<compile_context>
chip_gen: v7x
topology: tpu7x:2x2x1
jax: 0.10.0
libtpu: 0.0.40
codegen_flags: <defaults>
</compile_context>

<pallas_src>
import jax
import jax.numpy as jnp
from jax.experimental import pallas as pl
from jax.experimental.pallas import tpu as pltpu


def _fold_bn(gamma, beta, mean, var, eps=1e-5):
    scale = gamma / jnp.sqrt(var + eps)
    bias = beta - mean * scale
    return scale, bias


def _make_kernel(has_projection, H, W, Cp):
    HW = H * W
    base = W + 1             # first interior row of the padded (P, C) layout
    P = HW + 2 * W + 2       # total padded rows

    def _conv3x3(load_rows, w_ref, mask_ref):
        """3x3 conv as 9 tap matmuls over (H*W, Cin) row blocks (sublane shifts)."""
        acc = jnp.zeros((HW, Cp), jnp.float32)
        for dy in (-1, 0, 1):
            for dx in (-1, 0, 1):
                tap = (dy + 1) * 3 + (dx + 1)
                start = base + dy * W + dx                   # static python int
                contrib = jnp.dot(load_rows(start), w_ref[tap],
                                  preferred_element_type=jnp.float32)
                # mask out horizontal wrap-around (per output row -> exact)
                if dx == -1:
                    contrib = contrib * mask_ref[:, 0:1]
                elif dx == 1:
                    contrib = contrib * mask_ref[:, 1:2]
                acc = acc + contrib
        return acc

    def kernel(xp_ref, mask_ref, w1_ref, w2_ref, *rest):
        if has_projection:
            ws_ref, sb_ref, out_ref, pad_ref = rest
        else:
            sb_ref, out_ref, pad_ref = rest

        # ---- conv1 (3x3, pad 1) + folded BN1 + ReLU (f32 accumulate) ----
        acc1 = _conv3x3(lambda s: xp_ref[0, s:s + HW, :], w1_ref, mask_ref)
        out1 = jnp.maximum(acc1 * sb_ref[0:1, :] + sb_ref[1:2, :], 0.0)

        # ---- re-pad out1 for conv2: zero only the halo rows (cheap; done every
        #      step so it is safe under "parallel" grid sharding), interior is
        #      fully overwritten each step ----
        pad_ref[0:base, :] = jnp.zeros((base, Cp), pad_ref.dtype)
        pad_ref[base + HW:P, :] = jnp.zeros((P - base - HW, Cp), pad_ref.dtype)
        pad_ref[base:base + HW, :] = out1.astype(pad_ref.dtype)

        # ---- conv2 (3x3, pad 1) + folded BN2 ----
        acc2 = _conv3x3(lambda s: pad_ref[s:s + HW, :], w2_ref, mask_ref)
        out2 = acc2 * sb_ref[2:3, :] + sb_ref[3:4, :]

        # ---- shortcut ----
        x_center = xp_ref[0, base:base + HW, :]
        if has_projection:
            sc = jnp.dot(x_center, ws_ref[...], preferred_element_type=jnp.float32)
            sc = sc * sb_ref[4:5, :] + sb_ref[5:6, :]
        else:
            sc = x_center.astype(jnp.float32)     # identity: no matmul at all

        out_ref[0] = jnp.maximum(out2 + sc, 0.0).astype(out_ref.dtype)

    return kernel


def basic_block_pallas(x_nchw, params, eps=1e-5):
    N, Cin, H, W = x_nchw.shape
    HW = H * W
    P = HW + 2 * W + 2

    # PyTorch OIHW -> HWIO -> (9, Cin, Cout) raw tap weights (bf16 for the MXU)
    w1 = jnp.transpose(params["conv1_w"], (2, 3, 1, 0))          # (3,3,Cin,Cp)
    Cp = w1.shape[-1]
    w1t = w1.reshape(9, Cin, Cp).astype(jnp.bfloat16)
    w2t = (jnp.transpose(params["conv2_w"], (2, 3, 1, 0))
           .reshape(9, Cp, Cp).astype(jnp.bfloat16))

    s1, b1 = _fold_bn(params["bn1_gamma"], params["bn1_beta"],
                      params["bn1_mean"], params["bn1_var"], eps)
    s2, b2 = _fold_bn(params["bn2_gamma"], params["bn2_beta"],
                      params["bn2_mean"], params["bn2_var"], eps)

    has_projection = "sc_w" in params
    if has_projection:
        ws = params["sc_w"][:, :, 0, 0].T.astype(jnp.bfloat16)    # (Cin, Cp)
        ss, bs = _fold_bn(params["sc_gamma"], params["sc_beta"],
                          params["sc_mean"], params["sc_var"], eps)
    else:
        assert Cin == Cp, "identity shortcut requires in_planes == planes"
        ss = jnp.ones((Cp,), jnp.float32)
        bs = jnp.zeros((Cp,), jnp.float32)

    # pack the six per-channel scale/bias rows into one sublane-aligned tile
    sb = jnp.zeros((8, Cp), jnp.float32)
    sb = sb.at[0].set(s1).at[1].set(b1).at[2].set(s2).at[3].set(b2)
    sb = sb.at[4].set(ss).at[5].set(bs)

    # layout glue: NCHW -> (N, H*W, Cin) rows-x-channels with (W+1) zero halo rows
    x_rows = jnp.transpose(x_nchw, (0, 2, 3, 1)).reshape(N, HW, Cin)
    xp = jnp.pad(x_rows, ((0, 0), (W + 1, W + 1), (0, 0))).astype(jnp.bfloat16)

    # left/right edge masks for the row-shift wrap-around (dx = -1 / +1)
    xcol = jnp.arange(HW, dtype=jnp.int32) % W
    masks = jnp.stack([xcol > 0, xcol < W - 1], axis=1).astype(jnp.float32)

    kernel = _make_kernel(has_projection, H, W, Cp)

    inputs = [xp, masks, w1t, w2t]
    in_specs = [
        pl.BlockSpec((1, P, Cin), lambda n: (n, 0, 0)),
        pl.BlockSpec((HW, 2), lambda n: (0, 0)),
        pl.BlockSpec((9, Cin, Cp), lambda n: (0, 0, 0)),
        pl.BlockSpec((9, Cp, Cp), lambda n: (0, 0, 0)),
    ]
    if has_projection:
        inputs.append(ws)
        in_specs.append(pl.BlockSpec((Cin, Cp), lambda n: (0, 0)))
    inputs.append(sb)
    in_specs.append(pl.BlockSpec((8, Cp), lambda n: (0, 0)))

    out_rows = pl.pallas_call(
        kernel,
        out_shape=jax.ShapeDtypeStruct((N, HW, Cp), jnp.float32),
        grid_spec=pltpu.PrefetchScalarGridSpec(
            num_scalar_prefetch=0,
            grid=(N,),
            in_specs=in_specs,
            out_specs=pl.BlockSpec((1, HW, Cp), lambda n: (n, 0, 0)),
            scratch_shapes=[pltpu.VMEM((P, Cp), jnp.bfloat16)],
        ),
        compiler_params=pltpu.CompilerParams(
            dimension_semantics=("parallel",),
            vmem_limit_bytes=32 * 1024 * 1024,   # explicit budget, safe on v7x too
        ),
    )(*inputs)

    out = out_rows.reshape(N, H, W, Cp)
    return jnp.transpose(out, (0, 3, 1, 2))      # back to NCHW


def basic_block_ref(x_nchw, params, matmul_dtype=jnp.float32, eps=1e-5):
    """Plain-JAX reference; matmul_dtype=bf16 mirrors the kernel's MXU precision."""
    dn = ("NHWC", "HWIO", "NHWC")
    x = jnp.transpose(x_nchw, (0, 2, 3, 1)).astype(jnp.float32)
    xm = x.astype(matmul_dtype)
    w1 = jnp.transpose(params["conv1_w"], (2, 3, 1, 0)).astype(matmul_dtype)
    w2 = jnp.transpose(params["conv2_w"], (2, 3, 1, 0)).astype(matmul_dtype)
    s1, b1 = _fold_bn(params["bn1_gamma"], params["bn1_beta"],
                      params["bn1_mean"], params["bn1_var"], eps)
    s2, b2 = _fold_bn(params["bn2_gamma"], params["bn2_beta"],
                      params["bn2_mean"], params["bn2_var"], eps)
    y = jax.lax.conv_general_dilated(xm, w1, (1, 1), "SAME", dimension_numbers=dn,
                                     preferred_element_type=jnp.float32)
    y = jnp.maximum(y * s1 + b1, 0.0)
    y = jax.lax.conv_general_dilated(y.astype(matmul_dtype), w2, (1, 1), "SAME",
                                     dimension_numbers=dn,
                                     preferred_element_type=jnp.float32)
    y = y * s2 + b2
    if "sc_w" in params:
        ws = jnp.transpose(params["sc_w"], (2, 3, 1, 0)).astype(matmul_dtype)
        ss, bs = _fold_bn(params["sc_gamma"], params["sc_beta"],
                          params["sc_mean"], params["sc_var"], eps)
        sc = jax.lax.conv_general_dilated(xm, ws, (1, 1), "SAME",
                                          dimension_numbers=dn,
                                          preferred_element_type=jnp.float32)
        sc = sc * ss + bs
    else:
        sc = xm.astype(jnp.float32)
    y = jnp.maximum(y + sc, 0.0)
    return jnp.transpose(y, (0, 3, 1, 2))


def _make_params(key, in_planes, planes, projection):
    ks = jax.random.split(key, 16)
    p = {
        "conv1_w": jax.random.normal(ks[0], (planes, in_planes, 3, 3), jnp.float32) * 0.1,
        "bn1_gamma": jax.random.uniform(ks[1], (planes,), jnp.float32, 0.5, 1.5),
        "bn1_beta": jax.random.normal(ks[2], (planes,), jnp.float32) * 0.1,
        "bn1_mean": jax.random.normal(ks[3], (planes,), jnp.float32) * 0.1,
        "bn1_var": jax.random.uniform(ks[4], (planes,), jnp.float32, 0.5, 1.5),
        "conv2_w": jax.random.normal(ks[5], (planes, planes, 3, 3), jnp.float32) * 0.1,
        "bn2_gamma": jax.random.uniform(ks[6], (planes,), jnp.float32, 0.5, 1.5),
        "bn2_beta": jax.random.normal(ks[7], (planes,), jnp.float32) * 0.1,
        "bn2_mean": jax.random.normal(ks[8], (planes,), jnp.float32) * 0.1,
        "bn2_var": jax.random.uniform(ks[9], (planes,), jnp.float32, 0.5, 1.5),
    }
    if projection:
        p.update({
            "sc_w": jax.random.normal(ks[10], (planes, in_planes, 1, 1), jnp.float32) * 0.1,
            "sc_gamma": jax.random.uniform(ks[11], (planes,), jnp.float32, 0.5, 1.5),
            "sc_beta": jax.random.normal(ks[12], (planes,), jnp.float32) * 0.1,
            "sc_mean": jax.random.normal(ks[13], (planes,), jnp.float32) * 0.1,
            "sc_var": jax.random.uniform(ks[14], (planes,), jnp.float32, 0.5, 1.5),
        })
    return p


if __name__ == "__main__":
    key = jax.random.PRNGKey(0)
    k_proj, k_id, kx1, kx2 = jax.random.split(key, 4)

    # 1) projection-shortcut BasicBlock (in_planes != planes)
    N, Cin, H, W, planes = 2, 4, 16, 16, 8
    params = _make_params(k_proj, Cin, planes, projection=True)
    x = jax.random.normal(kx1, (N, Cin, H, W), jnp.float32)
    y = basic_block_pallas(x, params)
    jax.block_until_ready(y)
    assert y.shape == (N, planes, H, W), y.shape
    y_bf = basic_block_ref(x, params, matmul_dtype=jnp.bfloat16)   # matched precision
    y_f32 = basic_block_ref(x, params, matmul_dtype=jnp.float32)   # module semantics
    err_bf = float(jnp.max(jnp.abs(y - y_bf)))
    err_f32 = float(jnp.max(jnp.abs(y - y_f32)))
    assert err_bf < 5e-3, f"projection: max abs err vs matched-bf16 ref {err_bf}"
    assert err_f32 < 5e-2, f"projection: max abs err vs f32 ref {err_f32}"

    # 2) identity-shortcut BasicBlock (in_planes == planes) -- no shortcut matmul
    Cin2 = planes
    params_id = _make_params(k_id, Cin2, planes, projection=False)
    x2 = jax.random.normal(kx2, (N, Cin2, H, W), jnp.float32)
    y2 = basic_block_pallas(x2, params_id)
    jax.block_until_ready(y2)
    assert y2.shape == (N, planes, H, W), y2.shape
    y2_bf = basic_block_ref(x2, params_id, matmul_dtype=jnp.bfloat16)
    err2 = float(jnp.max(jnp.abs(y2 - y2_bf)))
    assert err2 < 5e-3, f"identity: max abs err vs matched-bf16 ref {err2}"

    print("KERNEL_OK")
</pallas_src>

<mosaic_0001>
module attributes {stable_mosaic.version = 11 : i64} {
  func.func @kernel(%arg0: i32, %arg1: memref<1x290x4xbf16, #tpu.memory_space<vmem>>, %arg2: memref<256x2xf32, #tpu.memory_space<vmem>>, %arg3: memref<9x4x8xbf16, #tpu.memory_space<vmem>>, %arg4: memref<9x8x8xbf16, #tpu.memory_space<vmem>>, %arg5: memref<4x8xbf16, #tpu.memory_space<vmem>>, %arg6: memref<8x8xf32, #tpu.memory_space<vmem>>, %arg7: memref<1x256x8xf32, #tpu.memory_space<vmem>>, %arg8: memref<290x8xbf16, #tpu.memory_space<vmem>>) attributes {dimension_semantics = [#tpu.dimension_semantics<parallel>], iteration_bounds = array<i64: 2>, scalar_prefetch = 0 : i64, scratch_operands = 1 : i64, tpu.core_type = #tpu.core_type<tc>, window_params = [{transform_indices = @transform_0, window_bounds = array<i64: 1, 290, 4>}, {pipeline_mode = #tpu.pipeline_mode<synchronous>, transform_indices = @transform_1, window_bounds = array<i64: 256, 2>}, {pipeline_mode = #tpu.pipeline_mode<synchronous>, transform_indices = @transform_2, window_bounds = array<i64: 9, 4, 8>}, {pipeline_mode = #tpu.pipeline_mode<synchronous>, transform_indices = @transform_3, window_bounds = array<i64: 9, 8, 8>}, {pipeline_mode = #tpu.pipeline_mode<synchronous>, transform_indices = @transform_4, window_bounds = array<i64: 4, 8>}, {pipeline_mode = #tpu.pipeline_mode<synchronous>, transform_indices = @transform_5, window_bounds = array<i64: 8, 8>}, {transform_indices = @transform_6, window_bounds = array<i64: 1, 256, 8>}]} {
    %cst = arith.constant 0.000000e+00 : f32
    %0 = vector.broadcast %cst : f32 to vector<256x8xf32>
    %c0 = arith.constant 0 : index
    %c0_0 = arith.constant 0 : index
    %c0_1 = arith.constant 0 : index
    %1 = vector.load %arg1[%c0, %c0_0, %c0_1] : memref<1x290x4xbf16, #tpu.memory_space<vmem>>, vector<1x256x4xbf16>
    %2 = vector.shape_cast %1 : vector<1x256x4xbf16> to vector<256x4xbf16>
    %c0_2 = arith.constant 0 : index
    %c0_3 = arith.constant 0 : index
    %c0_4 = arith.constant 0 : index
    %3 = vector.load %arg3[%c0_2, %c0_3, %c0_4] : memref<9x4x8xbf16, #tpu.memory_space<vmem>>, vector<1x4x8xbf16>
    %4 = vector.shape_cast %3 : vector<1x4x8xbf16> to vector<4x8xbf16>
    %cst_5 = arith.constant dense<0.000000e+00> : vector<256x8xf32>
    %5 = tpu.matmul %2, %4, %cst_5 {dimension_numbers = #tpu.dot_dimension_numbers<[1], [0], [0], [1], [0, 0, 1, 1], [], []>} : vector<256x4xbf16>, vector<4x8xbf16>, vector<256x8xf32> -> vector<256x8xf32>
    %c0_6 = arith.constant 0 : index
    %c0_7 = arith.constant 0 : index
    %6 = vector.load %arg2[%c0_6, %c0_7] : memref<256x2xf32, #tpu.memory_space<vmem>>, vector<256x1xf32>
    %7 = vector.broadcast %6 : vector<256x1xf32> to vector<256x8xf32>
    %8 = arith.mulf %5, %7 : vector<256x8xf32>
    %9 = arith.addf %0, %8 : vector<256x8xf32>
    %c0_8 = arith.constant 0 : index
    %c1 = arith.constant 1 : index
    %c0_9 = arith.constant 0 : index
    %10 = vector.load %arg1[%c0_8, %c1, %c0_9] : memref<1x290x4xbf16, #tpu.memory_space<vmem>>, vector<1x256x4xbf16>
    %11 = vector.shape_cast %10 : vector<1x256x4xbf16> to vector<256x4xbf16>
    %c1_10 = arith.constant 1 : index
    %c0_11 = arith.constant 0 : index
    %c0_12 = arith.constant 0 : index
    %12 = vector.load %arg3[%c1_10, %c0_11, %c0_12] : memref<9x4x8xbf16, #tpu.memory_space<vmem>>, vector<1x4x8xbf16>
    %13 = vector.shape_cast %12 : vector<1x4x8xbf16> to vector<4x8xbf16>
    %cst_13 = arith.constant dense<0.000000e+00> : vector<256x8xf32>
    %14 = tpu.matmul %11, %13, %cst_13 {dimension_numbers = #tpu.dot_dimension_numbers<[1], [0], [0], [1], [0, 0, 1, 1], [], []>} : vector<256x4xbf16>, vector<4x8xbf16>, vector<256x8xf32> -> vector<256x8xf32>
    %15 = arith.addf %9, %14 : vector<256x8xf32>
    %c0_14 = arith.constant 0 : index
    %c2 = arith.constant 2 : index
    %c0_15 = arith.constant 0 : index
    %16 = vector.load %arg1[%c0_14, %c2, %c0_15] : memref<1x290x4xbf16, #tpu.memory_space<vmem>>, vector<1x256x4xbf16>
    %17 = vector.shape_cast %16 : vector<1x256x4xbf16> to vector<256x4xbf16>
    %c2_16 = arith.constant 2 : index
    %c0_17 = arith.constant 0 : index
    %c0_18 = arith.constant 0 : index
    %18 = vector.load %arg3[%c2_16, %c0_17, %c0_18] : memref<9x4x8xbf16, #tpu.memory_space<vmem>>, vector<1x4x8xbf16>
    %19 = vector.shape_cast %18 : vector<1x4x8xbf16> to vector<4x8xbf16>
    %cst_19 = arith.constant dense<0.000000e+00> : vector<256x8xf32>
    %20 = tpu.matmul %17, %19, %cst_19 {dimension_numbers = #tpu.dot_dimension_numbers<[1], [0], [0], [1], [0, 0, 1, 1], [], []>} : vector<256x4xbf16>, vector<4x8xbf16>, vector<256x8xf32> -> vector<256x8xf32>
    %c0_20 = arith.constant 0 : index
    %c1_21 = arith.constant 1 : index
    %21 = vector.load %arg2[%c0_20, %c1_21] : memref<256x2xf32, #tpu.memory_space<vmem>>, vector<256x1xf32>
    %22 = vector.broadcast %21 : vector<256x1xf32> to vector<256x8xf32>
    %23 = arith.mulf %20, %22 : vector<256x8xf32>
    %24 = arith.addf %15, %23 : vector<256x8xf32>
    %c0_22 = arith.constant 0 : index
    %c16 = arith.constant 16 : index
    %c0_23 = arith.constant 0 : index
    %25 = vector.load %arg1[%c0_22, %c16, %c0_23] : memref<1x290x4xbf16, #tpu.memory_space<vmem>>, vector<1x256x4xbf16>
    %26 = vector.shape_cast %25 : vector<1x256x4xbf16> to vector<256x4xbf16>
    %c3 = arith.constant 3 : index
    %c0_24 = arith.constant 0 : index
    %c0_25 = arith.constant 0 : index
    %27 = vector.load %arg3[%c3, %c0_24, %c0_25] : memref<9x4x8xbf16, #tpu.memory_space<vmem>>, vector<1x4x8xbf16>
    %28 = vector.shape_cast %27 : vector<1x4x8xbf16> to vector<4x8xbf16>
    %cst_26 = arith.constant dense<0.000000e+00> : vector<256x8xf32>
    %29 = tpu.matmul %26, %28, %cst_26 {dimension_numbers = #tpu.dot_dimension_numbers<[1], [0], [0], [1], [0, 0, 1, 1], [], []>} : vector<256x4xbf16>, vector<4x8xbf16>, vector<256x8xf32> -> vector<256x8xf32>
    %c0_27 = arith.constant 0 : index
    %c0_28 = arith.constant 0 : index
    %30 = vector.load %arg2[%c0_27, %c0_28] : memref<256x2xf32, #tpu.memory_space<vmem>>, vector<256x1xf32>
    %31 = vector.broadcast %30 : vector<256x1xf32> to vector<256x8xf32>
    %32 = arith.mulf %29, %31 : vector<256x8xf32>
    %33 = arith.addf %24, %32 : vector<256x8xf32>
    %c0_29 = arith.constant 0 : index
    %c17 = arith.constant 17 : index
    %c0_30 = arith.constant 0 : index
    %34 = vector.load %arg1[%c0_29, %c17, %c0_30] : memref<1x290x4xbf16, #tpu.memory_space<vmem>>, vector<1x256x4xbf16>
    %35 = vector.shape_cast %34 : vector<1x256x4xbf16> to vector<256x4xbf16>
    %c4 = arith.constant 4 : index
    %c0_31 = arith.constant 0 : index
    %c0_32 = arith.constant 0 : index
    %36 = vector.load %arg3[%c4, %c0_31, %c0_32] : memref<9x4x8xbf16, #tpu.memory_space<vmem>>, vector<1x4x8xbf16>
    %37 = vector.shape_cast %36 : vector<1x4x8xbf16> to vector<4x8xbf16>
    %cst_33 = arith.constant dense<0.000000e+00> : vector<256x8xf32>
    %38 = tpu.matmul %35, %37, %cst_33 {dimension_numbers = #tpu.dot_dimension_numbers<[1], [0], [0], [1], [0, 0, 1, 1], [], []>} : vector<256x4xbf16>, vector<4x8xbf16>, vector<256x8xf32> -> vector<256x8xf32>
    %39 = arith.addf %33, %38 : vector<256x8xf32>
    %c0_34 = arith.constant 0 : index
    %c18 = arith.constant 18 : index
    %c0_35 = arith.constant 0 : index
    %40 = vector.load %arg1[%c0_34, %c18, %c0_35] : memref<1x290x4xbf16, #tpu.memory_space<vmem>>, vector<1x256x4xbf16>
    %41 = vector.shape_cast %40 : vector<1x256x4xbf16> to vector<256x4xbf16>
    %c5 = arith.constant 5 : index
    %c0_36 = arith.constant 0 : index
    %c0_37 = arith.constant 0 : index
    %42 = vector.load %arg3[%c5, %c0_36, %c0_37] : memref<9x4x8xbf16, #tpu.memory_space<vmem>>, vector<1x4x8xbf16>
    %43 = vector.shape_cast %42 : vector<1x4x8xbf16> to vector<4x8xbf16>
    %cst_38 = arith.constant dense<0.000000e+00> : vector<256x8xf32>
    %44 = tpu.matmul %41, %43, %cst_38 {dimension_numbers = #tpu.dot_dimension_numbers<[1], [0], [0], [1], [0, 0, 1, 1], [], []>} : vector<256x4xbf16>, vector<4x8xbf16>, vector<256x8xf32> -> vector<256x8xf32>
    %c0_39 = arith.constant 0 : index
    %c1_40 = arith.constant 1 : index
    %45 = vector.load %arg2[%c0_39, %c1_40] : memref<256x2xf32, #tpu.memory_space<vmem>>, vector<256x1xf32>
    %46 = vector.broadcast %45 : vector<256x1xf32> to vector<256x8xf32>
    %47 = arith.mulf %44, %46 : vector<256x8xf32>
    %48 = arith.addf %39, %47 : vector<256x8xf32>
    %c0_41 = arith.constant 0 : index
    %c32 = arith.constant 32 : index
    %c0_42 = arith.constant 0 : index
    %49 = vector.load %arg1[%c0_41, %c32, %c0_42] : memref<1x290x4xbf16, #tpu.memory_space<vmem>>, vector<1x256x4xbf16>
    %50 = vector.shape_cast %49 : vector<1x256x4xbf16> to vector<256x4xbf16>
    %c6 = arith.constant 6 : index
    %c0_43 = arith.constant 0 : index
    %c0_44 = arith.constant 0 : index
    %51 = vector.load %arg3[%c6, %c0_43, %c0_44] : memref<9x4x8xbf16, #tpu.memory_space<vmem>>, vector<1x4x8xbf16>
    %52 = vector.shape_cast %51 : vector<1x4x8xbf16> to vector<4x8xbf16>
    %cst_45 = arith.constant dense<0.000000e+00> : vector<256x8xf32>
    %53 = tpu.matmul %50, %52, %cst_45 {dimension_numbers = #tpu.dot_dimension_numbers<[1], [0], [0], [1], [0, 0, 1, 1], [], []>} : vector<256x4xbf16>, vector<4x8xbf16>, vector<256x8xf32> -> vector<256x8xf32>
    %c0_46 = arith.constant 0 : index
    %c0_47 = arith.constant 0 : index
    %54 = vector.load %arg2[%c0_46, %c0_47] : memref<256x2xf32, #tpu.memory_space<vmem>>, vector<256x1xf32>
    %55 = vector.broadcast %54 : vector<256x1xf32> to vector<256x8xf32>
    %56 = arith.mulf %53, %55 : vector<256x8xf32>
    %57 = arith.addf %48, %56 : vector<256x8xf32>
    %c0_48 = arith.constant 0 : index
    %c33 = arith.constant 33 : index
    %c0_49 = arith.constant 0 : index
    %58 = vector.load %arg1[%c0_48, %c33, %c0_49] : memref<1x290x4xbf16, #tpu.memory_space<vmem>>, vector<1x256x4xbf16>
    %59 = vector.shape_cast %58 : vector<1x256x4xbf16> to vector<256x4xbf16>
    %c7 = arith.constant 7 : index
    %c0_50 = arith.constant 0 : index
    %c0_51 = arith.constant 0 : index
    %60 = vector.load %arg3[%c7, %c0_50, %c0_51] : memref<9x4x8xbf16, #tpu.memory_space<vmem>>, vector<1x4x8xbf16>
    %61 = vector.shape_cast %60 : vector<1x4x8xbf16> to vector<4x8xbf16>
    %cst_52 = arith.constant dense<0.000000e+00> : vector<256x8xf32>
    %62 = tpu.matmul %59, %61, %cst_52 {dimension_numbers = #tpu.dot_dimension_numbers<[1], [0], [0], [1], [0, 0, 1, 1], [], []>} : vector<256x4xbf16>, vector<4x8xbf16>, vector<256x8xf32> -> vector<256x8xf32>
    %63 = arith.addf %57, %62 : vector<256x8xf32>
    %c0_53 = arith.constant 0 : index
    %c34 = arith.constant 34 : index
    %c0_54 = arith.constant 0 : index
    %64 = vector.load %arg1[%c0_53, %c34, %c0_54] : memref<1x290x4xbf16, #tpu.memory_space<vmem>>, vector<1x256x4xbf16>
    %65 = vector.shape_cast %64 : vector<1x256x4xbf16> to vector<256x4xbf16>
    %c8 = arith.constant 8 : index
    %c0_55 = arith.constant 0 : index
    %c0_56 = arith.constant 0 : index
    %66 = vector.load %arg3[%c8, %c0_55, %c0_56] : memref<9x4x8xbf16, #tpu.memory_space<vmem>>, vector<1x4x8xbf16>
    %67 = vector.shape_cast %66 : vector<1x4x8xbf16> to vector<4x8xbf16>
    %cst_57 = arith.constant dense<0.000000e+00> : vector<256x8xf32>
    %68 = tpu.matmul %65, %67, %cst_57 {dimension_numbers = #tpu.dot_dimension_numbers<[1], [0], [0], [1], [0, 0, 1, 1], [], []>} : vector<256x4xbf16>, vector<4x8xbf16>, vector<256x8xf32> -> vector<256x8xf32>
    %c0_58 = arith.constant 0 : index
    %c1_59 = arith.constant 1 : index
    %69 = vector.load %arg2[%c0_58, %c1_59] : memref<256x2xf32, #tpu.memory_space<vmem>>, vector<256x1xf32>
    %70 = vector.broadcast %69 : vector<256x1xf32> to vector<256x8xf32>
    %71 = arith.mulf %68, %70 : vector<256x8xf32>
    %72 = arith.addf %63, %71 : vector<256x8xf32>
    %c0_60 = arith.constant 0 : index
    %c0_61 = arith.constant 0 : index
    %73 = vector.load %arg6[%c0_60, %c0_61] : memref<8x8xf32, #tpu.memory_space<vmem>>, vector<1x8xf32>
    %74 = vector.broadcast %73 : vector<1x8xf32> to vector<256x8xf32>
    %75 = arith.mulf %72, %74 : vector<256x8xf32>
    %c1_62 = arith.constant 1 : index
    %c0_63 = arith.constant 0 : index
    %76 = vector.load %arg6[%c1_62, %c0_63] : memref<8x8xf32, #tpu.memory_space<vmem>>, vector<1x8xf32>
    %77 = vector.broadcast %76 : vector<1x8xf32> to vector<256x8xf32>
    %78 = arith.addf %75, %77 : vector<256x8xf32>
    %cst_64 = arith.constant 0.000000e+00 : f32
    %79 = vector.broadcast %cst_64 : f32 to vector<256x8xf32>
    %80 = arith.maximumf %78, %79 : vector<256x8xf32>
    %cst_65 = arith.constant 0.000000e+00 : bf16
    %81 = vector.broadcast %cst_65 : bf16 to vector<17x8xbf16>
    %c0_66 = arith.constant 0 : index
    %c0_67 = arith.constant 0 : index
    %82 = vector.load %arg8[%c0_66, %c0_67] : memref<290x8xbf16, #tpu.memory_space<vmem>>, vector<17x8xbf16>
    tpu.vector_store %arg8[%c0_66, %c0_67], %81 {strides = array<i32>} : memref<290x8xbf16, #tpu.memory_space<vmem>>, vector<17x8xbf16>,
    %cst_68 = arith.constant 0.000000e+00 : bf16
    %83 = vector.broadcast %cst_68 : bf16 to vector<17x8xbf16>
    %c273 = arith.constant 273 : index
    %c0_69 = arith.constant 0 : index
    %84 = vector.load %arg8[%c273, %c0_69] : memref<290x8xbf16, #tpu.memory_space<vmem>>, vector<17x8xbf16>
    tpu.vector_store %arg8[%c273, %c0_69], %83 {strides = array<i32>} : memref<290x8xbf16, #tpu.memory_space<vmem>>, vector<17x8xbf16>,
    %85 = arith.truncf %80 : vector<256x8xf32> to vector<256x8xbf16>
    %c17_70 = arith.constant 17 : index
    %c0_71 = arith.constant 0 : index
    %86 = vector.load %arg8[%c17_70, %c0_71] : memref<290x8xbf16, #tpu.memory_space<vmem>>, vector<256x8xbf16>
    tpu.vector_store %arg8[%c17_70, %c0_71], %85 {strides = array<i32>} : memref<290x8xbf16, #tpu.memory_space<vmem>>, vector<256x8xbf16>,
    %cst_72 = arith.constant 0.000000e+00 : f32
    %87 = vector.broadcast %cst_72 : f32 to vector<256x8xf32>
    %c0_73 = arith.constant 0 : index
    %c0_74 = arith.constant 0 : index
    %88 = vector.load %arg8[%c0_73, %c0_74] : memref<290x8xbf16, #tpu.memory_space<vmem>>, vector<256x8xbf16>
    %c0_75 = arith.constant 0 : index
    %c0_76 = arith.constant 0 : index
    %c0_77 = arith.constant 0 : index
    %89 = vector.load %arg4[%c0_75, %c0_76, %c0_77] : memref<9x8x8xbf16, #tpu.memory_space<vmem>>, vector<1x8x8xbf16>
    %90 = vector.shape_cast %89 : vector<1x8x8xbf16> to vector<8x8xbf16>
    %cst_78 = arith.constant dense<0.000000e+00> : vector<256x8xf32>
    %91 = tpu.matmul %88, %90, %cst_78 {dimension_numbers = #tpu.dot_dimension_numbers<[1], [0], [0], [1], [0, 0, 1, 1], [], []>} : vector<256x8xbf16>, vector<8x8xbf16>, vector<256x8xf32> -> vector<256x8xf32>
    %c0_79 = arith.constant 0 : index
    %c0_80 = arith.constant 0 : index
    %92 = vector.load %arg2[%c0_79, %c0_80] : memref<256x2xf32, #tpu.memory_space<vmem>>, vector<256x1xf32>
    %93 = vector.broadcast %92 : vector<256x1xf32> to vector<256x8xf32>
    %94 = arith.mulf %91, %93 : vector<256x8xf32>
    %95 = arith.addf %87, %94 : vector<256x8xf32>
    %c1_81 = arith.constant 1 : index
    %c0_82 = arith.constant 0 : index
    %96 = vector.load %arg8[%c1_81, %c0_82] : memref<290x8xbf16, #tpu.memory_space<vmem>>, vector<256x8xbf16>
    %c1_83 = arith.constant 1 : index
    %c0_84 = arith.constant 0 : index
    %c0_85 = arith.constant 0 : index
    %97 = vector.load %arg4[%c1_83, %c0_84, %c0_85] : memref<9x8x8xbf16, #tpu.memory_space<vmem>>, vector<1x8x8xbf16>
    %98 = vector.shape_cast %97 : vector<1x8x8xbf16> to vector<8x8xbf16>
    %cst_86 = arith.constant dense<0.000000e+00> : vector<256x8xf32>
    %99 = tpu.matmul %96, %98, %cst_86 {dimension_numbers = #tpu.dot_dimension_numbers<[1], [0], [0], [1], [0, 0, 1, 1], [], []>} : vector<256x8xbf16>, vector<8x8xbf16>, vector<256x8xf32> -> vector<256x8xf32>
    %100 = arith.addf %95, %99 : vector<256x8xf32>
    %c2_87 = arith.constant 2 : index
    %c0_88 = arith.constant 0 : index
    %101 = vector.load %arg8[%c2_87, %c0_88] : memref<290x8xbf16, #tpu.memory_space<vmem>>, vector<256x8xbf16>
    %c2_89 = arith.constant 2 : index
    %c0_90 = arith.constant 0 : index
    %c0_91 = arith.constant 0 : index
    %102 = vector.load %arg4[%c2_89, %c0_90, %c0_91] : memref<9x8x8xbf16, #tpu.memory_space<vmem>>, vector<1x8x8xbf16>
    %103 = vector.shape_cast %102 : vector<1x8x8xbf16> to vector<8x8xbf16>
    %cst_92 = arith.constant dense<0.000000e+00> : vector<256x8xf32>
    %104 = tpu.matmul %101, %103, %cst_92 {dimension_numbers = #tpu.dot_dimension_numbers<[1], [0], [0], [1], [0, 0, 1, 1], [], []>} : vector<256x8xbf16>, vector<8x8xbf16>, vector<256x8xf32> -> vector<256x8xf32>
    %c0_93 = arith.constant 0 : index
    %c1_94 = arith.constant 1 : index
    %105 = vector.load %arg2[%c0_93, %c1_94] : memref<256x2xf32, #tpu.memory_space<vmem>>, vector<256x1xf32>
    %106 = vector.broadcast %105 : vector<256x1xf32> to vector<256x8xf32>
    %107 = arith.mulf %104, %106 : vector<256x8xf32>
    %108 = arith.addf %100, %107 : vector<256x8xf32>
    %c16_95 = arith.constant 16 : index
    %c0_96 = arith.constant 0 : index
    %109 = vector.load %arg8[%c16_95, %c0_96] : memref<290x8xbf16, #tpu.memory_space<vmem>>, vector<256x8xbf16>
    %c3_97 = arith.constant 3 : index
    %c0_98 = arith.constant 0 : index
    %c0_99 = arith.constant 0 : index
    %110 = vector.load %arg4[%c3_97, %c0_98, %c0_99] : memref<9x8x8xbf16, #tpu.memory_space<vmem>>, vector<1x8x8xbf16>
    %111 = vector.shape_cast %110 : vector<1x8x8xbf16> to vector<8x8xbf16>
    %cst_100 = arith.constant dense<0.000000e+00> : vector<256x8xf32>
    %112 = tpu.matmul %109, %111, %cst_100 {dimension_numbers = #tpu.dot_dimension_numbers<[1], [0], [0], [1], [0, 0, 1, 1], [], []>} : vector<256x8xbf16>, vector<8x8xbf16>, vector<256x8xf32> -> vector<256x8xf32>
    %c0_101 = arith.constant 0 : index
    %c0_102 = arith.constant 0 : index
    %113 = vector.load %arg2[%c0_101, %c0_102] : memref<256x2xf32, #tpu.memory_space<vmem>>, vector<256x1xf32>
    %114 = vector.broadcast %113 : vector<256x1xf32> to vector<256x8xf32>
    %115 = arith.mulf %112, %114 : vector<256x8xf32>
    %116 = arith.addf %108, %115 : vector<256x8xf32>
    %c17_103 = arith.constant 17 : index
    %c0_104 = arith.constant 0 : index
    %117 = vector.load %arg8[%c17_103, %c0_104] : memref<290x8xbf16, #tpu.memory_space<vmem>>, vector<256x8xbf16>
    %c4_105 = arith.constant 4 : index
    %c0_106 = arith.constant 0 : index
    %c0_107 = arith.constant 0 : index
    %118 = vector.load %arg4[%c4_105, %c0_106, %c0_107] : memref<9x8x8xbf16, #tpu.memory_space<vmem>>, vector<1x8x8xbf16>
    %119 = vector.shape_cast %118 : vector<1x8x8xbf16> to vector<8x8xbf16>
    %cst_108 = arith.constant dense<0.000000e+00> : vector<256x8xf32>
    %120 = tpu.matmul %117, %119, %cst_108 {dimension_numbers = #tpu.dot_dimension_numbers<[1], [0], [0], [1], [0, 0, 1, 1], [], []>} : vector<256x8xbf16>, vector<8x8xbf16>, vector<256x8xf32> -> vector<256x8xf32>
    %121 = arith.addf %116, %120 : vector<256x8xf32>
    %c18_109 = arith.constant 18 : index
    %c0_110 = arith.constant 0 : index
    %122 = vector.load %arg8[%c18_109, %c0_110] : memref<290x8xbf16, #tpu.memory_space<vmem>>, vector<256x8xbf16>
    %c5_111 = arith.constant 5 : index
    %c0_112 = arith.constant 0 : index
    %c0_113 = arith.constant 0 : index
    %123 = vector.load %arg4[%c5_111, %c0_112, %c0_113] : memref<9x8x8xbf16, #tpu.memory_space<vmem>>, vector<1x8x8xbf16>
    %124 = vector.shape_cast %123 : vector<1x8x8xbf16> to vector<8x8xbf16>
    %cst_114 = arith.constant dense<0.000000e+00> : vector<256x8xf32>
    %125 = tpu.matmul %122, %124, %cst_114 {dimension_numbers = #tpu.dot_dimension_numbers<[1], [0], [0], [1], [0, 0, 1, 1], [], []>} : vector<256x8xbf16>, vector<8x8xbf16>, vector<256x8xf32> -> vector<256x8xf32>
    %c0_115 = arith.constant 0 : index
    %c1_116 = arith.constant 1 : index
    %126 = vector.load %arg2[%c0_115, %c1_116] : memref<256x2xf32, #tpu.memory_space<vmem>>, vector<256x1xf32>
    %127 = vector.broadcast %126 : vector<256x1xf32> to vector<256x8xf32>
    %128 = arith.mulf %125, %127 : vector<256x8xf32>
    %129 = arith.addf %121, %128 : vector<256x8xf32>
    %c32_117 = arith.constant 32 : index
    %c0_118 = arith.constant 0 : index
    %130 = vector.load %arg8[%c32_117, %c0_118] : memref<290x8xbf16, #tpu.memory_space<vmem>>, vector<256x8xbf16>
    %c6_119 = arith.constant 6 : index
    %c0_120 = arith.constant 0 : index
    %c0_121 = arith.constant 0 : index
    %131 = vector.load %arg4[%c6_119, %c0_120, %c0_121] : memref<9x8x8xbf16, #tpu.memory_space<vmem>>, vector<1x8x8xbf16>
    %132 = vector.shape_cast %131 : vector<1x8x8xbf16> to vector<8x8xbf16>
    %cst_122 = arith.constant dense<0.000000e+00> : vector<256x8xf32>
    %133 = tpu.matmul %130, %132, %cst_122 {dimension_numbers = #tpu.dot_dimension_numbers<[1], [0], [0], [1], [0, 0, 1, 1], [], []>} : vector<256x8xbf16>, vector<8x8xbf16>, vector<256x8xf32> -> vector<256x8xf32>
    %c0_123 = arith.constant 0 : index
    %c0_124 = arith.constant 0 : index
    %134 = vector.load %arg2[%c0_123, %c0_124] : memref<256x2xf32, #tpu.memory_space<vmem>>, vector<256x1xf32>
    %135 = vector.broadcast %134 : vector<256x1xf32> to vector<256x8xf32>
    %136 = arith.mulf %133, %135 : vector<256x8xf32>
    %137 = arith.addf %129, %136 : vector<256x8xf32>
    %c33_125 = arith.constant 33 : index
    %c0_126 = arith.constant 0 : index
    %138 = vector.load %arg8[%c33_125, %c0_126] : memref<290x8xbf16, #tpu.memory_space<vmem>>, vector<256x8xbf16>
    %c7_127 = arith.constant 7 : index
    %c0_128 = arith.constant 0 : index
    %c0_129 = arith.constant 0 : index
    %139 = vector.load %arg4[%c7_127, %c0_128, %c0_129] : memref<9x8x8xbf16, #tpu.memory_space<vmem>>, vector<1x8x8xbf16>
    %140 = vector.shape_cast %139 : vector<1x8x8xbf16> to vector<8x8xbf16>
    %cst_130 = arith.constant dense<0.000000e+00> : vector<256x8xf32>
    %141 = tpu.matmul %138, %140, %cst_130 {dimension_numbers = #tpu.dot_dimension_numbers<[1], [0], [0], [1], [0, 0, 1, 1], [], []>} : vector<256x8xbf16>, vector<8x8xbf16>, vector<256x8xf32> -> vector<256x8xf32>
    %142 = arith.addf %137, %141 : vector<256x8xf32>
    %c34_131 = arith.constant 34 : index
    %c0_132 = arith.constant 0 : index
    %143 = vector.load %arg8[%c34_131, %c0_132] : memref<290x8xbf16, #tpu.memory_space<vmem>>, vector<256x8xbf16>
    %c8_133 = arith.constant 8 : index
    %c0_134 = arith.constant 0 : index
    %c0_135 = arith.constant 0 : index
    %144 = vector.load %arg4[%c8_133, %c0_134, %c0_135] : memref<9x8x8xbf16, #tpu.memory_space<vmem>>, vector<1x8x8xbf16>
    %145 = vector.shape_cast %144 : vector<1x8x8xbf16> to vector<8x8xbf16>
    %cst_136 = arith.constant dense<0.000000e+00> : vector<256x8xf32>
    %146 = tpu.matmul %143, %145, %cst_136 {dimension_numbers = #tpu.dot_dimension_numbers<[1], [0], [0], [1], [0, 0, 1, 1], [], []>} : vector<256x8xbf16>, vector<8x8xbf16>, vector<256x8xf32> -> vector<256x8xf32>
    %c0_137 = arith.constant 0 : index
    %c1_138 = arith.constant 1 : index
    %147 = vector.load %arg2[%c0_137, %c1_138] : memref<256x2xf32, #tpu.memory_space<vmem>>, vector<256x1xf32>
    %148 = vector.broadcast %147 : vector<256x1xf32> to vector<256x8xf32>
    %149 = arith.mulf %146, %148 : vector<256x8xf32>
    %150 = arith.addf %142, %149 : vector<256x8xf32>
    %c2_139 = arith.constant 2 : index
    %c0_140 = arith.constant 0 : index
    %151 = vector.load %arg6[%c2_139, %c0_140] : memref<8x8xf32, #tpu.memory_space<vmem>>, vector<1x8xf32>
    %152 = vector.broadcast %151 : vector<1x8xf32> to vector<256x8xf32>
    %153 = arith.mulf %150, %152 : vector<256x8xf32>
    %c3_141 = arith.constant 3 : index
    %c0_142 = arith.constant 0 : index
    %154 = vector.load %arg6[%c3_141, %c0_142] : memref<8x8xf32, #tpu.memory_space<vmem>>, vector<1x8xf32>
    %155 = vector.broadcast %154 : vector<1x8xf32> to vector<256x8xf32>
    %156 = arith.addf %153, %155 : vector<256x8xf32>
    %c0_143 = arith.constant 0 : index
    %c17_144 = arith.constant 17 : index
    %c0_145 = arith.constant 0 : index
    %157 = vector.load %arg1[%c0_143, %c17_144, %c0_145] : memref<1x290x4xbf16, #tpu.memory_space<vmem>>, vector<1x256x4xbf16>
    %158 = vector.shape_cast %157 : vector<1x256x4xbf16> to vector<256x4xbf16>
    %c0_146 = arith.constant 0 : index
    %c0_147 = arith.constant 0 : index
    %159 = vector.load %arg5[%c0_146, %c0_147] : memref<4x8xbf16, #tpu.memory_space<vmem>>, vector<4x8xbf16>
    %cst_148 = arith.constant dense<0.000000e+00> : vector<256x8xf32>
    %160 = tpu.matmul %158, %159, %cst_148 {dimension_numbers = #tpu.dot_dimension_numbers<[1], [0], [0], [1], [0, 0, 1, 1], [], []>} : vector<256x4xbf16>, vector<4x8xbf16>, vector<256x8xf32> -> vector<256x8xf32>
    %c4_149 = arith.constant 4 : index
    %c0_150 = arith.constant 0 : index
    %161 = vector.load %arg6[%c4_149, %c0_150] : memref<8x8xf32, #tpu.memory_space<vmem>>, vector<1x8xf32>
    %162 = vector.broadcast %161 : vector<1x8xf32> to vector<256x8xf32>
    %163 = arith.mulf %160, %162 : vector<256x8xf32>
    %c5_151 = arith.constant 5 : index
    %c0_152 = arith.constant 0 : index
    %164 = vector.load %arg6[%c5_151, %c0_152] : memref<8x8xf32, #tpu.memory_space<vmem>>, vector<1x8xf32>
    %165 = vector.broadcast %164 : vector<1x8xf32> to vector<256x8xf32>
    %166 = arith.addf %163, %165 : vector<256x8xf32>
    %167 = arith.addf %156, %166 : vector<256x8xf32>
    %cst_153 = arith.constant 0.000000e+00 : f32
    %168 = vector.broadcast %cst_153 : f32 to vector<256x8xf32>
    %169 = arith.maximumf %167, %168 : vector<256x8xf32>
    %c0_154 = arith.constant 0 : index
    %c0_155 = arith.constant 0 : index
    %c0_156 = arith.constant 0 : index
    %170 = vector.load %arg7[%c0_154, %c0_155, %c0_156] : memref<1x256x8xf32, #tpu.memory_space<vmem>>, vector<1x256x8xf32>
    %171 = vector.shape_cast %170 : vector<1x256x8xf32> to vector<256x8xf32>
    %172 = vector.shape_cast %169 : vector<256x8xf32> to vector<1x256x8xf32>
    tpu.vector_store %arg7[%c0_154, %c0_155, %c0_156], %172 {strides = array<i32>} : memref<1x256x8xf32, #tpu.memory_space<vmem>>, vector<1x256x8xf32>,
    return
  }
  func.func @transform_0(%arg0: i32) -> (i32, i32, i32) {
    %c0_i32 = arith.constant 0 : i32
    %c0_i32_0 = arith.constant 0 : i32
    %c0_i32_1 = arith.constant 0 : i32
    return %arg0, %c0_i32, %c0_i32_0 : i32, i32, i32
  }
  func.func @transform_1(%arg0: i32) -> (i32, i32) {
    %c0_i32 = arith.constant 0 : i32
    %c0_i32_0 = arith.constant 0 : i32
    %c0_i32_1 = arith.constant 0 : i32
    return %c0_i32, %c0_i32_0 : i32, i32
  }
  func.func @transform_2(%arg0: i32) -> (i32, i32, i32) {
    %c0_i32 = arith.constant 0 : i32
    %c0_i32_0 = arith.constant 0 : i32
    %c0_i32_1 = arith.constant 0 : i32
    %c0_i32_2 = arith.constant 0 : i32
    return %c0_i32, %c0_i32_0, %c0_i32_1 : i32, i32, i32
  }
  func.func @transform_3(%arg0: i32) -> (i32, i32, i32) {
    %c0_i32 = arith.constant 0 : i32
    %c0_i32_0 = arith.constant 0 : i32
    %c0_i32_1 = arith.constant 0 : i32
    %c0_i32_2 = arith.constant 0 : i32
    return %c0_i32, %c0_i32_0, %c0_i32_1 : i32, i32, i32
  }
  func.func @transform_4(%arg0: i32) -> (i32, i32) {
    %c0_i32 = arith.constant 0 : i32
    %c0_i32_0 = arith.constant 0 : i32
    %c0_i32_1 = arith.constant 0 : i32
    return %c0_i32, %c0_i32_0 : i32, i32
  }
  func.func @transform_5(%arg0: i32) -> (i32, i32) {
    %c0_i32 = arith.constant 0 : i32
    %c0_i32_0 = arith.constant 0 : i32
    %c0_i32_1 = arith.constant 0 : i32
    return %c0_i32, %c0_i32_0 : i32, i32
  }
  func.func @transform_6(%arg0: i32) -> (i32, i32, i32) {
    %c0_i32 = arith.constant 0 : i32
    %c0_i32_0 = arith.constant 0 : i32
    %c0_i32_1 = arith.constant 0 : i32
    return %arg0, %c0_i32, %c0_i32_0 : i32, i32, i32
  }
}

</mosaic_0001>

<bundles_post_ra>
// kernel: tpu_custom_call.1
= control target key start
LH: loop header
LB: loop body
LE: loop exit
PB: predicated region body
PF: predicated region fallthrough
CT: control target
= control target key end

     0   :  { %s11819_s21 = smov 0   ;;  %s15498_s0 = inlined_call_operand.vmem [shape: bf16[2,290,4], index: 0, kind: input, shape index: {}]   ;;  %s15499_s1 = inlined_call_operand.vmem [shape: f32[256,2], index: 1, kind: input, shape index: {}]   ;;  %s15500_s2 = inlined_call_operand.vmem [shape: bf16[9,4,8], index: 2, kind: input, shape index: {}]   ;;  %s15501_s3 = inlined_call_operand.vmem [shape: bf16[9,8,8], index: 3, kind: input, shape index: {}]   ;;  %s15502_s4 = inlined_call_operand.vmem [shape: bf16[4,8], index: 4, kind: input, shape index: {}]   ;;  %s15503_s5 = inlined_call_operand.vmem [shape: f32[8,8], index: 5, kind: input, shape index: {}]   ;;  %s15504_s6 = inlined_call_operand.vmem [shape: f32[2,256,8], index: 6, kind: output, shape index: {}]  }
   0x1 LB: > { %s9430_s22 = sadd.s32 4294967295, %s11780_s21   ;;  %p9434_p0 = scmp.ge.s32.totalorder %s11780_s21, 1  ;;  %s11780_s21 = sphi %s11819_s21, %s16_s21  }
   0x2   : > { %p212_p1 = scmp.lt.s32.totalorder %s11780_s21, 3 }
   0x4   : > { %p213_p2 = pnand %p9434_p0, %p212_p1 }
   0x6   : > { %216 = sbr.rel (%p213_p2) target bundleno = 1085 (0x43d), region = 44 }
   0xd   : > { %v11830_v0 = vld [vmem:[%s15499_s1] sm:$0xff]  ;;  %vm415_vm0 = vcmask 1041408   ;;  %v15505_v2 = vmov 1   ;;  %p242_p3 = scmp.lt.s32.totalorder %s9430_s22, 1  ;;  %v11849_v6 = vld [vmem:[%s15499_s1 + $0x8] sm:$0xff]  ;;  %v11856_v7 = vld [vmem:[%s15499_s1 + $0x10] sm:$0xff] }
   0xe   : > { %v285_v1 = vld [vmem:[%s15500_s2] sm:$0x3]  ;;  %11502 = vset.pattern.permute.xlu1 %v15505_v2  ;;  %v9470_v4 = vld [vmem:[%s15500_s2 + $0x2] sm:$0x3]  ;;  %v9504_v5 = vld [vmem:[%s15500_s2 + $0x4] sm:$0x3]  ;;  %11504 = vset.pattern.permute.xlu0 %v15505_v2 }
   0xf   : > { %11471 = vmatprep.subr.msk.bf16.mxu0 %vm415_vm0, %v285_v1  ;;  %v417_v3 = vsel %vm415_vm0, %v285_v1, 0  ;;  %1584 = vperm.xlu1 %11502, %v11830_v0   ;;  %s16171_s22 = smov (!%p242_p3, %s9430_s22), 1  ;;  %vm366_vm1 = vcmask 31744   ;;  %v583_v8 = vld [vmem:[%s15499_s1 + $0x18] sm:$0xff]  ;;  %v11875_v9 = vld [vmem:[%s15499_s1 + $0x30] sm:$0xff]  ;;  %v15506_v12 = vmov 0  }
  0x10   : > { %11472 = vmatprep.subr.msk.bf16.mxu1 %vm415_vm0, %v285_v1  ;;  %10376 = vmatpush3.bf16.msra.mxu0 %v417_v3  ;;  %s11491_s11 = smul.u32 148, %s16171_s22  ;;  %v1420_v14 = vsel %vm415_vm0, %v9504_v5, 0  ;;  %v1136_v16 = vsel %vm415_vm0, %v9470_v4, 0  ;;  %v11889_v17 = vld [vmem:[%s15499_s1 + $0x50] sm:$0xff]  ;;  %v11897_v19 = vld [vmem:[%s15500_s2 + $0x6] sm:$0x3] }
  0x11   : > { %11022 = vmatpush3.bf16.msra.mxu1 %v417_v3  ;;  %11474 = vmatprep.subr.msk.bf16.mxu0 %vm415_vm0, %v9504_v5  ;;  %v11905_v21 = vld [vmem:[%s15500_s2 + $0xa] sm:$0x3]  ;;  %v584_v24 = vld [vmem:[%s15499_s1 + $0x20] sm:$0xff]  ;;  %v11926_v27 = vld [vmem:[%s15499_s1 + $0x70] sm:$0xff]  ;;  %vm1337_vm2 = vcmask 1046528   ;;  %vm4914_vm4 = vcmask 1043456  }
  0x12   : > { %11473 = vmatprep.subr.msk.bf16.mxu1 %vm415_vm0, %v9470_v4  ;;  %1592 = vperm.xlu0 %11504, %v11856_v7   ;;  %s11867_s14 = scalar_lea.vmem %s15498_s0, %s11491_s11  ;;  %v11935_v29 = vld [vmem:[%s15499_s1 + $0x90] sm:$0xff]  ;;  %v11949_v39 = vld [vmem:[%s15499_s1 + $0x28] sm:$0xff]  ;;  %v587_v48 = vld [vmem:[%s15499_s1 + $0x38] sm:$0xff]  ;;  %vm954_vm3 = vsmask.f32 7424  ;;  %vm4282_vm5 = vcmask 57344  }
  0x13   : > { %1588 = vperm.xlu1 %11502, %v11849_v6   ;;  %v11536_v10 = vld [vmem:[%s11867_s14] sm:$0xff]   ;;  %v11538_v13 = vld [vmem:[%s11867_s14 + $0x8] sm:$0xff]   ;;  %v11540_v18 = vld [vmem:[%s11867_s14 + $0x10] sm:$0xff]   ;;  %vm4283_vm6 = vsmask.f32 256  ;;  %vm4279_vm8 = vcmask 60416  }
  0x14   : > { %v11537_v11 = vld [vmem:[%s11867_s14 + $0x40] sm:$0xff]   ;;  %10377 = vmatprep.mubr.msk.bf16.mxu0 %vm366_vm1, %v11536_v10  ;;  %v11539_v15 = vld [vmem:[%s11867_s14 + $0x48] sm:$0xff]   ;;  %v11541_v20 = vld [vmem:[%s11867_s14 + $0x50] sm:$0xff]   ;;  %vm4289_vm9 = vsmask.f32 7938  ;;  %vm4865_vm11 = vcmask 64512  }
  0x15   : > { %10393 = vmatprep.mubr.msk.bf16.mxu1 %vm366_vm1, %v11537_v11  ;;  %10378 = vmatmul.mubr.msk.bf16.vlgmr.msra.gmra.mrb[0].mxu0 %vm366_vm1, %v11538_v13  ;;  %v11542_v22 = vld [vmem:[%s11867_s14 + $0x18] sm:$0xff]   ;;  %v11544_v25 = vld [vmem:[%s11867_s14 + $0x20] sm:$0xff]   ;;  %v11546_v28 = vld [vmem:[%s11867_s14 + $0x28] sm:$0xff]   ;;  %vm4393_vm12 = vsmask.f32 4368  ;;  %s10019_s29 = sshll.u32 %s16171_s22, 8 }
  0x16   : > { %1608 = vperm.xlu0 %11504, %v11875_v9   ;;  %10394 = vmatmul.mubr.msk.bf16.vlgmr.msra.gmra.mrb[0].mxu1 %vm366_vm1, %v11539_v15  ;;  %v11543_v23 = vld [vmem:[%s11867_s14 + $0x58] sm:$0xff]   ;;  %v11545_v26 = vld [vmem:[%s11867_s14 + $0x60] sm:$0xff]   ;;  %v11547_v30 = vld [vmem:[%s11867_s14 + $0x68] sm:$0xff]   ;;  %s15274_s7 = scalar_lea.vmem %s15504_s6, %s10019_s29 }
  0x17   : > { %11503 = vset.pattern.permute.xlu1 %v15506_v12  ;;  %10444 = vmatpush3.bf16.msra.mxu0 %v1420_v14  ;;  %v11548_v31 = vld [vmem:[%s11867_s14 + $0x30] sm:$0xff]   ;;  %v836_v32 = vld [vmem:[%s11867_s14] sm:$0xf]  ;;  %v837_v33 = vld [vmem:[%s11867_s14 + $0x4] sm:$0xf]  ;;  %v2747_v14 = vsel %vm415_vm0, %v11905_v21, 0 }
  0x18   : > { %629 = vperm.xlu1 %11503, %v583_v8   ;;  %10410 = vmatpush3.bf16.msra.mxu1 %v1136_v16  ;;  %v9471_v34 = vcombine.low %v836_v32, %v837_v33  ;;  %v11553_v35 = vld [vmem:[%s11867_s14 + $0x8] sm:$0xff]   ;;  %v1331_v36 = vld [vmem:[%s11867_s14] sm:$0xe]  ;;  %v11549_v37 = vld [vmem:[%s11867_s14 + $0x70] sm:$0xff]   ;;  %v1938_v16 = vsel %vm415_vm0, %v11897_v19, 0 }
  0x19   : > { %10381 = vmatprep.mubr.msk.bf16.mxu0 %vm366_vm1, %v11540_v18  ;;  %10397 = vmatprep.mubr.msk.bf16.mxu1 %vm366_vm1, %v11541_v20  ;;  %v9505_v38 = vcombine.low %v1331_v36, %v837_v33  ;;  %v963_v42 = vshll.u32 %v11553_v35, 16  ;;  %v11956_v43 = vld [vmem:[%s15499_s1 + $0xb0] sm:$0xff]  ;;  %v1339_v47 = vrot.slane %v11553_v35, 1  ;;  %v11550_v52 = vld [vmem:[%s11867_s14 + $0x38] sm:$0xff]   ;;  %v967_v55 = vshrl.u32 %v11553_v35, 16  ;;  %v11557_v62 = vld [vmem:[%s11867_s14 + $0x20] sm:$0xff]  }
  0x1a   : > { %1624 = vperm.xlu0 %11504, %v11889_v17   ;;  %11475 = vmatprep.subr.msk.bf16.mxu1 %vm415_vm0, %v11897_v19  ;;  %v956_v40 = vshrl.u32 %v9471_v34, 16  ;;  %v958_v41 = vshll.u32 %v9471_v34, 16  ;;  %v11555_v45 = vld [vmem:[%s11867_s14 + $0x10] sm:$0xff]   ;;  %v11556_v53 = vld [vmem:[%s11867_s14 + $0x18] sm:$0xff]   ;;  %v11987_v3 = vld [vmem:[%s11867_s14 + $0x28] sm:$0xff]   ;;  %v987_v11 = vshll.u32 %v11557_v62, 16 }
  0x1b   : > { %11477 = vmatprep.subr.msk.bf16.mxu0 %vm415_vm0, %v11905_v21  ;;  %v1338_v46 = vrot.slane %v9505_v38, 1  ;;  %v965_v50 = vrot.slane %v963_v42, 1  ;;  %v11970_v51 = vld [vmem:[%s15499_s1 + $0xd0] sm:$0xff]  ;;  %v11551_v54 = vld [vmem:[%s11867_s14 + $0x78] sm:$0xff]   ;;  %v971_v57 = vshll.u32 %v11555_v45, 16  ;;  %v975_v59 = vshrl.u32 %v11555_v45, 16  ;;  %vm13074_vm7 = vmand %vm4282_vm5, %vm4283_vm6 }
  0x1c   : > { %11505 = vset.pattern.permute.xlu1 %v15505_v2  ;;  %v960_v44 = vrot.slane %v958_v41, 1  ;;  %v979_v60 = vshll.u32 %v11556_v53, 16  ;;  %v1341_v61 = vrot.slane %v11555_v45, 1  ;;  %v983_v15 = vshrl.u32 %v11556_v53, 16  ;;  %v588_v18 = vld [vmem:[%s15499_s1 + $0x40] sm:$0xff]  ;;  %v589_v41 = vld [vmem:[%s15499_s1 + $0x48] sm:$0xff]  ;;  %vm13099_vm10 = vmand %vm4279_vm8, %vm4289_vm9 }
  0x1d   : > { %1596 = vperm.xlu1 %11505, %v583_v8   ;;  %10382 = vmatmul.mubr.msk.bf16.gmra.mrb[4].mxu0 %vm366_vm1, %v11542_v22  ;;  %v1340_v56 = vsel %vm1337_vm2, %v1338_v46, %v1339_v47  ;;  %v969_v63 = vor.u32 %v967_v55, %v965_v50  ;;  %v973_v1 = vrot.slane %v971_v57, 1  ;;  %v1343_v8 = vrot.slane %v11556_v53, 1  ;;  %v12015_v34 = vld [vmem:[%s15500_s2 + $0x8] sm:$0x3]  ;;  %v11561_v45 = vld [vmem:[%s11867_s14 + $0x40] sm:$0xff]   ;;  %vm13434_vm13 = vmor %vm4283_vm6, %vm4393_vm12 }
  0x1e   : > { %10398 = vmatmul.mubr.msk.bf16.gmra.mrb[4].mxu1 %vm366_vm1, %v11543_v23  ;;  %10385 = vmatprep.mubr.msk.bf16.mxu0 %vm366_vm1, %v11544_v25  ;;  %v961_v49 = vor.u32 %v960_v44, %v956_v40  ;;  %v981_v5 = vrot.slane %v979_v60, 1  ;;  %v1342_v10 = vsel %vm1337_vm2, %v1339_v47, %v1341_v61  ;;  %v991_v20 = vshrl.u32 %v11557_v62, 16  ;;  %v12035_v46 = vld [vmem:[%s15500_s2 + $0xc] sm:$0x3] }
  0x1f   : > { %10401 = vmatprep.mubr.msk.bf16.mxu1 %vm366_vm1, %v11545_v26  ;;  %1640 = vperm.xlu0 %11504, %v11926_v27   ;;  %v977_v4 = vor.u32 %v975_v59, %v973_v1  ;;  %v974_v13 = vsel %vm954_vm3, %v969_v63, %v973_v1  ;;  %v1344_v21 = vsel %vm1337_vm2, %v1341_v61, %v1343_v8  ;;  %v989_v19 = vrot.slane %v987_v11, 1 }
  0x20   : > { %v966_v58 = vsel %vm954_vm3, %v961_v49, %v965_v50  ;;  %v1345_v23 = vrot.slane %v11557_v62, 1  ;;  %v985_v25 = vor.u32 %v983_v15, %v981_v5  ;;  %v1347_v26 = vrot.slane %v11987_v3, 1  ;;  %v11562_v50 = vld [vmem:[%s11867_s14 + $0x48] sm:$0xff]   ;;  %v11563_v62 = vld [vmem:[%s11867_s14 + $0x50] sm:$0xff]  }
  0x21   : > { %11506 = vset.pattern.permute.xlu1 %v15506_v12  ;;  %v982_v22 = vsel %vm954_vm3, %v977_v4, %v981_v5  ;;  %v1019_v55 = vshll.u32 %v11561_v45, 16  ;;  %v1023_v59 = vshrl.u32 %v11561_v45, 16  ;;  %v1353_v61 = vrot.slane %v11561_v45, 1  ;;  %v11564_v4 = vld [vmem:[%s11867_s14 + $0x58] sm:$0xff]  }
  0x22   : > { %634 = vperm.xlu1 %11506, %v584_v24   ;;  %v1346_v32 = vsel %vm1337_vm2, %v1343_v8, %v1345_v23  ;;  %v990_v35 = vsel %vm954_vm3, %v985_v25, %v989_v19  ;;  %v1348_v36 = vsel %vm1337_vm2, %v1345_v23, %v1347_v26  ;;  %v1355_v5 = vrot.slane %v11562_v50, 1  ;;  %v11566_v25 = vld [vmem:[%s11867_s14 + $0x68] sm:$0xff]   ;;  %v12088_v45 = vld [vmem:[%s11867_s14 + $0x78] sm:$0xff]  }
  0x23   : > { %1656 = vperm.xlu0 %11504, %v11935_v29   ;;  %v1021_v60 = vrot.slane %v1019_v55, 1  ;;  %v1039_v15 = vshrl.u32 %v11563_v62, 16  ;;  %v1075_v55 = vshll.u32 %v12088_v45, 16 }
  0x25   : > { %10386 = vmatmul.mubr.msk.bf16.gmra.mrb[8].mxu0 %vm366_vm1, %v11546_v28  ;;  %v993_v28 = vor.u32 %v991_v20, %v989_v19  ;;  %v1025_v1 = vor.u32 %v1023_v59, %v1021_v60  ;;  %v11565_v20 = vld [vmem:[%s11867_s14 + $0x60] sm:$0xff]   ;;  %v1359_v19 = vrot.slane %v11564_v4, 1  ;;  %v12110_v59 = vld [vmem:[%s11867_s14 + $0x38] sm:$0xff]  }
  0x26   : > { %11507 = vset.pattern.permute.xlu1 %v15505_v2  ;;  %10402 = vmatmul.mubr.msk.bf16.gmra.mrb[8].mxu1 %vm366_vm1, %v11547_v30 }
  0x27   : > { %1600 = vperm.xlu1 %11507, %v584_v24   ;;  %10389 = vmatprep.mubr.msk.bf16.mxu0 %vm366_vm1, %v11548_v31  ;;  %v11559_v24 = vld [vmem:[%s11867_s14 + $0x30] sm:$0xff]   ;;  %v11560_v31 = vld [vmem:[%s11867_s14 + $0x38] sm:$0xff]  }
  0x28   : > { %10405 = vmatprep.mubr.msk.bf16.mxu1 %vm366_vm1, %v11549_v37  ;;  %1672 = vperm.xlu0 %11504, %v11956_v43   ;;  %v1003_v33 = vshll.u32 %v11559_v24, 16  ;;  %v999_v37 = vshrl.u32 %v11987_v3, 16  ;;  %v1007_v38 = vshrl.u32 %v11559_v24, 16  ;;  %v1011_v40 = vshll.u32 %v11560_v31, 16 }
  0x29   : > { %v1349_v44 = vrot.slane %v11559_v24, 1 }
  0x2a   : > { %v1005_v42 = vrot.slane %v1003_v33, 1  ;;  %v1013_v49 = vrot.slane %v1011_v40, 1  ;;  %v1047_v33 = vshrl.u32 %v11564_v4, 16 }
  0x2b   : > { %1604 = vperm.xlu1 %11507, %v11949_v39   ;;  %v1350_v53 = vsel %vm1337_vm2, %v1347_v26, %v1349_v44 }
  0x2c   : > { %1688 = vperm.xlu0 %11504, %v11970_v51  }
  0x2d   : > { %10390 = vmatmul.mubr.msk.bf16.gmra.mrb[12].mxu0 %vm366_vm1, %v11550_v52  ;;  %v591_v52 = vld [vmem:[%s15499_s1 + $0x58] sm:$0xff] }
  0x2e   : > { %10406 = vmatmul.mubr.msk.bf16.gmra.mrb[12].mxu1 %vm366_vm1, %v11551_v54  ;;  %10445 = vmatprep.mubr.msk.bf16.mxu0 %vm366_vm1, %v1340_v56  ;;  %v1015_v54 = vshrl.u32 %v11560_v31, 16 }
  0x2f   : > { %11508 = vset.pattern.permute.xlu1 %v15506_v12  ;;  %10411 = vmatprep.mubr.msk.bf16.mxu1 %vm366_vm1, %v966_v58 }
  0x30   : > { %649 = vperm.xlu1 %11508, %v587_v48   ;;  %11529 = vset.pattern.permute.xlu0 %v15506_v12  ;;  %v1017_v63 = vor.u32 %v1015_v54, %v1013_v49 }
  0x31   : > { %614 = vperm.xlu0 %11529, %v11830_v0   ;;  %v995_v0 = vshll.u32 %v11987_v3, 16 }
  0x32   : > { %v1022_v11 = vsel %vm954_vm3, %v1017_v63, %v1021_v60  ;;  %v12114_v60 = vld [vmem:[%s11867_s14 + $0xc] sm:$0xf]  ;;  %v1077_v63 = vrot.slane %v1075_v55, 1 }
  0x33   : > { %v997_v30 = vrot.slane %v995_v0, 1 }
  0x34   : > { %11509 = vset.pattern.permute.xlu1 %v15505_v2 }
  0x35   : > { %1612 = vperm.xlu1 %11509, %v587_v48   ;;  %10446 = vmatmul.mubr.msk.bf16.vlgmr.msra.gmra.mrb[16].mxu0 %vm366_vm1, %v1342_v10  ;;  %v1001_v47 = vor.u32 %v999_v37, %v997_v30  ;;  %v1351_v48 = vrot.slane %v11560_v31, 1  ;;  %v1035_v10 = vshll.u32 %v11563_v62, 16  ;;  %v593_v31 = vld [vmem:[%s15499_s1 + $0x68] sm:$0xff]  ;;  %v11567_v37 = vld [vmem:[%s11867_s14 + $0x70] sm:$0xff]  }
  0x36   : > { %10412 = vmatmul.mubr.msk.bf16.vlgmr.msra.gmra.mrb[16].mxu1 %vm366_vm1, %v974_v13  ;;  %10546 = vmatpush3.bf16.msra.mxu0 %v2747_v14  ;;  %v1031_v13 = vshrl.u32 %v11562_v50, 16  ;;  %v592_v14 = vld [vmem:[%s15499_s1 + $0x60] sm:$0xff]  ;;  %v1071_v54 = vshrl.u32 %v11567_v37, 16 }
  0x37   : > { %10478 = vmatpush3.bf16.msra.mxu1 %v1938_v16  ;;  %10415 = vmatprep.mubr.msk.bf16.mxu1 %vm366_vm1, %v982_v22  ;;  %v1006_v56 = vsel %vm954_vm3, %v1001_v47, %v1005_v42  ;;  %v1352_v57 = vsel %vm1337_vm2, %v1349_v44, %v1351_v48  ;;  %v1354_v8 = vsel %vm1337_vm2, %v1351_v48, %v1353_v61  ;;  %v1043_v16 = vshll.u32 %v11564_v4, 16  ;;  %v12093_v47 = vld [vmem:[%s15499_s1 + $0x88] sm:$0xff]  ;;  %v595_v48 = vld [vmem:[%s15499_s1 + $0x78] sm:$0xff] }
  0x38   : > { %10449 = vmatprep.mubr.msk.bf16.mxu0 %vm366_vm1, %v1344_v21  ;;  %619 = vperm.xlu0 %11529, %v11849_v6   ;;  %v998_v6 = vsel %vm954_vm3, %v993_v28, %v997_v30  ;;  %v1037_v0 = vrot.slane %v1035_v10, 1  ;;  %v1357_v22 = vrot.slane %v11563_v62, 1  ;;  %v1051_v28 = vshll.u32 %v11565_v20, 16 }
  0x39   : > { %11510 = vset.pattern.permute.xlu1 %v15506_v12  ;;  %11476 = vmatprep.subr.msk.bf16.mxu1 %vm415_vm0, %v12015_v34  ;;  %v1045_v24 = vrot.slane %v1043_v16, 1  ;;  %v1367_v4 = vrot.slane %v12088_v45, 1  ;;  %v1079_v10 = vshrl.u32 %v12088_v45, 16 }
  0x3a   : > { %654 = vperm.xlu1 %11510, %v588_v18   ;;  %11478 = vmatprep.subr.msk.bf16.mxu0 %vm415_vm0, %v12035_v46  ;;  %v1041_v23 = vor.u32 %v1039_v15, %v1037_v0  ;;  %v1358_v26 = vsel %vm1337_vm2, %v1355_v5, %v1357_v22  ;;  %v12137_v15 = vld [vmem:[%s11867_s14 + $0x40] sm:$0xff]  }
  0x3b   : > { %v1049_v40 = vor.u32 %v1047_v33, %v1045_v24 }
  0x3c   : > { %624 = vperm.xlu0 %11529, %v11856_v7   ;;  %v1009_v7 = vor.u32 %v1007_v38, %v1005_v42  ;;  %v1361_v38 = vrot.slane %v11565_v20, 1 }
  0x3d   : > { %10450 = vmatmul.mubr.msk.bf16.gmra.mrb[20].mxu0 %vm366_vm1, %v1346_v32  ;;  %v1360_v32 = vsel %vm1337_vm2, %v1357_v22, %v1359_v19  ;;  %v12147_v22 = vld [vmem:[%s11867_s14 + $0x48] sm:$0xff]  }
  0x3e   : > { %11511 = vset.pattern.permute.xlu1 %v15505_v2  ;;  %10416 = vmatmul.mubr.msk.bf16.gmra.mrb[20].mxu1 %vm366_vm1, %v990_v35  ;;  %v1014_v58 = vsel %vm954_vm3, %v1009_v7, %v1013_v49  ;;  %v1055_v35 = vshrl.u32 %v11565_v20, 16  ;;  %v1362_v7 = vsel %vm1337_vm2, %v1359_v19, %v1361_v38  ;;  %v1067_v49 = vshll.u32 %v11567_v37, 16 }
  0x3f   : > { %1616 = vperm.xlu1 %11511, %v588_v18   ;;  %10453 = vmatprep.mubr.msk.bf16.mxu0 %vm366_vm1, %v1348_v36  ;;  %v1356_v18 = vsel %vm1337_vm2, %v1353_v61, %v1355_v5  ;;  %v1059_v36 = vshll.u32 %v11566_v25, 16  ;;  %v2659_v61 = vld [vmem:[%s11867_s14 + $0x8] sm:$0xe]  ;;  %v12127_v5 = vld [vmem:[%s11867_s14 + $0x10] sm:$0xff]   ;;  %v2335_v20 = vshrl.u32 %v12110_v59, 16  ;;  %v1081_v19 = vor.u32 %v1079_v10, %v1077_v63 }
  0x40   : > { %10419 = vmatprep.mubr.msk.bf16.mxu1 %vm366_vm1, %v998_v6  ;;  %639 = vperm.xlu0 %11529, %v11949_v39   ;;  %v1027_v39 = vshll.u32 %v11562_v50, 16  ;;  %v1053_v6 = vrot.slane %v1051_v28, 1  ;;  %v2351_v33 = vshrl.u32 %v12147_v22, 16 }
  0x41   : > { %v1061_v44 = vrot.slane %v1059_v36, 1 }
  0x42   : > { %v1029_v3 = vrot.slane %v1027_v39, 1  ;;  %v1057_v42 = vor.u32 %v1055_v35, %v1053_v6  ;;  %v12171_v35 = vld [vmem:[%s11867_s14 + $0x18] sm:$0xff]  }
  0x43   : > { %1620 = vperm.xlu1 %11511, %v589_v41  }
  0x44   : > { %644 = vperm.xlu0 %11529, %v11875_v9   ;;  %v1030_v9 = vsel %vm954_vm3, %v1025_v1, %v1029_v3  ;;  %v1033_v21 = vor.u32 %v1031_v13, %v1029_v3  ;;  %v2331_v1 = vshll.u32 %v12110_v59, 16  ;;  %v12123_v3 = vld [vmem:[%s15499_s1 + $0xa8] sm:$0xff] }
  0x45   : > { %10454 = vmatmul.mubr.msk.bf16.gmra.mrb[24].mxu0 %vm366_vm1, %v1350_v53  ;;  %v1062_v53 = vsel %vm954_vm3, %v1057_v42, %v1061_v44 }
  0x46   : > { %10420 = vmatmul.mubr.msk.bf16.gmra.mrb[24].mxu1 %vm366_vm1, %v1006_v56  ;;  %10457 = vmatprep.mubr.msk.bf16.mxu0 %vm366_vm1, %v1352_v57  ;;  %v1038_v30 = vsel %vm954_vm3, %v1033_v21, %v1037_v0  ;;  %v11569_v56 = vld [vmem:[%s11867_s14 + $0x80] ss:$0 sps:$4 sm:$0x11]   ;;  %v1365_v57 = vrot.slane %v11567_v37, 1  ;;  %v2339_v21 = vshll.u32 %v12137_v15, 16 }
  0x47   : > { %11512 = vset.pattern.permute.xlu1 %v15506_v12  ;;  %10423 = vmatprep.mubr.msk.bf16.mxu1 %vm366_vm1, %v1014_v58  ;;  %v1069_v58 = vrot.slane %v1067_v49, 1 }
  0x48   : > { %669 = vperm.xlu1 %11512, %v591_v52   ;;  %659 = vperm.xlu0 %11529, %v589_v41   ;;  %v1363_v41 = vrot.slane %v11566_v25, 1  ;;  %v1368_v0 = vsel %vm1337_vm2, %v1365_v57, %v1367_v4 }
  0x49   : > { %v1073_v62 = vor.u32 %v1071_v54, %v1069_v58 }
  0x4a   : > { %v1364_v50 = vsel %vm1337_vm2, %v1361_v38, %v1363_v41  ;;  %v11570_v38 = vld [vmem:[%s11867_s14 + $0x8] sm:$0xff]  }
  0x4b   : > { %v1078_v16 = vsel %vm954_vm3, %v1073_v62, %v1077_v63 }
  0x4c   : > { %11513 = vset.pattern.permute.xlu1 %v15505_v2  ;;  %664 = vperm.xlu0 %11529, %v11889_v17   ;;  %v1046_v17 = vsel %vm954_vm3, %v1041_v23, %v1045_v24  ;;  %v12153_v24 = vld [vmem:[%s11867_s14 + $0x50] sm:$0xff]  }
  0x4d   : > { %1628 = vperm.xlu1 %11513, %v591_v52   ;;  %10458 = vmatmul.mubr.msk.bf16.gmra.mrb[28].mxu0 %vm366_vm1, %v1354_v8  ;;  %v1063_v52 = vshrl.u32 %v11566_v25, 16  ;;  %v596_v8 = vld [vmem:[%s15499_s1 + $0x80] sm:$0xff] }
  0x4e   : > { %10424 = vmatmul.mubr.msk.bf16.gmra.mrb[28].mxu1 %vm366_vm1, %v1022_v11  ;;  %10461 = vmatprep.mubr.msk.bf16.mxu0 %vm366_vm1, %v1356_v18  ;;  %v1083_v11 = vshll.u32 %v11569_v56, 16  ;;  %v12141_v18 = vrot.slane %v2331_v1, 1 }
  0x4f   : > { %10427 = vmatprep.mubr.msk.bf16.mxu1 %vm366_vm1, %v1030_v9  ;;  %v1065_v39 = vor.u32 %v1063_v52, %v1061_v44  ;;  %v9590_v9 = vcombine.low %v2659_v61, %v12114_v60  ;;  %v12190_v44 = vld [vmem:[%s11867_s14 + $0x20] sm:$0xff]   ;;  %v12230_v61 = vld [vmem:[%s15499_s1 + $0xe8] sm:$0xff] }
  0x50   : > { %679 = vperm.xlu0 %11529, %v593_v31   ;;  %v1085_v23 = vrot.slane %v1083_v11, 1  ;;  %v2337_v25 = vor.u32 %v2335_v20, %v12141_v18  ;;  %v2670_v62 = vrot.slane %v12190_v44, 1 }
  0x51   : > { %11514 = vset.pattern.permute.xlu1 %v15506_v12  ;;  %v1070_v13 = vsel %vm954_vm3, %v1065_v39, %v1069_v58  ;;  %v2665_v28 = vrot.slane %v9590_v9, 1  ;;  %v599_v58 = vld [vmem:[%s15499_s1 + $0x98] sm:$0xff]  ;;  %v11574_v39 = vld [vmem:[%s11867_s14 + $0x10] sm:$0xff]   ;;  %v3137_v9 = vsel %vm415_vm0, %v12035_v46, 0 }
  0x52   : > { %674 = vperm.xlu1 %11514, %v592_v14  }
  0x54   : > { %684 = vperm.xlu0 %11529, %v11926_v27   ;;  %v1054_v27 = vsel %vm954_vm3, %v1049_v40, %v1053_v6  ;;  %v12182_v40 = vld [vmem:[%s11867_s14 + $0x68] sm:$0xff]  }
  0x55   : > { %10462 = vmatmul.mubr.msk.bf16.gmra.mrb[32].mxu0 %vm366_vm1, %v1358_v26  ;;  %v12160_v26 = vld [vmem:[%s15499_s1 + $0xc8] sm:$0xff]  ;;  %v2379_v49 = vshll.u32 %v12182_v40, 16  ;;  %v2383_v55 = vshrl.u32 %v12182_v40, 16 }
  0x56   : > { %11515 = vset.pattern.permute.xlu1 %v15505_v2  ;;  %10428 = vmatmul.mubr.msk.bf16.gmra.mrb[32].mxu1 %vm366_vm1, %v1038_v30  ;;  %v2666_v30 = vrot.slane %v12127_v5, 1 }
  0x57   : > { %1632 = vperm.xlu1 %11515, %v592_v14   ;;  %10465 = vmatprep.mubr.msk.bf16.mxu0 %vm366_vm1, %v1360_v32  ;;  %v1369_v14 = vrot.slane %v11569_v56, 1  ;;  %v2347_v32 = vshll.u32 %v12147_v22, 16  ;;  %v12215_v54 = vrot.slane %v2379_v49, 1 }
  0x58   : > { %10431 = vmatprep.mubr.msk.bf16.mxu1 %vm366_vm1, %v1046_v17  ;;  %699 = vperm.xlu0 %11529, %v12093_v47   ;;  %v2355_v17 = vshll.u32 %v12153_v24, 16  ;;  %v2667_v42 = vsel %vm1337_vm2, %v2665_v28, %v2666_v30 }
  0x59   : > { %v12177_v37 = vrot.slane %v2347_v32, 1  ;;  %v1370_v6 = vsel %vm1337_vm2, %v1367_v4, %v1369_v14  ;;  %v2385_v63 = vor.u32 %v2383_v55, %v12215_v54  ;;  %v2464_v14 = vsel %vm415_vm0, %v12015_v34, 0 }
  0x5a   : > { %v2678_v55 = vrot.slane %v12137_v15, 1 }
  0x5b   : > { %1636 = vperm.xlu1 %11515, %v593_v31   ;;  %v12163_v31 = vrot.slane %v2339_v21, 1  ;;  %v2353_v45 = vor.u32 %v2351_v33, %v12177_v37  ;;  %v12261_v21 = vld [vmem:[%s15499_s1 + $0xf0] sm:$0xff] }
  0x5c   : > { %704 = vperm.xlu0 %11529, %v11935_v29   ;;  %v1366_v29 = vsel %vm1337_vm2, %v1363_v41, %v1365_v57  ;;  %v1086_v41 = vsel %vm954_vm3, %v1081_v19, %v1085_v23  ;;  %v12266_v23 = vld [vmem:[%s11867_s14 + $0x30] sm:$0xff]  }
  0x5d   : > { %10466 = vmatmul.mubr.msk.bf16.gmra.mrb[36].mxu0 %vm366_vm1, %v1362_v7  ;;  %v12175_v36 = vsel %vm954_vm3, %v2337_v25, %v12163_v31  ;;  %v12198_v7 = vld [vmem:[%s11867_s14 + $0x78] sm:$0xff]   ;;  %v12285_v33 = vld [vmem:[%s15500_s2 + $0x10] sm:$0x3] }
  0x5e   : > { %10432 = vmatmul.mubr.msk.bf16.gmra.mrb[36].mxu1 %vm366_vm1, %v1054_v27  ;;  %10469 = vmatprep.mubr.msk.bf16.mxu0 %vm366_vm1, %v1364_v50  ;;  %v2668_v27 = vrot.slane %v12171_v35, 1  ;;  %v12204_v50 = vld [vmem:[%s11867_s14 + $0x80] sm:$0xff]   ;;  %v2395_v57 = vshll.u32 %v12198_v7, 16  ;;  %v2399_v1 = vshrl.u32 %v12198_v7, 16 }
  0x5f   : > { %11516 = vset.pattern.permute.xlu1 %v15506_v12  ;;  %10435 = vmatprep.mubr.msk.bf16.mxu1 %vm366_vm1, %v1062_v53  ;;  %v12213_v53 = vld [vmem:[%s11867_s14 + $0x88] ss:$0 sps:$4 sm:$0x11]   ;;  %v2407_v11 = vshrl.u32 %v12204_v50, 16 }
  0x60   : > { %689 = vperm.xlu1 %11516, %v595_v48   ;;  %719 = vperm.xlu0 %11529, %v12123_v3   ;;  %v2671_v46 = vsel %vm1337_vm2, %v2668_v27, %v2670_v62 }
  0x64   : > { %11517 = vset.pattern.permute.xlu1 %v15505_v2  ;;  %724 = vperm.xlu0 %11529, %v11956_v43   ;;  %v12184_v43 = vrot.slane %v2355_v17, 1  ;;  %v12293_v17 = vld [vmem:[%s15499_s1 + $0xf8] sm:$0xff] }
  0x65   : > { %1644 = vperm.xlu1 %11517, %v595_v48   ;;  %10470 = vmatmul.mubr.msk.bf16.gmra.mrb[40].mxu0 %vm366_vm1, %v1366_v29  ;;  %v12195_v48 = vld [vmem:[%s11867_s14 + $0x70] sm:$0xff]   ;;  %v12238_v29 = vrot.slane %v2395_v57, 1 }
  0x66   : > { %10436 = vmatmul.mubr.msk.bf16.gmra.mrb[40].mxu1 %vm366_vm1, %v1070_v13  ;;  %10473 = vmatprep.mubr.msk.bf16.mxu0 %vm366_vm1, %v1368_v0  ;;  %v12208_v52 = vsel %vm954_vm3, %v2353_v45, %v12184_v43  ;;  %v2387_v56 = vshll.u32 %v12195_v48, 16  ;;  %v2411_v13 = vshll.u32 %v12213_v53, 16  ;;  %v600_v45 = vld [vmem:[%s15499_s1 + $0xa0] sm:$0xff]  ;;  %v11582_v57 = vld [vmem:[%s11867_s14 + $0x30] sm:$0xff]  }
  0x67   : > { %10439 = vmatprep.mubr.msk.bf16.mxu1 %vm366_vm1, %v1078_v16  ;;  %v11576_v16 = vld [vmem:[%s11867_s14 + $0x18] sm:$0xff]   ;;  %v2401_v0 = vor.u32 %v2399_v1, %v12238_v29  ;;  %v2682_v1 = vrot.slane %v12153_v24, 1 }
  0x68   : > { %739 = vperm.xlu0 %11529, %v12160_v26   ;;  %v12236_v4 = vrot.slane %v2387_v56, 1  ;;  %v2413_v19 = vrot.slane %v2411_v13, 1  ;;  %v12318_v56 = vld [vmem:[%s15499_s1] sm:$0xff]  ;;  %v12345_v13 = vld [vmem:[%s11867_s14 + $0x58] sm:$0xff]  }
  0x69   : > { %11518 = vset.pattern.permute.xlu1 %v15506_v12 }
  0x6a   : > { %694 = vperm.xlu1 %11518, %v596_v8   ;;  %v12253_v20 = vsel %vm954_vm3, %v2385_v63, %v12236_v4  ;;  %v2680_v63 = vrot.slane %v12147_v22, 1 }
  0x6c   : > { %744 = vperm.xlu0 %11529, %v11970_v51   ;;  %v12242_v51 = vld [vmem:[%s11867_s14 + $0x28] sm:$0xff]  }
  0x6d   : > { %10474 = vmatmul.mubr.msk.bf16.gmra.mrb[44].mxu0 %vm366_vm1, %v1370_v6  ;;  %v2672_v28 = vrot.slane %v12242_v51, 1  ;;  %v2674_v6 = vrot.slane %v12266_v23, 1 }
  0x6e   : > { %11519 = vset.pattern.permute.xlu1 %v15505_v2  ;;  %10440 = vmatmul.mubr.msk.bf16.gmra.mrb[44].mxu1 %vm366_vm1, %v1086_v41 }
  0x6f   : > { %1648 = vperm.xlu1 %11519, %v596_v8   ;;  %10547 = vmatprep.mubr.msk.bf16.mxu0 %vm366_vm1, %v2667_v42  ;;  %v2669_v8 = vsel %vm1337_vm2, %v2666_v30, %v2668_v27  ;;  %v12276_v30 = vld [vmem:[%s15500_s2 + $0xe] sm:$0x3]  ;;  %v2673_v41 = vsel %vm1337_vm2, %v2670_v62, %v2672_v28  ;;  %v2675_v49 = vsel %vm1337_vm2, %v2672_v28, %v2674_v6  ;;  %v2676_v27 = vrot.slane %v12110_v59, 1  ;;  %v11584_v59 = vld [vmem:[%s11867_s14 + $0x38] sm:$0xff]   ;;  %v5081_v62 = vld [vmem:[%s15499_s1 + $0x10] sm:$0xff] }
  0x70   : > { %10479 = vmatprep.mubr.msk.bf16.mxu1 %vm366_vm1, %v11570_v38  ;;  %759 = vperm.xlu0 %11529, %v12230_v61   ;;  %v11578_v38 = vld [vmem:[%s11867_s14 + $0x20] sm:$0xff]   ;;  %v11580_v42 = vld [vmem:[%s11867_s14 + $0x28] sm:$0xff]   ;;  %v11590_v28 = vld [vmem:[%s11867_s14 + $0x50] sm:$0xff]  }
  0x73   : > { %1652 = vperm.xlu1 %11519, %v12093_v47   ;;  %v2403_v47 = vshll.u32 %v12204_v50, 16 }
  0x74   : > { %764 = vperm.xlu0 %11529, %v12261_v21  }
  0x75   : > { %v2405_v10 = vrot.slane %v2403_v47, 1  ;;  %10548 = vmatmul.mubr.msk.bf16.vlgmr.msra.gmra.mrb[48].mxu0 %vm366_vm1, %v2669_v8  ;;  %v5083_v47 = vld [vmem:[%s15499_s1 + $0x20] sm:$0xff]  ;;  %v603_v8 = vld [vmem:[%s15499_s1 + $0xb8] sm:$0xff] }
  0x76   : > { %10480 = vmatmul.mubr.msk.bf16.vlgmr.msra.gmra.mrb[48].mxu1 %vm366_vm1, %v11574_v39  ;;  %10580 = vmatpush3.bf16.msra.mxu0 %v3137_v9  ;;  %v2679_v39 = vsel %vm1337_vm2, %v2676_v27, %v2678_v55  ;;  %v2683_v9 = vsel %vm1337_vm2, %v2680_v63, %v2682_v1 }
  0x77   : > { %11520 = vset.pattern.permute.xlu1 %v15506_v12  ;;  %v2409_v34 = vor.u32 %v2407_v11, %v2405_v10  ;;  %v12269_v25 = vsel %vm954_vm3, %v2401_v0, %v2405_v10  ;;  %10512 = vmatpush3.bf16.msra.mxu1 %v2464_v14  ;;  %v11586_v10 = vld [vmem:[%s11867_s14 + $0x40] sm:$0xff]   ;;  %v2681_v11 = vsel %vm1337_vm2, %v2678_v55, %v2680_v63  ;;  %v11588_v14 = vld [vmem:[%s11867_s14 + $0x48] sm:$0xff]   ;;  %v2684_v0 = vrot.slane %v12345_v13, 1 }
  0x78   : > { %709 = vperm.xlu1 %11520, %v599_v58   ;;  %10483 = vmatprep.mubr.msk.bf16.mxu1 %vm366_vm1, %v11576_v16  ;;  %v5085_v16 = vld [vmem:[%s15499_s1 + $0x30] sm:$0xff]  ;;  %v2690_v55 = vrot.slane %v12195_v48, 1 }
  0x79   : > { %v12279_v32 = vsel %vm954_vm3, %v2409_v34, %v2413_v19  ;;  %10551 = vmatprep.mubr.msk.bf16.mxu0 %vm366_vm1, %v2671_v46  ;;  %11479 = vmatprep.subr.msk.bf16.mxu1 %vm415_vm0, %v12276_v30  ;;  %v5087_v19 = vld [vmem:[%s15499_s1 + $0x40] sm:$0xff] }
  0x7a   : > { %11480 = vmatprep.subr.msk.bf16.mxu0 %vm415_vm0, %v12285_v33  ;;  %769 = vperm.xlu0 %11529, %v12293_v17  }
  0x7c   : > { %11521 = vset.pattern.permute.xlu1 %v15505_v2 }
  0x7d   : > { %1660 = vperm.xlu1 %11521, %v599_v58   ;;  %10552 = vmatmul.mubr.msk.bf16.gmra.mrb[52].mxu0 %vm366_vm1, %v2673_v41  ;;  %v2677_v58 = vsel %vm1337_vm2, %v2674_v6, %v2676_v27  ;;  %v2685_v6 = vsel %vm1337_vm2, %v2682_v1, %v2684_v0  ;;  %v2688_v27 = vrot.slane %v12182_v40, 1  ;;  %v11596_v40 = vld [vmem:[%s11867_s14 + $0x68] sm:$0xff]  }
  0x7e   : > { %10484 = vmatmul.mubr.msk.bf16.gmra.mrb[52].mxu1 %vm366_vm1, %v11578_v38  ;;  %10555 = vmatprep.mubr.msk.bf16.mxu0 %vm366_vm1, %v2675_v49  ;;  %v11592_v38 = vld [vmem:[%s11867_s14 + $0x58] sm:$0xff]   ;;  %v5089_v49 = vld [vmem:[%s15499_s1 + $0x50] sm:$0xff] }
  0x7f   : > { %10487 = vmatprep.mubr.msk.bf16.mxu1 %vm366_vm1, %v11580_v42  ;;  %5113 = vperm.xlu0 %11529, %v12318_v56   ;;  %v604_v42 = vld [vmem:[%s15499_s1 + $0xc0] sm:$0xff]  ;;  %v2691_v63 = vsel %vm1337_vm2, %v2688_v27, %v2690_v55 }
  0x81   : > { %11522 = vset.pattern.permute.xlu1 %v15506_v12 }
  0x82   : > { %714 = vperm.xlu1 %11522, %v600_v45  }
  0x83   : > { %5123 = vperm.xlu0 %11529, %v5081_v62  }
  0x85   : > { %10556 = vmatmul.mubr.msk.bf16.gmra.mrb[56].mxu0 %vm366_vm1, %v2677_v58  ;;  %v2165_v58 = vld [vmem:[%s11867_s14 + $0x8] sm:$0xf] }
  0x86   : > { %11523 = vset.pattern.permute.xlu1 %v15505_v2  ;;  %10488 = vmatmul.mubr.msk.bf16.gmra.mrb[56].mxu1 %vm366_vm1, %v11582_v57  ;;  %v9556_v1 = vcombine.low %v2165_v58, %v12114_v60  ;;  %v2694_v60 = vrot.slane %v12204_v50, 1 }
  0x87   : > { %1664 = vperm.xlu1 %11523, %v600_v45   ;;  %10559 = vmatprep.mubr.msk.bf16.mxu0 %vm366_vm1, %v2679_v39  ;;  %v11594_v39 = vld [vmem:[%s11867_s14 + $0x60] sm:$0xff]  }
  0x88   : > { %10491 = vmatprep.mubr.msk.bf16.mxu1 %vm366_vm1, %v11584_v59  ;;  %5133 = vperm.xlu0 %11529, %v5083_v47   ;;  %v5091_v59 = vld [vmem:[%s15499_s1 + $0x60] sm:$0xff] }
  0x8b   : > { %1668 = vperm.xlu1 %11523, %v12123_v3   ;;  %v12353_v3 = vld [vmem:[%s11867_s14 + $0x60] sm:$0xff]  }
  0x8c   : > { %5143 = vperm.xlu0 %11529, %v5085_v16   ;;  %v2686_v46 = vrot.slane %v12353_v3, 1  ;;  %v11598_v16 = vld [vmem:[%s11867_s14 + $0x70] sm:$0xff]  }
  0x8d   : > { %10560 = vmatmul.mubr.msk.bf16.gmra.mrb[60].mxu0 %vm366_vm1, %v2681_v11  ;;  %v2286_v11 = vshll.u32 %v9556_v1, 16 }
  0x8e   : > { %v12347_v22 = vpop.permute.xlu1 %1584  ;;  %10492 = vmatmul.mubr.msk.bf16.gmra.mrb[60].mxu1 %vm366_vm1, %v11586_v10  ;;  %10563 = vmatprep.mubr.msk.bf16.mxu0 %vm366_vm1, %v2683_v9  ;;  %v2687_v45 = vsel %vm1337_vm2, %v2684_v0, %v2686_v46  ;;  %v2689_v62 = vsel %vm1337_vm2, %v2686_v46, %v2688_v27  ;;  %v2692_v10 = vrot.slane %v12198_v7, 1  ;;  %v607_v9 = vld [vmem:[%s15499_s1 + $0xd8] sm:$0xff]  ;;  %v5099_v27 = vld [vmem:[%s15499_s1 + $0xa0] sm:$0xff] }
  0x8f   : > { %15699 = vst [vmem:[#allocation3_spill] sm:$0xff] %v12347_v22  ;;  %11524 = vset.pattern.permute.xlu1 %v15506_v12  ;;  %10495 = vmatprep.mubr.msk.bf16.mxu1 %vm366_vm1, %v11588_v14  ;;  %v5095_v14 = vld [vmem:[%s15499_s1 + $0x80] sm:$0xff]  ;;  %v2288_v46 = vrot.slane %v2286_v11, 1 }
  0x90   : > { %729 = vperm.xlu1 %11524, %v603_v8   ;;  %5153 = vperm.xlu0 %11529, %v5087_v19   ;;  %v2693_v0 = vsel %vm1337_vm2, %v2690_v55, %v2692_v10  ;;  %v11600_v19 = vld [vmem:[%s11867_s14 + $0x78] sm:$0xff]   ;;  %v2695_v50 = vsel %vm1337_vm2, %v2692_v10, %v2694_v60  ;;  %v11602_v55 = vld [vmem:[%s11867_s14 + $0x80] sm:$0xff]   ;;  %v2307_v10 = vshll.u32 %v12190_v44, 16 }
  0x92   : > { %v12362_v34 = vpop.permute.xlu1 %1588 }
  0x93   : > { %15700 = vst [vmem:[#allocation4_spill] sm:$0xff] %v12362_v34 }
  0x94   : > { %11525 = vset.pattern.permute.xlu1 %v15505_v2  ;;  %5163 = vperm.xlu0 %11529, %v5089_v49  }
  0x95   : > { %1676 = vperm.xlu1 %11525, %v603_v8   ;;  %10564 = vmatmul.mubr.msk.bf16.gmra.mrb[64].mxu0 %vm366_vm1, %v2685_v6  ;;  %v5093_v8 = vld [vmem:[%s15499_s1 + $0x70] sm:$0xff] }
  0x96   : > { %10496 = vmatmul.mubr.msk.bf16.gmra.mrb[64].mxu1 %vm366_vm1, %v11590_v28  ;;  %10567 = vmatprep.mubr.msk.bf16.mxu0 %vm366_vm1, %v2687_v45  ;;  %v2291_v28 = vshll.u32 %v12127_v5, 16  ;;  %v5097_v6 = vld [vmem:[%s15499_s1 + $0x90] sm:$0xff] }
  0x97   : > { %v12373_v41 = vpop.permute.xlu1 %629  ;;  %10499 = vmatprep.mubr.msk.bf16.mxu1 %vm366_vm1, %v11592_v38  ;;  %v2696_v38 = vrot.slane %v12213_v53, 1  ;;  %v2299_v53 = vshll.u32 %v12171_v35, 16 }
  0x98   : > { %5173 = vperm.xlu0 %11529, %v5091_v59   ;;  %v2293_v49 = vrot.slane %v2291_v28, 1  ;;  %v2295_v59 = vshrl.u32 %v12127_v5, 16  ;;  %v5101_v5 = vld [vmem:[%s15499_s1 + $0xb0] sm:$0xff]  ;;  %v2311_v28 = vshrl.u32 %v12190_v44, 16 }
  0x99   : > { %11526 = vset.pattern.permute.xlu1 %v15506_v12  ;;  %v2697_v58 = vsel %vm1337_vm2, %v2694_v60, %v2696_v38  ;;  %v2301_v60 = vrot.slane %v2299_v53, 1 }
  0x9a   : > { %734 = vperm.xlu1 %11526, %v604_v42   ;;  %v2297_v11 = vor.u32 %v2295_v59, %v2293_v49  ;;  %v11607_v59 = vld [vmem:[%s11867_s14 + $0x28] sm:$0xff]  }
  0x9c   : > { %v12389_v57 = vpop.permute.xlu1 %1596  ;;  %5183 = vperm.xlu0 %11529, %v5093_v8   ;;  %v2303_v8 = vshrl.u32 %v12171_v35, 16 }
  0x9d   : > { %15701 = vst [vmem:[#allocation5_spill] sm:$0xff] %v12389_v57  ;;  %10568 = vmatmul.mubr.msk.bf16.gmra.mrb[68].mxu0 %vm366_vm1, %v2689_v62  ;;  %v12447_v62 = vpop.permute.xlu0 %1592 }
  0x9e   : > { %11527 = vset.pattern.permute.xlu1 %v15505_v2  ;;  %10500 = vmatmul.mubr.msk.bf16.gmra.mrb[68].mxu1 %vm366_vm1, %v11594_v39  ;;  %15704 = vst [vmem:[#allocation8_spill] sm:$0xff] %v12447_v62 }
  0x9f   : > { %1680 = vperm.xlu1 %11527, %v604_v42   ;;  %10571 = vmatprep.mubr.msk.bf16.mxu0 %vm366_vm1, %v2691_v63 }
  0xa0   : > { %10503 = vmatprep.mubr.msk.bf16.mxu1 %vm366_vm1, %v11596_v40  ;;  %5193 = vperm.xlu0 %11529, %v5095_v14   ;;  %v608_v40 = vld [vmem:[%s15499_s1 + $0xe0] sm:$0xff]  ;;  %v2305_v14 = vor.u32 %v2303_v8, %v2301_v60 }
  0xa1   : > { %v12402_v47 = vpop.permute.xlu1 %634 }
  0xa3   : > { %1684 = vperm.xlu1 %11527, %v12160_v26   ;;  %v2284_v26 = vshrl.u32 %v9556_v1, 16  ;;  %v11604_v1 = vld [vmem:[%s11867_s14 + $0x10] sm:$0xff]  }
  0xa4   : > { %5203 = vperm.xlu0 %11529, %v5097_v6   ;;  %v3663_v6 = vsel %vm415_vm0, %v12276_v30, 0  ;;  %v5105_v30 = vld [vmem:[%s15499_s1 + $0xd0] sm:$0xff] }
  0xa5   : > { %10572 = vmatmul.mubr.msk.bf16.gmra.mrb[72].mxu0 %vm366_vm1, %v2693_v0  ;;  %v2289_v45 = vor.u32 %v2288_v46, %v2284_v26  ;;  %v5103_v0 = vld [vmem:[%s15499_s1 + $0xc0] sm:$0xff]  ;;  %v2302_v26 = vsel %vm954_vm3, %v2297_v11, %v2301_v60  ;;  %v3946_v46 = vsel %vm415_vm0, %v12285_v33, 0  ;;  %v5109_v60 = vld [vmem:[%s15499_s1 + $0xf0] sm:$0xff] }
  0xa6   : > { %v12421_v7 = vpop.permute.xlu1 %1600  ;;  %10504 = vmatmul.mubr.msk.bf16.gmra.mrb[72].mxu1 %vm366_vm1, %v11598_v16  ;;  %10575 = vmatprep.mubr.msk.bf16.mxu0 %vm366_vm1, %v2695_v50  ;;  %v11605_v16 = vld [vmem:[%s11867_s14 + $0x18] sm:$0xff]   ;;  %v2315_v50 = vshll.u32 %v12242_v51, 16 }
  0xa7   : > { %15702 = vst [vmem:[#allocation6_spill] sm:$0xff] %v12421_v7  ;;  %11528 = vset.pattern.permute.xlu1 %v15506_v12  ;;  %10507 = vmatprep.mubr.msk.bf16.mxu1 %vm366_vm1, %v11600_v19  ;;  %v2294_v63 = vsel %vm954_vm3, %v2289_v45, %v2293_v49  ;;  %v12470_v19 = vpop.permute.xlu0 %1608  ;;  %v11606_v45 = vld [vmem:[%s11867_s14 + $0x20] sm:$0xff]   ;;  %v2319_v49 = vshrl.u32 %v12242_v51, 16 }
  0xa8   : > { %749 = vperm.xlu1 %11528, %v607_v9   ;;  %5213 = vperm.xlu0 %11529, %v5099_v27   ;;  %15706 = vst [vmem:[#allocation10_spill] sm:$0xff] %v12470_v19  ;;  %v2323_v27 = vshll.u32 %v12266_v23, 16  ;;  %v2317_v44 = vrot.slane %v2315_v50, 1 }
  0xaa   : > { %v12434_v42 = vpop.permute.xlu1 %1604  ;;  %v2325_v53 = vrot.slane %v2323_v27, 1  ;;  %v11613_v27 = vld [vmem:[%s11867_s14 + $0x58] sm:$0xff]  }
  0xab   : > { %15703 = vst [vmem:[#allocation7_spill] sm:$0xff] %v12434_v42 }
  0xac   : > { %11530 = vset.pattern.permute.xlu1 %v15505_v2  ;;  %5223 = vperm.xlu0 %11529, %v5101_v5  }
  0xad   : > { %1692 = vperm.xlu1 %11530, %v607_v9   ;;  %10576 = vmatmul.mubr.msk.bf16.gmra.mrb[76].mxu0 %vm366_vm1, %v2697_v58  ;;  %v2309_v9 = vrot.slane %v2307_v10, 1  ;;  %v2321_v58 = vor.u32 %v2319_v49, %v2317_v44  ;;  %v2327_v10 = vshrl.u32 %v12266_v23, 16 }
  0xae   : > { %10508 = vmatmul.mubr.msk.bf16.gmra.mrb[76].mxu1 %vm366_vm1, %v11602_v55  ;;  %10581 = vmatprep.mubr.msk.bf16.mxu0 %vm366_vm1, %v11604_v1  ;;  %v12492_v55 = vpop.permute.xlu0 %1624 }
  0xaf   : > { %v12445_v39 = vpop.permute.xlu1 %649  ;;  %10513 = vmatprep.mubr.msk.bf16.mxu1 %vm366_vm1, %v2294_v63  ;;  %v2310_v38 = vsel %vm954_vm3, %v2305_v14, %v2309_v9  ;;  %v2313_v51 = vor.u32 %v2311_v28, %v2309_v9  ;;  %15707 = vst [vmem:[#allocation11_spill] sm:$0xff] %v12492_v55  ;;  %v5107_v63 = vld [vmem:[%s15499_s1 + $0xe0] sm:$0xff]  ;;  %v2329_v23 = vor.u32 %v2327_v10, %v2325_v53  ;;  %v2363_v28 = vshll.u32 %v12345_v13, 16 }
  0xb0   : > { %5233 = vperm.xlu0 %11529, %v5103_v0   ;;  %v11610_v14 = vld [vmem:[%s11867_s14 + $0x40] sm:$0xff]  }
  0xb1   : > { %11531 = vset.pattern.permute.xlu1 %v15506_v12  ;;  %v2318_v1 = vsel %vm954_vm3, %v2313_v51, %v2317_v44  ;;  %v2334_v9 = vsel %vm954_vm3, %v2329_v23, %v12141_v18  ;;  %v11614_v44 = vld [vmem:[%s11867_s14 + $0x60] sm:$0xff]  }
  0xb2   : > { %754 = vperm.xlu1 %11531, %v608_v40   ;;  %v12508_v5 = vpop.permute.xlu0 %1640 }
  0xb3   : > { %15709 = vst [vmem:[#allocation13_spill] sm:$0xff] %v12508_v5 }
  0xb4   : > { %v12464_v35 = vpop.permute.xlu1 %1612  ;;  %5243 = vperm.xlu0 %11529, %v5105_v30  }
  0xb5   : > { %15705 = vst [vmem:[#allocation9_spill] sm:$0xff] %v12464_v35  ;;  %10582 = vmatmul.mubr.msk.bf16.vlgmr.msra.gmra.mrb[80].mxu0 %vm366_vm1, %v11605_v16  ;;  %v2343_v16 = vshrl.u32 %v12137_v15, 16  ;;  %v11611_v15 = vld [vmem:[%s11867_s14 + $0x48] sm:$0xff]  }
  0xb6   : > { %11532 = vset.pattern.permute.xlu1 %v15505_v2  ;;  %10514 = vmatmul.mubr.msk.bf16.vlgmr.msra.gmra.mrb[16].mxu1 %vm366_vm1, %v2302_v26  ;;  %v12524_v0 = vpop.permute.xlu0 %1656 }
  0xb7   : > { %1696 = vperm.xlu1 %11532, %v608_v40   ;;  %10648 = vmatpush3.bf16.msra.mxu0 %v3946_v46  ;;  %v11608_v40 = vld [vmem:[%s11867_s14 + $0x30] sm:$0xff]   ;;  %15711 = vst [vmem:[#allocation15_spill] sm:$0xff] %v12524_v0  ;;  %v2345_v18 = vor.u32 %v2343_v16, %v12163_v31  ;;  %v2371_v31 = vshll.u32 %v12353_v3, 16 }
  0xb8   : > { %10614 = vmatpush3.bf16.msra.mxu1 %v3663_v6  ;;  %10517 = vmatprep.mubr.msk.bf16.mxu1 %vm366_vm1, %v2310_v38  ;;  %v11612_v46 = vld [vmem:[%s11867_s14 + $0x50] sm:$0xff]   ;;  %v2359_v38 = vshrl.u32 %v12153_v24, 16 }
  0xb9   : > { %v12486_v33 = vpop.permute.xlu1 %654  ;;  %10585 = vmatprep.mubr.msk.bf16.mxu0 %vm366_vm1, %v11606_v45  ;;  %5253 = vperm.xlu0 %11529, %v5107_v63   ;;  %v2350_v6 = vsel %vm954_vm3, %v2345_v18, %v12177_v37  ;;  %v2365_v45 = vrot.slane %v2363_v28, 1  ;;  %v3364_v63 = vld [vmem:[%s11867_s14 + $0x10] sm:$0xf]  ;;  %v11617_v18 = vld [vmem:[%s11867_s14 + $0x78] sm:$0xff]  }
  0xba   : > { %v12540_v26 = vpop.permute.xlu0 %1672  ;;  %v2361_v37 = vor.u32 %v2359_v38, %v12184_v43 }
  0xbb   : > { %1700 = vperm.xlu1 %11532, %v12230_v61   ;;  %v2326_v61 = vsel %vm954_vm3, %v2321_v58, %v2325_v53  ;;  %15714 = vst [vmem:[#allocation18_spill] sm:$0xff] %v12540_v26  ;;  %v2375_v58 = vshrl.u32 %v12353_v3, 16  ;;  %v3365_v3 = vld [vmem:[%s11867_s14 + $0x14] sm:$0xf] }
  0xbc   : > { %v2366_v30 = vsel %vm954_vm3, %v2361_v37, %v2365_v45 }
  0xbd   : > { %10586 = vmatmul.mubr.msk.bf16.gmra.mrb[84].mxu0 %vm366_vm1, %v11607_v59  ;;  %5263 = vperm.xlu0 %11529, %v5109_v60  }
  0xbe   : > { %v12502_v8 = vpop.permute.xlu1 %1616  ;;  %10518 = vmatmul.mubr.msk.bf16.gmra.mrb[20].mxu1 %vm366_vm1, %v2318_v1  ;;  %10589 = vmatprep.mubr.msk.bf16.mxu0 %vm366_vm1, %v11608_v40  ;;  %v12557_v49 = vpop.permute.xlu0 %1688  ;;  %v11615_v40 = vld [vmem:[%s11867_s14 + $0x68] sm:$0xff]   ;;  %v11616_v1 = vld [vmem:[%s11867_s14 + $0x70] sm:$0xff]  }
  0xbf   : > { %15708 = vst [vmem:[#allocation12_spill] sm:$0xff] %v12502_v8  ;;  %1704 = vperm.xlu1 %11532, %v12261_v21   ;;  %10521 = vmatprep.mubr.msk.bf16.mxu1 %vm366_vm1, %v2326_v61  ;;  %v11609_v21 = vld [vmem:[%s11867_s14 + $0x38] sm:$0xff]   ;;  %15716 = vst [vmem:[#allocation20_spill] sm:$0xff] %v12557_v49  ;;  %v2391_v61 = vshrl.u32 %v12195_v48, 16  ;;  %v3858_v48 = vld [vmem:[%s11867_s14 + $0x10] sm:$0xe] }
  0xc1   : > { %11534 = vset.pattern.permute.xlu0 %v15505_v2 }
  0xc2   : > { %v12516_v11 = vpop.permute.xlu1 %1620  ;;  %6081 = vperm.xlu0 %11534, %v12318_v56   ;;  %v12567_v43 = vpop.permute.xlu0 %614 }
  0xc3   : > { %15710 = vst [vmem:[#allocation14_spill] sm:$0xff] %v12516_v11  ;;  %1708 = vperm.xlu1 %11532, %v12293_v17   ;;  %15718 = vst [vmem:[#allocation22_spill] sm:$0xff] %v12567_v43 }
  0xc5   : > { %10590 = vmatmul.mubr.msk.bf16.gmra.mrb[88].mxu0 %vm366_vm1, %v11609_v21  ;;  %v9641_v21 = vcombine.low %v3364_v63, %v3365_v3 }
  0xc6   : > { %10522 = vmatmul.mubr.msk.bf16.gmra.mrb[24].mxu1 %vm366_vm1, %v2334_v9  ;;  %10593 = vmatprep.mubr.msk.bf16.mxu0 %vm366_vm1, %v11610_v14  ;;  %v12581_v60 = vpop.permute.xlu0 %619  ;;  %v2393_v14 = vor.u32 %v2391_v61, %v12236_v4 }
  0xc7   : > { %v12526_v50 = vpop.permute.xlu1 %669  ;;  %11533 = vset.pattern.permute.xlu1 %v15506_v12  ;;  %10525 = vmatprep.mubr.msk.bf16.mxu1 %vm366_vm1, %v12175_v36  ;;  %v2367_v36 = vshrl.u32 %v12345_v13, 16  ;;  %v2373_v13 = vrot.slane %v2371_v31, 1  ;;  %v3485_v9 = vshll.u32 %v9641_v21, 16  ;;  %v3483_v38 = vshrl.u32 %v9641_v21, 16  ;;  %v11623_v31 = vld [vmem:[%s11867_s14 + $0x20] sm:$0xff]  }
  0xc8   : > { %15712 = vst [vmem:[#allocation16_spill] sm:$0xff] %v12526_v50  ;;  %v2398_v28 = vsel %vm954_vm3, %v2393_v14, %v12238_v29 }
  0xc9   : > { %v2369_v24 = vor.u32 %v2367_v36, %v2365_v45  ;;  %v2377_v59 = vor.u32 %v2375_v58, %v2373_v13  ;;  %v3487_v36 = vrot.slane %v3485_v9, 1  ;;  %v3502_v9 = vshrl.u32 %v11623_v31, 16 }
  0xcb   : > { %v2382_v10 = vsel %vm954_vm3, %v2377_v59, %v12215_v54  ;;  %v11621_v54 = vld [vmem:[%s11867_s14 + $0x18] sm:$0xff]  }
  0xcc   : > { %v12538_v17 = vpop.permute.xlu1 %1628  ;;  %v3865_v29 = vrot.slane %v11621_v54, 1 }
  0xcd   : > { %15713 = vst [vmem:[#allocation17_spill] sm:$0xff] %v12538_v17  ;;  %10594 = vmatmul.mubr.msk.bf16.gmra.mrb[92].mxu0 %vm366_vm1, %v11611_v15  ;;  %v12596_v15 = vpop.permute.xlu0 %624 }
  0xce   : > { %10526 = vmatmul.mubr.msk.bf16.gmra.mrb[28].mxu1 %vm366_vm1, %v2350_v6  ;;  %10597 = vmatprep.mubr.msk.bf16.mxu0 %vm366_vm1, %v11612_v46  ;;  %15722 = vst [vmem:[#allocation26_spill] sm:$0xff] %v12596_v15  ;;  %v11618_v46 = vld [vmem:[%s11867_s14 + $0x80] sm:$0xff]   ;;  %v9675_v6 = vcombine.low %v3858_v48, %v3365_v3 }
  0xcf   : > { %10529 = vmatprep.mubr.msk.bf16.mxu1 %vm366_vm1, %v12208_v52  ;;  %v2374_v52 = vsel %vm954_vm3, %v2369_v24, %v2373_v13  ;;  %v3488_v13 = vor.u32 %v3487_v36, %v3483_v38 }
  0xd0   : > { %v3864_v45 = vrot.slane %v9675_v6, 1 }
  0xd1   : > { %v12551_v56 = vpop.permute.xlu1 %674  ;;  %v12609_v37 = vpop.permute.xlu0 %639 }
  0xd2   : > { %15715 = vst [vmem:[#allocation19_spill] sm:$0xff] %v12551_v56  ;;  %v12750_v56 = vld [vmem:[%s11867_s14 + $0x68] sm:$0xff]  }
  0xd5   : > { %10598 = vmatmul.mubr.msk.bf16.gmra.mrb[96].mxu0 %vm366_vm1, %v11613_v27 }
  0xd6   : > { %v12562_v51 = vpop.permute.xlu1 %1632  ;;  %10530 = vmatmul.mubr.msk.bf16.gmra.mrb[32].mxu1 %vm366_vm1, %v2366_v30  ;;  %10601 = vmatprep.mubr.msk.bf16.mxu0 %vm366_vm1, %v11614_v44  ;;  %v12614_v44 = vld [vmem:[%s11867_s14 + $0x28] sm:$0xff]  }
  0xd7   : > { %15717 = vst [vmem:[#allocation21_spill] sm:$0xff] %v12562_v51  ;;  %10533 = vmatprep.mubr.msk.bf16.mxu1 %vm366_vm1, %v2374_v52  ;;  %v11619_v52 = vld [vmem:[%s11867_s14 + $0x88] sm:$0xff]   ;;  %v3506_v48 = vshll.u32 %v12614_v44, 16  ;;  %v3869_v38 = vrot.slane %v12614_v44, 1  ;;  %v3510_v12 = vshrl.u32 %v12614_v44, 16 }
  0xda   : > { %v12571_v53 = vpop.permute.xlu1 %1636 }
  0xdb   : > { %15719 = vst [vmem:[#allocation23_spill] sm:$0xff] %v12571_v53 }
  0xdd   : > { %10602 = vmatmul.mubr.msk.bf16.gmra.mrb[100].mxu0 %vm366_vm1, %v11615_v40 }
  0xde   : > { %10534 = vmatmul.mubr.msk.bf16.gmra.mrb[36].mxu1 %vm366_vm1, %v2382_v10  ;;  %10605 = vmatprep.mubr.msk.bf16.mxu0 %vm366_vm1, %v11616_v1  ;;  %v3494_v1 = vshrl.u32 %v11621_v54, 16  ;;  %v3866_v10 = vsel %vm1337_vm2, %v3864_v45, %v3865_v29 }
  0xdf   : > { %v12583_v23 = vpop.permute.xlu1 %689  ;;  %10537 = vmatprep.mubr.msk.bf16.mxu1 %vm366_vm1, %v12253_v20  ;;  %v3490_v20 = vshll.u32 %v11621_v54, 16 }
  0xe0   : > { %15720 = vst [vmem:[#allocation24_spill] sm:$0xff] %v12583_v23 }
  0xe1   : > { %v3492_v27 = vrot.slane %v3490_v20, 1 }
  0xe3   : > { %v3493_v14 = vsel %vm954_vm3, %v3488_v13, %v3492_v27  ;;  %v3496_v6 = vor.u32 %v3494_v1, %v3492_v27  ;;  %v3508_v13 = vrot.slane %v3506_v48, 1 }
  0xe4   : > { %v12593_v16 = vpop.permute.xlu1 %1644 }
  0xe5   : > { %15721 = vst [vmem:[#allocation25_spill] sm:$0xff] %v12593_v16  ;;  %10606 = vmatmul.mubr.msk.bf16.gmra.mrb[104].mxu0 %vm366_vm1, %v11617_v18  ;;  %v12637_v18 = vpop.permute.xlu0 %644 }
  0xe6   : > { %10538 = vmatmul.mubr.msk.bf16.gmra.mrb[40].mxu1 %vm366_vm1, %v2398_v28  ;;  %10609 = vmatprep.mubr.msk.bf16.mxu0 %vm366_vm1, %v11618_v46  ;;  %v3867_v46 = vrot.slane %v11623_v31, 1  ;;  %v11625_v28 = vld [vmem:[%s11867_s14 + $0x30] sm:$0xff]  }
  0xe7   : > { %10541 = vmatprep.mubr.msk.bf16.mxu1 %vm366_vm1, %v12269_v25  ;;  %v3498_v25 = vshll.u32 %v11623_v31, 16  ;;  %v3514_v1 = vshll.u32 %v11625_v28, 16 }
  0xe8   : > { %v12611_v24 = vpop.f32.mrb[0].mxu0  ;;  %v3868_v27 = vsel %vm1337_vm2, %v3865_v29, %v3867_v46  ;;  %v3870_v48 = vsel %vm1337_vm2, %v3867_v46, %v3869_v38  ;;  %v3518_v29 = vshrl.u32 %v11625_v28, 16  ;;  %v3871_v46 = vrot.slane %v11625_v28, 1 }
  0xe9   : > { %v12603_v4 = vpop.permute.xlu1 %694  ;;  %v12616_v30 = vpop.f32.mrb[0].mxu1  ;;  %v3500_v54 = vrot.slane %v3498_v25, 1 }
  0xea   : > { %15723 = vst [vmem:[#allocation27_spill] sm:$0xff] %v12603_v4  ;;  %15724 = vst [vmem:[#allocation28_spill] sm:$0xff] %v12616_v30  ;;  %v12618_v58 = vpop.f32.mrb[1].mxu0  ;;  %v12621_v59 = vpop.f32.mrb[1].mxu1 }
  0xeb   : > { %15725 = vst [vmem:[#allocation29_spill] sm:$0xff] %v12621_v59  ;;  %v12623_v40 = vpop.f32.mrb[2].mxu0  ;;  %v12625_v63 = vpop.f32.mrb[2].mxu1  ;;  %v3504_v45 = vor.u32 %v3502_v9, %v3500_v54  ;;  %v3501_v9 = vsel %vm954_vm3, %v3496_v6, %v3500_v54  ;;  %v3516_v54 = vrot.slane %v3514_v1, 1  ;;  %v11627_v6 = vld [vmem:[%s11867_s14 + $0x40] sm:$0xff]   ;;  %v12713_v59 = vld [vmem:[%s11867_s14 + $0x58] sm:$0xff]  }
  0xec   : > { %15726 = vst [vmem:[#allocation30_spill] sm:$0xff] %v12625_v63  ;;  %v12627_v3 = vpop.f32.mrb[3].mxu0  ;;  %v12630_v61 = vpop.f32.mrb[3].mxu1 }
  0xed   : > { %15727 = vst [vmem:[#allocation31_spill] sm:$0xff] %v12630_v61  ;;  %10610 = vmatmul.mubr.msk.bf16.gmra.mrb[108].mxu0 %vm366_vm1, %v11619_v52  ;;  %v12650_v52 = vld [vmem:[%s11867_s14 + $0x38] sm:$0xff]   ;;  %v12668_v49 = vpop.permute.xlu0 %659  ;;  %v3509_v26 = vsel %vm954_vm3, %v3504_v45, %v3508_v13  ;;  %v12683_v45 = vld [vmem:[%s11867_s14 + $0x48] sm:$0xff]  }
  0xee   : > { %v12632_v21 = vpop.permute.xlu1 %1648  ;;  %10542 = vmatmul.mubr.msk.bf16.gmra.mrb[44].mxu1 %vm366_vm1, %v12279_v32  ;;  %10649 = vmatprep.mubr.msk.bf16.mxu0 %vm366_vm1, %v3866_v10  ;;  %15733 = vst [vmem:[#allocation37_spill] sm:$0xff] %v12668_v49  ;;  %v3542_v0 = vshrl.u32 %v12683_v45, 16 }
  0xef   : > { %15728 = vst [vmem:[#allocation32_spill] sm:$0xff] %v12632_v21  ;;  %10615 = vmatprep.mubr.msk.bf16.mxu1 %vm366_vm1, %v3493_v14  ;;  %v12705_v21 = vld [vmem:[%s11867_s14 + $0x50] sm:$0xff]  }
  0xf0   : > { %v12647_v20 = vpop.f32.mrb[4].mxu0  ;;  %v3546_v30 = vshll.u32 %v12705_v21, 16  ;;  %v3879_v51 = vrot.slane %v12705_v21, 1 }
  0xf1   : > { %v12652_v2 = vpop.f32.mrb[4].mxu1  ;;  %v12654_v32 = vpop.f32.mrb[5].mxu0 }
  0xf2   : > { %v12645_v36 = vpop.permute.xlu1 %1652  ;;  %15730 = vst [vmem:[#allocation34_spill] sm:$0xff] %v12652_v2  ;;  %v12656_v25 = vpop.f32.mrb[5].mxu1  ;;  %v3522_v2 = vshll.u32 %v12650_v52, 16 }
  0xf3   : > { %15729 = vst [vmem:[#allocation33_spill] sm:$0xff] %v12645_v36  ;;  %15731 = vst [vmem:[#allocation35_spill] sm:$0xff] %v12656_v25  ;;  %v12658_v31 = vpop.f32.mrb[6].mxu0  ;;  %v12661_v10 = vpop.f32.mrb[6].mxu1 }
  0xf4   : > { %15732 = vst [vmem:[#allocation36_spill] sm:$0xff] %v12661_v10  ;;  %v12663_v14 = vpop.f32.mrb[7].mxu0  ;;  %v12670_v25 = vpop.f32.mrb[7].mxu1  ;;  %v3512_v10 = vor.u32 %v3510_v12, %v3508_v13  ;;  %v3524_v61 = vrot.slane %v3522_v2, 1  ;;  %v3872_v12 = vsel %vm1337_vm2, %v3869_v38, %v3871_v46  ;;  %v3530_v13 = vshll.u32 %v11627_v6, 16 }
  0xf5   : > { %15734 = vst [vmem:[#allocation38_spill] sm:$0xff] %v12670_v25  ;;  %10650 = vmatmul.mubr.msk.bf16.vlgmr.msra.gmra.mrb[112].mxu0 %vm366_vm1, %v3868_v27  ;;  %v3873_v25 = vrot.slane %v12650_v52, 1  ;;  %v3520_v27 = vor.u32 %v3518_v29, %v3516_v54  ;;  %v12691_v28 = vpop.permute.xlu0 %664 }
  0xf6   : > { %10616 = vmatmul.mubr.msk.bf16.vlgmr.msra.gmra.mrb[16].mxu1 %vm366_vm1, %v3501_v9  ;;  %10653 = vmatprep.mubr.msk.bf16.mxu0 %vm366_vm1, %v3870_v48  ;;  %v3517_v2 = vsel %vm954_vm3, %v3512_v10, %v3516_v54  ;;  %v3532_v54 = vrot.slane %v3530_v13, 1 }
  0xf7   : > { %v12678_v44 = vpop.permute.xlu1 %709  ;;  %10619 = vmatprep.mubr.msk.bf16.mxu1 %vm366_vm1, %v3509_v26  ;;  %v3526_v26 = vshrl.u32 %v12650_v52, 16  ;;  %v3874_v29 = vsel %vm1337_vm2, %v3871_v46, %v3873_v25  ;;  %v3525_v38 = vsel %vm954_vm3, %v3520_v27, %v3524_v61  ;;  %v3534_v52 = vshrl.u32 %v11627_v6, 16 }
  0xf8   : > { %15735 = vst [vmem:[#allocation39_spill] sm:$0xff] %v12678_v44  ;;  %v12685_v36 = vpop.f32.mrb[8].mxu0  ;;  %v3875_v46 = vrot.slane %v11627_v6, 1  ;;  %v3877_v27 = vrot.slane %v12683_v45, 1 }
  0xf9   : > { %v12687_v9 = vpop.f32.mrb[8].mxu1  ;;  %v12689_v48 = vpop.f32.mrb[9].mxu0  ;;  %v3528_v10 = vor.u32 %v3526_v26, %v3524_v61  ;;  %v12730_v61 = vld [vmem:[%s11867_s14 + $0x60] sm:$0xff]  }
  0xfa   : > { %15736 = vst [vmem:[#allocation40_spill] sm:$0xff] %v12687_v9  ;;  %v12693_v1 = vpop.f32.mrb[9].mxu1  ;;  %v12699_v44 = vpop.f32.mrb[10].mxu0  ;;  %v3538_v9 = vshll.u32 %v12683_v45, 16  ;;  %v3878_v16 = vsel %vm1337_vm2, %v3875_v46, %v3877_v27 }
  0xfb   : > { %15737 = vst [vmem:[#allocation41_spill] sm:$0xff] %v12693_v1  ;;  %v12707_v4 = vpop.f32.mrb[10].mxu1  ;;  %v12709_v1 = vpop.f32.mrb[11].mxu0 }
  0xfc   : > { %v12697_v63 = vpop.permute.xlu1 %1660  ;;  %15739 = vst [vmem:[#allocation43_spill] sm:$0xff] %v12707_v4  ;;  %v3540_v4 = vrot.slane %v3538_v9, 1  ;;  %v3550_v9 = vshrl.u32 %v12705_v21, 16  ;;  %v12737_v13 = vpop.permute.xlu0 %679 }
  0xfd   : > { %15738 = vst [vmem:[#allocation42_spill] sm:$0xff] %v12697_v63  ;;  %v12715_v63 = vpop.f32.mrb[11].mxu1  ;;  %10654 = vmatmul.mubr.msk.bf16.gmra.mrb[116].mxu0 %vm366_vm1, %v3872_v12  ;;  %v3536_v12 = vor.u32 %v3534_v52, %v3532_v54  ;;  %15744 = vst [vmem:[#allocation48_spill] sm:$0xff] %v12737_v13 }
  0xfe   : > { %15740 = vst [vmem:[#allocation44_spill] sm:$0xff] %v12715_v63  ;;  %10620 = vmatmul.mubr.msk.bf16.gmra.mrb[20].mxu1 %vm366_vm1, %v3517_v2  ;;  %10657 = vmatprep.mubr.msk.bf16.mxu0 %vm366_vm1, %v3874_v29  ;;  %v3554_v2 = vshll.u32 %v12713_v59, 16  ;;  %v3533_v29 = vsel %vm954_vm3, %v3528_v10, %v3532_v54  ;;  %v3544_v23 = vor.u32 %v3542_v0, %v3540_v4 }
  0xff   : > { %10623 = vmatprep.mubr.msk.bf16.mxu1 %vm366_vm1, %v3525_v38  ;;  %v3876_v38 = vsel %vm1337_vm2, %v3873_v25, %v3875_v46  ;;  %v3541_v10 = vsel %vm954_vm3, %v3536_v12, %v3540_v4  ;;  %v3558_v25 = vshrl.u32 %v12713_v59, 16  ;;  %v3570_v4 = vshll.u32 %v12750_v56, 16 }
 0x100   : > { %v12726_v53 = vpop.f32.mrb[12].mxu0  ;;  %v3556_v54 = vrot.slane %v3554_v2, 1  ;;  %v12767_v21 = vpop.permute.xlu0 %684  ;;  %v3880_v2 = vsel %vm1337_vm2, %v3877_v27, %v3879_v51 }
 0x101   : > { %v12724_v63 = vpop.permute.xlu1 %714  ;;  %v12732_v6 = vpop.f32.mrb[12].mxu1  ;;  %15750 = vst [vmem:[#allocation54_spill] sm:$0xff] %v12767_v21 }
 0x102   : > { %15741 = vst [vmem:[#allocation45_spill] sm:$0xff] %v12724_v63  ;;  %15742 = vst [vmem:[#allocation46_spill] sm:$0xff] %v12732_v6  ;;  %v12734_v26 = vpop.f32.mrb[13].mxu0  ;;  %v12739_v45 = vpop.f32.mrb[13].mxu1  ;;  %v3548_v6 = vrot.slane %v3546_v30, 1  ;;  %v3881_v30 = vrot.slane %v12713_v59, 1 }
 0x103   : > { %15743 = vst [vmem:[#allocation47_spill] sm:$0xff] %v12734_v26  ;;  %15745 = vst [vmem:[#allocation49_spill] sm:$0xff] %v12739_v45  ;;  %v12743_v52 = vpop.f32.mrb[14].mxu0  ;;  %v12745_v63 = vpop.f32.mrb[14].mxu1  ;;  %v3562_v45 = vshll.u32 %v12730_v61, 16 }
 0x104   : > { %15746 = vst [vmem:[#allocation50_spill] sm:$0xff] %v12745_v63  ;;  %v12752_v26 = vpop.f32.mrb[15].mxu0  ;;  %v12754_v13 = vpop.f32.mrb[15].mxu1  ;;  %v3552_v0 = vor.u32 %v3550_v9, %v3548_v6  ;;  %v3549_v12 = vsel %vm954_vm3, %v3544_v23, %v3548_v6  ;;  %v772_v23 = vmul.f32 %v12567_v43, %v12618_v58  ;;  %v773_v58 = vmul.f32 %v12581_v60, %v12627_v3  ;;  %v12810_v3 = vld [vmem:[%s11867_s14 + $0x78] sm:$0xff]  }
 0x105   : > { %15747 = vst [vmem:[#allocation51_spill] sm:$0xff] %v12752_v26  ;;  %15748 = vst [vmem:[#allocation52_spill] sm:$0xff] %v12754_v13  ;;  %10658 = vmatmul.mubr.msk.bf16.gmra.mrb[120].mxu0 %vm366_vm1, %v3876_v38  ;;  %v3560_v38 = vor.u32 %v3558_v25, %v3556_v54  ;;  %v3564_v9 = vrot.slane %v3562_v45, 1  ;;  %v12779_v26 = vld [vmem:[%s11867_s14 + $0x70] sm:$0xff]   ;;  %v3882_v45 = vsel %vm1337_vm2, %v3879_v51, %v3881_v30  ;;  %v3574_v51 = vshrl.u32 %v12750_v56, 16 }
 0x106   : > { %v12759_v63 = vpop.permute.xlu1 %1664  ;;  %10624 = vmatmul.mubr.msk.bf16.gmra.mrb[24].mxu1 %vm366_vm1, %v3533_v29  ;;  %10661 = vmatprep.mubr.msk.bf16.mxu0 %vm366_vm1, %v3878_v16  ;;  %v774_v29 = vmul.f32 %v12611_v24, %v12596_v15  ;;  %v3566_v24 = vshrl.u32 %v12730_v61, 16  ;;  %v775_v25 = vmul.f32 %v12623_v40, %v12373_v41  ;;  %v3578_v40 = vshll.u32 %v12779_v26, 16 }
 0x107   : > { %15749 = vst [vmem:[#allocation53_spill] sm:$0xff] %v12759_v63  ;;  %10627 = vmatprep.mubr.msk.bf16.mxu1 %vm366_vm1, %v3541_v10  ;;  %v3557_v10 = vsel %vm954_vm3, %v3552_v0, %v3556_v54  ;;  %v3883_v63 = vrot.slane %v12730_v61, 1 }
 0x108   : > { %v10447_v46 = vpop.f32.mrb[16].mxu0 }
 0x109   : > { %v1713_v59 = vmul.f32 %v10447_v46, %v12447_v62  ;;  %v1456_v13 = vpop.f32.mrb[17].mxu0  ;;  %v3572_v62 = vrot.slane %v3570_v4, 1 }
 0x10a   : > { %v12773_v16 = vpop.permute.xlu1 %1668  ;;  %v1711_v27 = vmul.f32 %v12347_v22, %v1456_v13  ;;  %v10448_v6 = vpop.f32.mrb[18].mxu0 }
 0x10b   : > { %15751 = vst [vmem:[#allocation55_spill] sm:$0xff] %v12773_v16  ;;  %v12788_v46 = vadd.f32 %v1713_v59, %v774_v29  ;;  %v1714_v54 = vmul.f32 %v10448_v6, %v12389_v57  ;;  %v1459_v0 = vpop.f32.mrb[19].mxu0  ;;  %v12803_v29 = vpop.permute.xlu0 %699  ;;  %v3885_v59 = vrot.slane %v12750_v56, 1  ;;  %v3568_v6 = vor.u32 %v3566_v24, %v3564_v9 }
 0x10c   : > { %v12793_v43 = vadd.f32 %v1711_v27, %v772_v23  ;;  %v1712_v13 = vmul.f32 %v12362_v34, %v1459_v0  ;;  %v3565_v27 = vsel %vm954_vm3, %v3560_v38, %v3564_v9  ;;  %v776_v56 = vmul.f32 %v12402_v47, %v12654_v32 }
 0x10d   : > { %v12797_v61 = vadd.f32 %v1714_v54, %v775_v25  ;;  %10662 = vmatmul.mubr.msk.bf16.gmra.mrb[124].mxu0 %vm366_vm1, %v3880_v2  ;;  %v3884_v2 = vsel %vm1337_vm2, %v3881_v30, %v3883_v63  ;;  %v3576_v25 = vor.u32 %v3574_v51, %v3572_v62  ;;  %v778_v54 = vmul.f32 %v12647_v20, %v12637_v18 }
 0x10e   : > { %v12805_v4 = vadd.f32 %v1712_v13, %v773_v58  ;;  %10628 = vmatmul.mubr.msk.bf16.gmra.mrb[28].mxu1 %vm366_vm1, %v3549_v12  ;;  %10665 = vmatprep.mubr.msk.bf16.mxu0 %vm366_vm1, %v3882_v45  ;;  %v3580_v58 = vrot.slane %v3578_v40, 1  ;;  %v3582_v9 = vshrl.u32 %v12779_v26, 16  ;;  %v3586_v24 = vshll.u32 %v12810_v3, 16 }
 0x10f   : > { %v12799_v22 = vpop.permute.xlu1 %729  ;;  %10631 = vmatprep.mubr.msk.bf16.mxu1 %vm366_vm1, %v3557_v10  ;;  %v3887_v10 = vrot.slane %v12779_v26, 1  ;;  %v779_v20 = vmul.f32 %v12658_v31, %v12445_v39  ;;  %v777_v32 = vmul.f32 %v12609_v37, %v12663_v14 }
 0x110   : > { %15752 = vst [vmem:[#allocation56_spill] sm:$0xff] %v12799_v22  ;;  %v10451_v23 = vpop.f32.mrb[20].mxu0  ;;  %v3588_v14 = vrot.slane %v3586_v24, 1  ;;  %v3590_v24 = vshrl.u32 %v12810_v3, 16 }
 0x111   : > { %v1717_v12 = vmul.f32 %v10451_v23, %v12470_v19  ;;  %v1472_v0 = vpop.f32.mrb[21].mxu0  ;;  %v3886_v23 = vsel %vm1337_vm2, %v3883_v63, %v3885_v59  ;;  %v12833_v19 = vpop.permute.xlu0 %704  ;;  %v3584_v63 = vor.u32 %v3582_v9, %v3580_v58 }
 0x112   : > { %v1715_v38 = vmul.f32 %v12421_v7, %v1472_v0  ;;  %v10452_v30 = vpop.f32.mrb[22].mxu0  ;;  %15754 = vst [vmem:[#allocation58_spill] sm:$0xff] %v12833_v19  ;;  %v3573_v7 = vsel %vm954_vm3, %v3568_v6, %v3572_v62  ;;  %v12856_v62 = vld [vmem:[%s11867_s14 + $0x88] sm:$0xff]  }
 0x113   : > { %v12829_v13 = vadd.f32 %v1717_v12, %v778_v54  ;;  %v1718_v51 = vmul.f32 %v10452_v30, %v12464_v35  ;;  %v1475_v40 = vpop.f32.mrb[23].mxu0  ;;  %v12845_v54 = vld [vmem:[%s11867_s14 + $0x80] sm:$0xff]   ;;  %v3888_v30 = vsel %vm1337_vm2, %v3885_v59, %v3887_v10  ;;  %v3589_v59 = vsel %vm954_vm3, %v3584_v63, %v3588_v14 }
 0x114   : > { %v12819_v45 = vpop.permute.xlu1 %1676  ;;  %v12837_v0 = vadd.f32 %v1715_v38, %v776_v56  ;;  %v1716_v26 = vmul.f32 %v12434_v42, %v1475_v40  ;;  %v3889_v56 = vrot.slane %v12810_v3, 1  ;;  %v3598_v63 = vshrl.u32 %v12845_v54, 16 }
 0x115   : > { %15753 = vst [vmem:[#allocation57_spill] sm:$0xff] %v12819_v45  ;;  %v12841_v31 = vadd.f32 %v1718_v51, %v779_v20  ;;  %10666 = vmatmul.mubr.msk.bf16.gmra.mrb[128].mxu0 %vm366_vm1, %v3884_v2  ;;  %v3581_v2 = vsel %vm954_vm3, %v3576_v25, %v3580_v58  ;;  %v3594_v51 = vshll.u32 %v12845_v54, 16  ;;  %v12865_v40 = vpop.permute.xlu0 %719 }
 0x116   : > { %v12847_v12 = vadd.f32 %v1716_v26, %v777_v32  ;;  %10632 = vmatmul.mubr.msk.bf16.gmra.mrb[32].mxu1 %vm366_vm1, %v3565_v27  ;;  %10669 = vmatprep.mubr.msk.bf16.mxu0 %vm366_vm1, %v3886_v23  ;;  %v782_v27 = vmul.f32 %v12685_v36, %v12691_v28  ;;  %v3890_v58 = vsel %vm1337_vm2, %v3887_v10, %v3889_v56 }
 0x117   : > { %10635 = vmatprep.mubr.msk.bf16.mxu1 %vm366_vm1, %v3573_v7  ;;  %v780_v7 = vmul.f32 %v12486_v33, %v12689_v48  ;;  %v783_v36 = vmul.f32 %v12699_v44, %v12526_v50  ;;  %v3602_v48 = vshll.u32 %v12856_v62, 16 }
 0x118   : > { %v10455_v6 = vpop.f32.mrb[24].mxu0 }
 0x119   : > { %v12852_v38 = vpop.permute.xlu1 %734  ;;  %v1721_v20 = vmul.f32 %v10455_v6, %v12492_v55  ;;  %v1488_v9 = vpop.f32.mrb[25].mxu0 }
 0x11a   : > { %15755 = vst [vmem:[#allocation59_spill] sm:$0xff] %v12852_v38  ;;  %v1719_v23 = vmul.f32 %v12502_v8, %v1488_v9  ;;  %v10456_v25 = vpop.f32.mrb[26].mxu0  ;;  %v781_v9 = vmul.f32 %v12668_v49, %v12709_v1  ;;  %v11637_v1 = vld [vmem:[%s11867_s14 + $0x90] ss:$0 sps:$4 sm:$0x11]  }
 0x11b   : > { %v12874_v32 = vadd.f32 %v1721_v20, %v782_v27  ;;  %v1722_v3 = vmul.f32 %v10456_v25, %v12538_v17  ;;  %v1491_v26 = vpop.f32.mrb[27].mxu0  ;;  %v3592_v27 = vor.u32 %v3590_v24, %v3588_v14  ;;  %v3596_v20 = vrot.slane %v3594_v51, 1 }
 0x11c   : > { %v12882_v8 = vadd.f32 %v1719_v23, %v780_v7  ;;  %v1720_v10 = vmul.f32 %v12516_v11, %v1491_v26  ;;  %v3891_v25 = vrot.slane %v12845_v54, 1  ;;  %v3893_v23 = vrot.slane %v12856_v62, 1  ;;  %v15762_v26 = vld [vmem:[#allocation47_spill] sm:$0xff] }
 0x11d   : > { %v12886_v44 = vadd.f32 %v1722_v3, %v783_v36  ;;  %10670 = vmatmul.mubr.msk.bf16.gmra.mrb[132].mxu0 %vm366_vm1, %v3888_v30  ;;  %v12899_v36 = vpop.permute.xlu0 %724  ;;  %v3600_v14 = vor.u32 %v3598_v63, %v3596_v20  ;;  %v3604_v24 = vrot.slane %v3602_v48, 1  ;;  %v786_v54 = vmul.f32 %v12726_v53, %v12767_v21  ;;  %v15765_v48 = vld [vmem:[#allocation24_spill] sm:$0xff] }
 0x11e   : > { %v12877_v6 = vpop.permute.xlu1 %1680  ;;  %15757 = vst [vmem:[#allocation61_spill] sm:$0xff] %v12882_v8  ;;  %v12890_v17 = vadd.f32 %v1720_v10, %v781_v9  ;;  %10636 = vmatmul.mubr.msk.bf16.gmra.mrb[36].mxu1 %vm366_vm1, %v3581_v2  ;;  %10673 = vmatprep.mubr.msk.bf16.mxu0 %vm366_vm1, %v3890_v58  ;;  %15761 = vst [vmem:[#allocation65_spill] sm:$0xff] %v12899_v36  ;;  %v3597_v58 = vsel %vm954_vm3, %v3592_v27, %v3596_v20  ;;  %v15763_v9 = vld [vmem:[#allocation19_spill] sm:$0xff]  ;;  %v15764_v10 = vld [vmem:[#allocation21_spill] sm:$0xff]  ;;  %v3610_v63 = vshll.u32 %v11637_v1, 16 }
 0x11f   : > { %15756 = vst [vmem:[#allocation60_spill] sm:$0xff] %v12877_v6  ;;  %15758 = vst [vmem:[#allocation62_spill] sm:$0xff] %v12886_v44  ;;  %10639 = vmatprep.mubr.msk.bf16.mxu1 %vm366_vm1, %v3589_v59  ;;  %v3892_v3 = vsel %vm1337_vm2, %v3889_v56, %v3891_v25  ;;  %v784_v59 = vmul.f32 %v15763_v9, %v15762_v26  ;;  %v3606_v44 = vshrl.u32 %v12856_v62, 16  ;;  %v15767_v56 = vld [vmem:[#allocation51_spill] sm:$0xff]  ;;  %v15768_v20 = vld [vmem:[#allocation48_spill] sm:$0xff] }
 0x120   : > { %15759 = vst [vmem:[#allocation63_spill] sm:$0xff] %v12890_v17  ;;  %v10459_v30 = vpop.f32.mrb[28].mxu0  ;;  %v787_v49 = vmul.f32 %v12743_v52, %v15765_v48  ;;  %v3894_v27 = vsel %vm1337_vm2, %v3891_v25, %v3893_v23  ;;  %v785_v8 = vmul.f32 %v15768_v20, %v15767_v56  ;;  %v3605_v62 = vsel %vm954_vm3, %v3600_v14, %v3604_v24 }
 0x121   : > { %v1725_v51 = vmul.f32 %v10459_v30, %v12508_v5  ;;  %v1504_v2 = vpop.f32.mrb[29].mxu0  ;;  %v15766_v30 = vld [vmem:[#allocation25_spill] sm:$0xff]  ;;  %v12927_v52 = vpop.permute.xlu0 %739  ;;  %v3612_v25 = vrot.slane %v3610_v63, 1 }
 0x122   : > { %v12895_v7 = vpop.permute.xlu1 %1684  ;;  %v1723_v11 = vmul.f32 %v15764_v10, %v1504_v2  ;;  %v10460_v17 = vpop.f32.mrb[30].mxu0  ;;  %v15769_v2 = vld [vmem:[#allocation23_spill] sm:$0xff] }
 0x123   : > { %15760 = vst [vmem:[#allocation64_spill] sm:$0xff] %v12895_v7  ;;  %v12912_v53 = vadd.f32 %v1725_v51, %v786_v54  ;;  %v1726_v5 = vmul.f32 %v10460_v17, %v15766_v30  ;;  %v1507_v21 = vpop.f32.mrb[31].mxu0  ;;  %v15774_v54 = vld [vmem:[#allocation15_spill] sm:$0xff] }
 0x124   : > { %v12918_v26 = vadd.f32 %v1723_v11, %v784_v59  ;;  %v1724_v10 = vmul.f32 %v15769_v2, %v1507_v21  ;;  %v3895_v11 = vrot.slane %v11637_v1, 1  ;;  %v3608_v21 = vor.u32 %v3606_v44, %v3604_v24  ;;  %v15780_v44 = vld [vmem:[#allocation30_spill] sm:$0xff] }
 0x125   : > { %v12922_v9 = vadd.f32 %v1726_v5, %v787_v49  ;;  %10674 = vmatmul.mubr.msk.bf16.gmra.mrb[136].mxu0 %vm366_vm1, %v3892_v3  ;;  %v15773_v5 = vld [vmem:[#allocation28_spill] sm:$0xff] }
 0x126   : > { %v12929_v17 = vadd.f32 %v1724_v10, %v785_v8  ;;  %10640 = vmatmul.mubr.msk.bf16.gmra.mrb[40].mxu1 %vm366_vm1, %v3597_v58  ;;  %10677 = vmatprep.mubr.msk.bf16.mxu0 %vm366_vm1, %v3894_v27  ;;  %v790_v49 = vmul.f32 %v15773_v5, %v12833_v19  ;;  %v15776_v8 = vld [vmem:[#allocation29_spill] sm:$0xff]  ;;  %v15777_v10 = vld [vmem:[#allocation27_spill] sm:$0xff]  ;;  %v15778_v58 = vld [vmem:[#allocation32_spill] sm:$0xff]  ;;  %v3896_v1 = vsel %vm1337_vm2, %v3893_v23, %v3895_v11 }
 0x127   : > { %15770 = vst [vmem:[#allocation47_spill] sm:$0xff] %v12922_v9  ;;  %v12924_v50 = vpop.permute.xlu1 %749  ;;  %10643 = vmatprep.mubr.msk.bf16.mxu1 %vm366_vm1, %v3605_v62  ;;  %v788_v56 = vmul.f32 %v15777_v10, %v15776_v8  ;;  %v15779_v62 = vld [vmem:[#allocation39_spill] sm:$0xff]  ;;  %v12951_v9 = vpop.permute.xlu0 %744  ;;  %v4784_v23 = vld [vmem:[%s15501_s3] sm:$0xf]  ;;  %v9758_v11 = vld [vmem:[%s15501_s3 + $0x4] sm:$0xf] }
 0x128   : > { %15771 = vst [vmem:[#allocation51_spill] sm:$0xff] %v12924_v50  ;;  %15772 = vst [vmem:[#allocation48_spill] sm:$0xff] %v12929_v17  ;;  %v10463_v14 = vpop.f32.mrb[32].mxu0  ;;  %v791_v24 = vmul.f32 %v15780_v44, %v15779_v62  ;;  %v15781_v17 = vld [vmem:[#allocation42_spill] sm:$0xff]  ;;  %11481 = vmatprep.subr.msk.bf16.mxu1 %vm4914_vm4, %v4784_v23  ;;  %11482 = vmatprep.subr.msk.bf16.mxu0 %vm4914_vm4, %v9758_v11  ;;  %v5634_v44 = vsel %vm4914_vm4, %v9758_v11, 0 }
 0x129   : > { %v1729_v51 = vmul.f32 %v10463_v14, %v15774_v54  ;;  %v1520_v3 = vpop.f32.mrb[33].mxu0  ;;  %v3613_v14 = vsel %vm954_vm3, %v3608_v21, %v3612_v25  ;;  %v15782_v54 = vld [vmem:[#allocation31_spill] sm:$0xff]  ;;  %15783 = vst [vmem:[#allocation29_spill] sm:$0xff] %v12951_v9  ;;  %10716 = vmatpush3.bf16.msra.mxu0 %v5634_v44  ;;  %v15796_v11 = vld [vmem:[#allocation38_spill] sm:$0xff] }
 0x12a   : > { %v1727_v2 = vmul.f32 %v15778_v58, %v1520_v3  ;;  %v10464_v27 = vpop.f32.mrb[34].mxu0  ;;  %v789_v30 = vmul.f32 %v12803_v29, %v15782_v54  ;;  %v15784_v3 = vld [vmem:[#allocation33_spill] sm:$0xff]  ;;  %v15788_v54 = vld [vmem:[#allocation34_spill] sm:$0xff] }
 0x12b   : > { %v12945_v63 = vadd.f32 %v1729_v51, %v790_v49  ;;  %v1730_v5 = vmul.f32 %v10464_v27, %v15781_v17  ;;  %v1523_v19 = vpop.f32.mrb[35].mxu0  ;;  %v794_v51 = vmul.f32 %v15788_v54, %v12899_v36  ;;  %v793_v36 = vmul.f32 %v12865_v40, %v15796_v11  ;;  %v15801_v11 = vld [vmem:[#allocation41_spill] sm:$0xff] }
 0x12c   : > { %v12937_v59 = vpop.permute.xlu1 %1692  ;;  %v12953_v8 = vadd.f32 %v1727_v2, %v788_v56  ;;  %v1728_v58 = vmul.f32 %v15784_v3, %v1523_v19  ;;  %v4916_v2 = vsel %vm4914_vm4, %v4784_v23, 0  ;;  %v15789_v56 = vld [vmem:[#allocation18_spill] sm:$0xff] }
 0x12d   : > { %15775 = vst [vmem:[#allocation28_spill] sm:$0xff] %v12937_v59  ;;  %v12962_v49 = vadd.f32 %v1730_v5, %v791_v24  ;;  %10678 = vmatmul.mubr.msk.bf16.gmra.mrb[140].mxu0 %vm366_vm1, %v3896_v1  ;;  %10682 = vmatpush3.bf16.msra.mxu1 %v4916_v2  ;;  %v12977_v24 = vpop.permute.xlu0 %759  ;;  %v15793_v2 = vld [vmem:[#allocation36_spill] sm:$0xff] }
 0x12e   : > { %v12967_v21 = vadd.f32 %v1728_v58, %v789_v30  ;;  %10644 = vmatmul.mubr.msk.bf16.gmra.mrb[44].mxu1 %vm366_vm1, %v3613_v14  ;;  %v15790_v30 = vld [vmem:[#allocation35_spill] sm:$0xff]  ;;  %v15791_v58 = vld [vmem:[#allocation45_spill] sm:$0xff] }
 0x12f   : > { %15785 = vst [vmem:[#allocation30_spill] sm:$0xff] %v12962_v49  ;;  %v792_v5 = vmul.f32 %v15791_v58, %v15790_v30  ;;  %v15792_v14 = vld [vmem:[#allocation53_spill] sm:$0xff] }
 0x130   : > { %15786 = vst [vmem:[#allocation31_spill] sm:$0xff] %v12967_v21  ;;  %v10467_v25 = vpop.f32.mrb[36].mxu0  ;;  %v795_v21 = vmul.f32 %v15793_v2, %v12799_v22 }
 0x131   : > { %v12971_v19 = vpop.permute.xlu1 %754  ;;  %v1733_v27 = vmul.f32 %v10467_v25, %v15789_v56  ;;  %v1536_v1 = vpop.f32.mrb[37].mxu0 }
 0x132   : > { %15787 = vst [vmem:[#allocation66_spill] sm:$0xff] %v12971_v19  ;;  %v1731_v23 = vmul.f32 %v15792_v14, %v1536_v1  ;;  %v10468_v3 = vpop.f32.mrb[38].mxu0  ;;  %v13002_v2 = vpop.permute.xlu0 %764 }
 0x133   : > { %v12984_v17 = vadd.f32 %v1733_v27, %v794_v51  ;;  %v1734_v54 = vmul.f32 %v10468_v3, %v12819_v45  ;;  %v1539_v25 = vpop.f32.mrb[39].mxu0  ;;  %v15798_v27 = vld [vmem:[#allocation40_spill] sm:$0xff]  ;;  %15799 = vst [vmem:[#allocation38_spill] sm:$0xff] %v13002_v2 }
 0x134   : > { %v12991_v49 = vadd.f32 %v1731_v23, %v792_v5  ;;  %v1732_v30 = vmul.f32 %v12773_v16, %v1539_v25  ;;  %v798_v3 = vmul.f32 %v15798_v27, %v12951_v9  ;;  %v15800_v45 = vld [vmem:[#allocation20_spill] sm:$0xff]  ;;  %v796_v5 = vmul.f32 %v12852_v38, %v15801_v11 }
 0x135   : > { %15794 = vst [vmem:[#allocation34_spill] sm:$0xff] %v12984_v17  ;;  %v12994_v1 = vadd.f32 %v1734_v54, %v795_v21  ;;  %v15804_v9 = vld [vmem:[#allocation44_spill] sm:$0xff] }
 0x136   : > { %v12987_v56 = vpop.permute.xlu1 %1696  ;;  %v12996_v44 = vadd.f32 %v1732_v30, %v793_v36  ;;  %v15802_v36 = vld [vmem:[#allocation43_spill] sm:$0xff] }
 0x137   : > { %15795 = vst [vmem:[#allocation35_spill] sm:$0xff] %v12987_v56  ;;  %v799_v54 = vmul.f32 %v15802_v36, %v12924_v50 }
 0x138   : > { %v10471_v51 = vpop.f32.mrb[40].mxu0 }
 0x139   : > { %v1737_v22 = vmul.f32 %v10471_v51, %v15800_v45  ;;  %v1552_v17 = vpop.f32.mrb[41].mxu0  ;;  %v797_v51 = vmul.f32 %v12927_v52, %v15804_v9  ;;  %v15809_v9 = vld [vmem:[#allocation49_spill] sm:$0xff] }
 0x13a   : > { %v12998_v14 = vpop.permute.xlu1 %1700  ;;  %v1735_v23 = vmul.f32 %v12877_v6, %v1552_v17  ;;  %v10472_v21 = vpop.f32.mrb[42].mxu0 }
 0x13b   : > { %15797 = vst [vmem:[#allocation36_spill] sm:$0xff] %v12998_v14  ;;  %v13010_v25 = vadd.f32 %v1737_v22, %v798_v3  ;;  %v1738_v30 = vmul.f32 %v10472_v21, %v12937_v59  ;;  %v1555_v16 = vpop.f32.mrb[43].mxu0  ;;  %v13024_v6 = vpop.permute.xlu0 %769  ;;  %v15808_v21 = vld [vmem:[#allocation46_spill] sm:$0xff] }
 0x13c   : > { %v13017_v45 = vadd.f32 %v1735_v23, %v796_v5  ;;  %v1736_v11 = vmul.f32 %v12895_v7, %v1555_v16  ;;  %15806 = vst [vmem:[#allocation43_spill] sm:$0xff] %v13024_v6  ;;  %v802_v36 = vmul.f32 %v15808_v21, %v13002_v2  ;;  %v800_v5 = vmul.f32 %v12971_v19, %v15809_v9 }
 0x13d   : > { %v13020_v38 = vadd.f32 %v1738_v30, %v799_v54  ;;  %v15810_v54 = vld [vmem:[#allocation50_spill] sm:$0xff] }
 0x13e   : > { %v13013_v27 = vpop.permute.xlu1 %1704  ;;  %v13022_v17 = vadd.f32 %v1736_v11, %v797_v51  ;;  %v803_v30 = vmul.f32 %v15810_v54, %v13024_v6 }
 0x13f   : > { %15803 = vst [vmem:[#allocation40_spill] sm:$0xff] %v13013_v27 }
 0x140   : > { %15805 = vst [vmem:[#allocation41_spill] sm:$0xff] %v13022_v17  ;;  %v10475_v22 = vpop.f32.mrb[44].mxu0  ;;  %v15812_v17 = vld [vmem:[#allocation52_spill] sm:$0xff] }
 0x141   : > { %v1741_v59 = vmul.f32 %v10475_v22, %v13013_v27  ;;  %v1568_v50 = vpop.f32.mrb[45].mxu0  ;;  %v801_v21 = vmul.f32 %v12977_v24, %v15812_v17 }
 0x142   : > { %v13026_v3 = vpop.permute.xlu1 %1708  ;;  %v1739_v16 = vmul.f32 %v12987_v56, %v1568_v50  ;;  %v10476_v23 = vpop.f32.mrb[46].mxu0 }
 0x143   : > { %15807 = vst [vmem:[#allocation44_spill] sm:$0xff] %v13026_v3  ;;  %v13036_v51 = vadd.f32 %v1741_v59, %v802_v36  ;;  %v1742_v11 = vmul.f32 %v10476_v23, %v13026_v3  ;;  %v1571_v7 = vpop.f32.mrb[47].mxu0  ;;  %v15813_v23 = vld [vmem:[#allocation22_spill] sm:$0xff] }
 0x144   : > { %v13041_v2 = vadd.f32 %v1739_v16, %v800_v5  ;;  %v1740_v22 = vmul.f32 %v12998_v14, %v1571_v7  ;;  %v15814_v5 = vld [vmem:[#allocation8_spill] sm:$0xff] }
 0x145   : > { %15811 = vst [vmem:[#allocation46_spill] sm:$0xff] %v13036_v51  ;;  %v13044_v27 = vadd.f32 %v1742_v11, %v803_v30 }
 0x146   : > { %v13046_v9 = vadd.f32 %v1740_v22, %v801_v21  ;;  %v15815_v21 = vld [vmem:[#allocation3_spill] sm:$0xff] }
 0x148   : > { %v10549_v50 = vpop.f32.mrb[48].mxu0 }
 0x149   : > { %v10481_v56 = vpop.f32.mrb[48].mxu1  ;;  %v2783_v19 = vpop.f32.mrb[49].mxu0  ;;  %v2912_v16 = vmul.f32 %v10549_v50, %v15814_v5 }
 0x14a   : > { %v2103_v59 = vmul.f32 %v10481_v56, %v12596_v15  ;;  %v1974_v36 = vpop.f32.mrb[49].mxu1  ;;  %v10550_v54 = vpop.f32.mrb[50].mxu0  ;;  %v2910_v22 = vmul.f32 %v2783_v19, %v15815_v21 }
 0x14b   : > { %v2101_v3 = vmul.f32 %v1974_v36, %v15813_v23  ;;  %v10482_v6 = vpop.f32.mrb[50].mxu1  ;;  %v2786_v51 = vpop.f32.mrb[51].mxu0  ;;  %v2913_v36 = vmul.f32 %v10550_v54, %v12389_v57 }
 0x14c   : > { %v11024_v17 = vadd.f32 %v12788_v46, %v2103_v59  ;;  %v2104_v7 = vmul.f32 %v10482_v6, %v12373_v41  ;;  %v1977_v30 = vpop.f32.mrb[51].mxu1  ;;  %v2911_v50 = vmul.f32 %v2786_v51, %v12362_v34 }
 0x14d   : > { %v11029_v11 = vadd.f32 %v12793_v43, %v2101_v3  ;;  %v2102_v14 = vmul.f32 %v1977_v30, %v12581_v60 }
 0x14e   : > { %v13056_v56 = vadd.f32 %v11024_v17, %v2912_v16  ;;  %v11034_v15 = vadd.f32 %v12797_v61, %v2104_v7 }
 0x14f   : > { %v13060_v23 = vadd.f32 %v11029_v11, %v2910_v22  ;;  %v11039_v46 = vadd.f32 %v12805_v4, %v2102_v14  ;;  %v15816_v14 = vld [vmem:[#allocation10_spill] sm:$0xff]  ;;  %v15817_v22 = vmov 0 }
 0x150   : > { %v13064_v6 = vadd.f32 %v11034_v15, %v2913_v36  ;;  %v10553_v59 = vpop.f32.mrb[52].mxu0  ;;  %v15818_v22 = vsel %vm13074_vm7, 4294967295, %v15817_v22  ;;  %v4285_v36 = vld [vmem:[#allocation2 + $0x8] sm:$0x1] }
 0x151   : > { %v13066_v43 = vadd.f32 %v11039_v46, %v2911_v50  ;;  %v10485_v19 = vpop.f32.mrb[52].mxu1  ;;  %v2799_v3 = vpop.f32.mrb[53].mxu0  ;;  %v2916_v15 = vmul.f32 %v10553_v59, %v15816_v14  ;;  %15819 = vst [vmem:[#allocation49_spill] sm:$0xff] %v15818_v22  ;;  %v15820_v46 = vmov 0  }
 0x152   : > { %v2107_v17 = vmul.f32 %v10485_v19, %v12637_v18  ;;  %v1990_v16 = vpop.f32.mrb[53].mxu1  ;;  %v10554_v30 = vpop.f32.mrb[54].mxu0  ;;  %4296 = vst.msk [vmem:[#allocation2 + $0x90] sm:$0x1] %vm4282_vm5, %v15820_v46  ;;  %v15821_v19 = vld [vmem:[#allocation6_spill] sm:$0xff] }
 0x153   : > { %v2105_v61 = vmul.f32 %v1990_v16, %v12402_v47  ;;  %v10486_v54 = vpop.f32.mrb[54].mxu1  ;;  %v2802_v7 = vpop.f32.mrb[55].mxu0  ;;  %v2914_v16 = vmul.f32 %v2799_v3, %v15821_v19  ;;  %4280 = vst.msk [vmem:[#allocation2] sm:$0xf] %vm4279_vm8, %v15820_v46  ;;  %4281 = vst.msk [vmem:[#allocation2 + $0x4] sm:$0xf] %vm4279_vm8, %v15820_v46 }
 0x154   : > { %v11044_v4 = vadd.f32 %v12829_v13, %v2107_v17  ;;  %v2108_v51 = vmul.f32 %v10486_v54, %v12445_v39  ;;  %v1993_v11 = vpop.f32.mrb[55].mxu1  ;;  %v4286_v13 = vsel %vm13074_vm7, 0, %v4285_v36  ;;  %v2917_v54 = vmul.f32 %v10554_v30, %v12464_v35  ;;  %4294 = vst.msk [vmem:[#allocation2 + $0x8c] sm:$0xf] %vm4279_vm8, %v15820_v46  ;;  %v15828_v35 = vld [vmem:[#allocation37_spill] sm:$0xff]  ;;  %v15829_v46 = vld [vmem:[#allocation62_spill] sm:$0xff] }
 0x155   : > { %v11049_v50 = vadd.f32 %v12837_v0, %v2105_v61  ;;  %v2106_v34 = vmul.f32 %v1993_v11, %v12609_v37  ;;  %4287 = vst [vmem:[#allocation2 + $0x8] sm:$0x1] %v4286_v13  ;;  %v2915_v0 = vmul.f32 %v2802_v7, %v12434_v42 }
 0x156   : > { %v13084_v59 = vadd.f32 %v11044_v4, %v2916_v15  ;;  %v11054_v17 = vadd.f32 %v12841_v31, %v2108_v51 }
 0x157   : > { %v13088_v14 = vadd.f32 %v11049_v50, %v2914_v16  ;;  %v11059_v57 = vadd.f32 %v12847_v12, %v2106_v34  ;;  %v15822_v34 = vmov 0  ;;  %v4291_v12 = vld [vmem:[#allocation2 + $0x88] sm:$0xf] }
 0x158   : > { %v13092_v61 = vadd.f32 %v11054_v17, %v2917_v54  ;;  %v10557_v3 = vpop.f32.mrb[56].mxu0  ;;  %v15823_v34 = vsel %vm13099_vm10, 4294967295, %v15822_v34  ;;  %v4292_v17 = vsel %vm13099_vm10, 0, %v4291_v12  ;;  %v15826_v54 = vld [vmem:[#allocation61_spill] sm:$0xff] }
 0x159   : > { %v13094_v11 = vadd.f32 %v11059_v57, %v2915_v0  ;;  %v10489_v22 = vpop.f32.mrb[56].mxu1  ;;  %v2815_v36 = vpop.f32.mrb[57].mxu0  ;;  %15824 = vst [vmem:[#allocation50_spill] sm:$0xff] %v15823_v34  ;;  %v2920_v7 = vmul.f32 %v10557_v3, %v12492_v55  ;;  %4293 = vst [vmem:[#allocation2 + $0x88] sm:$0xf] %v4292_v17  ;;  %v15834_v17 = vld [vmem:[#allocation54_spill] sm:$0xff] }
 0x15a   : > { %v2111_v4 = vmul.f32 %v10489_v22, %v12691_v28  ;;  %v2006_v15 = vpop.f32.mrb[57].mxu1  ;;  %v10558_v31 = vpop.f32.mrb[58].mxu0  ;;  %v15825_v22 = vld [vmem:[#allocation16_spill] sm:$0xff] }
 0x15b   : > { %v2109_v30 = vmul.f32 %v2006_v15, %v12486_v33  ;;  %v10490_v51 = vpop.f32.mrb[58].mxu1  ;;  %v2818_v50 = vpop.f32.mrb[59].mxu0  ;;  %v15827_v15 = vld [vmem:[#allocation12_spill] sm:$0xff] }
 0x15c   : > { %v11064_v57 = vadd.f32 %v12874_v32, %v2111_v4  ;;  %v2112_v16 = vmul.f32 %v10490_v51, %v15825_v22  ;;  %v2009_v13 = vpop.f32.mrb[59].mxu1  ;;  %v2918_v42 = vmul.f32 %v2815_v36, %v15827_v15  ;;  %v15830_v32 = vld [vmem:[#allocation17_spill] sm:$0xff]  ;;  %v15831_v51 = vld [vmem:[#allocation63_spill] sm:$0xff]  ;;  %v15832_v22 = vld [vmem:[#allocation14_spill] sm:$0xff] }
 0x15d   : > { %v11069_v0 = vadd.f32 %v15826_v54, %v2109_v30  ;;  %v2110_v19 = vmul.f32 %v2009_v13, %v15828_v35  ;;  %v2921_v4 = vmul.f32 %v10558_v31, %v15830_v32  ;;  %v2919_v34 = vmul.f32 %v2818_v50, %v15832_v22  ;;  %v15838_v32 = vld [vmem:[#allocation47_spill] sm:$0xff] }
 0x15e   : > { %v13117_v21 = vadd.f32 %v11064_v57, %v2920_v7  ;;  %v11074_v5 = vadd.f32 %v15829_v46, %v2112_v16  ;;  %v15835_v16 = vld [vmem:[#allocation19_spill] sm:$0xff] }
 0x15f   : > { %v13121_v3 = vadd.f32 %v11069_v0, %v2918_v42  ;;  %v11079_v55 = vadd.f32 %v15831_v51, %v2110_v19  ;;  %v15836_v19 = vld [vmem:[#allocation13_spill] sm:$0xff] }
 0x160   : > { %v13125_v12 = vadd.f32 %v11074_v5, %v2921_v4  ;;  %v10561_v30 = vpop.f32.mrb[60].mxu0 }
 0x161   : > { %v13127_v54 = vadd.f32 %v11079_v55, %v2919_v34  ;;  %v10493_v36 = vpop.f32.mrb[60].mxu1  ;;  %v2831_v13 = vpop.f32.mrb[61].mxu0  ;;  %v2924_v51 = vmul.f32 %v10561_v30, %v15836_v19  ;;  %v15837_v34 = vld [vmem:[#allocation21_spill] sm:$0xff]  ;;  %v15841_v30 = vld [vmem:[#allocation23_spill] sm:$0xff] }
 0x162   : > { %v2115_v57 = vmul.f32 %v10493_v36, %v15834_v17  ;;  %v2022_v7 = vpop.f32.mrb[61].mxu1  ;;  %v10562_v15 = vpop.f32.mrb[62].mxu0  ;;  %v2922_v4 = vmul.f32 %v2831_v13, %v15837_v34 }
 0x163   : > { %15833 = vst [vmem:[#allocation52_spill] sm:$0xff] %v13127_v54  ;;  %v2113_v46 = vmul.f32 %v2022_v7, %v15835_v16  ;;  %v10494_v31 = vpop.f32.mrb[62].mxu1  ;;  %v2834_v42 = vpop.f32.mrb[63].mxu0  ;;  %v15839_v7 = vld [vmem:[#allocation25_spill] sm:$0xff] }
 0x164   : > { %v11084_v0 = vadd.f32 %v12912_v53, %v2115_v57  ;;  %v2116_v5 = vmul.f32 %v10494_v31, %v15765_v48  ;;  %v2025_v50 = vpop.f32.mrb[63].mxu1  ;;  %v2925_v16 = vmul.f32 %v10562_v15, %v15839_v7  ;;  %v15840_v53 = vld [vmem:[#allocation48_spill] sm:$0xff]  ;;  %v2923_v19 = vmul.f32 %v2834_v42, %v15841_v30  ;;  %v15845_v30 = vld [vmem:[#allocation30_spill] sm:$0xff] }
 0x165   : > { %v11089_v55 = vadd.f32 %v12918_v26, %v2113_v46  ;;  %v2114_v22 = vmul.f32 %v2025_v50, %v15768_v20  ;;  %v15842_v50 = vld [vmem:[#allocation58_spill] sm:$0xff] }
 0x166   : > { %v13137_v36 = vadd.f32 %v11084_v0, %v2924_v51  ;;  %v11094_v17 = vadd.f32 %v15838_v32, %v2116_v5 }
 0x167   : > { %v13141_v54 = vadd.f32 %v11089_v55, %v2922_v4  ;;  %v11099_v57 = vadd.f32 %v15840_v53, %v2114_v22  ;;  %v15843_v22 = vld [vmem:[#allocation15_spill] sm:$0xff] }
 0x168   : > { %v13145_v31 = vadd.f32 %v11094_v17, %v2925_v16  ;;  %v10565_v48 = vpop.f32.mrb[64].mxu0 }
 0x169   : > { %v13147_v26 = vadd.f32 %v11099_v57, %v2923_v19  ;;  %v10497_v13 = vpop.f32.mrb[64].mxu1  ;;  %v2847_v46 = vpop.f32.mrb[65].mxu0  ;;  %v2928_v4 = vmul.f32 %v10565_v48, %v15843_v22  ;;  %v15844_v19 = vld [vmem:[#allocation32_spill] sm:$0xff]  ;;  %v15848_v48 = vld [vmem:[#allocation33_spill] sm:$0xff] }
 0x16a   : > { %v2119_v0 = vmul.f32 %v10497_v13, %v15842_v50  ;;  %v2038_v51 = vpop.f32.mrb[65].mxu1  ;;  %v10566_v34 = vpop.f32.mrb[66].mxu0  ;;  %v2926_v53 = vmul.f32 %v2847_v46, %v15844_v19 }
 0x16b   : > { %v2117_v32 = vmul.f32 %v2038_v51, %v15777_v10  ;;  %v10498_v15 = vpop.f32.mrb[66].mxu1  ;;  %v2850_v5 = vpop.f32.mrb[67].mxu0  ;;  %v15846_v51 = vld [vmem:[#allocation42_spill] sm:$0xff] }
 0x16c   : > { %v11104_v55 = vadd.f32 %v12945_v63, %v2119_v0  ;;  %v2120_v17 = vmul.f32 %v10498_v15, %v15779_v62  ;;  %v2041_v16 = vpop.f32.mrb[67].mxu1  ;;  %v2929_v10 = vmul.f32 %v10566_v34, %v15846_v51  ;;  %v15847_v63 = vld [vmem:[#allocation31_spill] sm:$0xff]  ;;  %v2927_v22 = vmul.f32 %v2850_v5, %v15848_v48  ;;  %v15853_v5 = vld [vmem:[#allocation56_spill] sm:$0xff] }
 0x16d   : > { %v11109_v42 = vadd.f32 %v12953_v8, %v2117_v32  ;;  %v2118_v57 = vmul.f32 %v2041_v16, %v12803_v29  ;;  %v15850_v16 = vld [vmem:[#allocation65_spill] sm:$0xff] }
 0x16e   : > { %v13157_v13 = vadd.f32 %v11104_v55, %v2928_v4  ;;  %v11114_v7 = vadd.f32 %v15845_v30, %v2120_v17 }
 0x16f   : > { %v13161_v50 = vadd.f32 %v11109_v42, %v2926_v53  ;;  %v11119_v0 = vadd.f32 %v15847_v63, %v2118_v57  ;;  %v15851_v42 = vld [vmem:[#allocation34_spill] sm:$0xff] }
 0x170   : > { %v13165_v15 = vadd.f32 %v11114_v7, %v2929_v10  ;;  %v10569_v62 = vpop.f32.mrb[68].mxu0  ;;  %v15852_v57 = vld [vmem:[#allocation18_spill] sm:$0xff] }
 0x171   : > { %v13167_v8 = vadd.f32 %v11119_v0, %v2927_v22  ;;  %v10501_v46 = vpop.f32.mrb[68].mxu1  ;;  %v2863_v32 = vpop.f32.mrb[69].mxu0  ;;  %v2932_v63 = vmul.f32 %v10569_v62, %v15852_v57  ;;  %v15854_v0 = vld [vmem:[#allocation53_spill] sm:$0xff]  ;;  %v15856_v62 = vld [vmem:[#allocation55_spill] sm:$0xff] }
 0x172   : > { %v2123_v55 = vmul.f32 %v10501_v46, %v15850_v16  ;;  %v2054_v4 = vpop.f32.mrb[69].mxu1  ;;  %v10570_v19 = vpop.f32.mrb[70].mxu0  ;;  %v2930_v48 = vmul.f32 %v2863_v32, %v15854_v0 }
 0x173   : > { %15849 = vst [vmem:[#allocation61_spill] sm:$0xff] %v13167_v8  ;;  %v2121_v30 = vmul.f32 %v2054_v4, %v15791_v58  ;;  %v10502_v34 = vpop.f32.mrb[70].mxu1  ;;  %v2866_v17 = vpop.f32.mrb[71].mxu0  ;;  %v15855_v4 = vld [vmem:[#allocation57_spill] sm:$0xff] }
 0x174   : > { %v11124_v53 = vadd.f32 %v15851_v42, %v2123_v55  ;;  %v2124_v10 = vmul.f32 %v10502_v34, %v15853_v5  ;;  %v2057_v7 = vpop.f32.mrb[71].mxu1  ;;  %v2933_v58 = vmul.f32 %v10570_v19, %v15855_v4  ;;  %v2931_v42 = vmul.f32 %v2866_v17, %v15856_v62  ;;  %v11638_v34 = vld [vmem:[#allocation2] sm:$0xff]  }
 0x175   : > { %v11129_v22 = vadd.f32 %v12991_v49, %v2121_v30  ;;  %v2122_v51 = vmul.f32 %v2057_v7, %v12865_v40  ;;  %10683 = vmatprep.mubr.msk.bf16.mxu1 %vm4865_vm11, %v11638_v34  ;;  %v15862_v4 = vld [vmem:[#allocation60_spill] sm:$0xff] }
 0x176   : > { %v13177_v46 = vadd.f32 %v11124_v53, %v2932_v63  ;;  %v11134_v16 = vadd.f32 %v12994_v1, %v2124_v10  ;;  %v15858_v1 = vld [vmem:[#allocation29_spill] sm:$0xff]  ;;  %v15859_v10 = vld [vmem:[#allocation59_spill] sm:$0xff] }
 0x177   : > { %v13181_v8 = vadd.f32 %v11129_v22, %v2930_v48  ;;  %v11139_v55 = vadd.f32 %v12996_v44, %v2122_v51  ;;  %v15861_v22 = vld [vmem:[#allocation51_spill] sm:$0xff] }
 0x178   : > { %v13185_v57 = vadd.f32 %v11134_v16, %v2933_v58  ;;  %v10573_v49 = vpop.f32.mrb[72].mxu0  ;;  %v15860_v58 = vld [vmem:[#allocation20_spill] sm:$0xff] }
 0x179   : > { %v13187_v32 = vadd.f32 %v11139_v55, %v2931_v42  ;;  %v10505_v30 = vpop.f32.mrb[72].mxu1  ;;  %v2879_v53 = vpop.f32.mrb[73].mxu0  ;;  %v2936_v16 = vmul.f32 %v10573_v49, %v15860_v58  ;;  %v15865_v49 = vld [vmem:[#allocation64_spill] sm:$0xff] }
 0x17a   : > { %v2127_v63 = vmul.f32 %v10505_v30, %v15858_v1  ;;  %v2070_v19 = vpop.f32.mrb[73].mxu1  ;;  %v10574_v48 = vpop.f32.mrb[74].mxu0  ;;  %v2934_v0 = vmul.f32 %v2879_v53, %v15862_v4 }
 0x17b   : > { %15857 = vst [vmem:[#allocation37_spill] sm:$0xff] %v13187_v32  ;;  %v2125_v7 = vmul.f32 %v2070_v19, %v15859_v10  ;;  %v10506_v44 = vpop.f32.mrb[74].mxu1  ;;  %v2882_v51 = vpop.f32.mrb[75].mxu0  ;;  %v15863_v19 = vld [vmem:[#allocation28_spill] sm:$0xff] }
 0x17c   : > { %v11144_v17 = vadd.f32 %v13010_v25, %v2127_v63  ;;  %v2128_v62 = vmul.f32 %v10506_v44, %v15861_v22  ;;  %v2073_v55 = vpop.f32.mrb[75].mxu1  ;;  %v2937_v10 = vmul.f32 %v10574_v48, %v15863_v19  ;;  %v15864_v25 = vld [vmem:[#allocation41_spill] sm:$0xff]  ;;  %v2935_v58 = vmul.f32 %v2882_v51, %v15865_v49  ;;  %v15872_v51 = vld [vmem:[#allocation43_spill] sm:$0xff] }
 0x17d   : > { %v11149_v42 = vadd.f32 %v13017_v45, %v2125_v7  ;;  %v2126_v34 = vmul.f32 %v2073_v55, %v12927_v52  ;;  %v15868_v55 = vld [vmem:[#allocation38_spill] sm:$0xff] }
 0x17e   : > { %v13198_v30 = vadd.f32 %v11144_v17, %v2936_v16  ;;  %v11154_v1 = vadd.f32 %v13020_v38, %v2128_v62  ;;  %v15869_v38 = vld [vmem:[#allocation66_spill] sm:$0xff] }
 0x17f   : > { %v13202_v32 = vadd.f32 %v11149_v42, %v2934_v0  ;;  %v11159_v63 = vadd.f32 %v15864_v25, %v2126_v34  ;;  %v15870_v42 = vld [vmem:[#allocation46_spill] sm:$0xff]  ;;  %v15871_v34 = vld [vmem:[#allocation40_spill] sm:$0xff] }
 0x180   : > { %v13206_v44 = vadd.f32 %v11154_v1, %v2937_v10  ;;  %v10577_v22 = vpop.f32.mrb[76].mxu0 }
 0x181   : > { %v13208_v45 = vadd.f32 %v11159_v63, %v2935_v58  ;;  %v10509_v53 = vpop.f32.mrb[76].mxu1  ;;  %v2895_v7 = vpop.f32.mrb[77].mxu0  ;;  %v2940_v25 = vmul.f32 %v10577_v22, %v15871_v34  ;;  %v15873_v63 = vld [vmem:[#allocation35_spill] sm:$0xff]  ;;  %v15875_v22 = vld [vmem:[#allocation36_spill] sm:$0xff] }
 0x182   : > { %15866 = vst [vmem:[#allocation62_spill] sm:$0xff] %v13206_v44  ;;  %v2131_v17 = vmul.f32 %v10509_v53, %v15868_v55  ;;  %v2086_v16 = vpop.f32.mrb[77].mxu1  ;;  %v10578_v4 = vpop.f32.mrb[78].mxu0  ;;  %v2938_v49 = vmul.f32 %v2895_v7, %v15873_v63  ;;  %v15876_v7 = vld [vmem:[#allocation26_spill] sm:$0xff] }
 0x183   : > { %15867 = vst [vmem:[#allocation63_spill] sm:$0xff] %v13208_v45  ;;  %v2129_v62 = vmul.f32 %v2086_v16, %v15869_v38  ;;  %v10510_v48 = vpop.f32.mrb[78].mxu1  ;;  %v2898_v0 = vpop.f32.mrb[79].mxu0  ;;  %v15874_v16 = vld [vmem:[#allocation44_spill] sm:$0xff] }
 0x184   : > { %v11164_v19 = vadd.f32 %v15870_v42, %v2131_v17  ;;  %v2132_v1 = vmul.f32 %v10510_v48, %v15872_v51  ;;  %v2089_v10 = vpop.f32.mrb[79].mxu1  ;;  %v2941_v38 = vmul.f32 %v10578_v4, %v15874_v16  ;;  %v2939_v42 = vmul.f32 %v2898_v0, %v15875_v22 }
 0x185   : > { %v11169_v58 = vadd.f32 %v13041_v2, %v2129_v62  ;;  %v2130_v45 = vmul.f32 %v2089_v10, %v12977_v24 }
 0x186   : > { %v13218_v53 = vadd.f32 %v11164_v19, %v2940_v25  ;;  %v11174_v55 = vadd.f32 %v13044_v27, %v2132_v1  ;;  %v15877_v19 = vld [vmem:[#allocation22_spill] sm:$0xff] }
 0x187   : > { %v13222_v44 = vadd.f32 %v11169_v58, %v2938_v49  ;;  %v11179_v17 = vadd.f32 %v13046_v9, %v2130_v45 }
 0x188   : > { %v13226_v48 = vadd.f32 %v11174_v55, %v2941_v38  ;;  %v10583_v34 = vpop.f32.mrb[80].mxu0 }
 0x189   : > { %v13228_v2 = vadd.f32 %v11179_v17, %v2939_v42  ;;  %v3302_v62 = vmul.f32 %v10583_v34, %v15876_v7  ;;  %v3173_v10 = vpop.f32.mrb[81].mxu0  ;;  %v15878_v17 = vld [vmem:[#allocation16_spill] sm:$0xff] }
 0x18a   : > { %v3300_v25 = vmul.f32 %v3173_v10, %v15877_v19  ;;  %v10584_v63 = vpop.f32.mrb[82].mxu0 }
 0x18b   : > { %v3303_v27 = vmul.f32 %v10584_v63, %v12373_v41  ;;  %v3176_v4 = vpop.f32.mrb[83].mxu0  ;;  %v13234_v49 = vadd.f32 %v13056_v56, %v3302_v62 }
 0x18c   : > { %v3301_v9 = vmul.f32 %v3176_v4, %v12581_v60  ;;  %v13238_v45 = vadd.f32 %v13060_v23, %v3300_v25 }
 0x18d   : > { %v13241_v55 = vadd.f32 %v13064_v6, %v3303_v27  ;;  %v15879_v27 = vld [vmem:[#allocation52_spill] sm:$0xff] }
 0x18e   : > { %v13244_v38 = vadd.f32 %v13066_v43, %v3301_v9 }
 0x190   : > { %v10587_v0 = vpop.f32.mrb[84].mxu0 }
 0x191   : > { %v3306_v34 = vmul.f32 %v10587_v0, %v12637_v18  ;;  %v3189_v1 = vpop.f32.mrb[85].mxu0 }
 0x192   : > { %v3304_v41 = vmul.f32 %v3189_v1, %v12402_v47  ;;  %v10588_v58 = vpop.f32.mrb[86].mxu0  ;;  %v13265_v47 = vld [vmem:[%s15501_s3 + $0x8] sm:$0xf] }
 0x193   : > { %v3307_v56 = vmul.f32 %v10588_v58, %v12445_v39  ;;  %v3192_v63 = vpop.f32.mrb[87].mxu0  ;;  %v13250_v60 = vadd.f32 %v13084_v59, %v3306_v34  ;;  %v13270_v39 = vld [vmem:[%s15501_s3 + $0xc] sm:$0xf]  ;;  %11483 = vmatprep.subr.msk.bf16.mxu1 %vm4914_vm4, %v13265_v47  ;;  %v15881_v34 = vld [vmem:[#allocation19_spill] sm:$0xff] }
 0x194   : > { %v3305_v23 = vmul.f32 %v3192_v63, %v12609_v37  ;;  %v13254_v6 = vadd.f32 %v13088_v14, %v3304_v41  ;;  %11484 = vmatprep.subr.msk.bf16.mxu0 %vm4914_vm4, %v13270_v39 }
 0x195   : > { %v13257_v43 = vadd.f32 %v13092_v61, %v3307_v56 }
 0x196   : > { %v13260_v18 = vadd.f32 %v13094_v11, %v3305_v23 }
 0x198   : > { %v10591_v37 = vpop.f32.mrb[88].mxu0 }
 0x199   : > { %v3310_v14 = vmul.f32 %v10591_v37, %v12691_v28  ;;  %v3205_v59 = vpop.f32.mrb[89].mxu0 }
 0x19a   : > { %v3308_v61 = vmul.f32 %v3205_v59, %v12486_v33  ;;  %v10592_v11 = vpop.f32.mrb[90].mxu0  ;;  %v15880_v33 = vld [vmem:[#allocation54_spill] sm:$0xff] }
 0x19b   : > { %v3311_v42 = vmul.f32 %v10592_v11, %v15878_v17  ;;  %v3208_v7 = vpop.f32.mrb[91].mxu0  ;;  %v13280_v62 = vadd.f32 %v13117_v21, %v3310_v14  ;;  %v15882_v21 = vld [vmem:[#allocation24_spill] sm:$0xff]  ;;  %v15883_v14 = vld [vmem:[#allocation58_spill] sm:$0xff]  ;;  %v15884_v11 = vld [vmem:[#allocation27_spill] sm:$0xff] }
 0x19c   : > { %v3309_v10 = vmul.f32 %v3208_v7, %v15828_v35  ;;  %v13284_v19 = vadd.f32 %v13121_v3, %v3308_v61 }
 0x19d   : > { %v13287_v25 = vadd.f32 %v13125_v12, %v3311_v42 }
 0x19e   : > { %v13290_v28 = vadd.f32 %v15879_v27, %v3309_v10  ;;  %v15886_v27 = vld [vmem:[#allocation61_spill] sm:$0xff] }
 0x1a0   : > { %v10595_v4 = vpop.f32.mrb[92].mxu0 }
 0x1a1   : > { %v3314_v9 = vmul.f32 %v10595_v4, %v15880_v33  ;;  %v3221_v0 = vpop.f32.mrb[93].mxu0 }
 0x1a2   : > { %v3312_v1 = vmul.f32 %v3221_v0, %v15881_v34  ;;  %v10596_v41 = vpop.f32.mrb[94].mxu0 }
 0x1a3   : > { %v3315_v58 = vmul.f32 %v10596_v41, %v15882_v21  ;;  %v3224_v56 = vpop.f32.mrb[95].mxu0  ;;  %v13296_v35 = vadd.f32 %v13137_v36, %v3314_v9  ;;  %v15885_v36 = vld [vmem:[#allocation39_spill] sm:$0xff]  ;;  %v15887_v9 = vld [vmem:[#allocation65_spill] sm:$0xff] }
 0x1a4   : > { %v3313_v3 = vmul.f32 %v3224_v56, %v15768_v20  ;;  %v13300_v12 = vadd.f32 %v13141_v54, %v3312_v1  ;;  %v15888_v1 = vld [vmem:[#allocation45_spill] sm:$0xff] }
 0x1a5   : > { %v13303_v63 = vadd.f32 %v13145_v31, %v3315_v58 }
 0x1a6   : > { %v13306_v23 = vadd.f32 %v13147_v26, %v3313_v3  ;;  %v15889_v3 = vld [vmem:[#allocation37_spill] sm:$0xff] }
 0x1a8   : > { %v10599_v37 = vpop.f32.mrb[96].mxu0 }
 0x1a9   : > { %v3318_v59 = vmul.f32 %v10599_v37, %v15883_v14  ;;  %v3237_v61 = vpop.f32.mrb[97].mxu0 }
 0x1aa   : > { %v3316_v17 = vmul.f32 %v3237_v61, %v15884_v11  ;;  %v10600_v42 = vpop.f32.mrb[98].mxu0 }
 0x1ab   : > { %v3319_v7 = vmul.f32 %v10600_v42, %v15885_v36  ;;  %v3240_v10 = vpop.f32.mrb[99].mxu0  ;;  %v13312_v20 = vadd.f32 %v13157_v13, %v3318_v59  ;;  %v15890_v59 = vld [vmem:[#allocation29_spill] sm:$0xff] }
 0x1ac   : > { %v3317_v54 = vmul.f32 %v3240_v10, %v12803_v29  ;;  %v13316_v31 = vadd.f32 %v13161_v50, %v3316_v17  ;;  %v15893_v10 = vld [vmem:[#allocation62_spill] sm:$0xff] }
 0x1ad   : > { %v13319_v26 = vadd.f32 %v13165_v15, %v3319_v7 }
 0x1ae   : > { %v13322_v4 = vadd.f32 %v15886_v27, %v3317_v54  ;;  %v15894_v27 = vld [vmem:[#allocation63_spill] sm:$0xff] }
 0x1b0   : > { %v10603_v33 = vpop.f32.mrb[100].mxu0 }
 0x1b1   : > { %v3322_v0 = vmul.f32 %v10603_v33, %v15887_v9  ;;  %v3253_v34 = vpop.f32.mrb[101].mxu0 }
 0x1b2   : > { %v3320_v41 = vmul.f32 %v3253_v34, %v15888_v1  ;;  %v10604_v21 = vpop.f32.mrb[102].mxu0 }
 0x1b3   : > { %v3323_v13 = vmul.f32 %v10604_v21, %v15853_v5  ;;  %v3256_v58 = vpop.f32.mrb[103].mxu0  ;;  %v13328_v29 = vadd.f32 %v13177_v46, %v3322_v0  ;;  %v15891_v5 = vld [vmem:[#allocation59_spill] sm:$0xff]  ;;  %v15895_v0 = vld [vmem:[#allocation38_spill] sm:$0xff]  ;;  %v13357_v21 = vld [vmem:[#allocation2 + $0x4] sm:$0xf] }
 0x1b4   : > { %v3321_v50 = vmul.f32 %v3256_v58, %v12865_v40  ;;  %v13332_v15 = vadd.f32 %v13181_v8, %v3320_v41  ;;  %v15892_v46 = vld [vmem:[#allocation51_spill] sm:$0xff]  ;;  %v5335_v41 = vld [vmem:[#allocation2] sm:$0xf]  ;;  %15896 = vst [vmem:[#allocation47_spill] sm:$0xff] %v13357_v21 }
 0x1b5   : > { %v13335_v56 = vadd.f32 %v13185_v57, %v3323_v13 }
 0x1b6   : > { %v13338_v37 = vadd.f32 %v15889_v3, %v3321_v50 }
 0x1b8   : > { %v10607_v14 = vpop.f32.mrb[104].mxu0 }
 0x1b9   : > { %v3326_v61 = vmul.f32 %v10607_v14, %v15890_v59  ;;  %v3269_v11 = vpop.f32.mrb[105].mxu0  ;;  %v9759_v14 = vcombine.low %v5335_v41, %v13357_v21 }
 0x1ba   : > { %v3324_v17 = vmul.f32 %v3269_v11, %v15891_v5  ;;  %v10608_v42 = vpop.f32.mrb[106].mxu0 }
 0x1bb   : > { %v3327_v36 = vmul.f32 %v10608_v42, %v15892_v46  ;;  %v3272_v7 = vpop.f32.mrb[107].mxu0  ;;  %v13344_v40 = vadd.f32 %v13198_v30, %v3326_v61  ;;  %v15897_v30 = vld [vmem:[#allocation66_spill] sm:$0xff]  ;;  %v15900_v42 = vld [vmem:[#allocation8_spill] sm:$0xff] }
 0x1bc   : > { %v3325_v8 = vmul.f32 %v3272_v7, %v12927_v52  ;;  %v13348_v57 = vadd.f32 %v13202_v32, %v3324_v17  ;;  %v5456_v17 = vshll.u32 %v9759_v14, 16  ;;  %v15901_v7 = vld [vmem:[#allocation3_spill] sm:$0xff] }
 0x1bd   : > { %v13351_v54 = vadd.f32 %v15893_v10, %v3327_v36 }
 0x1be   : > { %v13354_v33 = vadd.f32 %v15894_v27, %v3325_v8  ;;  %v15902_v27 = vld [vmem:[#allocation5_spill] sm:$0xff] }
 0x1c0   : > { %v10611_v9 = vpop.f32.mrb[108].mxu0 }
 0x1c1   : > { %v3330_v34 = vmul.f32 %v10611_v9, %v15895_v0  ;;  %v3285_v1 = vpop.f32.mrb[109].mxu0 }
 0x1c2   : > { %v3328_v13 = vmul.f32 %v3285_v1, %v15897_v30  ;;  %v10612_v58 = vpop.f32.mrb[110].mxu0  ;;  %v15903_v30 = vld [vmem:[#allocation4_spill] sm:$0xff] }
 0x1c3   : > { %v3331_v52 = vmul.f32 %v10612_v58, %v15872_v51  ;;  %v3288_v32 = vpop.f32.mrb[111].mxu0  ;;  %v13362_v50 = vadd.f32 %v13218_v53, %v3330_v34  ;;  %v5454_v34 = vshrl.u32 %v9759_v14, 16  ;;  %v5458_v58 = vrot.slane %v5456_v17, 1 }
 0x1c4   : > { %v3329_v3 = vmul.f32 %v3288_v32, %v12977_v24  ;;  %v13367_v59 = vadd.f32 %v13222_v44, %v3328_v13  ;;  %v13381_v44 = vld [vmem:[%s15503_s5] ss:$0 sm:$0xff] }
 0x1c5   : > { %v13370_v61 = vadd.f32 %v13226_v48, %v3331_v52  ;;  %v13390_v52 = vld [vmem:[%s15503_s5 + $0x1] ss:$0 sm:$0xff] }
 0x1c6   : > { %v13373_v11 = vadd.f32 %v13228_v2, %v3329_v3 }
 0x1c7   : > { %15898 = vst [vmem:[#allocation48_spill] sm:$0xff] %v13370_v61 }
 0x1c8   : > { %15899 = vst [vmem:[#allocation30_spill] sm:$0xff] %v13373_v11  ;;  %v10651_v5 = vpop.f32.mrb[112].mxu0 }
 0x1c9   : > { %v10617_v51 = vpop.f32.mrb[16].mxu1  ;;  %v4111_v46 = vmul.f32 %v10651_v5, %v15900_v42  ;;  %v3982_v53 = vpop.f32.mrb[113].mxu0 }
 0x1ca   : > { %v11027_v36 = vadd.f32 %v13234_v49, %v10617_v51  ;;  %v3699_v24 = vpop.f32.mrb[17].mxu1  ;;  %v4109_v8 = vmul.f32 %v3982_v53, %v15901_v7  ;;  %v10652_v10 = vpop.f32.mrb[114].mxu0  ;;  %v13401_v53 = vor.u32 %v5458_v58, %v5454_v34  ;;  %v15906_v34 = vld [vmem:[#allocation6_spill] sm:$0xff] }
 0x1cb   : > { %v11032_v48 = vadd.f32 %v13238_v45, %v3699_v24  ;;  %v10618_v2 = vpop.f32.mrb[18].mxu1  ;;  %v4112_v9 = vmul.f32 %v10652_v10, %v15902_v27  ;;  %v3985_v0 = vpop.f32.mrb[115].mxu0 }
 0x1cc   : > { %v4143_v1 = vadd.f32 %v11027_v36, %v4111_v46  ;;  %v11037_v41 = vadd.f32 %v13241_v55, %v10618_v2  ;;  %v3702_v49 = vpop.f32.mrb[19].mxu1  ;;  %v4110_v13 = vmul.f32 %v3985_v0, %v15903_v30  ;;  %v13399_v46 = vsel %vm4914_vm4, %v13265_v47, 0  ;;  %v13403_v36 = vld [vmem:[#allocation2] sm:$0xe] }
 0x1cd   : > { %v4141_v32 = vadd.f32 %v11032_v48, %v4109_v8  ;;  %v11042_v45 = vadd.f32 %v13244_v38, %v3702_v49  ;;  %15904 = vst [vmem:[#allocation31_spill] sm:$0xff] %v13403_v36  ;;  %v15905_v8 = vld [vmem:[#allocation10_spill] sm:$0xff]  ;;  %v13410_v2 = vsel %vm4914_vm4, %v13270_v39, 0 }
 0x1ce   : > { %v4180_v3 = vmul.f32 %v13381_v44, %v4143_v1  ;;  %v4144_v5 = vadd.f32 %v11037_v41, %v4112_v9 }
 0x1cf   : > { %v4178_v14 = vmul.f32 %v13381_v44, %v4141_v32  ;;  %v4142_v51 = vadd.f32 %v11042_v45, %v4110_v13 }
 0x1d0   : > { %v4217_v55 = vadd.f32 %v13390_v52, %v4180_v3  ;;  %v4181_v42 = vmul.f32 %v13381_v44, %v4144_v5  ;;  %v10655_v17 = vpop.f32.mrb[116].mxu0 }
 0x1d1   : > { %v4215_v38 = vadd.f32 %v13390_v52, %v4178_v14  ;;  %v4179_v24 = vmul.f32 %v13381_v44, %v4142_v51  ;;  %v10621_v7 = vpop.f32.mrb[20].mxu1  ;;  %v4115_v10 = vmul.f32 %v10655_v17, %v15905_v8  ;;  %v3998_v48 = vpop.f32.mrb[117].mxu0 }
 0x1d2   : > { %v4249_v27 = vmax.f32 %v4217_v55, 0.0  ;;  %v4218_v47 = vadd.f32 %v13390_v52, %v4181_v42  ;;  %v11047_v9 = vadd.f32 %v13250_v60, %v10621_v7  ;;  %v3715_v0 = vpop.f32.mrb[21].mxu1  ;;  %v4113_v1 = vmul.f32 %v3998_v48, %v15906_v34  ;;  %v10656_v41 = vpop.f32.mrb[118].mxu0  ;;  %v15907_v7 = vld [vmem:[#allocation9_spill] sm:$0xff] }
 0x1d3   : > { %v4247_v49 = vmax.f32 %v4215_v38, 0.0  ;;  %v4216_v30 = vadd.f32 %v13390_v52, %v4179_v24  ;;  %v11052_v13 = vadd.f32 %v13254_v6, %v3715_v0  ;;  %v10622_v58 = vpop.f32.mrb[22].mxu1  ;;  %v13417_v32 = vpop.f32.mrb[119].mxu0  ;;  %v4116_v8 = vmul.f32 %v10656_v41, %v15907_v7 }
 0x1d4   : > { %v10022_v45 = vpack.c.bf16 %v4249_v27, %v4249_v27  ;;  %v4250_v3 = vmax.f32 %v4218_v47, 0.0  ;;  %v4147_v5 = vadd.f32 %v11047_v9, %v4115_v10  ;;  %v11057_v60 = vadd.f32 %v13257_v43, %v10622_v58  ;;  %v3718_v14 = vpop.f32.mrb[23].mxu1  ;;  %v4715_v9 = vld [vmem:[#allocation2 + $0x8] sm:$0xf] }
 0x1d5   : > { %v10020_v51 = vpack.c.bf16 %v4247_v49, %v4247_v49  ;;  %v4248_v55 = vmax.f32 %v4216_v30, 0.0  ;;  %v4145_v42 = vadd.f32 %v11052_v13, %v4113_v1  ;;  %v13423_v17 = vadd.f32 %v13260_v18, %v3718_v14 }
 0x1d6   : > { %v4413_v38 = vshrl.u32 %v10022_v45, 16  ;;  %v10023_v6 = vpack.c.bf16 %v4250_v3, %v4250_v3  ;;  %v4184_v24 = vmul.f32 %v13381_v44, %v4147_v5  ;;  %v4416_v48 = vshll.u32 %v10022_v45, 16 }
 0x1d7   : > { %v4396_v0 = vshrl.u32 %v10020_v51, 16  ;;  %v10021_v27 = vpack.c.bf16 %v4248_v55, %v4248_v55  ;;  %v4182_v10 = vmul.f32 %v13381_v44, %v4145_v42  ;;  %v4399_v43 = vshll.u32 %v10020_v51, 16 }
 0x1d8   : > { %v4415_v47 = vrot.slane %v4413_v38, 7  ;;  %v4422_v34 = vshrl.u32 %v10023_v6, 16  ;;  %v4221_v1 = vadd.f32 %v13390_v52, %v4184_v24  ;;  %v10659_v49 = vpop.f32.mrb[120].mxu0  ;;  %v4425_v30 = vshll.u32 %v10023_v6, 16 }
 0x1d9   : > { %v4398_v18 = vrot.slane %v4396_v0, 7  ;;  %v4404_v13 = vshrl.u32 %v10021_v27, 16  ;;  %v4219_v58 = vadd.f32 %v13390_v52, %v4182_v10  ;;  %v10625_v3 = vpop.f32.mrb[24].mxu1  ;;  %v4014_v5 = vpop.f32.mrb[121].mxu0  ;;  %v4407_v14 = vshll.u32 %v10021_v27, 16 }
 0x1da   : > { %v4418_v41 = vor.u32 %v4416_v48, %v4415_v47  ;;  %v13430_v45 = vrot.slane %v4422_v34, 7  ;;  %v4253_v55 = vmax.f32 %v4221_v1, 0.0  ;;  %v3731_v42 = vpop.f32.mrb[25].mxu1  ;;  %v10660_v38 = vpop.f32.mrb[122].mxu0  ;;  %v4420_v51 = vrot.slane %v4415_v47, 4 }
 0x1db   : > { %v4401_v6 = vor.u32 %v4399_v43, %v4398_v18  ;;  %v4406_v7 = vrot.slane %v4404_v13, 7  ;;  %v4251_v0 = vmax.f32 %v4219_v58, 0.0  ;;  %v10626_v10 = vpop.f32.mrb[26].mxu1  ;;  %v4017_v39 = vpop.f32.mrb[123].mxu0  ;;  %v4402_v21 = vrot.slane %v4398_v18, 4 }
 0x1dc   : > { %v4427_v48 = vor.u32 %v4425_v30, %v13430_v45  ;;  %v10026_v34 = vpack.c.bf16 %v4253_v55, %v4253_v55  ;;  %v4148_v27 = vadd.f32 %v11057_v60, %v4116_v8  ;;  %v3734_v1 = vpop.f32.mrb[27].mxu1 }
 0x1dd   : > { %v4716_v47 = vsel %vm13099_vm10, %v4401_v6, %v4715_v9  ;;  %v4409_v22 = vor.u32 %v4407_v14, %v4406_v7  ;;  %v4411_v11 = vrot.slane %v4406_v7, 4  ;;  %v10024_v16 = vpack.c.bf16 %v4251_v0, %v4251_v0  ;;  %v15911_v14 = vld [vmem:[#allocation7_spill] sm:$0xff] }
 0x1de   : > { %4717 = vst [vmem:[#allocation2 + $0x8] sm:$0xf] %v4716_v47  ;;  %v4428_v43 = vsel %vm13434_vm13, %v4420_v51, %v4427_v48  ;;  %v4449_v13 = vshrl.u32 %v10026_v34, 16  ;;  %v4452_v58 = vshll.u32 %v10026_v34, 16  ;;  %v4185_v61 = vmul.f32 %v13381_v44, %v4148_v27 }
 0x1df   : > { %4720 = vst.msk [vmem:[#allocation2 + $0x14] sm:$0xf] %vm4279_vm8, %v4428_v43  ;;  %v4410_v60 = vsel %vm13434_vm13, %v4402_v21, %v4409_v22  ;;  %v4419_v36 = vsel %vm13434_vm13, %v4411_v11, %v4418_v41  ;;  %v4431_v8 = vshrl.u32 %v10024_v16, 16  ;;  %v4434_v9 = vshll.u32 %v10024_v16, 16  ;;  %v15912_v21 = vld [vmem:[#allocation11_spill] sm:$0xff]  ;;  %v15913_v41 = vld [vmem:[#allocation12_spill] sm:$0xff] }
 0x1e0   : > { %4718 = vst.msk [vmem:[#allocation2 + $0xc] sm:$0xf] %vm4279_vm8, %v4410_v60  ;;  %4719 = vst.msk [vmem:[#allocation2 + $0x10] sm:$0xf] %vm4279_vm8, %v4419_v36  ;;  %v13451_v18 = vrot.slane %v4449_v13, 7  ;;  %v4222_v30 = vadd.f32 %v13390_v52, %v4185_v61  ;;  %v4114_v55 = vmul.f32 %v13417_v32, %v15911_v14  ;;  %v11067_v51 = vadd.f32 %v13280_v62, %v10625_v3  ;;  %v10663_v6 = vpop.f32.mrb[124].mxu0 }
 0x1e1   : > { %v13457_v22 = vrot.slane %v4431_v8, 7  ;;  %v4119_v11 = vmul.f32 %v10659_v49, %v15912_v21  ;;  %v11072_v16 = vadd.f32 %v13284_v19, %v3731_v42  ;;  %v4117_v7 = vmul.f32 %v4014_v5, %v15913_v41  ;;  %v10629_v0 = vpop.f32.mrb[28].mxu1  ;;  %v13462_v48 = vpop.f32.mrb[125].mxu0  ;;  %v15914_v60 = vld [vmem:[#allocation17_spill] sm:$0xff] }
 0x1e2   : > { %v4429_v34 = vrot.slane %v13430_v45, 4  ;;  %v13466_v61 = vor.u32 %v4452_v58, %v13451_v18  ;;  %v4254_v32 = vmax.f32 %v4222_v30, 0.0  ;;  %v4146_v62 = vadd.f32 %v13423_v17, %v4114_v55  ;;  %v3747_v3 = vpop.f32.mrb[29].mxu1  ;;  %v13469_v27 = vpop.f32.mrb[126].mxu0 }
 0x1e3   : > { %v4456_v49 = vrot.slane %v13451_v18, 4  ;;  %v4436_v19 = vor.u32 %v4434_v9, %v13457_v22  ;;  %v4151_v42 = vadd.f32 %v11067_v51, %v4119_v11  ;;  %v4149_v5 = vadd.f32 %v11072_v16, %v4117_v7  ;;  %v13473_v47 = vpop.f32.mrb[30].mxu1  ;;  %v13475_v43 = vpop.f32.mrb[127].mxu0  ;;  %v15915_v11 = vld [vmem:[#allocation14_spill] sm:$0xff] }
 0x1e4   : > { %v10027_v45 = vpack.c.bf16 %v4254_v32, %v4254_v32  ;;  %v4183_v13 = vmul.f32 %v13381_v44, %v4146_v62  ;;  %v11077_v58 = vadd.f32 %v13287_v25, %v10626_v10  ;;  %v4120_v17 = vmul.f32 %v10660_v38, %v15914_v60  ;;  %v13480_v36 = vpop.f32.mrb[31].mxu1  ;;  %v9877_v38 = vld [vmem:[%s15501_s3 + $0x14] sm:$0xf]  ;;  %v15916_v32 = vld [vmem:[#allocation13_spill] sm:$0xff] }
 0x1e5   : > { %v4437_v8 = vsel %vm13434_vm13, %v4429_v34, %v4436_v19  ;;  %v4188_v9 = vmul.f32 %v13381_v44, %v4151_v42  ;;  %v4186_v18 = vmul.f32 %v13381_v44, %v4149_v5  ;;  %v11082_v30 = vadd.f32 %v13290_v28, %v3734_v1 }
 0x1e6   : > { %4721 = vst.msk [vmem:[#allocation2 + $0x18] sm:$0xf] %vm4279_vm8, %v4437_v8  ;;  %v4458_v14 = vshrl.u32 %v10027_v45, 16  ;;  %v4461_v55 = vshll.u32 %v10027_v45, 16  ;;  %v4220_v51 = vadd.f32 %v13390_v52, %v4183_v13  ;;  %v4152_v25 = vadd.f32 %v11077_v58, %v4120_v17 }
 0x1e7   : > { %v4225_v10 = vadd.f32 %v13390_v52, %v4188_v9  ;;  %v4223_v21 = vadd.f32 %v13390_v52, %v4186_v18  ;;  %v4118_v16 = vmul.f32 %v4017_v39, %v15915_v11  ;;  %v11087_v41 = vadd.f32 %v13296_v35, %v10629_v0  ;;  %v11639_v28 = vld [vmem:[#allocation2 + $0x8] sm:$0xff]   ;;  %v11640_v42 = vld [vmem:[#allocation2 + $0x10] sm:$0xff]  }
 0x1e8   : > { %v13496_v1 = vrot.slane %v4458_v14, 7  ;;  %v4252_v7 = vmax.f32 %v4220_v51, 0.0  ;;  %v4189_v34 = vmul.f32 %v13381_v44, %v4152_v25  ;;  %v4123_v62 = vmul.f32 %v10663_v6, %v15916_v32  ;;  %v13500_v19 = vpop.f32.mrb[128].mxu0  ;;  %10684 = vmatmul.mubr.msk.bf16.vlgmr.msra.gmra.mrb[80].mxu1 %vm4865_vm11, %v11639_v28 }
 0x1e9   : > { %v4257_v5 = vmax.f32 %v4225_v10, 0.0  ;;  %v4255_v45 = vmax.f32 %v4223_v21, 0.0  ;;  %v4150_v13 = vadd.f32 %v11082_v30, %v4118_v16  ;;  %v11092_v58 = vadd.f32 %v13300_v12, %v3747_v3  ;;  %v13503_v60 = vpop.f32.mrb[32].mxu1  ;;  %v13505_v39 = vpop.f32.mrb[129].mxu0  ;;  %10687 = vmatprep.mubr.msk.bf16.mxu1 %vm4865_vm11, %v11640_v42  ;;  %10750 = vmatpush3.bf16.msra.mxu1 %v13399_v46 }
 0x1ea   : > { %v4438_v35 = vrot.slane %v13457_v22, 4  ;;  %v4463_v0 = vor.u32 %v4461_v55, %v13496_v1  ;;  %v10025_v17 = vpack.c.bf16 %v4252_v7, %v4252_v7  ;;  %v4226_v6 = vadd.f32 %v13390_v52, %v4189_v34  ;;  %v13511_v8 = vpop.f32.mrb[33].mxu1  ;;  %v13513_v9 = vpop.f32.mrb[130].mxu0  ;;  %11486 = vmatprep.subr.msk.bf16.mxu1 %vm4914_vm4, %v9877_v38 }
 0x1eb   : > { %v10030_v12 = vpack.c.bf16 %v4257_v5, %v4257_v5  ;;  %v10028_v3 = vpack.c.bf16 %v4255_v45, %v4255_v45  ;;  %v4187_v18 = vmul.f32 %v13381_v44, %v4150_v13  ;;  %v4155_v30 = vadd.f32 %v11087_v41, %v4123_v62  ;;  %v13518_v14 = vpop.f32.mrb[34].mxu1  ;;  %v13520_v22 = vpop.f32.mrb[131].mxu0  ;;  %v13539_v45 = vld [vmem:[%s15499_s1 + $0x8] sm:$0xff]  ;;  %v5082_v13 = vld [vmem:[%s15499_s1 + $0x18] sm:$0xff] }
 0x1ec   : > { %v4464_v55 = vsel %vm13434_vm13, %v4456_v49, %v4463_v0  ;;  %v4440_v51 = vshrl.u32 %v10025_v17, 16  ;;  %v4443_v25 = vshll.u32 %v10025_v17, 16  ;;  %v4258_v10 = vmax.f32 %v4226_v6, 0.0  ;;  %v13525_v21 = vpop.f32.mrb[35].mxu1  ;;  %v15917_v49 = vld [vmem:[#allocation21_spill] sm:$0xff]  ;;  %15918 = vst [vmem:[#allocation34_spill] sm:$0xff] %v13539_v45  ;;  %5118 = vperm.xlu1 %11533, %v13539_v45   ;;  %6093 = vperm.xlu0 %11534, %v5082_v13  }
 0x1ed   : > { %4724 = vst.msk [vmem:[#allocation2 + $0x24] sm:$0xf] %vm4279_vm8, %v4464_v55  ;;  %v4485_v46 = vshrl.u32 %v10030_v12, 16  ;;  %v4488_v11 = vshll.u32 %v10030_v12, 16  ;;  %v4467_v16 = vshrl.u32 %v10028_v3, 16  ;;  %v4470_v41 = vshll.u32 %v10028_v3, 16 }
 0x1ee   : > { %v4442_v28 = vrot.slane %v4440_v51, 7  ;;  %v10031_v7 = vpack.c.bf16 %v4258_v10, %v4258_v10  ;;  %v4224_v34 = vadd.f32 %v13390_v52, %v4187_v18  ;;  %v4192_v38 = vmul.f32 %v13381_v44, %v4155_v30 }
 0x1ef   : > { %v4487_v32 = vrot.slane %v4485_v46, 7  ;;  %v13530_v62 = vrot.slane %v4467_v16, 7  ;;  %v4121_v42 = vmul.f32 %v13462_v48, %v15917_v49  ;;  %v11097_v5 = vadd.f32 %v13303_v63, %v13473_v47 }
 0x1f0   : > { %v4465_v0 = vrot.slane %v13496_v1, 4  ;;  %v4445_v17 = vor.u32 %v4443_v25, %v4442_v28  ;;  %v4447_v6 = vrot.slane %v4442_v28, 4  ;;  %v4494_v12 = vshrl.u32 %v10031_v7, 16  ;;  %v13545_v3 = vpop.f32.mrb[132].mxu0  ;;  %v15919_v28 = vld [vmem:[#allocation25_spill] sm:$0xff]  ;;  %5128 = vperm.xlu1 %11533, %v5082_v13  }
 0x1f1   : > { %v13548_v63 = vor.u32 %v4488_v11, %v4487_v32  ;;  %v4492_v48 = vrot.slane %v4487_v32, 4  ;;  %v4472_v47 = vor.u32 %v4470_v41, %v13530_v62  ;;  %v4497_v18 = vshll.u32 %v10031_v7, 16  ;;  %v13551_v30 = vpop.f32.mrb[36].mxu1  ;;  %v13553_v55 = vpop.f32.mrb[133].mxu0  ;;  %v5084_v32 = vld [vmem:[%s15499_s1 + $0x28] sm:$0xff] }
 0x1f2   : > { %v4446_v1 = vsel %vm13434_vm13, %v4438_v35, %v4445_v17  ;;  %v4455_v51 = vsel %vm13434_vm13, %v4447_v6, %v13466_v61  ;;  %v13560_v25 = vrot.slane %v4494_v12, 7  ;;  %v4256_v10 = vmax.f32 %v4224_v34, 0.0  ;;  %v13562_v46 = vpop.f32.mrb[37].mxu1  ;;  %v13564_v11 = vpop.f32.mrb[134].mxu0  ;;  %6101 = vperm.xlu0 %11534, %v5084_v32   ;;  %v15920_v12 = vld [vmem:[#allocation23_spill] sm:$0xff] }
 0x1f3   : > { %4722 = vst.msk [vmem:[#allocation2 + $0x1c] sm:$0xf] %vm4279_vm8, %v4446_v1  ;;  %4723 = vst.msk [vmem:[#allocation2 + $0x20] sm:$0xf] %vm4279_vm8, %v4455_v51  ;;  %v4473_v16 = vsel %vm13434_vm13, %v4465_v0, %v4472_v47  ;;  %v4229_v35 = vadd.f32 %v13390_v52, %v4192_v38  ;;  %v4153_v41 = vadd.f32 %v11092_v58, %v4121_v42  ;;  %v13573_v7 = vpop.f32.mrb[38].mxu1  ;;  %v13575_v34 = vpop.f32.mrb[135].mxu0 }
 0x1f4   : > { %v4124_v61 = vmul.f32 %v13469_v27, %v15919_v28  ;;  %v4474_v49 = vrot.slane %v13530_v62, 4  ;;  %4725 = vst.msk [vmem:[#allocation2 + $0x28] sm:$0xf] %vm4279_vm8, %v4473_v16  ;;  %v4499_v0 = vor.u32 %v4497_v18, %v13560_v25  ;;  %v10029_v17 = vpack.c.bf16 %v4256_v10, %v4256_v10  ;;  %v13585_v38 = vpop.f32.mrb[39].mxu1  ;;  %v15921_v16 = vld [vmem:[#allocation15_spill] sm:$0xff]  ;;  %5138 = vperm.xlu1 %11533, %v5084_v32  }
 0x1f5   : > { %v11102_v58 = vadd.f32 %v13306_v23, %v13480_v36  ;;  %v4261_v27 = vmax.f32 %v4229_v35, 0.0  ;;  %v4190_v42 = vmul.f32 %v13381_v44, %v4153_v41  ;;  %v4122_v47 = vmul.f32 %v13475_v43, %v15920_v12  ;;  %v5086_v23 = vld [vmem:[%s15499_s1 + $0x38] sm:$0xff] }
 0x1f6   : > { %v4156_v6 = vadd.f32 %v11097_v5, %v4124_v61  ;;  %v4500_v62 = vsel %vm13434_vm13, %v4492_v48, %v4499_v0  ;;  %v4476_v1 = vshrl.u32 %v10029_v17, 16  ;;  %v4479_v18 = vshll.u32 %v10029_v17, 16  ;;  %6109 = vperm.xlu0 %11534, %v5086_v23  }
 0x1f7   : > { %v11107_v51 = vadd.f32 %v13312_v20, %v13503_v60  ;;  %4728 = vst.msk [vmem:[#allocation2 + $0x34] sm:$0xf] %vm4279_vm8, %v4500_v62  ;;  %v10034_v36 = vpack.c.bf16 %v4261_v27, %v4261_v27  ;;  %v4227_v5 = vadd.f32 %v13390_v52, %v4190_v42  ;;  %v4154_v43 = vadd.f32 %v11102_v58, %v4122_v47  ;;  %v15922_v20 = vld [vmem:[#allocation32_spill] sm:$0xff] }
 0x1f8   : > { %v4193_v13 = vmul.f32 %v13381_v44, %v4156_v6  ;;  %v4478_v10 = vrot.slane %v4476_v1, 7  ;;  %v4127_v48 = vmul.f32 %v13500_v19, %v15921_v16  ;;  %v11112_v35 = vadd.f32 %v13316_v31, %v13511_v8  ;;  %v13606_v41 = vpop.f32.mrb[136].mxu0  ;;  %5148 = vperm.xlu1 %11533, %v5086_v23   ;;  %v15923_v23 = vld [vmem:[#allocation42_spill] sm:$0xff] }
 0x1f9   : > { %v4125_v60 = vmul.f32 %v13505_v39, %v15922_v20  ;;  %v4521_v28 = vshrl.u32 %v10034_v36, 16  ;;  %v4524_v61 = vshll.u32 %v10034_v36, 16  ;;  %v4259_v0 = vmax.f32 %v4227_v5, 0.0  ;;  %v13609_v58 = vpop.f32.mrb[40].mxu1  ;;  %v13611_v27 = vpop.f32.mrb[137].mxu0 }
 0x1fa   : > { %v4230_v17 = vadd.f32 %v13390_v52, %v4193_v13  ;;  %v4481_v19 = vor.u32 %v4479_v18, %v4478_v10  ;;  %v4483_v42 = vrot.slane %v4478_v10, 4  ;;  %v4191_v31 = vmul.f32 %v13381_v44, %v4154_v43  ;;  %v11644_v6 = vld [vmem:[#allocation2 + $0x18] sm:$0xff]   ;;  %v11645_v62 = vld [vmem:[#allocation2 + $0x20] sm:$0xff]   ;;  %v13635_v16 = vpop.f32.mrb[138].mxu0 }
 0x1fb   : > { %v4159_v8 = vadd.f32 %v11107_v51, %v4127_v48  ;;  %v13614_v39 = vrot.slane %v4521_v28, 7  ;;  %v10032_v12 = vpack.c.bf16 %v4259_v0, %v4259_v0  ;;  %v4157_v47 = vadd.f32 %v11112_v35, %v4125_v60  ;;  %10688 = vmatmul.mubr.msk.bf16.gmra.mrb[84].mxu1 %vm4865_vm11, %v11644_v6  ;;  %v13624_v51 = vpop.f32.mrb[41].mxu1 }
 0x1fc   : > { %v4262_v32 = vmax.f32 %v4230_v17, 0.0  ;;  %v4482_v1 = vsel %vm13434_vm13, %v4474_v49, %v4481_v19  ;;  %v4491_v36 = vsel %vm13434_vm13, %v4483_v42, %v13548_v63  ;;  %v4228_v18 = vadd.f32 %v13390_v52, %v4191_v31  ;;  %10691 = vmatprep.mubr.msk.bf16.mxu1 %vm4865_vm11, %v11645_v62  ;;  %v13633_v63 = vpop.f32.mrb[42].mxu1 }
 0x1fd   : > { %v4196_v5 = vmul.f32 %v13381_v44, %v4159_v8  ;;  %v4501_v13 = vrot.slane %v13560_v25, 4  ;;  %4726 = vst.msk [vmem:[#allocation2 + $0x2c] sm:$0xf] %vm4279_vm8, %v4482_v1  ;;  %4727 = vst.msk [vmem:[#allocation2 + $0x30] sm:$0xf] %vm4279_vm8, %v4491_v36  ;;  %v13630_v49 = vor.u32 %v4524_v61, %v13614_v39  ;;  %v4503_v43 = vshrl.u32 %v10032_v12, 16 }
 0x1fe   : > { %v4506_v10 = vshll.u32 %v10032_v12, 16  ;;  %v5088_v25 = vld [vmem:[%s15499_s1 + $0x48] sm:$0xff]  ;;  %v10035_v48 = vpack.c.bf16 %v4262_v32, %v4262_v32  ;;  %v4260_v35 = vmax.f32 %v4228_v18, 0.0  ;;  %v4194_v60 = vmul.f32 %v13381_v44, %v4157_v47  ;;  %v13642_v28 = vpop.f32.mrb[43].mxu1  ;;  %v13644_v61 = vpop.f32.mrb[139].mxu0 }
 0x1ff   : > { %v4233_v20 = vadd.f32 %v13390_v52, %v4196_v5  ;;  %6117 = vperm.xlu0 %11534, %v5088_v25   ;;  %v4505_v0 = vrot.slane %v4503_v43, 7  ;;  %v11117_v17 = vadd.f32 %v13319_v26, %v13518_v14  ;;  %v4128_v19 = vmul.f32 %v13513_v9, %v15923_v23  ;;  %5158 = vperm.xlu1 %11533, %v5088_v25   ;;  %v5092_v23 = vld [vmem:[%s15499_s1 + $0x68] sm:$0xff] }
 0x200   : > { %v11122_v42 = vadd.f32 %v13322_v4, %v13525_v21  ;;  %v4528_v31 = vrot.slane %v13614_v39, 4  ;;  %v4530_v8 = vshrl.u32 %v10035_v48, 16  ;;  %v10033_v6 = vpack.c.bf16 %v4260_v35, %v4260_v35  ;;  %v13653_v32 = vpop.f32.mrb[140].mxu0  ;;  %v5090_v4 = vld [vmem:[%s15499_s1 + $0x58] sm:$0xff]  ;;  %v15926_v35 = vld [vmem:[#allocation33_spill] sm:$0xff] }
 0x201   : > { %v4265_v12 = vmax.f32 %v4233_v20, 0.0  ;;  %v4508_v47 = vor.u32 %v4506_v10, %v4505_v0  ;;  %v4533_v62 = vshll.u32 %v10035_v48, 16  ;;  %v4231_v1 = vadd.f32 %v13390_v52, %v4194_v60  ;;  %v13656_v18 = vpop.f32.mrb[44].mxu1  ;;  %v13658_v26 = vpop.f32.mrb[141].mxu0  ;;  %v13674_v60 = vld [vmem:[#allocation2 + $0x8] sm:$0xff]  }
 0x202   : > { %v4160_v36 = vadd.f32 %v11117_v17, %v4128_v19  ;;  %15924 = vst [vmem:[#allocation56_spill] sm:$0xff] %v13658_v26  ;;  %v4510_v9 = vrot.slane %v4505_v0, 4  ;;  %v13663_v14 = vrot.slane %v4530_v8, 7  ;;  %v4512_v21 = vshrl.u32 %v10033_v6, 16  ;;  %v13665_v5 = vpop.f32.mrb[45].mxu1  ;;  %v13667_v43 = vpop.f32.mrb[142].mxu0 }
 0x203   : > { %v10038_v39 = vpack.c.bf16 %v4265_v12, %v4265_v12  ;;  %15925 = vst [vmem:[#allocation41_spill] sm:$0xff] %v13667_v43  ;;  %6125 = vperm.xlu0 %11534, %v5090_v4   ;;  %v4509_v10 = vsel %vm13434_vm13, %v4501_v13, %v4508_v47  ;;  %v4263_v48 = vmax.f32 %v4231_v1, 0.0  ;;  %v4126_v20 = vmul.f32 %v13520_v22, %v15926_v35  ;;  %v13676_v0 = vpop.f32.mrb[46].mxu1  ;;  %v13678_v17 = vpop.f32.mrb[143].mxu0 }
 0x204   : > { %v4197_v25 = vmul.f32 %v13381_v44, %v4160_v36  ;;  %15927 = vst [vmem:[#allocation46_spill] sm:$0xff] %v13676_v0  ;;  %15928 = vst [vmem:[#allocation43_spill] sm:$0xff] %v13678_v17  ;;  %v4535_v13 = vor.u32 %v4533_v62, %v13663_v14  ;;  %v4514_v19 = vrot.slane %v4512_v21, 7  ;;  %v4515_v8 = vshll.u32 %v10033_v6, 16  ;;  %v11648_v47 = vld [vmem:[#allocation2 + $0x28] sm:$0xff]   ;;  %v11649_v45 = vld [vmem:[#allocation2 + $0x30] sm:$0xff]   ;;  %5168 = vperm.xlu1 %11533, %v5090_v4  }
 0x205   : > { %4729 = vst.msk [vmem:[#allocation2 + $0x38] sm:$0xf] %vm4279_vm8, %v4509_v10  ;;  %v4557_v12 = vshrl.u32 %v10038_v39, 16  ;;  %v4560_v1 = vshll.u32 %v10038_v39, 16  ;;  %v10036_v22 = vpack.c.bf16 %v4263_v48, %v4263_v48  ;;  %v4158_v35 = vadd.f32 %v11122_v42, %v4126_v20  ;;  %v13690_v10 = vld [vmem:[#allocation2 + $0x10] sm:$0xff]   ;;  %10692 = vmatmul.mubr.msk.bf16.gmra.mrb[88].mxu1 %vm4865_vm11, %v11648_v47 }
 0x206   : > { %v4234_v36 = vadd.f32 %v13390_v52, %v4197_v25  ;;  %v4536_v17 = vsel %vm13434_vm13, %v4528_v31, %v4535_v13  ;;  %v4517_v43 = vor.u32 %v4515_v8, %v4514_v19  ;;  %v4519_v0 = vrot.slane %v4514_v19, 4  ;;  %10695 = vmatprep.mubr.msk.bf16.mxu1 %vm4865_vm11, %v11649_v45  ;;  %v13697_v31 = vpop.f32.mrb[47].mxu1 }
 0x207   : > { %v13688_v26 = vrot.slane %v4557_v12, 7  ;;  %6133 = vperm.xlu0 %11534, %v5092_v23   ;;  %v4537_v6 = vrot.slane %v13663_v14, 4  ;;  %4732 = vst.msk [vmem:[#allocation2 + $0x44] sm:$0xf] %vm4279_vm8, %v4536_v17  ;;  %v4539_v62 = vshrl.u32 %v10036_v22, 16  ;;  %v4195_v4 = vmul.f32 %v13381_v44, %v4158_v35 }
 0x208   : > { %v4266_v42 = vmax.f32 %v4234_v36, 0.0  ;;  %v4518_v21 = vsel %vm13434_vm13, %v4510_v9, %v4517_v43  ;;  %v4527_v39 = vsel %vm13434_vm13, %v4519_v0, %v13630_v49  ;;  %v4542_v14 = vshll.u32 %v10036_v22, 16  ;;  %5178 = vperm.xlu1 %11533, %v5092_v23   ;;  %v5094_v49 = vld [vmem:[%s15499_s1 + $0x78] sm:$0xff]  ;;  %v15929_v0 = vld [vmem:[#allocation18_spill] sm:$0xff] }
 0x209   : > { %v13705_v48 = vor.u32 %v4560_v1, %v13688_v26  ;;  %4730 = vst.msk [vmem:[#allocation2 + $0x3c] sm:$0xf] %vm4279_vm8, %v4518_v21  ;;  %4731 = vst.msk [vmem:[#allocation2 + $0x40] sm:$0xf] %vm4279_vm8, %v4527_v39  ;;  %v13709_v25 = vrot.slane %v4539_v62, 7  ;;  %v4232_v20 = vadd.f32 %v13390_v52, %v4195_v4  ;;  %v5461_v17 = vshll.u32 %v13674_v60, 16 }
 0x20a   : > { %v10039_v45 = vpack.c.bf16 %v4266_v42, %v4266_v42  ;;  %v4564_v9 = vrot.slane %v13688_v26, 4  ;;  %v11127_v43 = vadd.f32 %v13328_v29, %v13551_v30  ;;  %v4131_v13 = vmul.f32 %v13545_v3, %v15929_v0  ;;  %v15930_v30 = vld [vmem:[#allocation53_spill] sm:$0xff] }
 0x20b   : > { %v5469_v19 = vshll.u32 %v13690_v10, 16  ;;  %6141 = vperm.xlu0 %11534, %v5094_v49   ;;  %v4544_v8 = vor.u32 %v4542_v14, %v13709_v25  ;;  %v5465_v23 = vshrl.u32 %v13674_v60, 16  ;;  %v4264_v1 = vmax.f32 %v4232_v20, 0.0  ;;  %v5096_v42 = vld [vmem:[%s15499_s1 + $0x88] sm:$0xff] }
 0x20c   : > { %v4566_v12 = vshrl.u32 %v10039_v45, 16  ;;  %v4569_v47 = vshll.u32 %v10039_v45, 16  ;;  %v5463_v22 = vrot.slane %v5461_v17, 1  ;;  %v4163_v36 = vadd.f32 %v11127_v43, %v4131_v13  ;;  %5188 = vperm.xlu1 %11533, %v5094_v49  }
 0x20d   : > { %v5471_v35 = vrot.slane %v5469_v19, 1  ;;  %v4545_v26 = vsel %vm13434_vm13, %v4537_v6, %v4544_v8  ;;  %v11132_v3 = vadd.f32 %v13332_v15, %v13562_v46  ;;  %v4129_v62 = vmul.f32 %v13553_v55, %v15930_v30  ;;  %v13742_v15 = vld [vmem:[%s15501_s3 + $0x10] sm:$0xf]  ;;  %v15931_v8 = vld [vmem:[#allocation57_spill] sm:$0xff] }
 0x20e   : > { %v13726_v29 = vrot.slane %v4566_v12, 7  ;;  %4733 = vst.msk [vmem:[#allocation2 + $0x48] sm:$0xf] %vm4279_vm8, %v4545_v26  ;;  %v10037_v4 = vpack.c.bf16 %v4264_v1, %v4264_v1  ;;  %v5464_v21 = vsel %vm954_vm3, %v13401_v53, %v5463_v22  ;;  %v5467_v6 = vor.u32 %v5465_v23, %v5463_v22  ;;  %v13749_v53 = vld [vmem:[#allocation2 + $0x18] sm:$0xff]   ;;  %v13777_v30 = vld [vmem:[#allocation2 + $0x20] sm:$0xff]  }
 0x20f   : > { %v4200_v39 = vmul.f32 %v13381_v44, %v4163_v36  ;;  %6149 = vperm.xlu0 %11534, %v5096_v42   ;;  %v4546_v55 = vrot.slane %v13709_v25, 4  ;;  %10717 = vmatprep.mubr.msk.bf16.mxu0 %vm4865_vm11, %v5464_v21  ;;  %v4161_v14 = vadd.f32 %v11132_v3, %v4129_v62  ;;  %v11137_v45 = vadd.f32 %v13335_v56, %v13573_v7  ;;  %v15932_v23 = vld [vmem:[#allocation55_spill] sm:$0xff] }
 0x210   : > { %v4571_v46 = vor.u32 %v4569_v47, %v13726_v29  ;;  %v4548_v20 = vshrl.u32 %v10037_v4, 16  ;;  %v4551_v17 = vshll.u32 %v10037_v4, 16  ;;  %v5472_v43 = vsel %vm954_vm3, %v5467_v6, %v5471_v35  ;;  %v11652_v0 = vld [vmem:[#allocation2 + $0x38] sm:$0xff]   ;;  %v11653_v13 = vld [vmem:[#allocation2 + $0x40] sm:$0xff]   ;;  %5198 = vperm.xlu1 %11533, %v5096_v42  }
 0x211   : > { %v4237_v49 = vadd.f32 %v13390_v52, %v4200_v39  ;;  %10718 = vmatmul.mubr.msk.bf16.vlgmr.msra.gmra.mrb[144].mxu0 %vm4865_vm11, %v5472_v43  ;;  %v4198_v19 = vmul.f32 %v13381_v44, %v4161_v14  ;;  %v4132_v56 = vmul.f32 %v13564_v11, %v15931_v8  ;;  %v11142_v7 = vadd.f32 %v13338_v37, %v13585_v38  ;;  %v5100_v43 = vld [vmem:[%s15499_s1 + $0xa8] sm:$0xff] }
 0x212   : > { %v4572_v25 = vsel %vm13434_vm13, %v4564_v9, %v4571_v46  ;;  %v4550_v12 = vrot.slane %v4548_v20, 7  ;;  %10784 = vmatpush3.bf16.msra.mxu0 %v13410_v2  ;;  %v4130_v1 = vmul.f32 %v13575_v34, %v15932_v23  ;;  %v5473_v9 = vshrl.u32 %v13690_v10, 16  ;;  %10696 = vmatmul.mubr.msk.bf16.gmra.mrb[92].mxu1 %vm4865_vm11, %v11652_v0  ;;  %v5098_v2 = vld [vmem:[%s15499_s1 + $0x98] sm:$0xff] }
 0x213   : > { %4736 = vst.msk [vmem:[#allocation2 + $0x54] sm:$0xf] %vm4279_vm8, %v4572_v25  ;;  %v4269_v47 = vmax.f32 %v4237_v49, 0.0  ;;  %v4235_v22 = vadd.f32 %v13390_v52, %v4198_v19  ;;  %v4164_v36 = vadd.f32 %v11137_v45, %v4132_v56  ;;  %v5477_v11 = vshll.u32 %v13749_v53, 16  ;;  %10699 = vmatprep.mubr.msk.bf16.mxu1 %vm4865_vm11, %v11653_v13  ;;  %11485 = vmatprep.subr.msk.bf16.mxu0 %vm4914_vm4, %v13742_v15 }
 0x214   : > { %v11147_v37 = vadd.f32 %v13344_v40, %v13609_v58  ;;  %v4553_v34 = vor.u32 %v4551_v17, %v4550_v12  ;;  %v4555_v38 = vrot.slane %v4550_v12, 4  ;;  %v4162_v3 = vadd.f32 %v11142_v7, %v4130_v1  ;;  %6157 = vperm.xlu0 %11534, %v5098_v2   ;;  %5208 = vperm.xlu1 %11533, %v5098_v2  }
 0x215   : > { %v10042_v26 = vpack.c.bf16 %v4269_v47, %v4269_v47  ;;  %v4267_v62 = vmax.f32 %v4235_v22, 0.0  ;;  %v4201_v40 = vmul.f32 %v13381_v44, %v4164_v36  ;;  %v5475_v58 = vor.u32 %v5473_v9, %v5471_v35  ;;  %v15934_v22 = vld [vmem:[#allocation60_spill] sm:$0xff] }
 0x216   : > { %v5479_v4 = vrot.slane %v5477_v11, 1  ;;  %v4554_v21 = vsel %vm13434_vm13, %v4546_v55, %v4553_v34  ;;  %v4563_v6 = vsel %vm13434_vm13, %v4555_v38, %v13705_v48  ;;  %v4199_v45 = vmul.f32 %v13381_v44, %v4162_v3  ;;  %v15933_v55 = vld [vmem:[#allocation20_spill] sm:$0xff] }
 0x217   : > { %v4593_v39 = vshrl.u32 %v10042_v26, 16  ;;  %v4596_v46 = vshll.u32 %v10042_v26, 16  ;;  %4734 = vst.msk [vmem:[#allocation2 + $0x4c] sm:$0xf] %vm4279_vm8, %v4554_v21  ;;  %4735 = vst.msk [vmem:[#allocation2 + $0x50] sm:$0xf] %vm4279_vm8, %v4563_v6  ;;  %v10040_v42 = vpack.c.bf16 %v4267_v62, %v4267_v62  ;;  %v4238_v14 = vadd.f32 %v13390_v52, %v4201_v40 }
 0x218   : > { %v5480_v35 = vsel %vm954_vm3, %v5475_v58, %v5479_v4  ;;  %v4135_v48 = vmul.f32 %v13606_v41, %v15933_v55  ;;  %v5481_v17 = vshrl.u32 %v13749_v53, 16  ;;  %v5485_v49 = vshll.u32 %v13777_v30, 16  ;;  %6165 = vperm.xlu0 %11534, %v5100_v43   ;;  %5218 = vperm.xlu1 %11533, %v5100_v43   ;;  %v13827_v3 = vld [vmem:[%s15503_s5 + $0x1] ss:$0 sm:$0xff]  ;;  %v13840_v21 = vld [vmem:[#allocation2 + $0x28] sm:$0xff]  }
 0x219   : > { %v13790_v20 = vrot.slane %v4593_v39, 7  ;;  %10721 = vmatprep.mubr.msk.bf16.mxu0 %vm4865_vm11, %v5480_v35  ;;  %v4573_v44 = vrot.slane %v13726_v29, 4  ;;  %v4575_v0 = vshrl.u32 %v10040_v42, 16  ;;  %v4270_v13 = vmax.f32 %v4238_v14, 0.0  ;;  %v5102_v29 = vld [vmem:[%s15499_s1 + $0xb8] sm:$0xff] }
 0x21a   : > { %v4236_v25 = vadd.f32 %v13390_v52, %v4199_v45  ;;  %v4578_v41 = vshll.u32 %v10040_v42, 16  ;;  %v4167_v8 = vadd.f32 %v11147_v37, %v4135_v48  ;;  %v5483_v56 = vor.u32 %v5481_v17, %v5479_v4  ;;  %v13813_v52 = vld [vmem:[%s15503_s5] ss:$0 sm:$0xff] }
 0x21b   : > { %v13803_v19 = vor.u32 %v4596_v46, %v13790_v20  ;;  %v13805_v7 = vrot.slane %v4575_v0, 7  ;;  %v10043_v12 = vpack.c.bf16 %v4270_v13, %v4270_v13  ;;  %v5487_v23 = vrot.slane %v5485_v49, 1  ;;  %v15935_v40 = vld [vmem:[#allocation28_spill] sm:$0xff] }
 0x21c   : > { %v4268_v47 = vmax.f32 %v4236_v25, 0.0  ;;  %v4204_v1 = vmul.f32 %v13813_v52, %v4167_v8  ;;  %v11152_v9 = vadd.f32 %v13348_v57, %v13624_v51  ;;  %v4133_v36 = vmul.f32 %v13611_v27, %v15934_v22  ;;  %6173 = vperm.xlu0 %11534, %v5102_v29   ;;  %5228 = vperm.xlu1 %11533, %v5102_v29   ;;  %v15936_v35 = vld [vmem:[#allocation64_spill] sm:$0xff] }
 0x21d   : > { %v11157_v11 = vadd.f32 %v13351_v54, %v13633_v63  ;;  %v4600_v37 = vrot.slane %v13790_v20, 4  ;;  %v4580_v2 = vor.u32 %v4578_v41, %v13805_v7  ;;  %v4602_v34 = vshrl.u32 %v10043_v12, 16 }
 0x21e   : > { %v4605_v38 = vshll.u32 %v10043_v12, 16  ;;  %v10041_v26 = vpack.c.bf16 %v4268_v47, %v4268_v47  ;;  %v4241_v57 = vadd.f32 %v13827_v3, %v4204_v1  ;;  %v5488_v27 = vsel %vm954_vm3, %v5483_v56, %v5487_v23  ;;  %v11656_v54 = vld [vmem:[#allocation2 + $0x48] sm:$0xff]   ;;  %v11657_v6 = vld [vmem:[#allocation2 + $0x50] sm:$0xff]   ;;  %v5106_v56 = vld [vmem:[%s15499_s1 + $0xd8] sm:$0xff] }
 0x21f   : > { %v4165_v51 = vadd.f32 %v11152_v9, %v4133_v36  ;;  %v4581_v63 = vsel %vm13434_vm13, %v4573_v44, %v4580_v2  ;;  %v13833_v62 = vrot.slane %v4602_v34, 7  ;;  %10722 = vmatmul.mubr.msk.bf16.gmra.mrb[148].mxu0 %vm4865_vm11, %v5488_v27  ;;  %v4136_v58 = vmul.f32 %v13635_v16, %v15935_v40  ;;  %10700 = vmatmul.mubr.msk.bf16.gmra.mrb[96].mxu1 %vm4865_vm11, %v11656_v54  ;;  %v5104_v16 = vld [vmem:[%s15499_s1 + $0xc8] sm:$0xff]  ;;  %v13865_v1 = vld [vmem:[#allocation2 + $0x30] sm:$0xff]   ;;  %v15937_v27 = vld [vmem:[#allocation40_spill] sm:$0xff] }
 0x220   : > { %v11162_v4 = vadd.f32 %v13354_v33, %v13642_v28  ;;  %v4582_v39 = vrot.slane %v13805_v7, 4  ;;  %4737 = vst.msk [vmem:[#allocation2 + $0x58] sm:$0xf] %vm4279_vm8, %v4581_v63  ;;  %v4584_v46 = vshrl.u32 %v10041_v26, 16  ;;  %v4273_v42 = vmax.f32 %v4241_v57, 0.0  ;;  %10703 = vmatprep.mubr.msk.bf16.mxu1 %vm4865_vm11, %v11657_v6  ;;  %6181 = vperm.xlu0 %11534, %v5104_v16  }
 0x221   : > { %v4202_v14 = vmul.f32 %v13813_v52, %v4165_v51  ;;  %v4607_v33 = vor.u32 %v4605_v38, %v13833_v62  ;;  %v4587_v28 = vshll.u32 %v10041_v26, 16  ;;  %v4168_v45 = vadd.f32 %v11157_v11, %v4136_v58  ;;  %5238 = vperm.xlu1 %11533, %v5104_v16   ;;  %v5108_v51 = vld [vmem:[%s15499_s1 + $0xe8] sm:$0xff] }
 0x222   : > { %v4134_v20 = vmul.f32 %v13644_v61, %v15936_v35  ;;  %v4586_v55 = vrot.slane %v4584_v46, 7  ;;  %v10046_v48 = vpack.c.bf16 %v4273_v42, %v4273_v42  ;;  %v5489_v49 = vshrl.u32 %v13777_v30, 16  ;;  %v5110_v35 = vld [vmem:[%s15499_s1 + $0xf8] sm:$0xff] }
 0x223   : > { %v4239_v17 = vadd.f32 %v13827_v3, %v4202_v14  ;;  %v4608_v43 = vsel %vm13434_vm13, %v4600_v37, %v4607_v33  ;;  %v4205_v44 = vmul.f32 %v13813_v52, %v4168_v45  ;;  %v5493_v13 = vshll.u32 %v13840_v21, 16  ;;  %v15938_v33 = vld [vmem:[#allocation35_spill] sm:$0xff] }
 0x224   : > { %v4166_v0 = vadd.f32 %v11162_v4, %v4134_v20  ;;  %4740 = vst.msk [vmem:[#allocation2 + $0x64] sm:$0xf] %vm4279_vm8, %v4608_v43  ;;  %v4589_v61 = vor.u32 %v4587_v28, %v4586_v55  ;;  %v4591_v25 = vrot.slane %v4586_v55, 4  ;;  %v4629_v41 = vshrl.u32 %v10046_v48, 16  ;;  %6189 = vperm.xlu0 %11534, %v5106_v56   ;;  %v15939_v28 = vld [vmem:[#allocation56_spill] sm:$0xff] }
 0x225   : > { %v4632_v8 = vshll.u32 %v10046_v48, 16  ;;  %v4271_v7 = vmax.f32 %v4239_v17, 0.0  ;;  %v4242_v12 = vadd.f32 %v13827_v3, %v4205_v44  ;;  %v5491_v29 = vor.u32 %v5489_v49, %v5487_v23  ;;  %5248 = vperm.xlu1 %11533, %v5106_v56  }
 0x226   : > { %v4203_v47 = vmul.f32 %v13813_v52, %v4166_v0  ;;  %v4590_v9 = vsel %vm13434_vm13, %v4582_v39, %v4589_v61  ;;  %v4599_v22 = vsel %vm13434_vm13, %v4591_v25, %v13803_v19  ;;  %v4631_v36 = vrot.slane %v4629_v41, 7  ;;  %v13903_v41 = vld [vmem:[#allocation2 + $0x38] sm:$0xff]  }
 0x227   : > { %v5495_v11 = vrot.slane %v5493_v13, 1  ;;  %4738 = vst.msk [vmem:[#allocation2 + $0x5c] sm:$0xf] %vm4279_vm8, %v4590_v9  ;;  %4739 = vst.msk [vmem:[#allocation2 + $0x60] sm:$0xf] %vm4279_vm8, %v4599_v22  ;;  %v10044_v37 = vpack.c.bf16 %v4271_v7, %v4271_v7  ;;  %v4274_v2 = vmax.f32 %v4242_v12, 0.0  ;;  %v11167_v34 = vadd.f32 %v13362_v50, %v13656_v18 }
 0x228   : > { %v4240_v23 = vadd.f32 %v13827_v3, %v4203_v47  ;;  %v4609_v38 = vrot.slane %v13833_v62, 4  ;;  %v4634_v26 = vor.u32 %v4632_v8, %v4631_v36  ;;  %v4139_v19 = vmul.f32 %v13653_v32, %v15937_v27  ;;  %6197 = vperm.xlu0 %11534, %v5108_v51   ;;  %v15940_v12 = vld [vmem:[#allocation46_spill] sm:$0xff]  ;;  %v15941_v47 = vld [vmem:[#allocation48_spill] sm:$0xff]  ;;  %v15943_v22 = vld [vmem:[#allocation41_spill] sm:$0xff] }
 0x229   : > { %v5496_v57 = vsel %vm954_vm3, %v5491_v29, %v5495_v11  ;;  %v4636_v54 = vrot.slane %v4631_v36, 4  ;;  %v4611_v63 = vshrl.u32 %v10044_v37, 16  ;;  %v10047_v40 = vpack.c.bf16 %v4274_v2, %v4274_v2  ;;  %5258 = vperm.xlu1 %11533, %v5108_v51   ;;  %v15942_v9 = vld [vmem:[#allocation44_spill] sm:$0xff]  ;;  %v15946_v51 = vld [vmem:[#allocation43_spill] sm:$0xff] }
 0x22a   : > { %v4272_v58 = vmax.f32 %v4240_v23, 0.0  ;;  %10725 = vmatprep.mubr.msk.bf16.mxu0 %vm4865_vm11, %v5496_v57  ;;  %v4171_v50 = vadd.f32 %v11167_v34, %v4139_v19  ;;  %v5497_v18 = vshrl.u32 %v13840_v21, 16  ;;  %v5501_v62 = vshll.u32 %v13865_v1, 16  ;;  %v15944_v23 = vld [vmem:[#allocation30_spill] sm:$0xff]  ;;  %v15945_v19 = vld [vmem:[#allocation36_spill] sm:$0xff] }
 0x22b   : > { %v11172_v32 = vadd.f32 %v13367_v59, %v13665_v5  ;;  %v4613_v4 = vrot.slane %v4611_v63, 7  ;;  %v4614_v6 = vshll.u32 %v10044_v37, 16  ;;  %v4638_v39 = vshrl.u32 %v10047_v40, 16 }
 0x22c   : > { %v10045_v46 = vpack.c.bf16 %v4272_v58, %v4272_v58  ;;  %v4208_v42 = vmul.f32 %v13813_v52, %v4171_v50  ;;  %v5499_v14 = vor.u32 %v5497_v18, %v5495_v11  ;;  %v5503_v16 = vrot.slane %v5501_v62, 1  ;;  %6205 = vperm.xlu0 %11534, %v5110_v35  }
 0x22d   : > { %v4137_v45 = vmul.f32 %v15939_v28, %v15938_v33  ;;  %v4616_v20 = vor.u32 %v4614_v6, %v4613_v4  ;;  %v13895_v55 = vrot.slane %v4638_v39, 7  ;;  %v4641_v59 = vshll.u32 %v10047_v40, 16  ;;  %5268 = vperm.xlu1 %11533, %v5110_v35   ;;  %v13921_v40 = vld [vmem:[#allocation2 + $0x40] sm:$0xff]   ;;  %v15947_v6 = vld [vmem:[#allocation31_spill] sm:$0xff]  ;;  %v15951_v35 = vld [vmem:[#allocation34_spill] sm:$0xff] }
 0x22e   : > { %v4620_v5 = vshrl.u32 %v10045_v46, 16  ;;  %v4618_v48 = vrot.slane %v4613_v4, 4  ;;  %v4245_v17 = vadd.f32 %v13827_v3, %v4208_v42  ;;  %v5504_v49 = vsel %vm954_vm3, %v5499_v14, %v5503_v16  ;;  %v11660_v44 = vld [vmem:[#allocation2 + $0x58] sm:$0xff]   ;;  %v11661_v8 = vld [vmem:[#allocation2 + $0x60] sm:$0xff]   ;;  %v13932_v4 = vld [vmem:[#allocation2 + $0x48] sm:$0xff]  }
 0x22f   : > { %v4169_v43 = vadd.f32 %v11172_v32, %v4137_v45  ;;  %v4617_v0 = vsel %vm13434_vm13, %v4609_v38, %v4616_v20  ;;  %v4643_v13 = vor.u32 %v4641_v59, %v13895_v55  ;;  %v4623_v25 = vshll.u32 %v10045_v46, 16  ;;  %10726 = vmatmul.mubr.msk.bf16.gmra.mrb[152].mxu0 %vm4865_vm11, %v5504_v49  ;;  %10704 = vmatmul.mubr.msk.bf16.gmra.mrb[100].mxu1 %vm4865_vm11, %v11660_v44  ;;  %v15948_v39 = vld [vmem:[#allocation47_spill] sm:$0xff] }
 0x230   : > { %v4622_v61 = vrot.slane %v4620_v5, 7  ;;  %4741 = vst.msk [vmem:[#allocation2 + $0x68] sm:$0xf] %vm4279_vm8, %v4617_v0  ;;  %v4277_v56 = vmax.f32 %v4245_v17, 0.0  ;;  %v11177_v29 = vadd.f32 %v15941_v47, %v15940_v12  ;;  %v4140_v36 = vmul.f32 %v15943_v22, %v15942_v9  ;;  %10707 = vmatprep.mubr.msk.bf16.mxu1 %vm4865_vm11, %v11661_v8 }
 0x231   : > { %v4206_v7 = vmul.f32 %v13813_v52, %v4169_v43  ;;  %v4644_v11 = vsel %vm13434_vm13, %v4636_v54, %v4643_v13  ;;  %v11182_v34 = vadd.f32 %v15944_v23, %v13697_v31  ;;  %v4138_v63 = vmul.f32 %v15946_v51, %v15945_v19 }
 0x232   : > { %v4625_v37 = vor.u32 %v4623_v25, %v4622_v61  ;;  %v4627_v2 = vrot.slane %v4622_v61, 4  ;;  %4744 = vst.msk [vmem:[#allocation2 + $0x74] sm:$0xf] %vm4279_vm8, %v4644_v11  ;;  %v10050_v38 = vpack.c.bf16 %v4277_v56, %v4277_v56  ;;  %v4172_v27 = vadd.f32 %v11177_v29, %v4140_v36 }
 0x233   : > { %v4243_v57 = vadd.f32 %v13827_v3, %v4206_v7  ;;  %v5505_v31 = vshrl.u32 %v13865_v1, 16  ;;  %v5509_v50 = vshll.u32 %v13903_v41, 16  ;;  %v15949_v46 = vcombine.low %v15947_v6, %v15948_v39 }
 0x234   : > { %v4626_v54 = vsel %vm13434_vm13, %v4618_v48, %v4625_v37  ;;  %v4635_v58 = vsel %vm13434_vm13, %v4627_v2, %v4634_v26  ;;  %v4665_v18 = vshrl.u32 %v10050_v38, 16  ;;  %v4209_v32 = vmul.f32 %v13813_v52, %v4172_v27  ;;  %v13944_v48 = vld [vmem:[#allocation2 + $0x50] sm:$0xff]  }
 0x235   : > { %4742 = vst.msk [vmem:[#allocation2 + $0x6c] sm:$0xf] %vm4279_vm8, %v4626_v54  ;;  %4743 = vst.msk [vmem:[#allocation2 + $0x70] sm:$0xf] %vm4279_vm8, %v4635_v58  ;;  %v4275_v62 = vmax.f32 %v4243_v57, 0.0  ;;  %v13937_v42 = vrot.slane %v15949_v46, 1  ;;  %v4170_v14 = vadd.f32 %v11182_v34, %v4138_v63  ;;  %v5507_v33 = vor.u32 %v5505_v31, %v5503_v16 }
 0x236   : > { %v15950_v26 = vmov 1   ;;  %v5511_v28 = vrot.slane %v5509_v50, 1  ;;  %v5513_v45 = vshrl.u32 %v13903_v41, 16  ;;  %v4246_v59 = vadd.f32 %v13827_v3, %v4209_v32  ;;  %v11759_v54 = vld [vmem:[%s15499_s1 + $0x20] sm:$0xff]  ;;  %v4749_v31 = vld [vmem:[#allocation2 + $0x88] sm:$0x1] }
 0x237   : > { %11535 = vset.pattern.permute.xlu1 %v15950_v26  ;;  %v10048_v20 = vpack.c.bf16 %v4275_v62, %v4275_v62  ;;  %v5517_v5 = vshll.u32 %v13921_v40, 16  ;;  %v4645_v17 = vrot.slane %v13895_v55, 4  ;;  %v4207_v49 = vmul.f32 %v13813_v52, %v4170_v14  ;;  %v13955_v55 = vld [vmem:[#allocation2 + $0x58] sm:$0xff]   ;;  %v11758_v52 = vld [vmem:[%s15499_s1 + $0x10] sm:$0xff] }
 0x238   : > { %6085 = vperm.xlu1 %11535, %v15951_v35   ;;  %v5512_v43 = vsel %vm954_vm3, %v5507_v33, %v5511_v28  ;;  %v5515_v44 = vor.u32 %v5513_v45, %v5511_v28  ;;  %v13949_v16 = vrot.slane %v4665_v18, 7  ;;  %v4668_v0 = vshll.u32 %v10050_v38, 16  ;;  %v13964_v38 = vld [vmem:[#allocation2 + $0x60] sm:$0xff]  }
 0x239   : > { %v4647_v13 = vshrl.u32 %v10048_v20, 16  ;;  %10729 = vmatprep.mubr.msk.bf16.mxu0 %vm4865_vm11, %v5512_v43  ;;  %v5521_v61 = vshrl.u32 %v13921_v40, 16  ;;  %v4278_v25 = vmax.f32 %v4246_v59, 0.0  ;;  %v4244_v8 = vadd.f32 %v13827_v3, %v4207_v49 }
 0x23a   : > { %v5519_v56 = vrot.slane %v5517_v5, 1  ;;  %v5525_v7 = vshll.u32 %v13932_v4, 16  ;;  %v4650_v47 = vshll.u32 %v10048_v20, 16  ;;  %v5529_v29 = vshrl.u32 %v13932_v4, 16 }
 0x23b   : > { %v4649_v12 = vrot.slane %v4647_v13, 7  ;;  %v5533_v9 = vshll.u32 %v13944_v48, 16  ;;  %v10051_v22 = vpack.c.bf16 %v4278_v25, %v4278_v25  ;;  %v4276_v36 = vmax.f32 %v4244_v8, 0.0 }
 0x23c   : > { %6089 = vperm.xlu1 %11535, %v11758_v52   ;;  %v5520_v3 = vsel %vm954_vm3, %v5515_v44, %v5519_v56  ;;  %v11664_v11 = vld [vmem:[#allocation2 + $0x68] sm:$0xff]   ;;  %v5523_v2 = vor.u32 %v5521_v61, %v5519_v56  ;;  %v5527_v23 = vrot.slane %v5525_v7, 1  ;;  %v11665_v57 = vld [vmem:[#allocation2 + $0x70] sm:$0xff]   ;;  %v4670_v27 = vor.u32 %v4668_v0, %v13949_v16 }
 0x23d   : > { %v4652_v37 = vor.u32 %v4650_v47, %v4649_v12  ;;  %10730 = vmatmul.mubr.msk.bf16.gmra.mrb[156].mxu0 %vm4865_vm11, %v5520_v3  ;;  %v5535_v34 = vrot.slane %v5533_v9, 1  ;;  %v4674_v19 = vshrl.u32 %v10051_v22, 16  ;;  %v10049_v51 = vpack.c.bf16 %v4276_v36, %v4276_v36  ;;  %10708 = vmatmul.mubr.msk.bf16.gmra.mrb[104].mxu1 %vm4865_vm11, %v11664_v11  ;;  %v13977_v32 = vld [vmem:[#allocation2 + $0x68] sm:$0xff]  }
 0x23e   : > { %v5541_v63 = vshll.u32 %v13955_v55, 16  ;;  %v5528_v50 = vsel %vm954_vm3, %v5523_v2, %v5527_v23  ;;  %v5531_v18 = vor.u32 %v5529_v29, %v5527_v23  ;;  %v5537_v62 = vshrl.u32 %v13944_v48, 16  ;;  %10711 = vmatprep.mubr.msk.bf16.mxu1 %vm4865_vm11, %v11665_v57  ;;  %v14002_v29 = vld [vmem:[#allocation2 + $0x70] sm:$0xff]  }
 0x23f   : > { %v4653_v58 = vsel %vm13434_vm13, %v4645_v17, %v4652_v37  ;;  %v4676_v6 = vrot.slane %v4674_v19, 7  ;;  %v4677_v39 = vshll.u32 %v10051_v22, 16  ;;  %v4656_v46 = vshrl.u32 %v10049_v51, 16  ;;  %10733 = vmatprep.mubr.msk.bf16.mxu0 %vm4865_vm11, %v5528_v50  ;;  %v11760_v17 = vld [vmem:[%s15499_s1 + $0x30] sm:$0xff]  ;;  %v11761_v22 = vld [vmem:[%s15499_s1 + $0x40] sm:$0xff] }
 0x240   : > { %6097 = vperm.xlu1 %11535, %v11759_v54   ;;  %4745 = vst.msk [vmem:[#allocation2 + $0x78] sm:$0xf] %vm4279_vm8, %v4653_v58  ;;  %v5543_v26 = vrot.slane %v5541_v63, 1  ;;  %v4672_v14 = vrot.slane %v13949_v16, 4  ;;  %v4659_v33 = vshll.u32 %v10049_v51, 16  ;;  %v5539_v28 = vor.u32 %v5537_v62, %v5535_v34  ;;  %v11762_v57 = vld [vmem:[%s15499_s1 + $0x50] sm:$0xff] }
 0x241   : > { %v5549_v45 = vshll.u32 %v13964_v38, 16  ;;  %v4679_v35 = vor.u32 %v4677_v39, %v4676_v6  ;;  %v4681_v20 = vrot.slane %v4676_v6, 4  ;;  %v4658_v59 = vrot.slane %v4656_v46, 7  ;;  %v11763_v51 = vld [vmem:[%s15499_s1 + $0x60] sm:$0xff]  ;;  %v11764_v62 = vld [vmem:[%s15499_s1 + $0x70] sm:$0xff] }
 0x242   : > { %v5536_v5 = vsel %vm954_vm3, %v5531_v18, %v5535_v34  ;;  %v4654_v49 = vrot.slane %v4649_v12, 4  ;;  %v5544_v43 = vsel %vm954_vm3, %v5539_v28, %v5543_v26  ;;  %v5545_v44 = vshrl.u32 %v13955_v55, 16  ;;  %v11765_v28 = vld [vmem:[%s15501_s3 + $0x14] sm:$0xf] }
 0x243   : > { %v5557_v16 = vshll.u32 %v13977_v32, 16  ;;  %v4680_v0 = vsel %vm13434_vm13, %v4672_v14, %v4679_v35  ;;  %v4750_v61 = vsel %vm13074_vm7, %v4681_v20, %v4749_v31  ;;  %v4661_v25 = vor.u32 %v4659_v33, %v4658_v59  ;;  %v11766_v35 = vld [vmem:[%s15499_s1 + $0x80] sm:$0xff]  ;;  %v14057_v20 = vld [vmem:[%s15501_s3 + $0x18] sm:$0xf] }
 0x244   : > { %6105 = vperm.xlu1 %11535, %v11760_v17   ;;  %v4663_v8 = vrot.slane %v4658_v59, 4  ;;  %4748 = vst.msk [vmem:[#allocation2 + $0x84] sm:$0xf] %vm4279_vm8, %v4680_v0  ;;  %4751 = vst [vmem:[#allocation2 + $0x88] sm:$0x1] %v4750_v61  ;;  %v5551_v56 = vrot.slane %v5549_v45, 1  ;;  %v5547_v47 = vor.u32 %v5545_v44, %v5543_v26 }
 0x245   : > { %10734 = vmatmul.mubr.msk.bf16.gmra.mrb[160].mxu0 %vm4865_vm11, %v5536_v5  ;;  %v5553_v7 = vshrl.u32 %v13964_v38, 16  ;;  %v4662_v52 = vsel %vm13434_vm13, %v4654_v49, %v4661_v25  ;;  %v5836_v9 = vrot.slane %v13674_v60, 1  ;;  %v5559_v36 = vrot.slane %v5557_v16, 1  ;;  %v11767_v17 = vld [vmem:[%s15499_s1 + $0x90] sm:$0xff]  ;;  %v11671_v49 = vld [vmem:[#allocation2 + $0x8] sm:$0xff]   ;;  %v11768_v44 = vld [vmem:[%s15499_s1 + $0xa0] sm:$0xff] }
 0x246   : > { %v4671_v12 = vsel %vm13434_vm13, %v4663_v8, %v4670_v27  ;;  %10737 = vmatprep.mubr.msk.bf16.mxu0 %vm4865_vm11, %v5544_v43  ;;  %4746 = vst.msk [vmem:[#allocation2 + $0x7c] sm:$0xf] %vm4279_vm8, %v4662_v52  ;;  %v5838_v24 = vrot.slane %v13690_v10, 1  ;;  %v5840_v11 = vrot.slane %v13749_v53, 1  ;;  %v5842_v2 = vrot.slane %v13777_v30, 1  ;;  %v11672_v0 = vld [vmem:[#allocation2 + $0x10] sm:$0xff]  }
 0x247   : > { %4747 = vst.msk [vmem:[#allocation2 + $0x80] sm:$0xf] %vm4279_vm8, %v4671_v12  ;;  %v5837_v3 = vsel %vm1337_vm2, %v13937_v42, %v5836_v9  ;;  %v5555_v37 = vor.u32 %v5553_v7, %v5551_v56  ;;  %v5552_v23 = vsel %vm954_vm3, %v5547_v47, %v5551_v56  ;;  %v5565_v42 = vshll.u32 %v14002_v29, 16  ;;  %v11673_v25 = vld [vmem:[#allocation2 + $0x18] sm:$0xff]   ;;  %v11771_v12 = vld [vmem:[%s15499_s1 + $0xd0] sm:$0xff]  ;;  %v11675_v47 = vld [vmem:[#allocation2 + $0x28] sm:$0xff]  }
 0x248   : > { %6113 = vperm.xlu1 %11535, %v11761_v22   ;;  %v5839_v60 = vsel %vm1337_vm2, %v5836_v9, %v5838_v24  ;;  %v5841_v34 = vsel %vm1337_vm2, %v5838_v24, %v5840_v11  ;;  %v5843_v53 = vsel %vm1337_vm2, %v5840_v11, %v5842_v2  ;;  %v5561_v27 = vshrl.u32 %v13977_v32, 16  ;;  %v14086_v56 = vld [vmem:[%s15501_s3 + $0x1c] sm:$0xf]  ;;  %v11676_v24 = vld [vmem:[#allocation2 + $0x30] sm:$0xff]  }
 0x249   : > { %v5560_v10 = vsel %vm954_vm3, %v5555_v37, %v5559_v36  ;;  %v5567_v63 = vrot.slane %v5565_v42, 1  ;;  %v5569_v31 = vshrl.u32 %v14002_v29, 16  ;;  %v7244_v45 = vsel %vm4914_vm4, %v11765_v28, 0  ;;  %v11677_v11 = vld [vmem:[#allocation2 + $0x38] sm:$0xff]   ;;  %v11680_v42 = vld [vmem:[#allocation2 + $0x50] sm:$0xff]  }
 0x24a   : > { %v5563_v30 = vor.u32 %v5561_v27, %v5559_v36  ;;  %v5844_v43 = vrot.slane %v13840_v21, 1  ;;  %v11769_v21 = vld [vmem:[%s15499_s1 + $0xb0] sm:$0xff]  ;;  %v6961_v13 = vsel %vm4914_vm4, %v13742_v15, 0  ;;  %v5846_v61 = vrot.slane %v13865_v1, 1  ;;  %v11770_v15 = vld [vmem:[%s15499_s1 + $0xc0] sm:$0xff]  ;;  %v11681_v27 = vld [vmem:[#allocation2 + $0x58] sm:$0xff]  }
 0x24b   : > { %v5571_v6 = vor.u32 %v5569_v31, %v5567_v63  ;;  %v5848_v8 = vrot.slane %v13903_v41, 1  ;;  %v11674_v41 = vld [vmem:[#allocation2 + $0x20] sm:$0xff]   ;;  %v5850_v52 = vrot.slane %v13921_v40, 1  ;;  %v5852_v9 = vrot.slane %v13932_v4, 1  ;;  %v11684_v28 = vld [vmem:[#allocation2 + $0x70] sm:$0xff]  }
 0x24c   : > { %6121 = vperm.xlu1 %11535, %v11762_v57   ;;  %v5568_v18 = vsel %vm954_vm3, %v5563_v30, %v5567_v63  ;;  %v5845_v16 = vsel %vm1337_vm2, %v5842_v2, %v5844_v43  ;;  %v5847_v7 = vsel %vm1337_vm2, %v5844_v43, %v5846_v61  ;;  %v11772_v36 = vld [vmem:[%s15499_s1 + $0xe0] sm:$0xff]  ;;  %v5854_v4 = vrot.slane %v13944_v48, 1  ;;  %v11687_v63 = vld [vmem:[#allocation2 + $0x10] sm:$0xff]  }
 0x24d   : > { %10738 = vmatmul.mubr.msk.bf16.gmra.mrb[164].mxu0 %vm4865_vm11, %v5552_v23  ;;  %v11668_v19 = vld [vmem:[#allocation2 + $0x78] sm:$0xff]   ;;  %v5849_v1 = vsel %vm1337_vm2, %v5846_v61, %v5848_v8  ;;  %v5851_v22 = vsel %vm1337_vm2, %v5848_v8, %v5850_v52  ;;  %v5853_v40 = vsel %vm1337_vm2, %v5850_v52, %v5852_v9  ;;  %v5856_v37 = vrot.slane %v13955_v55, 1  ;;  %v11678_v48 = vld [vmem:[#allocation2 + $0x40] sm:$0xff]  }
 0x24e   : > { %10741 = vmatprep.mubr.msk.bf16.mxu0 %vm4865_vm11, %v5560_v10  ;;  %v14030_v54 = vld [vmem:[#allocation2 + $0x78] sm:$0xff]   ;;  %10712 = vmatmul.mubr.msk.bf16.gmra.mrb[108].mxu1 %vm4865_vm11, %v11668_v19  ;;  %v14033_v58 = vld [vmem:[#allocation2 + $0x80] ss:$0 sps:$4 sm:$0x11]   ;;  %v5858_v23 = vrot.slane %v13964_v38, 1  ;;  %v5860_v57 = vrot.slane %v13977_v32, 1 }
 0x24f   : > { %10751 = vmatprep.mubr.msk.bf16.mxu1 %vm4865_vm11, %v5837_v3  ;;  %v5573_v50 = vshll.u32 %v14030_v54, 16  ;;  %v5577_v46 = vshrl.u32 %v14030_v54, 16  ;;  %v5581_v26 = vshll.u32 %v14033_v58, 16  ;;  %v11773_v3 = vld [vmem:[%s15499_s1 + $0xf0] sm:$0xff]  ;;  %v5857_v2 = vsel %vm1337_vm2, %v5854_v4, %v5856_v37  ;;  %v6663_v32 = vld [vmem:[#allocation2 + $0xc] sm:$0xf] }
 0x250   : > { %6129 = vperm.xlu1 %11535, %v11763_v51   ;;  %v5859_v55 = vsel %vm1337_vm2, %v5856_v37, %v5858_v23  ;;  %v5861_v10 = vsel %vm1337_vm2, %v5858_v23, %v5860_v57  ;;  %v5864_v38 = vrot.slane %v14030_v54, 1  ;;  %v7156_v19 = vld [vmem:[#allocation2 + $0x8] sm:$0xe]  ;;  %v6788_v43 = vshll.u32 %v11687_v63, 16  ;;  %v14185_v23 = vld [vmem:[%s15502_s4] sm:$0x3] }
 0x251   : > { %v5575_v39 = vrot.slane %v5573_v50, 1  ;;  %v5583_v59 = vrot.slane %v5581_v26, 1  ;;  %v9878_v31 = vcombine.low %v7156_v19, %v6663_v32  ;;  %v5866_v50 = vrot.slane %v14033_v58, 1  ;;  %v11683_v54 = vld [vmem:[#allocation2 + $0x68] sm:$0xff]   ;;  %v11690_v26 = vld [vmem:[#allocation2 + $0x18] sm:$0xff]  }
 0x252   : > { %v6790_v8 = vrot.slane %v6788_v43, 1  ;;  %v6800_v52 = vshrl.u32 %v11690_v26, 16 }
 0x253   : > { %v5576_v14 = vsel %vm954_vm3, %v5571_v6, %v5575_v39  ;;  %v5579_v33 = vor.u32 %v5577_v46, %v5575_v39  ;;  %v7163_v6 = vrot.slane %v11687_v63, 1  ;;  %v5867_v46 = vsel %vm1337_vm2, %v5864_v38, %v5866_v50 }
 0x254   : > { %6137 = vperm.xlu1 %11535, %v11764_v62   ;;  %v7162_v62 = vrot.slane %v9878_v31, 1 }
 0x255   : > { %10742 = vmatmul.mubr.msk.bf16.gmra.mrb[168].mxu0 %vm4865_vm11, %v5568_v18  ;;  %v5584_v5 = vsel %vm954_vm3, %v5579_v33, %v5583_v59  ;;  %v6662_v18 = vld [vmem:[#allocation2 + $0x8] sm:$0xf]  ;;  %v14146_v33 = vld [vmem:[#allocation2 + $0x20] sm:$0xff]  }
 0x256   : > { %10745 = vmatprep.mubr.msk.bf16.mxu0 %vm4865_vm11, %v5576_v14  ;;  %10752 = vmatmul.mubr.msk.bf16.vlgmr.msra.gmra.mrb[112].mxu1 %vm4865_vm11, %v5839_v60  ;;  %v5855_v60 = vsel %vm1337_vm2, %v5852_v9, %v5854_v4  ;;  %v9844_v39 = vcombine.low %v6662_v18, %v6663_v32  ;;  %v7164_v14 = vsel %vm1337_vm2, %v7162_v62, %v7163_v6  ;;  %v7167_v59 = vrot.slane %v14146_v33, 1  ;;  %v11694_v9 = vld [vmem:[#allocation2 + $0x38] sm:$0xff]   ;;  %v14199_v32 = vld [vmem:[#allocation2 + $0x50] sm:$0xff]  }
 0x257   : > { %10755 = vmatprep.mubr.msk.bf16.mxu1 %vm4865_vm11, %v5841_v34  ;;  %10852 = vmatpush3.bf16.msra.mxu1 %v7244_v45  ;;  %v11679_v34 = vld [vmem:[#allocation2 + $0x48] sm:$0xff]   ;;  %v7165_v45 = vrot.slane %v11690_v26, 1  ;;  %v6828_v19 = vshll.u32 %v11694_v9, 16 }
 0x258   : > { %6145 = vperm.xlu1 %11535, %v11766_v35   ;;  %11487 = vmatprep.subr.msk.bf16.mxu1 %vm4914_vm4, %v14057_v20  ;;  %v6783_v58 = vshll.u32 %v9844_v39, 16  ;;  %v11685_v35 = vld [vmem:[#allocation2 + $0x78] sm:$0xff]  }
 0x25c   : > { %6153 = vperm.xlu1 %11535, %v11767_v17   ;;  %v7634_v17 = vsel %vm4914_vm4, %v14057_v20, 0  ;;  %v6796_v20 = vshll.u32 %v11690_v26, 16 }
 0x25d   : > { %10746 = vmatmul.mubr.msk.bf16.gmra.mrb[172].mxu0 %vm4865_vm11, %v5584_v5  ;;  %v6785_v5 = vrot.slane %v6783_v58, 1 }
 0x25e   : > { %10785 = vmatprep.mubr.msk.bf16.mxu0 %vm4865_vm11, %v11671_v49  ;;  %10756 = vmatmul.mubr.msk.bf16.gmra.mrb[116].mxu1 %vm4865_vm11, %v5843_v53  ;;  %v5862_v53 = vrot.slane %v14002_v29, 1  ;;  %v11682_v29 = vld [vmem:[#allocation2 + $0x60] sm:$0xff]   ;;  %v6781_v49 = vshrl.u32 %v9844_v39, 16  ;;  %v6832_v39 = vshrl.u32 %v11694_v9, 16 }
 0x25f   : > { %10759 = vmatprep.mubr.msk.bf16.mxu1 %vm4865_vm11, %v5845_v16  ;;  %v11692_v16 = vld [vmem:[#allocation2 + $0x28] sm:$0xff]  }
 0x260   : > { %6161 = vperm.xlu1 %11535, %v11768_v44   ;;  %v5863_v30 = vsel %vm1337_vm2, %v5860_v57, %v5862_v53  ;;  %v5865_v51 = vsel %vm1337_vm2, %v5862_v53, %v5864_v38  ;;  %v7166_v44 = vsel %vm1337_vm2, %v7163_v6, %v7165_v45  ;;  %v6786_v61 = vor.u32 %v6785_v5, %v6781_v49  ;;  %v11696_v53 = vld [vmem:[#allocation2 + $0x48] sm:$0xff]  }
 0x261   : > { %v6812_v4 = vshll.u32 %v11692_v16, 16  ;;  %v6830_v6 = vrot.slane %v6828_v19, 1 }
 0x263   : > { %v6814_v57 = vrot.slane %v6812_v4, 1 }
 0x264   : > { %6169 = vperm.xlu1 %11535, %v11769_v21   ;;  %v7168_v21 = vsel %vm1337_vm2, %v7165_v45, %v7167_v59  ;;  %v14218_v45 = vld [vmem:[#allocation2 + $0x60] sm:$0xff]  }
 0x265   : > { %10786 = vmatmul.mubr.msk.bf16.vlgmr.msra.gmra.mrb[176].mxu0 %vm4865_vm11, %v11672_v0  ;;  %v14158_v0 = vld [vmem:[%s15501_s3 + $0x20] sm:$0xf] }
 0x266   : > { %10818 = vmatpush3.bf16.msra.mxu0 %v6961_v13  ;;  %10789 = vmatprep.mubr.msk.bf16.mxu0 %vm4865_vm11, %v11673_v25  ;;  %v14162_v13 = vld [vmem:[#allocation2 + $0x30] sm:$0xff]   ;;  %v11689_v25 = vld [vmem:[#allocation2 + $0x80] sm:$0xff]  }
 0x267   : > { %11488 = vmatprep.subr.msk.bf16.mxu0 %vm4914_vm4, %v14086_v56  ;;  %10760 = vmatmul.mubr.msk.bf16.gmra.mrb[120].mxu1 %vm4865_vm11, %v5847_v7  ;;  %v7169_v7 = vrot.slane %v11692_v16, 1  ;;  %v6824_v58 = vshrl.u32 %v14162_v13, 16 }
 0x268   : > { %6177 = vperm.xlu1 %11535, %v11770_v15   ;;  %10763 = vmatprep.mubr.msk.bf16.mxu1 %vm4865_vm11, %v5849_v1  ;;  %v7171_v15 = vrot.slane %v14162_v13, 1  ;;  %v6791_v1 = vsel %vm954_vm3, %v6786_v61, %v6790_v8 }
 0x26c   : > { %6185 = vperm.xlu1 %11535, %v11771_v12   ;;  %v6804_v12 = vshll.u32 %v14146_v33, 16 }
 0x26d   : > { %10790 = vmatmul.mubr.msk.bf16.gmra.mrb[180].mxu0 %vm4865_vm11, %v11674_v41  ;;  %v6798_v41 = vrot.slane %v6796_v20, 1  ;;  %v6848_v20 = vshrl.u32 %v11696_v53, 16 }
 0x26e   : > { %10793 = vmatprep.mubr.msk.bf16.mxu0 %vm4865_vm11, %v11675_v47  ;;  %v7170_v47 = vsel %vm1337_vm2, %v7167_v59, %v7169_v7  ;;  %v6806_v37 = vrot.slane %v6804_v12, 1  ;;  %v6844_v59 = vshll.u32 %v11696_v53, 16 }
 0x26f   : > { %10764 = vmatmul.mubr.msk.bf16.gmra.mrb[124].mxu1 %vm4865_vm11, %v5851_v22  ;;  %v6792_v22 = vshrl.u32 %v11687_v63, 16 }
 0x270   : > { %6193 = vperm.xlu1 %11535, %v11772_v36   ;;  %10767 = vmatprep.mubr.msk.bf16.mxu1 %vm4865_vm11, %v5853_v40  ;;  %v7172_v36 = vsel %vm1337_vm2, %v7169_v7, %v7171_v15  ;;  %v14175_v40 = vld [vmem:[#allocation2 + $0x40] sm:$0xff]   ;;  %v11700_v7 = vld [vmem:[#allocation2 + $0x68] sm:$0xff]  }
 0x271   : > { %v6876_v19 = vshll.u32 %v11700_v7, 16 }
 0x274   : > { %6201 = vperm.xlu1 %11535, %v11773_v3   ;;  %v6794_v3 = vor.u32 %v6792_v22, %v6790_v8 }
 0x275   : > { %10794 = vmatmul.mubr.msk.bf16.gmra.mrb[184].mxu0 %vm4865_vm11, %v11676_v24  ;;  %v6802_v24 = vor.u32 %v6800_v52, %v6798_v41 }
 0x276   : > { %10797 = vmatprep.mubr.msk.bf16.mxu0 %vm4865_vm11, %v11677_v11  ;;  %v8160_v11 = vsel %vm4914_vm4, %v14086_v56, 0  ;;  %v14190_v56 = vpop.permute.xlu1 %5118 }
 0x277   : > { %10768 = vmatmul.mubr.msk.bf16.gmra.mrb[128].mxu1 %vm4865_vm11, %v5855_v60  ;;  %v7173_v60 = vrot.slane %v11694_v9, 1  ;;  %15953 = vst [vmem:[#allocation26_spill] sm:$0xff] %v14190_v56 }
 0x278   : > { %10771 = vmatprep.mubr.msk.bf16.mxu1 %vm4865_vm11, %v5857_v2  ;;  %v6799_v2 = vsel %vm954_vm3, %v6794_v3, %v6798_v41  ;;  %v14235_v41 = vld [vmem:[#allocation2 + $0x70] sm:$0xff]  }
 0x27a   : > { %v14206_v18 = vpop.permute.xlu1 %5128 }
 0x27b   : > { %15955 = vst [vmem:[#allocation16_spill] sm:$0xff] %v14206_v18 }
 0x27d   : > { %10798 = vmatmul.mubr.msk.bf16.gmra.mrb[188].mxu0 %vm4865_vm11, %v11678_v48  ;;  %v7175_v48 = vrot.slane %v14175_v40, 1 }
 0x27e   : > { %10801 = vmatprep.mubr.msk.bf16.mxu0 %vm4865_vm11, %v11679_v34  ;;  %v6807_v34 = vsel %vm954_vm3, %v6802_v24, %v6806_v37 }
 0x27f   : > { %10772 = vmatmul.mubr.msk.bf16.gmra.mrb[132].mxu1 %vm4865_vm11, %v5859_v55  ;;  %v6816_v55 = vshrl.u32 %v11692_v16, 16  ;;  %v7176_v38 = vsel %vm1337_vm2, %v7173_v60, %v7175_v48  ;;  %v7183_v16 = vrot.slane %v14218_v45, 1 }
 0x280   : > { %10775 = vmatprep.mubr.msk.bf16.mxu1 %vm4865_vm11, %v5861_v10  ;;  %v6820_v10 = vshll.u32 %v14162_v13, 16  ;;  %v6846_v13 = vrot.slane %v6844_v59, 1 }
 0x282   : > { %v6822_v31 = vrot.slane %v6820_v10, 1  ;;  %v6850_v12 = vor.u32 %v6848_v20, %v6846_v13  ;;  %v7861_v20 = vld [vmem:[#allocation2 + $0x10] sm:$0xf] }
 0x284   : > { %v6826_v5 = vor.u32 %v6824_v58, %v6822_v31  ;;  %v11704_v58 = vld [vmem:[#allocation2 + $0x88] ss:$0 sps:$4 sm:$0x11]  }
 0x285   : > { %10802 = vmatmul.mubr.msk.bf16.gmra.mrb[192].mxu0 %vm4865_vm11, %v11680_v42  ;;  %v7174_v42 = vsel %vm1337_vm2, %v7171_v15, %v7173_v60  ;;  %v6840_v15 = vshrl.u32 %v14175_v40, 16 }
 0x286   : > { %10805 = vmatprep.mubr.msk.bf16.mxu0 %vm4865_vm11, %v11681_v27  ;;  %v6808_v27 = vshrl.u32 %v14146_v33, 16 }
 0x287   : > { %10776 = vmatmul.mubr.msk.bf16.gmra.mrb[136].mxu1 %vm4865_vm11, %v5863_v30  ;;  %v6818_v30 = vor.u32 %v6816_v55, %v6814_v57  ;;  %v11702_v55 = vld [vmem:[#allocation2 + $0x78] sm:$0xff]  }
 0x288   : > { %10779 = vmatprep.mubr.msk.bf16.mxu1 %vm4865_vm11, %v5865_v51  ;;  %v14202_v51 = vpop.permute.xlu0 %5113  ;;  %v6810_v63 = vor.u32 %v6808_v27, %v6806_v37  ;;  %v14260_v27 = vld [vmem:[#allocation2 + $0x80] sm:$0xff]  }
 0x289   : > { %15954 = vst [vmem:[#allocation22_spill] sm:$0xff] %v14202_v51  ;;  %v6823_v62 = vsel %vm954_vm3, %v6818_v30, %v6822_v31 }
 0x28a   : > { %v6815_v50 = vsel %vm954_vm3, %v6810_v63, %v6814_v57 }
 0x28c   : > { %v14213_v33 = vpop.permute.xlu0 %5123 }
 0x28d   : > { %10806 = vmatmul.mubr.msk.bf16.gmra.mrb[196].mxu0 %vm4865_vm11, %v11682_v29  ;;  %v7177_v29 = vrot.slane %v11696_v53, 1  ;;  %15956 = vst [vmem:[#allocation52_spill] sm:$0xff] %v14213_v33 }
 0x28e   : > { %10809 = vmatprep.mubr.msk.bf16.mxu0 %vm4865_vm11, %v11683_v54  ;;  %v7179_v54 = vrot.slane %v14199_v32, 1 }
 0x28f   : > { %10780 = vmatmul.mubr.msk.bf16.gmra.mrb[140].mxu1 %vm4865_vm11, %v5867_v46  ;;  %v6836_v46 = vshll.u32 %v14175_v40, 16  ;;  %v7178_v26 = vsel %vm1337_vm2, %v7175_v48, %v7177_v29  ;;  %v7187_v40 = vrot.slane %v14235_v41, 1 }
 0x290   : > { %10853 = vmatprep.mubr.msk.bf16.mxu1 %vm4865_vm11, %v7164_v14  ;;  %v11698_v14 = vld [vmem:[#allocation2 + $0x58] sm:$0xff]   ;;  %v14227_v61 = vpop.permute.xlu0 %5133 }
 0x291   : > { %v6838_v49 = vrot.slane %v6836_v46, 1  ;;  %v7181_v43 = vrot.slane %v11698_v14, 1  ;;  %15958 = vst [vmem:[#allocation19_spill] sm:$0xff] %v14227_v61  ;;  %v6864_v48 = vshrl.u32 %v11698_v14, 16  ;;  %v6880_v46 = vshrl.u32 %v11700_v7, 16 }
 0x293   : > { %v7182_v8 = vsel %vm1337_vm2, %v7179_v54, %v7181_v43  ;;  %v6842_v9 = vor.u32 %v6840_v15, %v6838_v49  ;;  %v6896_v15 = vshrl.u32 %v11702_v55, 16 }
 0x294   : > { %v14240_v24 = vpop.permute.xlu0 %5143 }
 0x295   : > { %10810 = vmatmul.mubr.msk.bf16.gmra.mrb[200].mxu0 %vm4865_vm11, %v11684_v28  ;;  %v7180_v28 = vsel %vm1337_vm2, %v7177_v29, %v7179_v54  ;;  %15960 = vst [vmem:[#allocation58_spill] sm:$0xff] %v14240_v24  ;;  %v6847_v4 = vsel %vm954_vm3, %v6842_v9, %v6846_v13 }
 0x296   : > { %10813 = vmatprep.mubr.msk.bf16.mxu0 %vm4865_vm11, %v11685_v35  ;;  %v6834_v35 = vor.u32 %v6832_v39, %v6830_v6  ;;  %v6878_v39 = vrot.slane %v6876_v19, 1 }
 0x297   : > { %10854 = vmatmul.mubr.msk.bf16.vlgmr.msra.gmra.mrb[144].mxu1 %vm4865_vm11, %v7166_v44  ;;  %v6831_v44 = vsel %vm954_vm3, %v6826_v5, %v6830_v6 }
 0x298   : > { %10857 = vmatprep.mubr.msk.bf16.mxu1 %vm4865_vm11, %v7168_v21  ;;  %10886 = vmatpush3.bf16.msra.mxu1 %v7634_v17  ;;  %v14221_v17 = vpop.permute.xlu1 %5138  ;;  %v6839_v21 = vsel %vm954_vm3, %v6834_v35, %v6838_v49  ;;  %v14265_v63 = vpop.permute.xlu0 %5153  ;;  %v6872_v35 = vshrl.u32 %v14218_v45, 16  ;;  %v6882_v5 = vor.u32 %v6880_v46, %v6878_v39  ;;  %v6892_v49 = vshll.u32 %v11702_v55, 16  ;;  %v14322_v46 = vld [vmem:[#allocation2 + $0x20] sm:$0xff]  }
 0x299   : > { %11489 = vmatprep.subr.msk.bf16.mxu1 %vm4914_vm4, %v14158_v0  ;;  %15957 = vst [vmem:[#allocation54_spill] sm:$0xff] %v14221_v17  ;;  %15962 = vst [vmem:[#allocation39_spill] sm:$0xff] %v14265_v63 }
 0x29c   : > { %v14237_v52 = vpop.permute.xlu1 %5148 }
 0x29d   : > { %10814 = vmatmul.mubr.msk.bf16.gmra.mrb[204].mxu0 %vm4865_vm11, %v11689_v25  ;;  %v6852_v25 = vshll.u32 %v14199_v32, 16  ;;  %15959 = vst [vmem:[#allocation24_spill] sm:$0xff] %v14237_v52 }
 0x29e   : > { %10819 = vmatprep.mubr.msk.bf16.mxu0 %vm4865_vm11, %v6791_v1  ;;  %v7184_v1 = vsel %vm1337_vm2, %v7181_v43, %v7183_v16 }
 0x29f   : > { %10858 = vmatmul.mubr.msk.bf16.gmra.mrb[148].mxu1 %vm4865_vm11, %v7170_v47  ;;  %v6860_v47 = vshll.u32 %v11698_v14, 16  ;;  %v6854_v22 = vrot.slane %v6852_v25, 1  ;;  %v14285_v25 = vld [vmem:[#allocation2 + $0x14] sm:$0xf] }
 0x2a0   : > { %10861 = vmatprep.mubr.msk.bf16.mxu1 %vm4865_vm11, %v7172_v36  ;;  %v7185_v36 = vrot.slane %v11700_v7, 1  ;;  %v9929_v9 = vcombine.low %v7861_v20, %v14285_v25 }
 0x2a1   : > { %v6855_v3 = vsel %vm954_vm3, %v6850_v12, %v6854_v22 }
 0x2a2   : > { %v7186_v57 = vsel %vm1337_vm2, %v7183_v16, %v7185_v36  ;;  %v7188_v53 = vsel %vm1337_vm2, %v7185_v36, %v7187_v40 }
 0x2a5   : > { %10820 = vmatmul.mubr.msk.bf16.vlgmr.msra.gmra.mrb[144].mxu0 %vm4865_vm11, %v6799_v2  ;;  %v14251_v2 = vpop.permute.xlu1 %5158 }
 0x2a6   : > { %10920 = vmatpush3.bf16.msra.mxu0 %v8160_v11  ;;  %10823 = vmatprep.mubr.msk.bf16.mxu0 %vm4865_vm11, %v6807_v34  ;;  %v6862_v11 = vrot.slane %v6860_v47, 1  ;;  %15961 = vst [vmem:[#allocation27_spill] sm:$0xff] %v14251_v2  ;;  %v6868_v34 = vshll.u32 %v14218_v45, 16  ;;  %v11705_v47 = vld [vmem:[#allocation2 + $0x10] sm:$0xff]  }
 0x2a7   : > { %11490 = vmatprep.subr.msk.bf16.mxu0 %vm415_vm0, %v14185_v23  ;;  %10862 = vmatmul.mubr.msk.bf16.gmra.mrb[152].mxu1 %vm4865_vm11, %v7174_v42  ;;  %v6856_v42 = vshrl.u32 %v14199_v32, 16  ;;  %v7191_v32 = vrot.slane %v14260_v27, 1 }
 0x2a8   : > { %10865 = vmatprep.mubr.msk.bf16.mxu1 %vm4865_vm11, %v7176_v38  ;;  %v6866_v30 = vor.u32 %v6864_v48, %v6862_v11  ;;  %v6870_v29 = vrot.slane %v6868_v34, 1 }
 0x2a9   : > { %v6858_v31 = vor.u32 %v6856_v42, %v6854_v22  ;;  %v6888_v22 = vshrl.u32 %v14235_v41, 16 }
 0x2aa   : > { %v6871_v6 = vsel %vm954_vm3, %v6866_v30, %v6870_v29  ;;  %v6874_v43 = vor.u32 %v6872_v35, %v6870_v29  ;;  %v6908_v29 = vshll.u32 %v11704_v58, 16 }
 0x2ab   : > { %v6863_v54 = vsel %vm954_vm3, %v6858_v31, %v6862_v11  ;;  %v6904_v31 = vshrl.u32 %v14260_v27, 16 }
 0x2ac   : > { %v6879_v13 = vsel %vm954_vm3, %v6874_v43, %v6878_v39  ;;  %v11709_v39 = vld [vmem:[#allocation2 + $0x20] sm:$0xff]  }
 0x2ad   : > { %10824 = vmatmul.mubr.msk.bf16.gmra.mrb[148].mxu0 %vm4865_vm11, %v6815_v50  ;;  %v7189_v50 = vrot.slane %v11702_v55, 1  ;;  %v7982_v55 = vshll.u32 %v9929_v9, 16 }
 0x2ae   : > { %10827 = vmatprep.mubr.msk.bf16.mxu0 %vm4865_vm11, %v6823_v62  ;;  %v14269_v62 = vpop.permute.xlu1 %5168 }
 0x2af   : > { %10866 = vmatmul.mubr.msk.bf16.gmra.mrb[156].mxu1 %vm4865_vm11, %v7178_v26  ;;  %15963 = vst [vmem:[#allocation61_spill] sm:$0xff] %v14269_v62  ;;  %v6884_v26 = vshll.u32 %v14235_v41, 16  ;;  %v7190_v14 = vsel %vm1337_vm2, %v7187_v40, %v7189_v50  ;;  %v7192_v59 = vsel %vm1337_vm2, %v7189_v50, %v7191_v32  ;;  %v11706_v50 = vld [vmem:[#allocation2 + $0x18] sm:$0xff]  }
 0x2b0   : > { %10869 = vmatprep.mubr.msk.bf16.mxu1 %vm4865_vm11, %v7180_v28  ;;  %v14276_v28 = vpop.permute.xlu0 %5163 }
 0x2b1   : > { %15964 = vst [vmem:[#allocation65_spill] sm:$0xff] %v14276_v28  ;;  %v6886_v16 = vrot.slane %v6884_v26, 1 }
 0x2b3   : > { %v6887_v45 = vsel %vm954_vm3, %v6882_v5, %v6886_v16  ;;  %v6890_v48 = vor.u32 %v6888_v22, %v6886_v16 }
 0x2b4   : > { %v14289_v7 = vpop.permute.xlu0 %5173 }
 0x2b5   : > { %10828 = vmatmul.mubr.msk.bf16.gmra.mrb[152].mxu0 %vm4865_vm11, %v6831_v44  ;;  %v14282_v44 = vpop.permute.xlu1 %5178  ;;  %15966 = vst [vmem:[#allocation37_spill] sm:$0xff] %v14289_v7 }
 0x2b6   : > { %10831 = vmatprep.mubr.msk.bf16.mxu0 %vm4865_vm11, %v6839_v21  ;;  %15965 = vst [vmem:[#allocation45_spill] sm:$0xff] %v14282_v44  ;;  %v7193_v21 = vrot.slane %v11704_v58, 1  ;;  %v11739_v44 = vld [vmem:[%s11867_s14 + $0x8] sm:$0xff]  }
 0x2b7   : > { %10870 = vmatmul.mubr.msk.bf16.gmra.mrb[160].mxu1 %vm4865_vm11, %v7182_v8  ;;  %v6894_v8 = vrot.slane %v6892_v49, 1  ;;  %v7995_v49 = vshll.u32 %v14322_v46, 16 }
 0x2b8   : > { %10873 = vmatprep.mubr.msk.bf16.mxu1 %vm4865_vm11, %v7184_v1  ;;  %v6900_v1 = vshll.u32 %v14260_v27, 16  ;;  %v7194_v12 = vsel %vm1337_vm2, %v7191_v32, %v7193_v21  ;;  %v14310_v41 = vpop.permute.xlu0 %5183  ;;  %v14326_v27 = vld [vmem:[#allocation2 + $0x28] sm:$0xff]  }
 0x2b9   : > { %v6898_v40 = vor.u32 %v6896_v15, %v6894_v8  ;;  %15968 = vst [vmem:[#allocation59_spill] sm:$0xff] %v14310_v41 }
 0x2bb   : > { %v14246_v37 = vpop.f32.mrb[80].mxu1 }
 0x2bc   : > { %v14249_v60 = vpop.f32.mrb[81].mxu1  ;;  %v14328_v58 = vpop.permute.xlu0 %5193 }
 0x2bd   : > { %10832 = vmatmul.mubr.msk.bf16.gmra.mrb[156].mxu0 %vm4865_vm11, %v6847_v4  ;;  %v14255_v10 = vpop.f32.mrb[82].mxu1  ;;  %v14299_v4 = vpop.permute.xlu1 %5188  ;;  %15970 = vst [vmem:[#allocation62_spill] sm:$0xff] %v14328_v58 }
 0x2be   : > { %10835 = vmatprep.mubr.msk.bf16.mxu0 %vm4865_vm11, %v6855_v3  ;;  %v14262_v38 = vpop.f32.mrb[83].mxu1  ;;  %15967 = vst [vmem:[#allocation29_spill] sm:$0xff] %v14299_v4  ;;  %v14302_v3 = vld [vmem:[#allocation2 + $0x18] sm:$0xff]   ;;  %v14501_v4 = vld [vmem:[#allocation2 + $0x90] ss:$0 sps:$4 sm:$0x11]  }
 0x2bf   : > { %10874 = vmatmul.mubr.msk.bf16.gmra.mrb[164].mxu1 %vm4865_vm11, %v7186_v57  ;;  %v6902_v57 = vrot.slane %v6900_v1, 1  ;;  %v7987_v19 = vshll.u32 %v14302_v3, 16  ;;  %v7991_v15 = vshrl.u32 %v14302_v3, 16  ;;  %v11711_v1 = vld [vmem:[#allocation2 + $0x28] sm:$0xff]   ;;  %16001 = vst [vmem:[#allocation28_spill] sm:$0xff] %v14501_v4 }
 0x2c0   : > { %10877 = vmatprep.mubr.msk.bf16.mxu1 %vm4865_vm11, %v7188_v53  ;;  %v6895_v53 = vsel %vm954_vm3, %v6890_v48, %v6894_v8  ;;  %v14349_v22 = vpop.permute.xlu0 %5203  ;;  %v7999_v48 = vshrl.u32 %v14322_v46, 16 }
 0x2c1   : > { %v6903_v30 = vsel %vm954_vm3, %v6898_v40, %v6902_v57  ;;  %v14320_v32 = vpop.permute.xlu1 %5198  ;;  %v6906_v26 = vor.u32 %v6904_v31, %v6902_v57  ;;  %v7989_v35 = vrot.slane %v7987_v19, 1  ;;  %15972 = vst [vmem:[#allocation38_spill] sm:$0xff] %v14349_v22 }
 0x2c2   : > { %15969 = vst [vmem:[#allocation51_spill] sm:$0xff] %v14320_v32 }
 0x2c3   : > { %v7993_v40 = vor.u32 %v7991_v15, %v7989_v35 }
 0x2c5   : > { %10836 = vmatmul.mubr.msk.bf16.gmra.mrb[160].mxu0 %vm4865_vm11, %v6863_v54  ;;  %v8443_v54 = vsel %vm4914_vm4, %v14158_v0, 0 }
 0x2c6   : > { %10839 = vmatprep.mubr.msk.bf16.mxu0 %vm4865_vm11, %v6871_v6  ;;  %v7984_v6 = vrot.slane %v7982_v55, 1  ;;  %v14354_v55 = vld [vmem:[#allocation2 + $0x38] sm:$0xff]  }
 0x2c7   : > { %10878 = vmatmul.mubr.msk.bf16.gmra.mrb[168].mxu1 %vm4865_vm11, %v7190_v14  ;;  %v7980_v14 = vshrl.u32 %v9929_v9, 16  ;;  %v14347_v9 = vld [vmem:[#allocation2 + $0x30] sm:$0xff]  }
 0x2c8   : > { %10881 = vmatprep.mubr.msk.bf16.mxu1 %vm4865_vm11, %v7192_v59  ;;  %v6910_v59 = vrot.slane %v6908_v29, 1  ;;  %v8011_v31 = vshll.u32 %v14347_v9, 16 }
 0x2c9   : > { %v7985_v5 = vor.u32 %v7984_v6, %v7980_v14  ;;  %v14365_v6 = vpop.permute.xlu0 %5213 }
 0x2ca   : > { %v6911_v16 = vsel %vm954_vm3, %v6906_v26, %v6910_v59  ;;  %15974 = vst [vmem:[#allocation8_spill] sm:$0xff] %v14365_v6  ;;  %v11715_v26 = vld [vmem:[#allocation2 + $0x38] sm:$0xff]   ;;  %v8013_v14 = vrot.slane %v8011_v31, 1  ;;  %v14371_v59 = vld [vmem:[#allocation2 + $0x40] sm:$0xff]   ;;  %v8023_v31 = vshrl.u32 %v14354_v55, 16 }
 0x2cb   : > { %v7990_v20 = vsel %vm954_vm3, %v7985_v5, %v7989_v35  ;;  %v11717_v35 = vld [vmem:[#allocation2 + $0x40] sm:$0xff]  }
 0x2cd   : > { %10840 = vmatmul.mubr.msk.bf16.gmra.mrb[164].mxu0 %vm4865_vm11, %v6879_v13  ;;  %v14338_v13 = vpop.permute.xlu1 %5208 }
 0x2ce   : > { %10843 = vmatprep.mubr.msk.bf16.mxu0 %vm4865_vm11, %v6887_v45  ;;  %v14297_v36 = vpop.f32.mrb[84].mxu1  ;;  %15971 = vst [vmem:[#allocation63_spill] sm:$0xff] %v14338_v13  ;;  %v8003_v45 = vshll.u32 %v14326_v27, 16 }
 0x2cf   : > { %10882 = vmatmul.mubr.msk.bf16.gmra.mrb[172].mxu1 %vm4865_vm11, %v7194_v12  ;;  %v14304_v11 = vpop.f32.mrb[85].mxu1  ;;  %v7997_v12 = vrot.slane %v7995_v49, 1 }
 0x2d0   : > { %10887 = vmatprep.mubr.msk.bf16.mxu1 %vm4865_vm11, %v11705_v47  ;;  %v14306_v34 = vpop.f32.mrb[86].mxu1  ;;  %v11713_v47 = vld [vmem:[#allocation2 + $0x30] sm:$0xff]   ;;  %v8005_v57 = vrot.slane %v8003_v45, 1  ;;  %v8015_v45 = vshrl.u32 %v14347_v9, 16 }
 0x2d1   : > { %v14308_v42 = vpop.f32.mrb[87].mxu1  ;;  %v8001_v19 = vor.u32 %v7999_v48, %v7997_v12  ;;  %v7998_v29 = vsel %vm954_vm3, %v7993_v40, %v7997_v12  ;;  %v8027_v40 = vshll.u32 %v14371_v59, 16  ;;  %v14387_v48 = vpop.permute.xlu0 %5223 }
 0x2d2   : > { %15980 = vst [vmem:[#allocation9_spill] sm:$0xff] %v14387_v48 }
 0x2d5   : > { %10844 = vmatmul.mubr.msk.bf16.gmra.mrb[168].mxu0 %vm4865_vm11, %v6895_v53  ;;  %v14356_v53 = vpop.permute.xlu1 %5218 }
 0x2d6   : > { %10847 = vmatprep.mubr.msk.bf16.mxu0 %vm4865_vm11, %v6903_v30  ;;  %15973 = vst [vmem:[#allocation66_spill] sm:$0xff] %v14356_v53  ;;  %v9042_v30 = vsel %vm415_vm0, %v14185_v23, 0 }
 0x2d7   : > { %10888 = vmatmul.mubr.msk.bf16.vlgmr.msra.gmra.mrb[176].mxu1 %vm4865_vm11, %v11706_v50  ;;  %v8006_v50 = vsel %vm954_vm3, %v8001_v19, %v8005_v57 }
 0x2d8   : > { %10891 = vmatprep.mubr.msk.bf16.mxu1 %vm4865_vm11, %v11709_v39  ;;  %10954 = vmatpush3.bf16.msra.mxu1 %v8443_v54  ;;  %v14330_v0 = vpop.f32.mrb[88].mxu1  ;;  %v8019_v54 = vshll.u32 %v14354_v55, 16  ;;  %v8007_v39 = vshrl.u32 %v14326_v27, 16 }
 0x2d9   : > { %v14333_v43 = vpop.f32.mrb[89].mxu1 }
 0x2da   : > { %v14336_v21 = vpop.f32.mrb[90].mxu1  ;;  %v8009_v49 = vor.u32 %v8007_v39, %v8005_v57  ;;  %v8021_v15 = vrot.slane %v8019_v54, 1  ;;  %v8029_v54 = vrot.slane %v8027_v40, 1  ;;  %v11721_v39 = vld [vmem:[#allocation2 + $0x50] sm:$0xff]  }
 0x2db   : > { %v14343_v8 = vpop.f32.mrb[91].mxu1 }
 0x2dc   : > { %v8014_v57 = vsel %vm954_vm3, %v8009_v49, %v8013_v14 }
 0x2dd   : > { %10848 = vmatmul.mubr.msk.bf16.gmra.mrb[172].mxu0 %vm4865_vm11, %v6911_v16 }
 0x2de   : > { %10921 = vmatprep.mubr.msk.bf16.mxu0 %vm4865_vm11, %v7990_v20  ;;  %v14378_v20 = vpop.permute.xlu1 %5228 }
 0x2df   : > { %10892 = vmatmul.mubr.msk.bf16.gmra.mrb[180].mxu1 %vm4865_vm11, %v11711_v1  ;;  %15978 = vst [vmem:[#allocation10_spill] sm:$0xff] %v14378_v20  ;;  %v14382_v1 = vld [vmem:[#allocation2 + $0x48] sm:$0xff]  }
 0x2e0   : > { %10895 = vmatprep.mubr.msk.bf16.mxu1 %vm4865_vm11, %v11713_v47  ;;  %v8017_v47 = vor.u32 %v8015_v45, %v8013_v14  ;;  %v8035_v19 = vshll.u32 %v14382_v1, 16  ;;  %v8031_v14 = vshrl.u32 %v14371_v59, 16  ;;  %v14402_v45 = vld [vmem:[#allocation2 + $0x58] sm:$0xff]  }
 0x2e2   : > { %v8037_v49 = vrot.slane %v8035_v19, 1  ;;  %v8051_v19 = vshll.u32 %v14402_v45, 16 }
 0x2e4   : > { %v8053_v6 = vrot.slane %v8051_v19, 1  ;;  %v8055_v19 = vshrl.u32 %v14402_v45, 16 }
 0x2e5   : > { %10922 = vmatmul.mubr.msk.bf16.vlgmr.msra.gmra.mrb[144].mxu0 %vm4865_vm11, %v7998_v29  ;;  %v14369_v23 = vpop.f32.mrb[92].mxu1  ;;  %v11719_v29 = vld [vmem:[#allocation2 + $0x48] sm:$0xff]  }
 0x2e6   : > { %10988 = vmatpush3.bf16.msra.mxu0 %v9042_v30  ;;  %10925 = vmatprep.mubr.msk.bf16.mxu0 %vm4865_vm11, %v8006_v50  ;;  %15975 = vst [vmem:[#allocation3_spill] sm:$0xff] %v14369_v23  ;;  %v14373_v5 = vpop.f32.mrb[93].mxu1  ;;  %v8022_v30 = vsel %vm954_vm3, %v8017_v47, %v8021_v15  ;;  %v14395_v50 = vpop.permute.xlu1 %5238 }
 0x2e7   : > { %15976 = vst [vmem:[#allocation5_spill] sm:$0xff] %v14373_v5  ;;  %10896 = vmatmul.mubr.msk.bf16.gmra.mrb[184].mxu1 %vm4865_vm11, %v11715_v26  ;;  %v14376_v16 = vpop.f32.mrb[94].mxu1  ;;  %15981 = vst [vmem:[#allocation50_spill] sm:$0xff] %v14395_v50  ;;  %v14397_v26 = vld [vmem:[#allocation2 + $0x50] sm:$0xff]   ;;  %v14404_v47 = vpop.permute.xlu0 %5233  ;;  %v8364_v5 = vrot.slane %v14322_v46, 1 }
 0x2e8   : > { %15977 = vst [vmem:[#allocation4_spill] sm:$0xff] %v14376_v16  ;;  %10899 = vmatprep.mubr.msk.bf16.mxu1 %vm4865_vm11, %v11717_v35  ;;  %v14384_v12 = vpop.f32.mrb[95].mxu1  ;;  %v8025_v35 = vor.u32 %v8023_v31, %v8021_v15  ;;  %15982 = vst [vmem:[#allocation7_spill] sm:$0xff] %v14404_v47  ;;  %v14421_v47 = vld [vmem:[#allocation2 + $0x60] sm:$0xff]   ;;  %v8047_v20 = vshrl.u32 %v14397_v26, 16 }
 0x2e9   : > { %15979 = vst [vmem:[#allocation6_spill] sm:$0xff] %v14384_v12  ;;  %v8059_v32 = vshll.u32 %v14421_v47, 16  ;;  %v11735_v12 = vld [vmem:[#allocation2 + $0x88] sm:$0xff]  }
 0x2ea   : > { %v8030_v40 = vsel %vm954_vm3, %v8025_v35, %v8029_v54  ;;  %v14410_v53 = vpop.permute.xlu1 %5248  ;;  %v11725_v35 = vld [vmem:[#allocation2 + $0x60] sm:$0xff]  }
 0x2eb   : > { %15984 = vst [vmem:[#allocation12_spill] sm:$0xff] %v14410_v53 }
 0x2ed   : > { %10926 = vmatmul.mubr.msk.bf16.gmra.mrb[148].mxu0 %vm4865_vm11, %v8014_v57  ;;  %v8033_v57 = vor.u32 %v8031_v14, %v8029_v54 }
 0x2ee   : > { %10929 = vmatprep.mubr.msk.bf16.mxu0 %vm4865_vm11, %v8022_v30  ;;  %v8043_v30 = vshll.u32 %v14397_v26, 16  ;;  %v14432_v48 = vpop.permute.xlu1 %5258 }
 0x2ef   : > { %10900 = vmatmul.mubr.msk.bf16.gmra.mrb[188].mxu1 %vm4865_vm11, %v11719_v29  ;;  %v8038_v15 = vsel %vm954_vm3, %v8033_v57, %v8037_v49  ;;  %v8039_v29 = vshrl.u32 %v14382_v1, 16  ;;  %15989 = vst [vmem:[#allocation25_spill] sm:$0xff] %v14432_v48  ;;  %v11729_v48 = vld [vmem:[#allocation2 + $0x70] sm:$0xff]  }
 0x2f0   : > { %10903 = vmatprep.mubr.msk.bf16.mxu1 %vm4865_vm11, %v11721_v39  ;;  %v11723_v39 = vld [vmem:[#allocation2 + $0x58] sm:$0xff]   ;;  %v8045_v54 = vrot.slane %v8043_v30, 1 }
 0x2f1   : > { %v8041_v57 = vor.u32 %v8039_v29, %v8037_v49 }
 0x2f2   : > { %v14408_v50 = vpop.f32.mrb[96].mxu1  ;;  %v8049_v30 = vor.u32 %v8047_v20, %v8045_v54  ;;  %v14443_v20 = vld [vmem:[#allocation2 + $0x70] sm:$0xff]  }
 0x2f3   : > { %15983 = vst [vmem:[#allocation11_spill] sm:$0xff] %v14408_v50  ;;  %v14415_v31 = vpop.f32.mrb[97].mxu1  ;;  %v14479_v50 = vld [vmem:[#allocation2 + $0x88] sm:$0xff]  }
 0x2f4   : > { %15985 = vst [vmem:[#allocation17_spill] sm:$0xff] %v14415_v31  ;;  %v14419_v14 = vpop.f32.mrb[98].mxu1  ;;  %v8054_v49 = vsel %vm954_vm3, %v8049_v30, %v8053_v6  ;;  %v14450_v30 = vld [vmem:[#allocation2 + $0x78] sm:$0xff]  }
 0x2f5   : > { %10930 = vmatmul.mubr.msk.bf16.gmra.mrb[152].mxu0 %vm4865_vm11, %v8030_v40  ;;  %15986 = vst [vmem:[#allocation14_spill] sm:$0xff] %v14419_v14  ;;  %v14423_v53 = vpop.f32.mrb[99].mxu1  ;;  %v14425_v40 = vpop.permute.xlu0 %5243  ;;  %v8046_v14 = vsel %vm954_vm3, %v8041_v57, %v8045_v54 }
 0x2f6   : > { %10933 = vmatprep.mubr.msk.bf16.mxu0 %vm4865_vm11, %v8038_v15  ;;  %15987 = vst [vmem:[#allocation13_spill] sm:$0xff] %v14423_v53  ;;  %15988 = vst [vmem:[#allocation21_spill] sm:$0xff] %v14425_v40  ;;  %v14430_v15 = vld [vmem:[#allocation2 + $0x68] sm:$0xff]   ;;  %v8061_v40 = vrot.slane %v8059_v32, 1  ;;  %v8057_v53 = vor.u32 %v8055_v19, %v8053_v6  ;;  %v14446_v54 = vpop.permute.xlu1 %5268  ;;  %v8083_v19 = vshll.u32 %v14450_v30, 16 }
 0x2f7   : > { %10904 = vmatmul.mubr.msk.bf16.gmra.mrb[192].mxu1 %vm4865_vm11, %v11723_v39  ;;  %v8067_v29 = vshll.u32 %v14430_v15, 16  ;;  %15991 = vst [vmem:[#allocation15_spill] sm:$0xff] %v14446_v54 }
 0x2f8   : > { %10907 = vmatprep.mubr.msk.bf16.mxu1 %vm4865_vm11, %v11725_v35  ;;  %v11727_v35 = vld [vmem:[#allocation2 + $0x68] sm:$0xff]   ;;  %v8062_v32 = vsel %vm954_vm3, %v8057_v53, %v8061_v40 }
 0x2f9   : > { %v14439_v39 = vpop.permute.xlu0 %5253  ;;  %v8069_v57 = vrot.slane %v8067_v29, 1  ;;  %v14461_v29 = vld [vmem:[#allocation2 + $0x80] sm:$0xff]  }
 0x2fa   : > { %15990 = vst [vmem:[#allocation23_spill] sm:$0xff] %v14439_v39  ;;  %v8075_v39 = vshll.u32 %v14443_v20, 16  ;;  %v14469_v53 = vpop.permute.xlu1 %6085 }
 0x2fb   : > { %15996 = vst [vmem:[#allocation53_spill] sm:$0xff] %v14469_v53 }
 0x2fd   : > { %10934 = vmatmul.mubr.msk.bf16.gmra.mrb[156].mxu0 %vm4865_vm11, %v8046_v14  ;;  %v8063_v14 = vshrl.u32 %v14421_v47, 16  ;;  %v14453_v13 = vpop.permute.xlu0 %5263 }
 0x2fe   : > { %10937 = vmatprep.mubr.msk.bf16.mxu0 %vm4865_vm11, %v8054_v49  ;;  %15992 = vst [vmem:[#allocation32_spill] sm:$0xff] %v14453_v13  ;;  %v8355_v13 = vld [vmem:[#allocation2 + $0x10] sm:$0xe] }
 0x2ff   : > { %10908 = vmatmul.mubr.msk.bf16.gmra.mrb[196].mxu1 %vm4865_vm11, %v11727_v35  ;;  %v8065_v49 = vor.u32 %v8063_v14, %v8061_v40  ;;  %v8071_v35 = vshrl.u32 %v14430_v15, 16  ;;  %v11731_v14 = vld [vmem:[#allocation2 + $0x78] sm:$0xff]   ;;  %v8077_v40 = vrot.slane %v8075_v39, 1  ;;  %v9963_v39 = vcombine.low %v8355_v13, %v14285_v25 }
 0x300   : > { %10911 = vmatprep.mubr.msk.bf16.mxu1 %vm4865_vm11, %v11729_v48  ;;  %v8099_v25 = vshll.u32 %v14479_v50, 16 }
 0x301   : > { %v8070_v6 = vsel %vm954_vm3, %v8065_v49, %v8069_v57  ;;  %v14474_v31 = vpop.permute.xlu0 %6081  ;;  %v8361_v13 = vrot.slane %v9963_v39, 1 }
 0x302   : > { %v14456_v58 = vpop.f32.mrb[100].mxu1  ;;  %15998 = vst [vmem:[#allocation55_spill] sm:$0xff] %v14474_v31 }
 0x303   : > { %15993 = vst [vmem:[#allocation42_spill] sm:$0xff] %v14456_v58  ;;  %v14463_v48 = vpop.f32.mrb[101].mxu1  ;;  %v8073_v58 = vor.u32 %v8071_v35, %v8069_v57  ;;  %v8362_v35 = vrot.slane %v14302_v3, 1  ;;  %v11740_v3 = vld [vmem:[%s11867_s14 + $0x10] sm:$0xff]  }
 0x304   : > { %15994 = vst [vmem:[#allocation33_spill] sm:$0xff] %v14463_v48  ;;  %v14467_v54 = vpop.f32.mrb[102].mxu1  ;;  %v8085_v48 = vrot.slane %v8083_v19, 1 }
 0x305   : > { %10938 = vmatmul.mubr.msk.bf16.gmra.mrb[160].mxu0 %vm4865_vm11, %v8062_v32  ;;  %15995 = vst [vmem:[#allocation18_spill] sm:$0xff] %v14467_v54  ;;  %v11733_v32 = vld [vmem:[#allocation2 + $0x80] sm:$0xff]   ;;  %v14471_v49 = vpop.f32.mrb[103].mxu1  ;;  %v8091_v54 = vshll.u32 %v14461_v29, 16  ;;  %v8078_v57 = vsel %vm954_vm3, %v8073_v58, %v8077_v40  ;;  %v8095_v58 = vshrl.u32 %v14461_v29, 16 }
 0x306   : > { %10941 = vmatprep.mubr.msk.bf16.mxu0 %vm4865_vm11, %v8070_v6  ;;  %15997 = vst [vmem:[#allocation57_spill] sm:$0xff] %v14471_v49  ;;  %v8079_v6 = vshrl.u32 %v14443_v20, 16  ;;  %v8087_v49 = vshrl.u32 %v14450_v30, 16 }
 0x307   : > { %10912 = vmatmul.mubr.msk.bf16.gmra.mrb[200].mxu1 %vm4865_vm11, %v11731_v14  ;;  %v14485_v14 = vpop.permute.xlu1 %6089 }
 0x308   : > { %10915 = vmatprep.mubr.msk.bf16.mxu1 %vm4865_vm11, %v11733_v32  ;;  %v8081_v22 = vor.u32 %v8079_v6, %v8077_v40  ;;  %15999 = vst [vmem:[#allocation20_spill] sm:$0xff] %v14485_v14  ;;  %v8093_v32 = vrot.slane %v8091_v54, 1  ;;  %v14492_v6 = vpop.permute.xlu0 %6093  ;;  %v8864_v40 = vshll.u32 %v11739_v44, 16  ;;  %v8089_v16 = vor.u32 %v8087_v49, %v8085_v48 }
 0x30a   : > { %v8086_v19 = vsel %vm954_vm3, %v8081_v22, %v8085_v48  ;;  %v8363_v22 = vsel %vm1337_vm2, %v8361_v13, %v8362_v35  ;;  %v8097_v54 = vor.u32 %v8095_v58, %v8093_v32  ;;  %v8866_v49 = vrot.slane %v8864_v40, 1 }
 0x30b   : > { %v14505_v7 = vpop.permute.xlu1 %6097  ;;  %v8869_v13 = vshll.u32 %v11740_v3, 16  ;;  %v8094_v58 = vsel %vm954_vm3, %v8089_v16, %v8093_v32  ;;  %v8365_v40 = vsel %vm1337_vm2, %v8362_v35, %v8364_v5 }
 0x30c   : > { %16003 = vst [vmem:[#allocation40_spill] sm:$0xff] %v14505_v7  ;;  %v14515_v23 = vpop.permute.xlu0 %6101 }
 0x30d   : > { %10942 = vmatmul.mubr.msk.bf16.gmra.mrb[164].mxu0 %vm4865_vm11, %v8078_v57  ;;  %16006 = vst [vmem:[#allocation46_spill] sm:$0xff] %v14515_v23  ;;  %v8871_v32 = vrot.slane %v8869_v13, 1 }
 0x30e   : > { %10945 = vmatprep.mubr.msk.bf16.mxu0 %vm4865_vm11, %v8086_v19  ;;  %v8101_v19 = vrot.slane %v8099_v25, 1  ;;  %v8366_v25 = vrot.slane %v14326_v27, 1 }
 0x30f   : > { %10916 = vmatmul.mubr.msk.bf16.gmra.mrb[204].mxu1 %vm4865_vm11, %v11735_v12  ;;  %v8862_v12 = vshrl.u32 %v11739_v44, 16  ;;  %v8103_v44 = vshrl.u32 %v14479_v50, 16 }
 0x310   : > { %10955 = vmatprep.mubr.msk.bf16.mxu1 %vm4865_vm11, %v8363_v22  ;;  %v14499_v57 = vpop.f32.mrb[104].mxu1  ;;  %v8107_v22 = vshll.u32 %v14501_v4, 16  ;;  %v8102_v46 = vsel %vm954_vm3, %v8097_v54, %v8101_v19  ;;  %v14529_v4 = vpop.permute.xlu0 %6109 }
 0x311   : > { %16000 = vst [vmem:[#allocation60_spill] sm:$0xff] %v14499_v57  ;;  %v14503_v39 = vpop.f32.mrb[105].mxu1  ;;  %v8867_v16 = vor.u32 %v8866_v49, %v8862_v12  ;;  %v8105_v41 = vor.u32 %v8103_v44, %v8101_v19  ;;  %16008 = vst [vmem:[#allocation44_spill] sm:$0xff] %v14529_v4  ;;  %v8368_v12 = vrot.slane %v14347_v9, 1  ;;  %v11743_v44 = vld [vmem:[%s11867_s14 + $0x28] sm:$0xff]  }
 0x312   : > { %16002 = vst [vmem:[#allocation64_spill] sm:$0xff] %v14503_v39  ;;  %v14508_v48 = vpop.f32.mrb[106].mxu1  ;;  %v11741_v39 = vld [vmem:[%s11867_s14 + $0x18] sm:$0xff]   ;;  %v8109_v27 = vrot.slane %v8107_v22, 1  ;;  %v8370_v22 = vrot.slane %v14354_v55, 1 }
 0x313   : > { %16004 = vst [vmem:[#allocation35_spill] sm:$0xff] %v14508_v48  ;;  %v14513_v57 = vpop.f32.mrb[107].mxu1  ;;  %v11742_v48 = vld [vmem:[%s11867_s14 + $0x20] sm:$0xff]   ;;  %v8877_v54 = vshll.u32 %v11741_v39, 16  ;;  %v8872_v35 = vsel %vm954_vm3, %v8867_v16, %v8871_v32  ;;  %v8881_v19 = vshrl.u32 %v11741_v39, 16  ;;  %v11744_v39 = vld [vmem:[%s11867_s14 + $0x30] sm:$0xff]  }
 0x314   : > { %16005 = vst [vmem:[#allocation56_spill] sm:$0xff] %v14513_v57  ;;  %v8367_v57 = vsel %vm1337_vm2, %v8364_v5, %v8366_v25  ;;  %v8885_v49 = vshll.u32 %v11742_v48, 16  ;;  %v8110_v13 = vsel %vm954_vm3, %v8105_v41, %v8109_v27  ;;  %v8371_v41 = vsel %vm1337_vm2, %v8368_v12, %v8370_v22  ;;  %v14544_v55 = vpop.permute.xlu0 %6117 }
 0x315   : > { %10946 = vmatmul.mubr.msk.bf16.gmra.mrb[168].mxu0 %vm4865_vm11, %v8094_v58  ;;  %v14526_v58 = vpop.permute.xlu1 %6105  ;;  %v8879_v5 = vrot.slane %v8877_v54, 1  ;;  %16010 = vst [vmem:[#allocation30_spill] sm:$0xff] %v14544_v55  ;;  %v8893_v27 = vshll.u32 %v11743_v44, 16  ;;  %v8889_v54 = vshrl.u32 %v11742_v48, 16 }
 0x316   : > { %10949 = vmatprep.mubr.msk.bf16.mxu0 %vm4865_vm11, %v8102_v46  ;;  %16007 = vst [vmem:[#allocation48_spill] sm:$0xff] %v14526_v58  ;;  %v8873_v46 = vshrl.u32 %v11740_v3, 16  ;;  %v8887_v9 = vrot.slane %v8885_v49, 1  ;;  %v8901_v49 = vshll.u32 %v11744_v39, 16 }
 0x317   : > { %10956 = vmatmul.mubr.msk.bf16.vlgmr.msra.gmra.mrb[208].mxu1 %vm4865_vm11, %v8365_v40  ;;  %v8369_v40 = vsel %vm1337_vm2, %v8366_v25, %v8368_v12  ;;  %v8883_v16 = vor.u32 %v8881_v19, %v8879_v5  ;;  %v8897_v19 = vshrl.u32 %v11743_v44, 16  ;;  %v8374_v12 = vrot.slane %v14382_v1, 1 }
 0x318   : > { %10959 = vmatprep.mubr.msk.bf16.mxu1 %vm4865_vm11, %v8367_v57  ;;  %v8875_v57 = vor.u32 %v8873_v46, %v8871_v32  ;;  %v8895_v48 = vrot.slane %v8893_v27, 1  ;;  %v14564_v44 = vpop.permute.xlu0 %6125  ;;  %v8376_v27 = vrot.slane %v14397_v26, 1 }
 0x319   : > { %v14538_v3 = vpop.permute.xlu1 %6113  ;;  %v8888_v25 = vsel %vm954_vm3, %v8883_v16, %v8887_v9  ;;  %16016 = vst [vmem:[#allocation49_spill] sm:$0xff] %v14564_v44 }
 0x31a   : > { %16009 = vst [vmem:[#allocation41_spill] sm:$0xff] %v14538_v3  ;;  %v8880_v32 = vsel %vm954_vm3, %v8875_v57, %v8879_v5 }
 0x31d   : > { %10950 = vmatmul.mubr.msk.bf16.gmra.mrb[172].mxu0 %vm4865_vm11, %v8110_v13  ;;  %v11745_v13 = vld [vmem:[%s11867_s14 + $0x38] sm:$0xff]   ;;  %v14556_v55 = vpop.permute.xlu1 %6121 }
 0x31e   : > { %10989 = vmatprep.mubr.msk.bf16.mxu0 %vm366_vm1, %v8872_v35  ;;  %v8372_v35 = vrot.slane %v14371_v59, 1  ;;  %16013 = vst [vmem:[#allocation31_spill] sm:$0xff] %v14556_v55  ;;  %v8891_v59 = vor.u32 %v8889_v54, %v8887_v9  ;;  %v8909_v1 = vshll.u32 %v11745_v13, 16  ;;  %v8378_v54 = vrot.slane %v14402_v45, 1 }
 0x31f   : > { %10960 = vmatmul.mubr.msk.bf16.gmra.mrb[212].mxu1 %vm4865_vm11, %v8369_v40 }
 0x320   : > { %10963 = vmatprep.mubr.msk.bf16.mxu1 %vm4865_vm11, %v8371_v41  ;;  %v8373_v16 = vsel %vm1337_vm2, %v8370_v22, %v8372_v35  ;;  %v8899_v41 = vor.u32 %v8897_v19, %v8895_v48  ;;  %v8896_v9 = vsel %vm954_vm3, %v8891_v59, %v8895_v48  ;;  %v8380_v22 = vrot.slane %v14421_v47, 1  ;;  %v14584_v47 = vpop.permute.xlu0 %6133 }
 0x321   : > { %v14548_v46 = vpop.f32.mrb[108].mxu1  ;;  %v14576_v19 = vpop.permute.xlu1 %6129  ;;  %16018 = vst [vmem:[#allocation68_spill] sm:$0xff] %v14584_v47 }
 0x322   : > { %16011 = vst [vmem:[#allocation36_spill] sm:$0xff] %v14548_v46  ;;  %v14553_v40 = vpop.f32.mrb[109].mxu1  ;;  %v11746_v46 = vld [vmem:[%s11867_s14 + $0x40] sm:$0xff]   ;;  %16017 = vst [vmem:[#allocation67_spill] sm:$0xff] %v14576_v19  ;;  %v5271_v19 = vmul.f32 %v14202_v51, %v14249_v60 }
 0x323   : > { %16012 = vst [vmem:[#allocation43_spill] sm:$0xff] %v14553_v40  ;;  %v14559_v5 = vpop.f32.mrb[110].mxu1  ;;  %v8903_v40 = vrot.slane %v8901_v49, 1  ;;  %v8921_v60 = vshrl.u32 %v11746_v46, 16 }
 0x324   : > { %16014 = vst [vmem:[#allocation47_spill] sm:$0xff] %v14559_v5  ;;  %v14561_v57 = vpop.f32.mrb[111].mxu1  ;;  %v8905_v5 = vshrl.u32 %v11744_v39, 16  ;;  %v8917_v39 = vshll.u32 %v11746_v46, 16 }
 0x325   : > { %10990 = vmatmul.mubr.msk.bf16.vlgmr.msra.gmra.mrb[208].mxu0 %vm366_vm1, %v8880_v32  ;;  %16015 = vst [vmem:[#allocation34_spill] sm:$0xff] %v14561_v57  ;;  %v8375_v32 = vsel %vm1337_vm2, %v8372_v35, %v8374_v12  ;;  %v11747_v57 = vld [vmem:[%s11867_s14 + $0x48] sm:$0xff]   ;;  %v8911_v35 = vrot.slane %v8909_v1, 1 }
 0x326   : > { %10993 = vmatprep.mubr.msk.bf16.mxu0 %vm366_vm1, %v8888_v25  ;;  %v8913_v25 = vshrl.u32 %v11745_v13, 16  ;;  %v5273_v13 = vmul.f32 %v14246_v37, %v14213_v33  ;;  %v8907_v45 = vor.u32 %v8905_v5, %v8903_v40 }
 0x327   : > { %10964 = vmatmul.mubr.msk.bf16.gmra.mrb[216].mxu1 %vm4865_vm11, %v8373_v16  ;;  %v8904_v16 = vsel %vm954_vm3, %v8899_v41, %v8903_v40  ;;  %v5274_v41 = vmul.f32 %v14255_v10, %v14206_v18  ;;  %v5272_v10 = vmul.f32 %v14190_v56, %v14262_v38 }
 0x328   : > { %10967 = vmatprep.mubr.msk.bf16.mxu1 %vm4865_vm11, %v8375_v32  ;;  %v8377_v32 = vsel %vm1337_vm2, %v8374_v12, %v8376_v27  ;;  %v8915_v37 = vor.u32 %v8913_v25, %v8911_v35  ;;  %v8919_v25 = vrot.slane %v8917_v39, 1  ;;  %v8912_v39 = vsel %vm954_vm3, %v8907_v45, %v8911_v35 }
 0x329   : > { %v10753_v49 = vpop.f32.mrb[112].mxu1 }
 0x32a   : > { %v6210_v48 = vmul.f32 %v10753_v49, %v14485_v14  ;;  %v5953_v59 = vpop.f32.mrb[113].mxu1  ;;  %v14593_v49 = vld [vmem:[%s11867_s14 + $0x50] sm:$0xff]   ;;  %v8925_v14 = vshll.u32 %v11747_v57, 16 }
 0x32b   : > { %v6208_v1 = vmul.f32 %v14474_v31, %v5953_v59  ;;  %v10754_v26 = vpop.f32.mrb[114].mxu1  ;;  %v8933_v38 = vshll.u32 %v14593_v49, 16 }
 0x32c   : > { %v14595_v40 = vadd.f32 %v6210_v48, %v5273_v13  ;;  %v6211_v12 = vmul.f32 %v10754_v26, %v14492_v6  ;;  %v5956_v5 = vpop.f32.mrb[115].mxu1  ;;  %v8379_v13 = vsel %vm1337_vm2, %v8376_v27, %v8378_v54  ;;  %v8929_v26 = vshrl.u32 %v11747_v57, 16  ;;  %v11749_v48 = vld [vmem:[%s11867_s14 + $0x58] sm:$0xff]   ;;  %v14619_v57 = vpop.permute.xlu0 %6141 }
 0x32d   : > { %10994 = vmatmul.mubr.msk.bf16.gmra.mrb[212].mxu0 %vm366_vm1, %v8896_v9  ;;  %v14601_v9 = vadd.f32 %v6208_v1, %v5271_v19  ;;  %v6209_v59 = vmul.f32 %v14469_v53, %v5956_v5  ;;  %16020 = vst [vmem:[#allocation70_spill] sm:$0xff] %v14619_v57  ;;  %v8923_v5 = vor.u32 %v8921_v60, %v8919_v25  ;;  %v8941_v27 = vshll.u32 %v11749_v48, 16 }
 0x32e   : > { %10997 = vmatprep.mubr.msk.bf16.mxu0 %vm366_vm1, %v8904_v16  ;;  %v14604_v31 = vadd.f32 %v6211_v12, %v5274_v41  ;;  %v14609_v16 = vpop.permute.xlu1 %6137  ;;  %v8927_v41 = vrot.slane %v8925_v14, 1  ;;  %v8920_v12 = vsel %vm954_vm3, %v8915_v37, %v8919_v25  ;;  %v5277_v14 = vmul.f32 %v14297_v36, %v14240_v24 }
 0x32f   : > { %10968 = vmatmul.mubr.msk.bf16.gmra.mrb[220].mxu1 %vm4865_vm11, %v8377_v32  ;;  %16019 = vst [vmem:[#allocation69_spill] sm:$0xff] %v14609_v16  ;;  %v14611_v46 = vadd.f32 %v6209_v59, %v5272_v10  ;;  %v8381_v32 = vsel %vm1337_vm2, %v8378_v54, %v8380_v22  ;;  %v16021_v10 = vrot.slane %v14430_v15, 1  ;;  %v5275_v37 = vmul.f32 %v14227_v61, %v14304_v11 }
 0x330   : > { %10971 = vmatprep.mubr.msk.bf16.mxu1 %vm4865_vm11, %v8379_v13  ;;  %v14626_v13 = vld [vmem:[%s11867_s14 + $0x60] sm:$0xff]   ;;  %v8931_v45 = vor.u32 %v8929_v26, %v8927_v41  ;;  %v8935_v25 = vrot.slane %v8933_v38, 1  ;;  %v5278_v36 = vmul.f32 %v14306_v34, %v14237_v52  ;;  %v8945_v11 = vshrl.u32 %v11749_v48, 16  ;;  %v14652_v34 = vld [vmem:[%s11867_s14 + $0x68] sm:$0xff]  }
 0x331   : > { %v10757_v1 = vpop.f32.mrb[116].mxu1  ;;  %v8383_v59 = vsel %vm1337_vm2, %v8380_v22, %v16021_v10  ;;  %v8937_v10 = vshrl.u32 %v14593_v49, 16  ;;  %v8949_v38 = vshll.u32 %v14626_v13, 16  ;;  %v16023_v48 = vrot.slane %v14443_v20, 1 }
 0x332   : > { %v6214_v54 = vmul.f32 %v10757_v1, %v14526_v58  ;;  %v5969_v35 = vpop.f32.mrb[117].mxu1  ;;  %v14643_v58 = vpop.permute.xlu1 %6145 }
 0x333   : > { %v6212_v22 = vmul.f32 %v14505_v7, %v5969_v35  ;;  %v10758_v60 = vpop.f32.mrb[118].mxu1  ;;  %16022 = vst [vmem:[#allocation71_spill] sm:$0xff] %v14643_v58 }
 0x334   : > { %v14639_v19 = vadd.f32 %v6214_v54, %v5277_v14  ;;  %v6215_v26 = vmul.f32 %v10758_v60, %v14529_v4  ;;  %v5972_v1 = vpop.f32.mrb[119].mxu1  ;;  %v16024_v60 = vrot.slane %v14430_v15, 1 }
 0x335   : > { %10998 = vmatmul.mubr.msk.bf16.gmra.mrb[216].mxu0 %vm366_vm1, %v8912_v39  ;;  %v5276_v39 = vmul.f32 %v14221_v17, %v14308_v42  ;;  %v14647_v35 = vadd.f32 %v6212_v22, %v5275_v37  ;;  %v6213_v49 = vmul.f32 %v14515_v23, %v5972_v1  ;;  %v14662_v37 = vpop.permute.xlu0 %6149 }
 0x336   : > { %11001 = vmatprep.mubr.msk.bf16.mxu0 %vm366_vm1, %v8920_v12  ;;  %v14654_v54 = vadd.f32 %v6215_v26, %v5278_v36  ;;  %v8943_v12 = vrot.slane %v8941_v27, 1  ;;  %v8385_v42 = vsel %vm1337_vm2, %v16024_v60, %v16023_v48  ;;  %16025 = vst [vmem:[#allocation72_spill] sm:$0xff] %v14662_v37  ;;  %v8928_v36 = vsel %vm954_vm3, %v8923_v5, %v8927_v41 }
 0x337   : > { %10972 = vmatmul.mubr.msk.bf16.gmra.mrb[224].mxu1 %vm4865_vm11, %v8381_v32  ;;  %v14666_v4 = vadd.f32 %v6213_v49, %v5276_v39  ;;  %v8936_v32 = vsel %vm954_vm3, %v8931_v45, %v8935_v25  ;;  %v8939_v26 = vor.u32 %v8937_v10, %v8935_v25  ;;  %v8953_v60 = vshrl.u32 %v14626_v13, 16  ;;  %v14685_v25 = vpop.permute.xlu1 %6153 }
 0x338   : > { %v10787_v14 = vpop.f32.mrb[176].mxu0  ;;  %10975 = vmatprep.mubr.msk.bf16.mxu1 %vm4865_vm11, %v8383_v59  ;;  %v8947_v48 = vor.u32 %v8945_v11, %v8943_v12  ;;  %v8951_v41 = vrot.slane %v8949_v38, 1  ;;  %v8957_v5 = vshll.u32 %v14652_v34, 16  ;;  %v5281_v59 = vmul.f32 %v14330_v0, %v14276_v28  ;;  %16026 = vst [vmem:[#allocation73_spill] sm:$0xff] %v14685_v25  ;;  %v14695_v38 = vld [vmem:[%s11867_s14 + $0x70] sm:$0xff]  }
 0x339   : > { %v6600_v1 = vmul.f32 %v10787_v14, %v14213_v33  ;;  %v6471_v23 = vpop.f32.mrb[177].mxu0  ;;  %v5279_v10 = vmul.f32 %v14265_v63, %v14333_v43 }
 0x33a   : > { %v6598_v27 = vmul.f32 %v6471_v23, %v14202_v51  ;;  %v10788_v15 = vpop.f32.mrb[178].mxu0  ;;  %v10761_v49 = vpop.f32.mrb[120].mxu1  ;;  %v16041_v51 = vld [vmem:[#allocation29_spill] sm:$0xff] }
 0x33b   : > { %v14674_v22 = vadd.f32 %v14595_v40, %v6600_v1  ;;  %v6601_v14 = vmul.f32 %v10788_v15, %v14206_v18  ;;  %v6474_v39 = vpop.f32.mrb[179].mxu0  ;;  %v6218_v13 = vmul.f32 %v10761_v49, %v14556_v55  ;;  %v5985_v40 = vpop.f32.mrb[121].mxu1  ;;  %v8961_v1 = vshrl.u32 %v14652_v34, 16  ;;  %v16028_v34 = vld [vmem:[#allocation30_spill] sm:$0xff] }
 0x33c   : > { %v14681_v23 = vadd.f32 %v14601_v9, %v6598_v27  ;;  %v6599_v45 = vmul.f32 %v6474_v39, %v14190_v56  ;;  %v6216_v0 = vmul.f32 %v14538_v3, %v5985_v40  ;;  %v10762_v9 = vpop.f32.mrb[122].mxu1  ;;  %v5282_v27 = vmul.f32 %v14336_v21, %v14269_v62 }
 0x33d   : > { %v14690_v11 = vadd.f32 %v14604_v31, %v6601_v14  ;;  %11002 = vmatmul.mubr.msk.bf16.gmra.mrb[220].mxu0 %vm366_vm1, %v8928_v36  ;;  %v14703_v43 = vadd.f32 %v6218_v13, %v5281_v59  ;;  %v6219_v31 = vmul.f32 %v10762_v9, %v14564_v44  ;;  %v5988_v14 = vpop.f32.mrb[123].mxu1  ;;  %v14707_v36 = vpop.permute.xlu0 %6157  ;;  %v5280_v39 = vmul.f32 %v14251_v2, %v14343_v8 }
 0x33e   : > { %v14701_v15 = vadd.f32 %v14611_v46, %v6599_v45  ;;  %11005 = vmatprep.mubr.msk.bf16.mxu0 %vm366_vm1, %v8936_v32  ;;  %16027 = vst [vmem:[#allocation74_spill] sm:$0xff] %v14707_v36  ;;  %v14711_v49 = vadd.f32 %v6216_v0, %v5279_v10  ;;  %v6217_v40 = vmul.f32 %v16028_v34, %v5988_v14  ;;  %v16029_v21 = vrot.slane %v14450_v30, 1  ;;  %v14720_v45 = vld [vmem:[%s11867_s14 + $0x78] sm:$0xff]  }
 0x33f   : > { %v16030_v46 = vrot.slane %v14443_v20, 1  ;;  %v14722_v9 = vadd.f32 %v6219_v31, %v5282_v27  ;;  %10976 = vmatmul.mubr.msk.bf16.gmra.mrb[228].mxu1 %vm4865_vm11, %v8385_v42  ;;  %v8959_v32 = vrot.slane %v8957_v5, 1  ;;  %v16031_v8 = vrot.slane %v14461_v29, 1  ;;  %v16033_v14 = vld [vmem:[#allocation28_spill] sm:$0xff] }
 0x340   : > { %v10791_v13 = vpop.f32.mrb[180].mxu0  ;;  %v16032_v10 = vmov %v16029_v21  ;;  %v8392_v56 = vrot.slane %v16033_v14, 1  ;;  %v8965_v42 = vshll.u32 %v14695_v38, 16  ;;  %v8952_v30 = vsel %vm954_vm3, %v8947_v48, %v8951_v41  ;;  %v16035_v14 = vld [vmem:[#allocation59_spill] sm:$0xff] }
 0x341   : > { %v8387_v59 = vsel %vm1337_vm2, %v16030_v46, %v16029_v21  ;;  %v8389_v0 = vsel %vm1337_vm2, %v16032_v10, %v16031_v8  ;;  %v6604_v20 = vmul.f32 %v10791_v13, %v14240_v24  ;;  %v6487_v18 = vpop.f32.mrb[181].mxu0  ;;  %v14732_v21 = vadd.f32 %v6217_v40, %v5280_v39  ;;  %v14739_v10 = vpop.permute.xlu1 %6161 }
 0x342   : > { %v8944_v46 = vsel %vm954_vm3, %v8939_v26, %v8943_v12  ;;  %10979 = vmatprep.mubr.msk.bf16.mxu1 %vm4865_vm11, %v8387_v59  ;;  %v6602_v5 = vmul.f32 %v6487_v18, %v14227_v61  ;;  %v10792_v27 = vpop.f32.mrb[182].mxu0  ;;  %v8955_v31 = vor.u32 %v8953_v60, %v8951_v41  ;;  %v8963_v8 = vor.u32 %v8961_v1, %v8959_v32  ;;  %v10765_v12 = vpop.f32.mrb[124].mxu1  ;;  %v16036_v18 = vld [vmem:[#allocation3_spill] sm:$0xff] }
 0x343   : > { %16034 = vst [vmem:[#allocation28_spill] sm:$0xff] %v14739_v10  ;;  %v14742_v13 = vadd.f32 %v14639_v19, %v6604_v20  ;;  %v6605_v39 = vmul.f32 %v10792_v27, %v14237_v52  ;;  %v6490_v40 = vpop.f32.mrb[183].mxu0  ;;  %v8969_v26 = vshrl.u32 %v14695_v38, 16  ;;  %v8973_v59 = vshll.u32 %v14720_v45, 16  ;;  %v6001_v19 = vpop.f32.mrb[125].mxu1  ;;  %v16038_v20 = vld [vmem:[#allocation5_spill] sm:$0xff] }
 0x344   : > { %v5285_v61 = vmul.f32 %v16036_v18, %v16035_v14  ;;  %v14750_v48 = vadd.f32 %v14647_v35, %v6602_v5  ;;  %v6603_v60 = vmul.f32 %v6490_v40, %v14221_v17  ;;  %v6222_v41 = vmul.f32 %v10765_v12, %v14609_v16  ;;  %v14754_v1 = vpop.permute.xlu0 %6165  ;;  %v16039_v27 = vld [vmem:[#allocation37_spill] sm:$0xff]  ;;  %v16040_v18 = vld [vmem:[#allocation67_spill] sm:$0xff]  ;;  %v10766_v35 = vpop.f32.mrb[126].mxu1  ;;  %v16042_v40 = vld [vmem:[#allocation4_spill] sm:$0xff] }
 0x345   : > { %16037 = vst [vmem:[#allocation3_spill] sm:$0xff] %v14754_v1  ;;  %v5283_v52 = vmul.f32 %v16039_v27, %v16038_v20  ;;  %v14759_v38 = vadd.f32 %v14654_v54, %v6605_v39  ;;  %11006 = vmatmul.mubr.msk.bf16.gmra.mrb[224].mxu0 %vm366_vm1, %v8944_v46  ;;  %v6220_v24 = vmul.f32 %v16040_v18, %v6001_v19  ;;  %v8967_v5 = vrot.slane %v8965_v42, 1  ;;  %v6004_v20 = vpop.f32.mrb[127].mxu1  ;;  %v16043_v54 = vld [vmem:[#allocation6_spill] sm:$0xff]  ;;  %v16044_v39 = vld [vmem:[#allocation45_spill] sm:$0xff] }
 0x346   : > { %v5286_v17 = vmul.f32 %v16042_v40, %v16041_v51  ;;  %v14766_v12 = vadd.f32 %v14666_v4, %v6603_v60  ;;  %v14768_v33 = vadd.f32 %v6222_v41, %v5285_v61  ;;  %v6223_v16 = vmul.f32 %v10766_v35, %v14619_v57  ;;  %11009 = vmatprep.mubr.msk.bf16.mxu0 %vm366_vm1, %v8952_v30  ;;  %v14778_v18 = vld [vmem:[%s11867_s14 + $0x80] sm:$0xff]   ;;  %v14789_v40 = vpop.permute.xlu1 %6169 }
 0x347   : > { %v5284_v46 = vmul.f32 %v16044_v39, %v16043_v54  ;;  %v14774_v19 = vadd.f32 %v6220_v24, %v5283_v52  ;;  %v6221_v42 = vmul.f32 %v14584_v47, %v6004_v20  ;;  %v8977_v4 = vshrl.u32 %v14720_v45, 16  ;;  %10980 = vmatmul.mubr.msk.bf16.gmra.mrb[232].mxu1 %vm4865_vm11, %v8389_v0  ;;  %16047 = vst [vmem:[#allocation5_spill] sm:$0xff] %v14789_v40  ;;  %v11755_v0 = vld [vmem:[%s11867_s14 + $0x88] ss:$0 sps:$4 sm:$0x11]  }
 0x348   : > { %v10795_v60 = vpop.f32.mrb[184].mxu0  ;;  %v14781_v61 = vadd.f32 %v6223_v16, %v5286_v17  ;;  %v16045_v41 = vrot.slane %v14479_v50, 1  ;;  %v16046_v30 = vrot.slane %v14461_v29, 1  ;;  %v8975_v45 = vrot.slane %v8973_v59, 1 }
 0x349   : > { %v6608_v52 = vmul.f32 %v10795_v60, %v14276_v28  ;;  %v6503_v24 = vpop.f32.mrb[185].mxu0  ;;  %v14792_v20 = vadd.f32 %v6221_v42, %v5284_v46  ;;  %v8971_v47 = vor.u32 %v8969_v26, %v8967_v5  ;;  %v14802_v60 = vpop.permute.xlu0 %6173  ;;  %v16054_v28 = vld [vmem:[#allocation63_spill] sm:$0xff] }
 0x34a   : > { %v8391_v35 = vsel %vm1337_vm2, %v16046_v30, %v16045_v41  ;;  %v16048_v17 = vmov %v16045_v41  ;;  %v6606_v54 = vmul.f32 %v6503_v24, %v14265_v63  ;;  %v10796_v29 = vpop.f32.mrb[186].mxu0  ;;  %v8960_v41 = vsel %vm954_vm3, %v8955_v31, %v8959_v32  ;;  %16049 = vst [vmem:[#allocation4_spill] sm:$0xff] %v14802_v60  ;;  %v10769_v50 = vpop.f32.mrb[128].mxu1  ;;  %v16051_v24 = vld [vmem:[#allocation11_spill] sm:$0xff] }
 0x34b   : > { %10983 = vmatprep.mubr.msk.bf16.mxu1 %vm4865_vm11, %v8391_v35  ;;  %v8393_v16 = vsel %vm1337_vm2, %v16048_v17, %v8392_v56  ;;  %v8968_v30 = vsel %vm954_vm3, %v8963_v8, %v8967_v5  ;;  %v14805_v46 = vadd.f32 %v14703_v43, %v6608_v52  ;;  %v6609_v59 = vmul.f32 %v10796_v29, %v14269_v62  ;;  %v6506_v42 = vpop.f32.mrb[187].mxu0  ;;  %v16050_v17 = vld [vmem:[#allocation38_spill] sm:$0xff]  ;;  %v6017_v26 = vpop.f32.mrb[129].mxu1  ;;  %v16052_v43 = vld [vmem:[#allocation17_spill] sm:$0xff] }
 0x34c   : > { %v8979_v35 = vor.u32 %v8977_v4, %v8975_v45  ;;  %v8981_v56 = vshll.u32 %v14778_v18, 16  ;;  %v5289_v63 = vmul.f32 %v16051_v24, %v16050_v17  ;;  %v14812_v32 = vadd.f32 %v14711_v49, %v6606_v54  ;;  %v16053_v5 = vld [vmem:[#allocation62_spill] sm:$0xff]  ;;  %v10770_v62 = vpop.f32.mrb[130].mxu1 }
 0x34d   : > { %v6607_v31 = vmul.f32 %v6506_v42, %v14251_v2  ;;  %v6226_v8 = vmul.f32 %v10769_v50, %v14685_v25  ;;  %v5287_v52 = vmul.f32 %v16053_v5, %v16052_v43  ;;  %v14819_v29 = vadd.f32 %v14722_v9, %v6609_v59  ;;  %11010 = vmatmul.mubr.msk.bf16.gmra.mrb[228].mxu0 %vm366_vm1, %v8960_v41  ;;  %v16055_v49 = vld [vmem:[#allocation14_spill] sm:$0xff]  ;;  %v6020_v25 = vpop.f32.mrb[131].mxu1  ;;  %v14830_v9 = vpop.permute.xlu1 %6177  ;;  %v16057_v59 = vld [vmem:[#allocation13_spill] sm:$0xff]  ;;  %v16058_v41 = vld [vmem:[#allocation51_spill] sm:$0xff] }
 0x34e   : > { %v6224_v4 = vmul.f32 %v14643_v58, %v6017_v26  ;;  %v8989_v24 = vshll.u32 %v11755_v0, 16  ;;  %v5290_v54 = vmul.f32 %v16055_v49, %v16054_v28  ;;  %v6227_v2 = vmul.f32 %v10770_v62, %v14707_v36  ;;  %11013 = vmatprep.mubr.msk.bf16.mxu0 %vm366_vm1, %v8968_v30  ;;  %16056 = vst [vmem:[#allocation6_spill] sm:$0xff] %v14830_v9 }
 0x34f   : > { %v14826_v42 = vadd.f32 %v14732_v21, %v6607_v31  ;;  %v11263_v50 = vadd.f32 %v6226_v8, %v5289_v63  ;;  %v5288_v43 = vmul.f32 %v16058_v41, %v16057_v59  ;;  %v6225_v0 = vmul.f32 %v14662_v37, %v6020_v25  ;;  %10984 = vmatmul.mubr.msk.bf16.gmra.mrb[236].mxu1 %vm4865_vm11, %v8393_v16  ;;  %v14836_v21 = vpop.permute.xlu0 %6181  ;;  %v16061_v59 = vld [vmem:[#allocation42_spill] sm:$0xff] }
 0x350   : > { %v11268_v26 = vadd.f32 %v6224_v4, %v5287_v52  ;;  %v8983_v58 = vrot.slane %v8981_v56, 1  ;;  %v10799_v57 = vpop.f32.mrb[188].mxu0  ;;  %v11273_v49 = vadd.f32 %v6227_v2, %v5290_v54  ;;  %16059 = vst [vmem:[#allocation11_spill] sm:$0xff] %v14836_v21  ;;  %v8985_v30 = vshrl.u32 %v14778_v18, 16 }
 0x351   : > { %v6612_v63 = vmul.f32 %v10799_v57, %v16035_v14  ;;  %v6519_v62 = vpop.f32.mrb[189].mxu0  ;;  %v11278_v31 = vadd.f32 %v6225_v0, %v5288_v43  ;;  %v8976_v52 = vsel %vm954_vm3, %v8971_v47, %v8975_v45  ;;  %v8991_v54 = vrot.slane %v8989_v24, 1  ;;  %v16060_v57 = vld [vmem:[#allocation9_spill] sm:$0xff] }
 0x352   : > { %v6610_v8 = vmul.f32 %v6519_v62, %v16039_v27  ;;  %v10800_v36 = vpop.f32.mrb[190].mxu0  ;;  %v10773_v16 = vpop.f32.mrb[132].mxu1  ;;  %v8984_v4 = vsel %vm954_vm3, %v8979_v35, %v8983_v58  ;;  %v5293_v43 = vmul.f32 %v16061_v59, %v16060_v57  ;;  %v16066_v59 = vld [vmem:[#allocation18_spill] sm:$0xff] }
 0x353   : > { %v14843_v25 = vadd.f32 %v14768_v33, %v6612_v63  ;;  %v6613_v2 = vmul.f32 %v10800_v36, %v16041_v51  ;;  %v6522_v56 = vpop.f32.mrb[191].mxu0  ;;  %v6230_v47 = vmul.f32 %v10773_v16, %v14789_v40  ;;  %v6033_v45 = vpop.f32.mrb[133].mxu1  ;;  %v16063_v63 = vld [vmem:[#allocation33_spill] sm:$0xff]  ;;  %v16064_v36 = vld [vmem:[#allocation8_spill] sm:$0xff] }
 0x354   : > { %v14850_v18 = vadd.f32 %v14774_v19, %v6610_v8  ;;  %v6611_v0 = vmul.f32 %v6522_v56, %v16044_v39  ;;  %v14854_v33 = vpop.permute.xlu1 %6185  ;;  %v5291_v62 = vmul.f32 %v16064_v36, %v16063_v63  ;;  %v6228_v35 = vmul.f32 %v14739_v10, %v6033_v45  ;;  %v10774_v24 = vpop.f32.mrb[134].mxu1  ;;  %v16065_v8 = vld [vmem:[#allocation10_spill] sm:$0xff] }
 0x355   : > { %16062 = vst [vmem:[#allocation17_spill] sm:$0xff] %v14854_v33  ;;  %v14859_v51 = vadd.f32 %v14781_v61, %v6613_v2  ;;  %11014 = vmatmul.mubr.msk.bf16.gmra.mrb[232].mxu0 %vm366_vm1, %v8976_v52  ;;  %v8987_v19 = vor.u32 %v8985_v30, %v8983_v58  ;;  %v5294_v56 = vmul.f32 %v16066_v59, %v16065_v8  ;;  %v6036_v14 = vpop.f32.mrb[135].mxu1  ;;  %v14870_v61 = vpop.permute.xlu0 %6189  ;;  %v16068_v2 = vld [vmem:[#allocation57_spill] sm:$0xff]  ;;  %v16069_v52 = vld [vmem:[#allocation66_spill] sm:$0xff] }
 0x356   : > { %v14866_v16 = vadd.f32 %v14792_v20, %v6611_v0  ;;  %v11283_v39 = vadd.f32 %v6230_v47, %v5293_v43  ;;  %v6231_v27 = vmul.f32 %v10774_v24, %v14802_v60  ;;  %11017 = vmatprep.mubr.msk.bf16.mxu0 %vm366_vm1, %v8984_v4  ;;  %16067 = vst [vmem:[#allocation14_spill] sm:$0xff] %v14870_v61 }
 0x357   : > { %v5292_v63 = vmul.f32 %v16069_v52, %v16068_v2  ;;  %v11288_v45 = vadd.f32 %v6228_v35, %v5291_v62  ;;  %v6229_v58 = vmul.f32 %v14754_v1, %v6036_v14  ;;  %v8992_v24 = vsel %vm954_vm3, %v8987_v19, %v8991_v54  ;;  %v16071_v14 = vld [vmem:[#allocation21_spill] sm:$0xff]  ;;  %v16072_v1 = vld [vmem:[#allocation60_spill] sm:$0xff]  ;;  %v16075_v19 = vld [vmem:[#allocation7_spill] sm:$0xff] }
 0x358   : > { %v10803_v30 = vpop.f32.mrb[192].mxu0  ;;  %v11293_v10 = vadd.f32 %v6231_v27, %v5294_v56  ;;  %v14878_v4 = vpop.permute.xlu1 %6193  ;;  %v5297_v27 = vmul.f32 %v16072_v1, %v16071_v14  ;;  %v16074_v54 = vld [vmem:[#allocation64_spill] sm:$0xff] }
 0x359   : > { %v6616_v59 = vmul.f32 %v10803_v30, %v16050_v17  ;;  %v6535_v20 = vpop.f32.mrb[193].mxu0  ;;  %v11298_v0 = vadd.f32 %v6229_v58, %v5292_v63  ;;  %16070 = vst [vmem:[#allocation13_spill] sm:$0xff] %v14878_v4  ;;  %v16077_v1 = vld [vmem:[#allocation12_spill] sm:$0xff] }
 0x35a   : > { %v6614_v43 = vmul.f32 %v6535_v20, %v16053_v5  ;;  %v10804_v47 = vpop.f32.mrb[194].mxu0  ;;  %v10777_v35 = vpop.f32.mrb[136].mxu1  ;;  %v16079_v17 = vld [vmem:[#allocation56_spill] sm:$0xff] }
 0x35b   : > { %v14880_v60 = vadd.f32 %v11263_v50, %v6616_v59  ;;  %v6617_v2 = vmul.f32 %v10804_v47, %v16054_v28  ;;  %v6538_v62 = vpop.f32.mrb[195].mxu0  ;;  %v6234_v58 = vmul.f32 %v10777_v35, %v14854_v33  ;;  %v6049_v30 = vpop.f32.mrb[137].mxu1  ;;  %v5295_v50 = vmul.f32 %v16075_v19, %v16074_v54  ;;  %v16080_v33 = vld [vmem:[#allocation50_spill] sm:$0xff] }
 0x35c   : > { %v14885_v56 = vadd.f32 %v11268_v26, %v6614_v43  ;;  %v6615_v63 = vmul.f32 %v6538_v62, %v16058_v41  ;;  %v14889_v20 = vpop.permute.xlu0 %6197  ;;  %v6232_v47 = vmul.f32 %v14830_v9, %v6049_v30  ;;  %v10778_v28 = vpop.f32.mrb[138].mxu1  ;;  %v16078_v26 = vld [vmem:[#allocation35_spill] sm:$0xff]  ;;  %v5296_v40 = vmul.f32 %v16080_v33, %v16079_v17 }
 0x35d   : > { %16073 = vst [vmem:[#allocation42_spill] sm:$0xff] %v14889_v20  ;;  %v14893_v59 = vadd.f32 %v11273_v49, %v6617_v2  ;;  %11018 = vmatmul.mubr.msk.bf16.gmra.mrb[236].mxu0 %vm366_vm1, %v8992_v24  ;;  %v5298_v43 = vmul.f32 %v16078_v26, %v16077_v1  ;;  %v11303_v62 = vadd.f32 %v6234_v58, %v5297_v27  ;;  %v6052_v41 = vpop.f32.mrb[139].mxu1  ;;  %v14906_v37 = vpop.permute.xlu1 %6201 }
 0x35e   : > { %v14899_v5 = vadd.f32 %v11278_v31, %v6615_v63  ;;  %v6235_v35 = vmul.f32 %v10778_v28, %v14870_v61  ;;  %v11308_v54 = vadd.f32 %v6232_v47, %v5295_v50  ;;  %v6233_v49 = vmul.f32 %v14836_v21, %v6052_v41  ;;  %16081 = vst [vmem:[#allocation18_spill] sm:$0xff] %v14906_v37  ;;  %v16083_v41 = vld [vmem:[#allocation32_spill] sm:$0xff] }
 0x35f   : > { %16076 = vst [vmem:[#allocation33_spill] sm:$0xff] %v14893_v59  ;;  %v16084_v47 = vld [vmem:[#allocation36_spill] sm:$0xff] }
 0x360   : > { %v10807_v2 = vpop.f32.mrb[196].mxu0  ;;  %v11313_v24 = vadd.f32 %v6235_v35, %v5298_v43  ;;  %v11318_v59 = vadd.f32 %v6233_v49, %v5296_v40  ;;  %v14909_v63 = vpop.permute.xlu0 %6205  ;;  %v5301_v26 = vmul.f32 %v16084_v47, %v16083_v41  ;;  %v16090_v47 = vld [vmem:[#allocation34_spill] sm:$0xff] }
 0x361   : > { %v6620_v30 = vmul.f32 %v10807_v2, %v16060_v57  ;;  %v6551_v9 = vpop.f32.mrb[197].mxu0  ;;  %16082 = vst [vmem:[#allocation57_spill] sm:$0xff] %v14909_v63  ;;  %v16086_v2 = vld [vmem:[#allocation23_spill] sm:$0xff] }
 0x362   : > { %v6618_v31 = vmul.f32 %v6551_v9, %v16064_v36  ;;  %v10808_v27 = vpop.f32.mrb[198].mxu0  ;;  %v10781_v50 = vpop.f32.mrb[140].mxu1  ;;  %v16085_v9 = vld [vmem:[#allocation43_spill] sm:$0xff] }
 0x363   : > { %v14911_v28 = vadd.f32 %v11283_v39, %v6620_v30  ;;  %v6621_v17 = vmul.f32 %v10808_v27, %v16065_v8  ;;  %v6554_v58 = vpop.f32.mrb[199].mxu0  ;;  %v6238_v35 = vmul.f32 %v10781_v50, %v14906_v37  ;;  %v6065_v49 = vpop.f32.mrb[141].mxu1  ;;  %v5299_v36 = vmul.f32 %v16086_v2, %v16085_v9  ;;  %v16088_v27 = vld [vmem:[#allocation15_spill] sm:$0xff]  ;;  %v16091_v50 = vld [vmem:[#allocation25_spill] sm:$0xff] }
 0x364   : > { %v14916_v43 = vadd.f32 %v11288_v45, %v6618_v31  ;;  %v6619_v40 = vmul.f32 %v6554_v58, %v16069_v52  ;;  %v6236_v39 = vmul.f32 %v14878_v4, %v6065_v49  ;;  %v10782_v30 = vpop.f32.mrb[142].mxu1  ;;  %v16089_v8 = vld [vmem:[#allocation47_spill] sm:$0xff]  ;;  %v5300_v52 = vmul.f32 %v16091_v50, %v16090_v47 }
 0x365   : > { %v14922_v57 = vadd.f32 %v11293_v10, %v6621_v17  ;;  %v5302_v21 = vmul.f32 %v16089_v8, %v16088_v27  ;;  %v11323_v45 = vadd.f32 %v6238_v35, %v5301_v26  ;;  %v6239_v31 = vmul.f32 %v10782_v30, %v14909_v63  ;;  %v6068_v58 = vpop.f32.mrb[143].mxu1  ;;  %v16093_v47 = vld [vmem:[#allocation55_spill] sm:$0xff] }
 0x366   : > { %v14927_v61 = vadd.f32 %v11298_v0, %v6619_v40  ;;  %v11328_v37 = vadd.f32 %v6236_v39, %v5299_v36  ;;  %v6237_v9 = vmul.f32 %v14889_v20, %v6068_v58  ;;  %v16092_v39 = vld [vmem:[#allocation20_spill] sm:$0xff] }
 0x367   : > { %16087 = vst [vmem:[#allocation21_spill] sm:$0xff] %v14922_v57  ;;  %v11333_v17 = vadd.f32 %v6239_v31, %v5302_v21 }
 0x368   : > { %v10811_v10 = vpop.f32.mrb[200].mxu0  ;;  %v11338_v57 = vadd.f32 %v6237_v9, %v5300_v52 }
 0x369   : > { %v6624_v49 = vmul.f32 %v10811_v10, %v16071_v14  ;;  %v6567_v4 = vpop.f32.mrb[201].mxu0 }
 0x36a   : > { %v6622_v8 = vmul.f32 %v6567_v4, %v16075_v19  ;;  %v10812_v0 = vpop.f32.mrb[202].mxu0  ;;  %v10855_v30 = vpop.f32.mrb[144].mxu1 }
 0x36b   : > { %v14935_v40 = vadd.f32 %v11303_v62, %v6624_v49  ;;  %v6625_v26 = vmul.f32 %v10812_v0, %v16077_v1  ;;  %v6570_v35 = vpop.f32.mrb[203].mxu0  ;;  %v7409_v58 = vmul.f32 %v10855_v30, %v16092_v39  ;;  %v7280_v21 = vpop.f32.mrb[145].mxu1 }
 0x36c   : > { %v14938_v63 = vadd.f32 %v11308_v54, %v6622_v8  ;;  %v6623_v36 = vmul.f32 %v6570_v35, %v16080_v33  ;;  %v7407_v52 = vmul.f32 %v7280_v21, %v16093_v47  ;;  %v10856_v9 = vpop.f32.mrb[146].mxu1 }
 0x36d   : > { %v14942_v31 = vadd.f32 %v11313_v24, %v6625_v26  ;;  %v14948_v62 = vadd.f32 %v14674_v22, %v7409_v58  ;;  %v7410_v10 = vmul.f32 %v10856_v9, %v14492_v6  ;;  %v7283_v49 = vpop.f32.mrb[147].mxu1  ;;  %v16094_v9 = vld [vmem:[#allocation48_spill] sm:$0xff] }
 0x36e   : > { %v14945_v4 = vadd.f32 %v11318_v59, %v6623_v36  ;;  %v14952_v54 = vadd.f32 %v14681_v23, %v7407_v52  ;;  %v7408_v8 = vmul.f32 %v7283_v49, %v14469_v53 }
 0x36f   : > { %v14956_v24 = vadd.f32 %v14690_v11, %v7410_v10 }
 0x370   : > { %v10815_v0 = vpop.f32.mrb[204].mxu0  ;;  %v14960_v59 = vadd.f32 %v14701_v15, %v7408_v8 }
 0x371   : > { %v6628_v26 = vmul.f32 %v10815_v0, %v16083_v41  ;;  %v6583_v35 = vpop.f32.mrb[205].mxu0 }
 0x372   : > { %v6626_v22 = vmul.f32 %v6583_v35, %v16086_v2  ;;  %v10816_v30 = vpop.f32.mrb[206].mxu0  ;;  %v10859_v21 = vpop.f32.mrb[148].mxu1 }
 0x373   : > { %v14963_v36 = vadd.f32 %v11323_v45, %v6628_v26  ;;  %v6629_v23 = vmul.f32 %v10816_v30, %v16088_v27  ;;  %v6586_v58 = vpop.f32.mrb[207].mxu0  ;;  %v7413_v10 = vmul.f32 %v10859_v21, %v16094_v9  ;;  %v7296_v49 = vpop.f32.mrb[149].mxu1  ;;  %v16095_v26 = vld [vmem:[#allocation44_spill] sm:$0xff] }
 0x374   : > { %v14966_v52 = vadd.f32 %v11328_v37, %v6626_v22  ;;  %v6627_v11 = vmul.f32 %v6586_v58, %v16091_v50  ;;  %v7411_v15 = vmul.f32 %v7296_v49, %v14505_v7  ;;  %v10860_v8 = vpop.f32.mrb[150].mxu1  ;;  %v16096_v22 = vld [vmem:[#allocation46_spill] sm:$0xff]  ;;  %v16124_v7 = vld [vmem:[#allocation24_spill] sm:$0xff] }
 0x375   : > { %v14970_v0 = vadd.f32 %v11333_v17, %v6629_v23  ;;  %v14976_v45 = vadd.f32 %v14742_v13, %v7413_v10  ;;  %v7414_v30 = vmul.f32 %v10860_v8, %v16095_v26  ;;  %v7299_v53 = vpop.f32.mrb[151].mxu1  ;;  %v16123_v26 = vld [vmem:[#allocation19_spill] sm:$0xff] }
 0x376   : > { %v14973_v35 = vadd.f32 %v11338_v57, %v6627_v11  ;;  %v14980_v37 = vadd.f32 %v14750_v48, %v7411_v15  ;;  %v7412_v58 = vmul.f32 %v7299_v53, %v16096_v22 }
 0x377   : > { %v14984_v21 = vadd.f32 %v14759_v38, %v7414_v30 }
 0x378   : > { %v14987_v17 = vadd.f32 %v14766_v12, %v7412_v58  ;;  %v16097_v58 = vld [vmem:[#allocation69_spill] sm:$0xff] }
 0x37a   : > { %v10863_v23 = vpop.f32.mrb[152].mxu1 }
 0x37b   : > { %v7417_v57 = vmul.f32 %v10863_v23, %v14556_v55  ;;  %v7312_v11 = vpop.f32.mrb[153].mxu1 }
 0x37c   : > { %v7415_v13 = vmul.f32 %v7312_v11, %v14538_v3  ;;  %v10864_v10 = vpop.f32.mrb[154].mxu1 }
 0x37d   : > { %v14992_v49 = vadd.f32 %v14805_v46, %v7417_v57  ;;  %v7418_v48 = vmul.f32 %v10864_v10, %v14564_v44  ;;  %v7315_v15 = vpop.f32.mrb[155].mxu1  ;;  %v16098_v46 = vld [vmem:[#allocation67_spill] sm:$0xff] }
 0x37e   : > { %v14996_v53 = vadd.f32 %v14812_v32, %v7415_v13  ;;  %v7416_v38 = vmul.f32 %v7315_v15, %v16028_v34  ;;  %v16099_v32 = vld [vmem:[#allocation70_spill] sm:$0xff] }
 0x37f   : > { %v15000_v12 = vadd.f32 %v14819_v29, %v7418_v48  ;;  %v16100_v29 = vld [vmem:[#allocation68_spill] sm:$0xff] }
 0x380   : > { %v15003_v8 = vadd.f32 %v14826_v42, %v7416_v38 }
 0x382   : > { %v10867_v30 = vpop.f32.mrb[156].mxu1 }
 0x383   : > { %v7421_v23 = vmul.f32 %v10867_v30, %v16097_v58  ;;  %v7328_v11 = vpop.f32.mrb[157].mxu1 }
 0x384   : > { %v7419_v57 = vmul.f32 %v7328_v11, %v16098_v46  ;;  %v10868_v3 = vpop.f32.mrb[158].mxu1  ;;  %v16101_v11 = vld [vmem:[#allocation73_spill] sm:$0xff] }
 0x385   : > { %v15008_v10 = vadd.f32 %v14843_v25, %v7421_v23  ;;  %v7422_v13 = vmul.f32 %v10868_v3, %v16099_v32  ;;  %v7331_v44 = vpop.f32.mrb[159].mxu1  ;;  %v16102_v25 = vld [vmem:[#allocation71_spill] sm:$0xff] }
 0x386   : > { %v15012_v15 = vadd.f32 %v14850_v18, %v7419_v57  ;;  %v7420_v48 = vmul.f32 %v7331_v44, %v16100_v29  ;;  %v16103_v18 = vld [vmem:[#allocation74_spill] sm:$0xff] }
 0x387   : > { %v15016_v42 = vadd.f32 %v14859_v51, %v7422_v13  ;;  %v16104_v51 = vld [vmem:[#allocation72_spill] sm:$0xff] }
 0x388   : > { %v15019_v38 = vadd.f32 %v14866_v16, %v7420_v48  ;;  %v16105_v16 = vld [vmem:[#allocation33_spill] sm:$0xff] }
 0x38a   : > { %v10871_v30 = vpop.f32.mrb[160].mxu1 }
 0x38b   : > { %v7425_v46 = vmul.f32 %v10871_v30, %v16101_v11  ;;  %v7344_v58 = vpop.f32.mrb[161].mxu1 }
 0x38c   : > { %v7423_v23 = vmul.f32 %v7344_v58, %v16102_v25  ;;  %v10872_v34 = vpop.f32.mrb[162].mxu1  ;;  %v16106_v58 = vld [vmem:[#allocation5_spill] sm:$0xff] }
 0x38d   : > { %v15024_v3 = vadd.f32 %v14880_v60, %v7425_v46  ;;  %v7426_v57 = vmul.f32 %v10872_v34, %v16103_v18  ;;  %v7347_v32 = vpop.f32.mrb[163].mxu1  ;;  %v16107_v60 = vld [vmem:[#allocation28_spill] sm:$0xff] }
 0x38e   : > { %v15028_v44 = vadd.f32 %v14885_v56, %v7423_v23  ;;  %v7424_v13 = vmul.f32 %v7347_v32, %v16104_v51  ;;  %v16108_v56 = vld [vmem:[#allocation4_spill] sm:$0xff] }
 0x38f   : > { %v15032_v48 = vadd.f32 %v16105_v16, %v7426_v57  ;;  %v16109_v57 = vld [vmem:[#allocation3_spill] sm:$0xff] }
 0x390   : > { %v15035_v30 = vadd.f32 %v14899_v5, %v7424_v13  ;;  %v16110_v5 = vld [vmem:[#allocation21_spill] sm:$0xff] }
 0x392   : > { %v10875_v11 = vpop.f32.mrb[164].mxu1 }
 0x393   : > { %v7429_v25 = vmul.f32 %v10875_v11, %v16106_v58  ;;  %v7360_v29 = vpop.f32.mrb[165].mxu1 }
 0x394   : > { %v7427_v46 = vmul.f32 %v7360_v29, %v16107_v60  ;;  %v10876_v55 = vpop.f32.mrb[166].mxu1  ;;  %v16111_v29 = vld [vmem:[#allocation17_spill] sm:$0xff] }
 0x395   : > { %v15040_v34 = vadd.f32 %v14911_v28, %v7429_v25  ;;  %v7430_v23 = vmul.f32 %v10876_v55, %v16108_v56  ;;  %v7363_v18 = vpop.f32.mrb[167].mxu1  ;;  %v16112_v28 = vld [vmem:[#allocation6_spill] sm:$0xff] }
 0x396   : > { %v15044_v32 = vadd.f32 %v14916_v43, %v7427_v46  ;;  %v7428_v16 = vmul.f32 %v7363_v18, %v16109_v57  ;;  %v16113_v43 = vld [vmem:[#allocation14_spill] sm:$0xff] }
 0x397   : > { %v15048_v13 = vadd.f32 %v16110_v5, %v7430_v23  ;;  %v16114_v23 = vld [vmem:[#allocation11_spill] sm:$0xff] }
 0x398   : > { %v15051_v11 = vadd.f32 %v14927_v61, %v7428_v16 }
 0x39a   : > { %v10879_v58 = vpop.f32.mrb[168].mxu1 }
 0x39b   : > { %v7433_v60 = vmul.f32 %v10879_v58, %v16111_v29  ;;  %v7376_v51 = vpop.f32.mrb[169].mxu1 }
 0x39c   : > { %v7431_v25 = vmul.f32 %v7376_v51, %v16112_v28  ;;  %v10880_v22 = vpop.f32.mrb[170].mxu1  ;;  %v16115_v51 = vld [vmem:[#allocation18_spill] sm:$0xff] }
 0x39d   : > { %v15056_v55 = vadd.f32 %v14935_v40, %v7433_v60  ;;  %v7434_v46 = vmul.f32 %v10880_v22, %v16113_v43  ;;  %v7379_v56 = vpop.f32.mrb[171].mxu1  ;;  %v16116_v40 = vld [vmem:[#allocation13_spill] sm:$0xff] }
 0x39e   : > { %v15060_v18 = vadd.f32 %v14938_v63, %v7431_v25  ;;  %v7432_v5 = vmul.f32 %v7379_v56, %v16114_v23  ;;  %v16117_v63 = vld [vmem:[#allocation57_spill] sm:$0xff] }
 0x39f   : > { %v15064_v61 = vadd.f32 %v14942_v31, %v7434_v46 }
 0x3a0   : > { %v15067_v58 = vadd.f32 %v14945_v4, %v7432_v5 }
 0x3a2   : > { %v10883_v16 = vpop.f32.mrb[172].mxu1 }
 0x3a3   : > { %v7437_v28 = vmul.f32 %v10883_v16, %v16115_v51  ;;  %v7392_v29 = vpop.f32.mrb[173].mxu1 }
 0x3a4   : > { %v7435_v60 = vmul.f32 %v7392_v29, %v16116_v40  ;;  %v10884_v57 = vpop.f32.mrb[174].mxu1  ;;  %v16118_v29 = vld [vmem:[#allocation52_spill] sm:$0xff] }
 0x3a5   : > { %v15072_v22 = vadd.f32 %v14963_v36, %v7437_v28  ;;  %v7438_v25 = vmul.f32 %v10884_v57, %v16117_v63  ;;  %v7395_v43 = vpop.f32.mrb[175].mxu1  ;;  %v16119_v36 = vld [vmem:[#allocation22_spill] sm:$0xff]  ;;  %v16120_v57 = vld [vmem:[#allocation16_spill] sm:$0xff] }
 0x3a6   : > { %v15076_v56 = vadd.f32 %v14966_v52, %v7435_v60  ;;  %v7436_v31 = vmul.f32 %v7395_v43, %v14889_v20  ;;  %v16121_v60 = vld [vmem:[#allocation26_spill] sm:$0xff] }
 0x3a7   : > { %v15080_v4 = vadd.f32 %v14970_v0, %v7438_v25  ;;  %v16122_v20 = vld [vmem:[#allocation58_spill] sm:$0xff] }
 0x3a8   : > { %v15083_v46 = vadd.f32 %v14973_v35, %v7436_v31 }
 0x3aa   : > { %v10889_v5 = vpop.f32.mrb[176].mxu1 }
 0x3ab   : > { %v7799_v16 = vmul.f32 %v10889_v5, %v16118_v29  ;;  %v7670_v40 = vpop.f32.mrb[177].mxu1 }
 0x3ac   : > { %v7797_v28 = vmul.f32 %v7670_v40, %v16119_v36  ;;  %v10890_v51 = vpop.f32.mrb[178].mxu1 }
 0x3ad   : > { %v7800_v63 = vmul.f32 %v10890_v51, %v16120_v57  ;;  %v7673_v23 = vpop.f32.mrb[179].mxu1  ;;  %v11186_v52 = vadd.f32 %v14948_v62, %v7799_v16  ;;  %v16125_v16 = vld [vmem:[#allocation54_spill] sm:$0xff] }
 0x3ae   : > { %v7798_v43 = vmul.f32 %v7673_v23, %v16121_v60  ;;  %v11191_v0 = vadd.f32 %v14952_v54, %v7797_v28 }
 0x3af   : > { %v11196_v25 = vadd.f32 %v14956_v24, %v7800_v63 }
 0x3b0   : > { %v11201_v35 = vadd.f32 %v14960_v59, %v7798_v43 }
 0x3b2   : > { %v10893_v31 = vpop.f32.mrb[180].mxu1 }
 0x3b3   : > { %v7803_v5 = vmul.f32 %v10893_v31, %v16122_v20  ;;  %v7686_v29 = vpop.f32.mrb[181].mxu1 }
 0x3b4   : > { %v7801_v40 = vmul.f32 %v7686_v29, %v16123_v26  ;;  %v10894_v36 = vpop.f32.mrb[182].mxu1 }
 0x3b5   : > { %v7804_v51 = vmul.f32 %v10894_v36, %v16124_v7  ;;  %v7689_v57 = vpop.f32.mrb[183].mxu1  ;;  %v11206_v62 = vadd.f32 %v14976_v45, %v7803_v5  ;;  %v16126_v5 = vld [vmem:[#allocation65_spill] sm:$0xff] }
 0x3b6   : > { %v7802_v23 = vmul.f32 %v7689_v57, %v16125_v16  ;;  %v11211_v54 = vadd.f32 %v14980_v37, %v7801_v40  ;;  %v16127_v40 = vld [vmem:[#allocation39_spill] sm:$0xff] }
 0x3b7   : > { %v11216_v24 = vadd.f32 %v14984_v21, %v7804_v51 }
 0x3b8   : > { %v10923_v28 = vpop.f32.mrb[144].mxu0  ;;  %v11221_v20 = vadd.f32 %v14987_v17, %v7802_v23 }
 0x3b9   : > { %v15100_v59 = vadd.f32 %v11186_v52, %v10923_v28  ;;  %v8196_v63 = vpop.f32.mrb[145].mxu0  ;;  %v16128_v52 = vld [vmem:[#allocation61_spill] sm:$0xff] }
 0x3ba   : > { %v15103_v60 = vadd.f32 %v11191_v0, %v8196_v63  ;;  %v10924_v26 = vpop.f32.mrb[146].mxu0  ;;  %v10897_v31 = vpop.f32.mrb[184].mxu1  ;;  %v16129_v0 = vld [vmem:[#allocation27_spill] sm:$0xff] }
 0x3bb   : > { %v15105_v43 = vadd.f32 %v11196_v25, %v10924_v26  ;;  %v8199_v7 = vpop.f32.mrb[147].mxu0  ;;  %v7807_v29 = vmul.f32 %v10897_v31, %v16126_v5  ;;  %v7702_v37 = vpop.f32.mrb[185].mxu1 }
 0x3bc   : > { %v15107_v45 = vadd.f32 %v11201_v35, %v8199_v7  ;;  %v7805_v36 = vmul.f32 %v7702_v37, %v16127_v40  ;;  %v10898_v21 = vpop.f32.mrb[186].mxu1 }
 0x3bd   : > { %v7808_v51 = vmul.f32 %v10898_v21, %v16128_v52  ;;  %v7705_v57 = vpop.f32.mrb[187].mxu1  ;;  %v11226_v17 = vadd.f32 %v14992_v49, %v7807_v29  ;;  %v16130_v29 = vld [vmem:[#allocation59_spill] sm:$0xff] }
 0x3be   : > { %v7806_v16 = vmul.f32 %v7705_v57, %v16129_v0  ;;  %v11231_v25 = vadd.f32 %v14996_v53, %v7805_v36  ;;  %v16131_v36 = vld [vmem:[#allocation37_spill] sm:$0xff] }
 0x3bf   : > { %v11236_v28 = vadd.f32 %v15000_v12, %v7808_v51 }
 0x3c0   : > { %v10927_v23 = vpop.f32.mrb[148].mxu0  ;;  %v11241_v26 = vadd.f32 %v15003_v8, %v7806_v16 }
 0x3c1   : > { %v15116_v35 = vadd.f32 %v11206_v62, %v10927_v23  ;;  %v8212_v63 = vpop.f32.mrb[149].mxu0  ;;  %v16132_v62 = vld [vmem:[#allocation29_spill] sm:$0xff] }
 0x3c2   : > { %v15119_v7 = vadd.f32 %v11211_v54, %v8212_v63  ;;  %v10928_v31 = vpop.f32.mrb[150].mxu0  ;;  %v10901_v40 = vpop.f32.mrb[188].mxu1  ;;  %v16133_v54 = vld [vmem:[#allocation45_spill] sm:$0xff] }
 0x3c3   : > { %v15121_v5 = vadd.f32 %v11216_v24, %v10928_v31  ;;  %v8215_v37 = vpop.f32.mrb[151].mxu0  ;;  %v7811_v21 = vmul.f32 %v10901_v40, %v16130_v29  ;;  %v7718_v53 = vpop.f32.mrb[189].mxu1 }
 0x3c4   : > { %v15123_v49 = vadd.f32 %v11221_v20, %v8215_v37  ;;  %v7809_v52 = vmul.f32 %v7718_v53, %v16131_v36  ;;  %v10902_v12 = vpop.f32.mrb[190].mxu1 }
 0x3c5   : > { %v7812_v51 = vmul.f32 %v10902_v12, %v16132_v62  ;;  %v7721_v57 = vpop.f32.mrb[191].mxu1  ;;  %v11246_v8 = vadd.f32 %v15008_v10, %v7811_v21  ;;  %v16134_v21 = vld [vmem:[#allocation38_spill] sm:$0xff] }
 0x3c6   : > { %v7810_v0 = vmul.f32 %v7721_v57, %v16133_v54  ;;  %v11251_v24 = vadd.f32 %v15012_v15, %v7809_v52  ;;  %v16135_v52 = vld [vmem:[#allocation62_spill] sm:$0xff] }
 0x3c7   : > { %v11256_v23 = vadd.f32 %v15016_v42, %v7812_v51 }
 0x3c8   : > { %v10931_v16 = vpop.f32.mrb[152].mxu0  ;;  %v11261_v31 = vadd.f32 %v15019_v38, %v7810_v0 }
 0x3c9   : > { %v15132_v20 = vadd.f32 %v11226_v17, %v10931_v16  ;;  %v8228_v63 = vpop.f32.mrb[153].mxu0  ;;  %v16136_v17 = vld [vmem:[#allocation63_spill] sm:$0xff] }
 0x3ca   : > { %v15135_v37 = vadd.f32 %v11231_v25, %v8228_v63  ;;  %v10932_v40 = vpop.f32.mrb[154].mxu0  ;;  %v10905_v36 = vpop.f32.mrb[192].mxu1  ;;  %v16137_v25 = vld [vmem:[#allocation51_spill] sm:$0xff] }
 0x3cb   : > { %v15137_v29 = vadd.f32 %v11236_v28, %v10932_v40  ;;  %v8231_v53 = vpop.f32.mrb[155].mxu0  ;;  %v7815_v12 = vmul.f32 %v10905_v36, %v16134_v21  ;;  %v7734_v15 = vpop.f32.mrb[193].mxu1 }
 0x3cc   : > { %v15139_v10 = vadd.f32 %v11241_v26, %v8231_v53  ;;  %v7813_v62 = vmul.f32 %v7734_v15, %v16135_v52  ;;  %v10906_v42 = vpop.f32.mrb[194].mxu1 }
 0x3cd   : > { %v7816_v51 = vmul.f32 %v10906_v42, %v16136_v17  ;;  %v7737_v57 = vpop.f32.mrb[195].mxu1  ;;  %v11266_v38 = vadd.f32 %v15024_v3, %v7815_v12  ;;  %v16138_v12 = vld [vmem:[#allocation9_spill] sm:$0xff] }
 0x3ce   : > { %v7814_v54 = vmul.f32 %v7737_v57, %v16137_v25  ;;  %v11271_v28 = vadd.f32 %v15028_v44, %v7813_v62  ;;  %v16139_v62 = vld [vmem:[#allocation8_spill] sm:$0xff] }
 0x3cf   : > { %v11276_v16 = vadd.f32 %v15032_v48, %v7816_v51 }
 0x3d0   : > { %v10935_v0 = vpop.f32.mrb[156].mxu0  ;;  %v11281_v40 = vadd.f32 %v15035_v30, %v7814_v54 }
 0x3d1   : > { %v15148_v26 = vadd.f32 %v11246_v8, %v10935_v0  ;;  %v8244_v63 = vpop.f32.mrb[157].mxu0  ;;  %v16140_v8 = vld [vmem:[#allocation10_spill] sm:$0xff] }
 0x3d2   : > { %v15151_v53 = vadd.f32 %v11251_v24, %v8244_v63  ;;  %v10936_v36 = vpop.f32.mrb[158].mxu0  ;;  %v10909_v52 = vpop.f32.mrb[196].mxu1  ;;  %v16141_v24 = vld [vmem:[#allocation66_spill] sm:$0xff] }
 0x3d3   : > { %v15153_v21 = vadd.f32 %v11256_v23, %v10936_v36  ;;  %v8247_v15 = vpop.f32.mrb[159].mxu0  ;;  %v7819_v42 = vmul.f32 %v10909_v52, %v16138_v12  ;;  %v7750_v44 = vpop.f32.mrb[197].mxu1 }
 0x3d4   : > { %v15155_v3 = vadd.f32 %v11261_v31, %v8247_v15  ;;  %v7817_v17 = vmul.f32 %v7750_v44, %v16139_v62  ;;  %v10910_v48 = vpop.f32.mrb[198].mxu1 }
 0x3d5   : > { %v7820_v51 = vmul.f32 %v10910_v48, %v16140_v8  ;;  %v7753_v57 = vpop.f32.mrb[199].mxu1  ;;  %v11286_v30 = vadd.f32 %v15040_v34, %v7819_v42 }
 0x3d6   : > { %v7818_v25 = vmul.f32 %v7753_v57, %v16141_v24  ;;  %v11291_v23 = vadd.f32 %v15044_v32, %v7817_v17 }
 0x3d7   : > { %v11296_v0 = vadd.f32 %v15048_v13, %v7820_v51 }
 0x3d8   : > { %v10939_v54 = vpop.f32.mrb[160].mxu0  ;;  %v11301_v36 = vadd.f32 %v15051_v11, %v7818_v25 }
 0x3d9   : > { %v15164_v31 = vadd.f32 %v11266_v38, %v10939_v54  ;;  %v8260_v63 = vpop.f32.mrb[161].mxu0 }
 0x3da   : > { %v15167_v15 = vadd.f32 %v11271_v28, %v8260_v63  ;;  %v10940_v52 = vpop.f32.mrb[162].mxu0  ;;  %v10913_v62 = vpop.f32.mrb[200].mxu1 }
 0x3db   : > { %v15169_v12 = vadd.f32 %v11276_v16, %v10940_v52  ;;  %v8263_v44 = vpop.f32.mrb[163].mxu0  ;;  %v7823_v42 = vmul.f32 %v10913_v62, %v16071_v14  ;;  %v7766_v32 = vpop.f32.mrb[201].mxu1 }
 0x3dc   : > { %v15171_v34 = vadd.f32 %v11281_v40, %v8263_v44  ;;  %v7821_v17 = vmul.f32 %v7766_v32, %v16075_v19  ;;  %v10914_v13 = vpop.f32.mrb[202].mxu1 }
 0x3dd   : > { %v7824_v38 = vmul.f32 %v10914_v13, %v16077_v1  ;;  %v7769_v48 = vpop.f32.mrb[203].mxu1  ;;  %v11306_v11 = vadd.f32 %v15056_v55, %v7823_v42 }
 0x3de   : > { %v7822_v28 = vmul.f32 %v7769_v48, %v16080_v33  ;;  %v11311_v16 = vadd.f32 %v15060_v18, %v7821_v17 }
 0x3df   : > { %v11316_v51 = vadd.f32 %v15064_v61, %v7824_v38 }
 0x3e0   : > { %v10943_v8 = vpop.f32.mrb[164].mxu0  ;;  %v11321_v14 = vadd.f32 %v15067_v58, %v7822_v28 }
 0x3e1   : > { %v15180_v40 = vadd.f32 %v11286_v30, %v10943_v8  ;;  %v8276_v57 = vpop.f32.mrb[165].mxu0 }
 0x3e2   : > { %v15183_v24 = vadd.f32 %v11291_v23, %v8276_v57  ;;  %v10944_v19 = vpop.f32.mrb[166].mxu0  ;;  %v10917_v54 = vpop.f32.mrb[204].mxu1 }
 0x3e3   : > { %v15185_v25 = vadd.f32 %v11296_v0, %v10944_v19  ;;  %v8279_v1 = vpop.f32.mrb[167].mxu0  ;;  %v7827_v33 = vmul.f32 %v10917_v54, %v16083_v41  ;;  %v7782_v18 = vpop.f32.mrb[205].mxu1 }
 0x3e4   : > { %v15187_v55 = vadd.f32 %v11301_v36, %v8279_v1  ;;  %v7825_v63 = vmul.f32 %v7782_v18, %v16086_v2  ;;  %v10918_v61 = vpop.f32.mrb[206].mxu1 }
 0x3e5   : > { %v7828_v30 = vmul.f32 %v10918_v61, %v16088_v27  ;;  %v7785_v52 = vpop.f32.mrb[207].mxu1  ;;  %v11326_v58 = vadd.f32 %v15072_v22, %v7827_v33  ;;  %v16143_v61 = vld [vmem:[#allocation40_spill] sm:$0xff] }
 0x3e6   : > { %v7826_v23 = vmul.f32 %v7785_v52, %v16091_v50  ;;  %v11331_v0 = vadd.f32 %v15076_v56, %v7825_v63 }
 0x3e7   : > { %v11336_v62 = vadd.f32 %v15080_v4, %v7828_v30 }
 0x3e8   : > { %v10947_v44 = vpop.f32.mrb[168].mxu0  ;;  %v11341_v41 = vadd.f32 %v15083_v46, %v7826_v23 }
 0x3e9   : > { %v15196_v36 = vadd.f32 %v11306_v11, %v10947_v44  ;;  %v8292_v42 = vpop.f32.mrb[169].mxu0 }
 0x3ea   : > { %v15199_v32 = vadd.f32 %v11311_v16, %v8292_v42  ;;  %v10948_v2 = vpop.f32.mrb[170].mxu0  ;;  %v10957_v13 = vpop.f32.mrb[208].mxu1  ;;  %v16142_v16 = vld [vmem:[#allocation53_spill] sm:$0xff] }
 0x3eb   : > { %v15201_v17 = vadd.f32 %v11316_v51, %v10948_v2  ;;  %v8295_v27 = vpop.f32.mrb[171].mxu0  ;;  %v8608_v50 = vmul.f32 %v10957_v13, %v16092_v39  ;;  %v8479_v56 = vpop.f32.mrb[209].mxu1 }
 0x3ec   : > { %v15203_v22 = vadd.f32 %v11321_v14, %v8295_v27  ;;  %v8606_v38 = vmul.f32 %v8479_v56, %v16093_v47  ;;  %v10958_v4 = vpop.f32.mrb[210].mxu1  ;;  %v15220_v47 = vld [vmem:[%s15503_s5 + $0x2] ss:$0 sm:$0xff]  ;;  %v16145_v27 = vld [vmem:[#allocation46_spill] sm:$0xff]  ;;  %v15249_v56 = vld [vmem:[%s15503_s5 + $0x5] ss:$0 sm:$0xff] }
 0x3ed   : > { %v8640_v48 = vadd.f32 %v15100_v59, %v8608_v50  ;;  %v8609_v11 = vmul.f32 %v10958_v4, %v14492_v6  ;;  %v8482_v46 = vpop.f32.mrb[211].mxu1 }
 0x3ee   : > { %v8638_v28 = vadd.f32 %v15103_v60, %v8606_v38  ;;  %v8607_v8 = vmul.f32 %v8482_v46, %v16142_v16 }
 0x3ef   : > { %v8641_v57 = vadd.f32 %v15105_v43, %v8609_v11  ;;  %v8677_v63 = vmul.f32 %v15220_v47, %v8640_v48 }
 0x3f0   : > { %v10951_v51 = vpop.f32.mrb[172].mxu0  ;;  %v8639_v39 = vadd.f32 %v15107_v45, %v8607_v8  ;;  %v8675_v45 = vmul.f32 %v15220_v47, %v8638_v28 }
 0x3f1   : > { %v15212_v14 = vadd.f32 %v11326_v58, %v10951_v51  ;;  %v8308_v19 = vpop.f32.mrb[173].mxu0  ;;  %v8678_v58 = vmul.f32 %v15220_v47, %v8641_v57 }
 0x3f2   : > { %v15215_v1 = vadd.f32 %v11331_v0, %v8308_v19  ;;  %v10952_v6 = vpop.f32.mrb[174].mxu0  ;;  %v10961_v54 = vpop.f32.mrb[212].mxu1  ;;  %v8676_v23 = vmul.f32 %v15220_v47, %v8639_v39  ;;  %v15235_v0 = vld [vmem:[%s15503_s5 + $0x3] ss:$0 sm:$0xff] }
 0x3f3   : > { %v15222_v59 = vadd.f32 %v11336_v62, %v10952_v6  ;;  %v8311_v60 = vpop.f32.mrb[175].mxu0  ;;  %v8612_v43 = vmul.f32 %v10961_v54, %v16094_v9  ;;  %v8495_v18 = vpop.f32.mrb[213].mxu1  ;;  %v15240_v9 = vld [vmem:[%s15503_s5 + $0x4] ss:$0 sm:$0xff]  ;;  %v16144_v62 = vld [vmem:[#allocation44_spill] sm:$0xff]  ;;  %v8714_v4 = vadd.f32 %v15235_v0, %v8677_v63  ;;  %v8712_v46 = vadd.f32 %v15235_v0, %v8675_v45 }
 0x3f4   : > { %v15224_v33 = vadd.f32 %v11341_v41, %v8311_v60  ;;  %v8610_v30 = vmul.f32 %v8495_v18, %v16143_v61  ;;  %v10962_v52 = vpop.f32.mrb[214].mxu1  ;;  %v8715_v28 = vadd.f32 %v15235_v0, %v8678_v58  ;;  %v8713_v8 = vadd.f32 %v15235_v0, %v8676_v23 }
 0x3f5   : > { %v8644_v44 = vadd.f32 %v15116_v35, %v8612_v43  ;;  %v8613_v42 = vmul.f32 %v10962_v52, %v16144_v62  ;;  %v8498_v41 = vpop.f32.mrb[215].mxu1  ;;  %v16146_v43 = vld [vmem:[#allocation31_spill] sm:$0xff]  ;;  %v16147_v52 = vld [vmem:[#allocation41_spill] sm:$0xff] }
 0x3f6   : > { %v8642_v2 = vadd.f32 %v15119_v7, %v8610_v30  ;;  %v8611_v13 = vmul.f32 %v8498_v41, %v16145_v27  ;;  %v16148_v41 = vld [vmem:[#allocation49_spill] sm:$0xff] }
 0x3f7   : > { %v8645_v38 = vadd.f32 %v15121_v5, %v8613_v42  ;;  %v8681_v5 = vmul.f32 %v15220_v47, %v8644_v44 }
 0x3f8   : > { %v10991_v50 = vpop.f32.mrb[208].mxu0  ;;  %v8643_v11 = vadd.f32 %v15123_v49, %v8611_v13  ;;  %v8679_v57 = vmul.f32 %v15220_v47, %v8642_v2 }
 0x3f9   : > { %v9212_v35 = vmul.f32 %v10991_v50, %v15240_v9  ;;  %v9078_v48 = vpop.f32.mrb[209].mxu0  ;;  %v8682_v60 = vmul.f32 %v15220_v47, %v8645_v38 }
 0x3fa   : > { %v9210_v7 = vmul.f32 %v15240_v9, %v9078_v48  ;;  %v10992_v16 = vpop.f32.mrb[210].mxu0  ;;  %v10965_v49 = vpop.f32.mrb[216].mxu1  ;;  %v8680_v30 = vmul.f32 %v15220_v47, %v8643_v11 }
 0x3fb   : > { %v9249_v51 = vadd.f32 %v15249_v56, %v9212_v35  ;;  %v9213_v19 = vmul.f32 %v10992_v16, %v15240_v9  ;;  %v9081_v39 = vpop.f32.mrb[211].mxu0  ;;  %v8616_v18 = vmul.f32 %v10965_v49, %v16146_v43  ;;  %v8511_v63 = vpop.f32.mrb[217].mxu1 }
 0x3fc   : > { %v9247_v6 = vadd.f32 %v15249_v56, %v9210_v7  ;;  %v9211_v54 = vmul.f32 %v15240_v9, %v9081_v39  ;;  %v8614_v58 = vmul.f32 %v8511_v63, %v16147_v52  ;;  %v10966_v23 = vpop.f32.mrb[218].mxu1  ;;  %v8718_v7 = vadd.f32 %v15235_v0, %v8681_v5 }
 0x3fd   : > { %v9281_v45 = vadd.f32 %v9249_v51, %v8714_v4  ;;  %v9250_v61 = vadd.f32 %v15249_v56, %v9213_v19  ;;  %v8648_v42 = vadd.f32 %v15132_v20, %v8616_v18  ;;  %v8617_v2 = vmul.f32 %v10966_v23, %v16148_v41  ;;  %v8514_v27 = vpop.f32.mrb[219].mxu1  ;;  %v16149_v4 = vld [vmem:[#allocation30_spill] sm:$0xff] }
 0x3fe   : > { %v9279_v44 = vadd.f32 %v9247_v6, %v8712_v46  ;;  %v9248_v62 = vadd.f32 %v15249_v56, %v9211_v54  ;;  %v8646_v38 = vadd.f32 %v15135_v37, %v8614_v58  ;;  %v8615_v35 = vmul.f32 %v8514_v27, %v16149_v4 }
 0x3ff   : > { %v9313_v13 = vmax.f32 %v9281_v45, 0.0  ;;  %v9282_v50 = vadd.f32 %v9250_v61, %v8715_v28  ;;  %v8649_v16 = vadd.f32 %v15137_v29, %v8617_v2  ;;  %v8716_v19 = vadd.f32 %v15235_v0, %v8679_v57  ;;  %v16150_v61 = vld [vmem:[#allocation69_spill] sm:$0xff] }
 0x400   : > { %v9311_v48 = vmax.f32 %v9279_v44, 0.0  ;;  %v9280_v11 = vadd.f32 %v9248_v62, %v8713_v8  ;;  %v10995_v46 = vpop.f32.mrb[212].mxu0  ;;  %v8647_v37 = vadd.f32 %v15139_v10, %v8615_v35  ;;  %v8719_v5 = vadd.f32 %v15235_v0, %v8682_v60  ;;  %v16151_v62 = vld [vmem:[#allocation67_spill] sm:$0xff] }
 0x401   : > { %9345 = vst.msk [vmem:[%s15274_s7 + $0x10] sm:$0xff] %vm4865_vm11, %v9313_v13  ;;  %v9314_v20 = vmax.f32 %v9282_v50, 0.0  ;;  %v9216_v51 = vmul.f32 %v10995_v46, %v15240_v9  ;;  %v9094_v28 = vpop.f32.mrb[213].mxu0  ;;  %v8717_v29 = vadd.f32 %v15235_v0, %v8680_v30  ;;  %v8685_v57 = vmul.f32 %v15220_v47, %v8648_v42  ;;  %v16152_v50 = vld [vmem:[#allocation70_spill] sm:$0xff] }
 0x402   : > { %9343 = vst.msk [vmem:[%s15274_s7] sm:$0xff] %vm4865_vm11, %v9311_v48  ;;  %v9312_v8 = vmax.f32 %v9280_v11, 0.0  ;;  %v9214_v39 = vmul.f32 %v15240_v9, %v9094_v28  ;;  %v10996_v49 = vpop.f32.mrb[214].mxu0  ;;  %v8683_v54 = vmul.f32 %v15220_v47, %v8646_v38  ;;  %v10969_v18 = vpop.f32.mrb[220].mxu1  ;;  %v8686_v60 = vmul.f32 %v15220_v47, %v8649_v16 }
 0x403   : > { %9346 = vst.msk [vmem:[%s15274_s7 + $0x18] sm:$0xff] %vm4865_vm11, %v9314_v20  ;;  %v9253_v6 = vadd.f32 %v15249_v56, %v9216_v51  ;;  %v9217_v10 = vmul.f32 %v10996_v49, %v15240_v9  ;;  %v9097_v43 = vpop.f32.mrb[215].mxu0  ;;  %v8620_v30 = vmul.f32 %v10969_v18, %v16150_v61  ;;  %v8527_v52 = vpop.f32.mrb[221].mxu1  ;;  %v8684_v44 = vmul.f32 %v15220_v47, %v8647_v37  ;;  %v16154_v61 = vld [vmem:[#allocation73_spill] sm:$0xff] }
 0x404   : > { %9344 = vst.msk [vmem:[%s15274_s7 + $0x8] sm:$0xff] %vm4865_vm11, %v9312_v8  ;;  %v9251_v63 = vadd.f32 %v15249_v56, %v9214_v39  ;;  %v9215_v45 = vmul.f32 %v15240_v9, %v9097_v43  ;;  %v8618_v42 = vmul.f32 %v8527_v52, %v16151_v62  ;;  %v10970_v41 = vpop.f32.mrb[222].mxu1  ;;  %v8722_v51 = vadd.f32 %v15235_v0, %v8685_v57  ;;  %v16155_v62 = vld [vmem:[#allocation71_spill] sm:$0xff] }
 0x405   : > { %v9285_v58 = vadd.f32 %v9253_v6, %v8718_v7  ;;  %v9254_v23 = vadd.f32 %v15249_v56, %v9217_v10  ;;  %v8652_v13 = vadd.f32 %v15148_v26, %v8620_v30  ;;  %v8621_v38 = vmul.f32 %v10970_v41, %v16152_v50  ;;  %v8530_v4 = vpop.f32.mrb[223].mxu1  ;;  %v16153_v7 = vld [vmem:[#allocation68_spill] sm:$0xff]  ;;  %v16156_v50 = vld [vmem:[#allocation74_spill] sm:$0xff] }
 0x406   : > { %v9283_v2 = vadd.f32 %v9251_v63, %v8716_v19  ;;  %v9252_v27 = vadd.f32 %v15249_v56, %v9215_v45  ;;  %v8650_v11 = vadd.f32 %v15151_v53, %v8618_v42  ;;  %v8619_v46 = vmul.f32 %v8530_v4, %v16153_v7  ;;  %v16157_v7 = vld [vmem:[#allocation72_spill] sm:$0xff] }
 0x407   : > { %v9317_v35 = vmax.f32 %v9285_v58, 0.0  ;;  %v9286_v48 = vadd.f32 %v9254_v23, %v8719_v5  ;;  %v8653_v28 = vadd.f32 %v15153_v21, %v8621_v38  ;;  %v8720_v8 = vadd.f32 %v15235_v0, %v8683_v54 }
 0x408   : > { %v9315_v16 = vmax.f32 %v9283_v2, 0.0  ;;  %v9284_v20 = vadd.f32 %v9252_v27, %v8717_v29  ;;  %v10999_v19 = vpop.f32.mrb[216].mxu0  ;;  %v8651_v53 = vadd.f32 %v15155_v3, %v8619_v46  ;;  %v8723_v29 = vadd.f32 %v15235_v0, %v8686_v60 }
 0x409   : > { %9349 = vst.msk [vmem:[%s15274_s7 + $0x30] sm:$0xff] %vm4865_vm11, %v9317_v35  ;;  %v9318_v26 = vmax.f32 %v9286_v48, 0.0  ;;  %v9220_v37 = vmul.f32 %v10999_v19, %v15240_v9  ;;  %v9110_v39 = vpop.f32.mrb[217].mxu0  ;;  %v8721_v21 = vadd.f32 %v15235_v0, %v8684_v44  ;;  %v8689_v54 = vmul.f32 %v15220_v47, %v8652_v13 }
 0x40a   : > { %9347 = vst.msk [vmem:[%s15274_s7 + $0x20] sm:$0xff] %vm4865_vm11, %v9315_v16  ;;  %v9316_v5 = vmax.f32 %v9284_v20, 0.0  ;;  %v9218_v49 = vmul.f32 %v15240_v9, %v9110_v39  ;;  %v11000_v6 = vpop.f32.mrb[218].mxu0  ;;  %v8687_v10 = vmul.f32 %v15220_v47, %v8650_v11  ;;  %v10973_v18 = vpop.f32.mrb[224].mxu1  ;;  %v8690_v60 = vmul.f32 %v15220_v47, %v8653_v28 }
 0x40b   : > { %9350 = vst.msk [vmem:[%s15274_s7 + $0x38] sm:$0xff] %vm4865_vm11, %v9318_v26  ;;  %v9257_v57 = vadd.f32 %v15249_v56, %v9220_v37  ;;  %v9221_v3 = vmul.f32 %v11000_v6, %v15240_v9  ;;  %v9113_v43 = vpop.f32.mrb[219].mxu0  ;;  %v8624_v30 = vmul.f32 %v10973_v18, %v16154_v61  ;;  %v8543_v52 = vpop.f32.mrb[225].mxu1  ;;  %v8688_v44 = vmul.f32 %v15220_v47, %v8651_v53  ;;  %v16158_v18 = vld [vmem:[#allocation5_spill] sm:$0xff] }
 0x40c   : > { %9348 = vst.msk [vmem:[%s15274_s7 + $0x28] sm:$0xff] %vm4865_vm11, %v9316_v5  ;;  %v9255_v63 = vadd.f32 %v15249_v56, %v9218_v49  ;;  %v9219_v45 = vmul.f32 %v15240_v9, %v9113_v43  ;;  %v8622_v42 = vmul.f32 %v8543_v52, %v16155_v62  ;;  %v10974_v41 = vpop.f32.mrb[226].mxu1  ;;  %v8724_v37 = vadd.f32 %v15235_v0, %v8687_v10  ;;  %v16159_v52 = vld [vmem:[#allocation28_spill] sm:$0xff] }
 0x40d   : > { %v9289_v58 = vadd.f32 %v9257_v57, %v8722_v51  ;;  %v9258_v23 = vadd.f32 %v15249_v56, %v9221_v3  ;;  %v8656_v13 = vadd.f32 %v15164_v31, %v8624_v30  ;;  %v8625_v38 = vmul.f32 %v10974_v41, %v16156_v50  ;;  %v8546_v4 = vpop.f32.mrb[227].mxu1  ;;  %v16160_v41 = vld [vmem:[#allocation4_spill] sm:$0xff] }
 0x40e   : > { %v9287_v2 = vadd.f32 %v9255_v63, %v8720_v8  ;;  %v9256_v27 = vadd.f32 %v15249_v56, %v9219_v45  ;;  %v8654_v11 = vadd.f32 %v15167_v15, %v8622_v42  ;;  %v8623_v46 = vmul.f32 %v8546_v4, %v16157_v7  ;;  %v16161_v4 = vld [vmem:[#allocation3_spill] sm:$0xff] }
 0x40f   : > { %v9321_v35 = vmax.f32 %v9289_v58, 0.0  ;;  %v9290_v48 = vadd.f32 %v9258_v23, %v8723_v29  ;;  %v8726_v51 = vadd.f32 %v15235_v0, %v8689_v54  ;;  %v8657_v28 = vadd.f32 %v15169_v12, %v8625_v38 }
 0x410   : > { %v9319_v16 = vmax.f32 %v9287_v2, 0.0  ;;  %v9288_v20 = vadd.f32 %v9256_v27, %v8721_v21  ;;  %v11003_v19 = vpop.f32.mrb[220].mxu0  ;;  %v8655_v15 = vadd.f32 %v15171_v34, %v8623_v46  ;;  %v8727_v5 = vadd.f32 %v15235_v0, %v8690_v60 }
 0x411   : > { %9353 = vst.msk [vmem:[%s15274_s7 + $0x50] sm:$0xff] %vm4865_vm11, %v9321_v35  ;;  %v9322_v31 = vmax.f32 %v9290_v48, 0.0  ;;  %v9224_v26 = vmul.f32 %v11003_v19, %v15240_v9  ;;  %v9126_v8 = vpop.f32.mrb[221].mxu0  ;;  %v8725_v12 = vadd.f32 %v15235_v0, %v8688_v44  ;;  %v8693_v6 = vmul.f32 %v15220_v47, %v8656_v13 }
 0x412   : > { %9351 = vst.msk [vmem:[%s15274_s7 + $0x40] sm:$0xff] %vm4865_vm11, %v9319_v16  ;;  %v9320_v39 = vmax.f32 %v9288_v20, 0.0  ;;  %v9222_v53 = vmul.f32 %v15240_v9, %v9126_v8  ;;  %v11004_v49 = vpop.f32.mrb[222].mxu0  ;;  %v8691_v21 = vmul.f32 %v15220_v47, %v8654_v11  ;;  %v10977_v54 = vpop.f32.mrb[228].mxu1  ;;  %v8694_v3 = vmul.f32 %v15220_v47, %v8657_v28 }
 0x413   : > { %9354 = vst.msk [vmem:[%s15274_s7 + $0x58] sm:$0xff] %vm4865_vm11, %v9322_v31  ;;  %v9261_v29 = vadd.f32 %v15249_v56, %v9224_v26  ;;  %v9225_v34 = vmul.f32 %v11004_v49, %v15240_v9  ;;  %v9129_v57 = vpop.f32.mrb[223].mxu0  ;;  %v8628_v63 = vmul.f32 %v10977_v54, %v16158_v18  ;;  %v8559_v60 = vpop.f32.mrb[229].mxu1  ;;  %v8692_v30 = vmul.f32 %v15220_v47, %v8655_v15 }
 0x414   : > { %9352 = vst.msk [vmem:[%s15274_s7 + $0x48] sm:$0xff] %vm4865_vm11, %v9320_v39  ;;  %v9259_v10 = vadd.f32 %v15249_v56, %v9222_v53  ;;  %v9223_v43 = vmul.f32 %v15240_v9, %v9129_v57  ;;  %v8626_v58 = vmul.f32 %v8559_v60, %v16159_v52  ;;  %v10978_v23 = vpop.f32.mrb[230].mxu1  ;;  %v8728_v28 = vadd.f32 %v15235_v0, %v8691_v21 }
 0x415   : > { %v9293_v45 = vadd.f32 %v9261_v29, %v8726_v51  ;;  %v9262_v61 = vadd.f32 %v15249_v56, %v9225_v34  ;;  %v8660_v42 = vadd.f32 %v15180_v40, %v8628_v63  ;;  %v8629_v2 = vmul.f32 %v10978_v23, %v16160_v41  ;;  %v8562_v27 = vpop.f32.mrb[231].mxu1  ;;  %v16162_v29 = vld [vmem:[#allocation17_spill] sm:$0xff] }
 0x416   : > { %v9291_v44 = vadd.f32 %v9259_v10, %v8724_v37  ;;  %v9260_v62 = vadd.f32 %v15249_v56, %v9223_v43  ;;  %v8658_v38 = vadd.f32 %v15183_v24, %v8626_v58  ;;  %v8627_v35 = vmul.f32 %v8562_v27, %v16161_v4  ;;  %v16163_v10 = vld [vmem:[#allocation6_spill] sm:$0xff] }
 0x417   : > { %v9325_v13 = vmax.f32 %v9293_v45, 0.0  ;;  %v9294_v50 = vadd.f32 %v9262_v61, %v8727_v5  ;;  %v8661_v46 = vadd.f32 %v15185_v25, %v8629_v2  ;;  %v8730_v40 = vadd.f32 %v15235_v0, %v8693_v6  ;;  %v16164_v45 = vld [vmem:[#allocation14_spill] sm:$0xff] }
 0x418   : > { %v9323_v48 = vmax.f32 %v9291_v44, 0.0  ;;  %v9292_v11 = vadd.f32 %v9260_v62, %v8725_v12  ;;  %v11007_v7 = vpop.f32.mrb[224].mxu0  ;;  %v8659_v19 = vadd.f32 %v15187_v55, %v8627_v35  ;;  %v8731_v25 = vadd.f32 %v15235_v0, %v8694_v3  ;;  %v16165_v44 = vld [vmem:[#allocation11_spill] sm:$0xff] }
 0x419   : > { %9357 = vst.msk [vmem:[%s15274_s7 + $0x70] sm:$0xff] %vm4865_vm11, %v9325_v13  ;;  %v9326_v16 = vmax.f32 %v9294_v50, 0.0  ;;  %v9228_v20 = vmul.f32 %v11007_v7, %v15240_v9  ;;  %v9142_v51 = vpop.f32.mrb[225].mxu0  ;;  %v8697_v8 = vmul.f32 %v15220_v47, %v8660_v42  ;;  %v8729_v55 = vadd.f32 %v15235_v0, %v8692_v30 }
 0x41a   : > { %9355 = vst.msk [vmem:[%s15274_s7 + $0x60] sm:$0xff] %vm4865_vm11, %v9323_v48  ;;  %v9324_v24 = vmax.f32 %v9292_v11, 0.0  ;;  %v9226_v31 = vmul.f32 %v15240_v9, %v9142_v51  ;;  %v11008_v26 = vpop.f32.mrb[226].mxu0  ;;  %v10981_v53 = vpop.f32.mrb[232].mxu1  ;;  %v8695_v49 = vmul.f32 %v15220_v47, %v8658_v38  ;;  %v8698_v54 = vmul.f32 %v15220_v47, %v8661_v46 }
 0x41b   : > { %9358 = vst.msk [vmem:[%s15274_s7 + $0x78] sm:$0xff] %vm4865_vm11, %v9326_v16  ;;  %v9265_v37 = vadd.f32 %v15249_v56, %v9228_v20  ;;  %v9229_v15 = vmul.f32 %v11008_v26, %v15240_v9  ;;  %v9145_v39 = vpop.f32.mrb[227].mxu0  ;;  %v8632_v6 = vmul.f32 %v10981_v53, %v16162_v29  ;;  %v8575_v21 = vpop.f32.mrb[233].mxu1  ;;  %v8696_v2 = vmul.f32 %v15220_v47, %v8659_v19 }
 0x41c   : > { %9356 = vst.msk [vmem:[%s15274_s7 + $0x68] sm:$0xff] %vm4865_vm11, %v9324_v24  ;;  %v9263_v5 = vadd.f32 %v15249_v56, %v9226_v31  ;;  %v9227_v12 = vmul.f32 %v15240_v9, %v9145_v39  ;;  %v8630_v3 = vmul.f32 %v8575_v21, %v16163_v10  ;;  %v10982_v43 = vpop.f32.mrb[234].mxu1  ;;  %v8734_v35 = vadd.f32 %v15235_v0, %v8697_v8  ;;  %v16166_v24 = vld [vmem:[#allocation18_spill] sm:$0xff]  ;;  %v16167_v8 = vld [vmem:[#allocation13_spill] sm:$0xff] }
 0x41d   : > { %v9297_v34 = vadd.f32 %v9265_v37, %v8730_v40  ;;  %v9266_v57 = vadd.f32 %v15249_v56, %v9229_v15  ;;  %v8664_v60 = vadd.f32 %v15196_v36, %v8632_v6  ;;  %v8633_v61 = vmul.f32 %v10982_v43, %v16164_v45  ;;  %v8578_v30 = vpop.f32.mrb[235].mxu1 }
 0x41e   : > { %v9295_v18 = vadd.f32 %v9263_v5, %v8728_v28  ;;  %v9264_v63 = vadd.f32 %v15249_v56, %v9227_v12  ;;  %v8662_v23 = vadd.f32 %v15199_v32, %v8630_v3  ;;  %v8631_v62 = vmul.f32 %v8578_v30, %v16165_v44 }
 0x41f   : > { %v9329_v52 = vmax.f32 %v9297_v34, 0.0  ;;  %v9298_v58 = vadd.f32 %v9266_v57, %v8731_v25  ;;  %v8665_v13 = vadd.f32 %v15201_v17, %v8633_v61  ;;  %v8732_v7 = vadd.f32 %v15235_v0, %v8695_v49  ;;  %v16168_v49 = vld [vmem:[#allocation57_spill] sm:$0xff]  ;;  %v16169_v57 = vld [vmem:[#allocation42_spill] sm:$0xff] }
 0x420   : > { %v9327_v42 = vmax.f32 %v9295_v18, 0.0  ;;  %v9296_v41 = vadd.f32 %v9264_v63, %v8729_v55  ;;  %v11011_v27 = vpop.f32.mrb[228].mxu0  ;;  %v8663_v4 = vadd.f32 %v15203_v22, %v8631_v62  ;;  %v8735_v46 = vadd.f32 %v15235_v0, %v8698_v54 }
 0x421   : > { %9361 = vst.msk [vmem:[%s15274_s7 + $0x90] sm:$0xff] %vm4865_vm11, %v9329_v52  ;;  %v9330_v36 = vmax.f32 %v9298_v58, 0.0  ;;  %v9232_v50 = vmul.f32 %v11011_v27, %v15240_v9  ;;  %v9158_v38 = vpop.f32.mrb[229].mxu0  ;;  %v8733_v51 = vadd.f32 %v15235_v0, %v8696_v2  ;;  %v8701_v26 = vmul.f32 %v15220_v47, %v8664_v60 }
 0x422   : > { %9359 = vst.msk [vmem:[%s15274_s7 + $0x80] sm:$0xff] %vm4865_vm11, %v9327_v42  ;;  %v9328_v32 = vmax.f32 %v9296_v41, 0.0  ;;  %v9230_v48 = vmul.f32 %v15240_v9, %v9158_v38  ;;  %v11012_v11 = vpop.f32.mrb[230].mxu0  ;;  %v10985_v22 = vpop.f32.mrb[236].mxu1  ;;  %v8699_v3 = vmul.f32 %v15220_v47, %v8662_v23  ;;  %v8702_v60 = vmul.f32 %v15220_v47, %v8665_v13 }
 0x423   : > { %9362 = vst.msk [vmem:[%s15274_s7 + $0x98] sm:$0xff] %vm4865_vm11, %v9330_v36  ;;  %v9269_v17 = vadd.f32 %v15249_v56, %v9232_v50  ;;  %v9233_v16 = vmul.f32 %v11012_v11, %v15240_v9  ;;  %v9161_v40 = vpop.f32.mrb[231].mxu0  ;;  %v8636_v28 = vmul.f32 %v10985_v22, %v16166_v24  ;;  %v8591_v31 = vpop.f32.mrb[237].mxu1  ;;  %v8700_v52 = vmul.f32 %v15220_v47, %v8663_v4 }
 0x424   : > { %9360 = vst.msk [vmem:[%s15274_s7 + $0x88] sm:$0xff] %vm4865_vm11, %v9328_v32  ;;  %v9267_v20 = vadd.f32 %v15249_v56, %v9230_v48  ;;  %v9231_v19 = vmul.f32 %v15240_v9, %v9161_v40  ;;  %v8634_v15 = vmul.f32 %v8591_v31, %v16167_v8  ;;  %v10986_v55 = vpop.f32.mrb[238].mxu1  ;;  %v8739_v13 = vadd.f32 %v15235_v0, %v8702_v60 }
 0x425   : > { %v9301_v25 = vadd.f32 %v9269_v17, %v8734_v35  ;;  %v9270_v37 = vadd.f32 %v15249_v56, %v9233_v16  ;;  %v8668_v5 = vadd.f32 %v15212_v14, %v8636_v28  ;;  %v8637_v12 = vmul.f32 %v10986_v55, %v16168_v49  ;;  %v8594_v29 = vpop.f32.mrb[239].mxu1 }
 0x426   : > { %v9299_v39 = vadd.f32 %v9267_v20, %v8732_v7  ;;  %v9268_v53 = vadd.f32 %v15249_v56, %v9231_v19  ;;  %v8666_v34 = vadd.f32 %v15215_v1, %v8634_v15  ;;  %v8635_v54 = vmul.f32 %v8594_v29, %v16169_v57 }
 0x427   : > { %v9333_v6 = vmax.f32 %v9301_v25, 0.0  ;;  %v9302_v21 = vadd.f32 %v9270_v37, %v8735_v46  ;;  %v8669_v63 = vadd.f32 %v15222_v59, %v8637_v12  ;;  %v8738_v59 = vadd.f32 %v15235_v0, %v8701_v26 }
 0x428   : > { %v9331_v10 = vmax.f32 %v9299_v39, 0.0  ;;  %v9300_v43 = vadd.f32 %v9268_v53, %v8733_v51  ;;  %v11015_v18 = vpop.f32.mrb[232].mxu0  ;;  %v8667_v1 = vadd.f32 %v15224_v33, %v8635_v54  ;;  %v8736_v33 = vadd.f32 %v15235_v0, %v8699_v3 }
 0x429   : > { %9365 = vst.msk [vmem:[%s15274_s7 + $0xb0] sm:$0xff] %vm4865_vm11, %v9333_v6  ;;  %v9334_v14 = vmax.f32 %v9302_v21, 0.0  ;;  %v9236_v45 = vmul.f32 %v11015_v18, %v15240_v9  ;;  %v9174_v61 = vpop.f32.mrb[233].mxu0  ;;  %v8737_v38 = vadd.f32 %v15235_v0, %v8700_v52  ;;  %v8705_v35 = vmul.f32 %v15220_v47, %v8668_v5 }
 0x42a   : > { %9363 = vst.msk [vmem:[%s15274_s7 + $0xa0] sm:$0xff] %vm4865_vm11, %v9331_v10  ;;  %v9332_v30 = vmax.f32 %v9300_v43, 0.0  ;;  %v9234_v58 = vmul.f32 %v15240_v9, %v9174_v61  ;;  %v11016_v23 = vpop.f32.mrb[234].mxu0  ;;  %v8703_v17 = vmul.f32 %v15220_v47, %v8666_v34  ;;  %v8706_v40 = vmul.f32 %v15220_v47, %v8669_v63 }
 0x42b   : > { %9366 = vst.msk [vmem:[%s15274_s7 + $0xb8] sm:$0xff] %vm4865_vm11, %v9334_v14  ;;  %v9273_v44 = vadd.f32 %v15249_v56, %v9236_v45  ;;  %v9237_v62 = vmul.f32 %v11016_v23, %v15240_v9  ;;  %v9177_v42 = vpop.f32.mrb[235].mxu0  ;;  %v8704_v19 = vmul.f32 %v15220_v47, %v8667_v1  ;;  %v8742_v31 = vadd.f32 %v15235_v0, %v8705_v35 }
 0x42c   : > { %9364 = vst.msk [vmem:[%s15274_s7 + $0xa8] sm:$0xff] %vm4865_vm11, %v9332_v30  ;;  %v9271_v41 = vadd.f32 %v15249_v56, %v9234_v58  ;;  %v9235_v2 = vmul.f32 %v15240_v9, %v9177_v42  ;;  %v8740_v8 = vadd.f32 %v15235_v0, %v8703_v17  ;;  %v8743_v39 = vadd.f32 %v15235_v0, %v8706_v40 }
 0x42d   : > { %v9305_v27 = vadd.f32 %v9273_v44, %v8738_v59  ;;  %v9274_v36 = vadd.f32 %v15249_v56, %v9237_v62  ;;  %v8741_v49 = vadd.f32 %v15235_v0, %v8704_v19 }
 0x42e   : > { %v9303_v50 = vadd.f32 %v9271_v41, %v8736_v33  ;;  %v9272_v4 = vadd.f32 %v15249_v56, %v9235_v2 }
 0x42f   : > { %v9337_v32 = vmax.f32 %v9305_v27, 0.0  ;;  %v9306_v48 = vadd.f32 %v9274_v36, %v8739_v13 }
 0x430   : > { %v9335_v11 = vmax.f32 %v9303_v50, 0.0  ;;  %v9304_v7 = vadd.f32 %v9272_v4, %v8737_v38  ;;  %v11019_v46 = vpop.f32.mrb[236].mxu0 }
 0x431   : > { %9369 = vst.msk [vmem:[%s15274_s7 + $0xd0] sm:$0xff] %vm4865_vm11, %v9337_v32  ;;  %v9338_v16 = vmax.f32 %v9306_v48, 0.0  ;;  %v9240_v22 = vmul.f32 %v11019_v46, %v15240_v9  ;;  %v9190_v20 = vpop.f32.mrb[237].mxu0 }
 0x432   : > { %9367 = vst.msk [vmem:[%s15274_s7 + $0xc0] sm:$0xff] %vm4865_vm11, %v9335_v11  ;;  %v9336_v51 = vmax.f32 %v9304_v7, 0.0  ;;  %v9238_v24 = vmul.f32 %v15240_v9, %v9190_v20  ;;  %v11020_v28 = vpop.f32.mrb[238].mxu0 }
 0x433   : > { %9370 = vst.msk [vmem:[%s15274_s7 + $0xd8] sm:$0xff] %vm4865_vm11, %v9338_v16  ;;  %v9277_v25 = vadd.f32 %v15249_v56, %v9240_v22  ;;  %v9241_v26 = vmul.f32 %v11020_v28, %v15240_v9  ;;  %v9193_v37 = vpop.f32.mrb[239].mxu0 }
 0x434   : > { %9368 = vst.msk [vmem:[%s15274_s7 + $0xc8] sm:$0xff] %vm4865_vm11, %v9336_v51  ;;  %v9275_v47 = vadd.f32 %v15249_v56, %v9238_v24  ;;  %v9239_v15 = vmul.f32 %v15240_v9, %v9193_v37 }
 0x435   : > { %v9309_v55 = vadd.f32 %v9277_v25, %v8742_v31  ;;  %v9278_v53 = vadd.f32 %v15249_v56, %v9241_v26 }
 0x436   : > { %v9307_v5 = vadd.f32 %v9275_v47, %v8740_v8  ;;  %v9276_v12 = vadd.f32 %v15249_v56, %v9239_v15 }
 0x437   : > { %v9341_v29 = vmax.f32 %v9309_v55, 0.0  ;;  %v9310_v6 = vadd.f32 %v9278_v53, %v8743_v39 }
 0x438   : > { %v9339_v21 = vmax.f32 %v9307_v5, 0.0  ;;  %v9308_v34 = vadd.f32 %v9276_v12, %v8741_v49 }
 0x439   : > { %9373 = vst.msk [vmem:[%s15274_s7 + $0xf0] sm:$0xff] %vm4865_vm11, %v9341_v29  ;;  %v9342_v57 = vmax.f32 %v9310_v6, 0.0 }
 0x43a   : > { %9371 = vst.msk [vmem:[%s15274_s7 + $0xe0] sm:$0xff] %vm4865_vm11, %v9339_v21  ;;  %v9340_v9 = vmax.f32 %v9308_v34, 0.0 }
 0x43b   : > { %9374 = vst.msk [vmem:[%s15274_s7 + $0xf8] sm:$0xff] %vm4865_vm11, %v9342_v57 }
 0x43c   : > { %9372 = vst.msk [vmem:[%s15274_s7 + $0xe8] sm:$0xff] %vm4865_vm11, %v9340_v9 }
 0x43d PF: > { %s16_s21 = sadd.s32 1, %s11780_s21  }
 0x43e   : > { %p13_p4 = scmp.ge.s32.totalorder %s16_s21, 4  }
 0x440   :  { %15 = sbr.rel (!%p13_p4) target bundleno = 1 (0x1), region = 90 }

</bundles_post_ra>
